<compile_context>
chip_gen: v5e
topology: v5e:2x2
jax: 0.10.0
libtpu: 0.0.40
codegen_flags: <defaults>
</compile_context>

<pallas_src>
import math

import numpy as np
import jax
import jax.numpy as jnp
from jax.experimental import pallas as pl
from jax.experimental.pallas import tpu as pltpu


# Conv1 output rows are grouped by pooling tap; each group of 100 real rows is
# padded to 112 so every in-kernel row slice is (8,16)-sublane aligned.
_POOL1_GROUP = 112


# ----------------------------------------------------------------------------
# Constant gather / pooling selection matrices (built once, run on the MXU)
# ----------------------------------------------------------------------------
def _build_selection_matrices():
    g1 = _POOL1_GROUP

    # conv1 (8x8, stride 4, pad 2) on the 4x4 space-to-depth grid (21x21
    # blocks): 4 quadrant gathers.  Output rows are ordered so that pool1
    # becomes an elementwise max of 4 aligned row slices.
    s1 = np.zeros((4, 4 * g1, 441), np.float32)
    for bh in range(2):
        for bw in range(2):
            q = 2 * bh + bw
            for i in range(20):
                for j in range(20):
                    row = g1 * (2 * (i % 2) + (j % 2)) + 10 * (i // 2) + (j // 2)
                    s1[q, row, 21 * (i + bh) + (j + bw)] = 1.0

    # conv2 (4x4, stride 2, pad 1) over the 10x10 pooled map -> 5x5.  Zero
    # rows encode the zero padding.
    s2 = np.zeros((16, 25, g1), np.float32)
    for kh in range(4):
        for kw in range(4):
            o = 4 * kh + kw
            for i in range(5):
                for j in range(5):
                    r, c = 2 * i - 1 + kh, 2 * j - 1 + kw
                    if 0 <= r < 10 and 0 <= c < 10:
                        s2[o, 5 * i + j, 10 * r + c] = 1.0

    # pool2 (2x2/2, ceil) over 5x5 -> 3x3.  Zero rows for window overhang are
    # safe because the pooled input is post-ReLU (>= 0).
    t2 = np.zeros((4, 9, 25), np.float32)
    for d0 in range(2):
        for d1 in range(2):
            d = 2 * d0 + d1
            for p in range(3):
                for q in range(3):
                    r, c = 2 * p + d0, 2 * q + d1
                    if r < 5 and c < 5:
                        t2[d, 3 * p + q, 5 * r + c] = 1.0

    # conv3 (3x3, stride 1, pad 1) over 3x3 -> 3x3.
    s3 = np.zeros((9, 9, 9), np.float32)
    for kh in range(3):
        for kw in range(3):
            o = 3 * kh + kw
            for i in range(3):
                for j in range(3):
                    r, c = i - 1 + kh, j - 1 + kw
                    if 0 <= r < 3 and 0 <= c < 3:
                        s3[o, 3 * i + j, 3 * r + c] = 1.0

    # pool3 (2x2/2, ceil) over 3x3 -> 2x2.
    t3 = np.zeros((4, 4, 9), np.float32)
    for d0 in range(2):
        for d1 in range(2):
            d = 2 * d0 + d1
            for p in range(2):
                for q in range(2):
                    r, c = 2 * p + d0, 2 * q + d1
                    if r < 3 and c < 3:
                        t3[d, 2 * p + q, 3 * r + c] = 1.0

    return s1, s2, t2, s3, t3


# ----------------------------------------------------------------------------
# The fused Pallas kernel: one grid step == one image, everything in VMEM.
# ----------------------------------------------------------------------------
def _a2c_fused_kernel(x_ref,
                      s1_ref, w1_ref, b1_ref,
                      s2_ref, w2_ref, b2_ref, t2_ref,
                      s3_ref, w3_ref, b3_ref, t3_ref,
                      wh0_ref, bh0_ref, wa1_ref, ba1_ref, wa2_ref, ba2_ref,
                      wc0_ref, bc0_ref, wc1_ref, bc1_ref, wc2_ref, bc2_ref,
                      o_ref):
    f32 = jnp.float32
    cdt = x_ref.dtype                       # trunk MXU dtype (bf16 or f32)
    g1 = _POOL1_GROUP
    a0 = x_ref[0]                           # (441, 16) space-to-depth input

    # ---- conv1: 8x8 / s4 / p2 as 4 quadrant gathers + GEMMs, f32 accum ----
    acc = None
    for q in range(4):
        g = jnp.dot(s1_ref[q], a0, preferred_element_type=f32).astype(cdt)
        part = jnp.dot(g, w1_ref[16 * q:16 * (q + 1), :],
                       preferred_element_type=f32)
        acc = part if acc is None else acc + part
    h1 = jnp.maximum(acc + b1_ref[...], 0.0)                 # (448, 32) f32

    # ---- pool1 (2x2/2): rows are pre-grouped by pooling tap, so this is an
    #      elementwise max of four aligned row slices (no matmul) ----
    p1 = jnp.maximum(jnp.maximum(h1[0:g1, :], h1[g1:2 * g1, :]),
                     jnp.maximum(h1[2 * g1:3 * g1, :], h1[3 * g1:4 * g1, :]))
    p1 = p1.astype(cdt)                                      # (112, 32)

    # ---- conv2: 4x4 / s2 / p1 (zero padding folded into s2 rows) ----
    acc = None
    for o in range(16):
        g = jnp.dot(s2_ref[o], p1, preferred_element_type=f32).astype(cdt)
        part = jnp.dot(g, w2_ref[32 * o:32 * (o + 1), :],
                       preferred_element_type=f32)
        acc = part if acc is None else acc + part
    h2 = jnp.maximum(acc + b2_ref[...], 0.0).astype(cdt)     # (25, 64)

    # ---- pool2 (2x2/2, ceil) via tap-selection matmuls ----
    pm = None
    for d in range(4):
        t = jnp.dot(t2_ref[d], h2, preferred_element_type=f32)
        pm = t if pm is None else jnp.maximum(pm, t)
    p2 = pm.astype(cdt)                                      # (9, 64)

    # ---- conv3: 3x3 / s1 / p1 ----
    acc = None
    for o in range(9):
        g = jnp.dot(s3_ref[o], p2, preferred_element_type=f32).astype(cdt)
        part = jnp.dot(g, w3_ref[64 * o:64 * (o + 1), :],
                       preferred_element_type=f32)
        acc = part if acc is None else acc + part
    h3 = jnp.maximum(acc + b3_ref[...], 0.0).astype(cdt)     # (9, 64)

    # ---- pool3 (2x2/2, ceil) -> (4, 64) feature map ----
    pm = None
    for d in range(4):
        t = jnp.dot(t3_ref[d], h3, preferred_element_type=f32)
        pm = t if pm is None else jnp.maximum(pm, t)
    feats = pm                                               # (4, 64) f32

    # ---- heads (kept in f32; tiny).  Stage 0 = [actor0 | feature_transform];
    #      the PyTorch NCHW flatten order is folded into wh0's row order. ----
    h0 = bh0_ref[...]                                        # (1, 128)
    for r in range(4):
        h0 = h0 + jnp.dot(feats[r:r + 1, :], wh0_ref[64 * r:64 * (r + 1), :],
                          preferred_element_type=f32)
    a = jnp.tanh(h0[:, :64])                                 # actor hidden 0
    red = h0[:, 64:]                                         # feature_transform
    a = jnp.tanh(jnp.dot(a, wa1_ref[...], preferred_element_type=f32)
                 + ba1_ref[...])
    mu = jnp.dot(a, wa2_ref[...], preferred_element_type=f32) + ba2_ref[...]
    c = jnp.tanh(jnp.dot(red, wc0_ref[...], preferred_element_type=f32)
                 + bc0_ref[...])
    c = jnp.tanh(jnp.dot(c, wc1_ref[...], preferred_element_type=f32)
                 + bc1_ref[...])
    v = jnp.dot(c, wc2_ref[...], preferred_element_type=f32) + bc2_ref[...]

    # Lane-dense (1, 1, 128) output row: [mu | value | zeros].
    adim = mu.shape[1]
    o_ref[...] = jnp.zeros_like(o_ref)
    o_ref[:, :, 0:adim] = mu[None].astype(o_ref.dtype)
    o_ref[:, :, adim:adim + 1] = v[None].astype(o_ref.dtype)


# ----------------------------------------------------------------------------
# Parameters (PyTorch layout) and one-time packing into kernel layout
# ----------------------------------------------------------------------------
def init_params(key, action_dim):
    """PyTorch-layout params with default-style init (uniform +/- 1/sqrt(fan_in))."""
    def linear_init(k, fan_in, fan_out):
        k1, k2 = jax.random.split(k)
        bound = 1.0 / math.sqrt(fan_in)
        w = jax.random.uniform(k1, (fan_out, fan_in), jnp.float32, -bound, bound)
        b = jax.random.uniform(k2, (fan_out,), jnp.float32, -bound, bound)
        return w, b

    def conv_init(k, cout, cin, ksz):
        k1, k2 = jax.random.split(k)
        bound = 1.0 / math.sqrt(cin * ksz * ksz)
        w = jax.random.uniform(k1, (cout, cin, ksz, ksz), jnp.float32, -bound, bound)
        b = jax.random.uniform(k2, (cout,), jnp.float32, -bound, bound)
        return w, b

    ks = jax.random.split(key, 10)
    return {
        "conv1": conv_init(ks[0], 32, 1, 8),
        "conv2": conv_init(ks[1], 64, 32, 4),
        "conv3": conv_init(ks[2], 64, 64, 3),
        "feature_transform": linear_init(ks[3], 256, 64),
        "actor0": linear_init(ks[4], 256, 64),
        "actor1": linear_init(ks[5], 64, 64),
        "actor2": linear_init(ks[6], 64, action_dim),
        "critic0": linear_init(ks[7], 64, 64),
        "critic1": linear_init(ks[8], 64, 64),
        "critic2": linear_init(ks[9], 64, 1),
        "log_sigmas": jnp.full((action_dim,), 0.1, jnp.float32),
    }


def prepare_params(raw, compute_dtype=jnp.bfloat16):
    """Pack PyTorch-layout params + constant selection matrices for the kernel.

    Conv weights / selection matrices are stored in `compute_dtype` (bf16 by
    default) for the MXU; biases and all head parameters stay in f32.
    """
    f32 = jnp.float32
    cdt = jnp.dtype(compute_dtype)
    p = {}

    s1, s2, t2, s3, t3 = _build_selection_matrices()
    p["s1"] = jnp.asarray(s1, cdt)
    p["s2"] = jnp.asarray(s2, cdt)
    p["t2"] = jnp.asarray(t2, cdt)
    p["s3"] = jnp.asarray(s3, cdt)
    p["t3"] = jnp.asarray(t3, cdt)

    # conv1 (32,1,8,8): rows ordered (quadrant q=2*bh+bw, t=4*rh+rw).
    w1, b1 = raw["conv1"]
    p["w1"] = (w1.reshape(32, 2, 4, 2, 4).transpose(1, 3, 2, 4, 0)
                 .reshape(64, 32).astype(cdt))
    p["b1"] = b1.reshape(1, 32).astype(f32)

    # conv2 (64,32,4,4): rows ordered (offset o=4*kh+kw, cin).
    w2, b2 = raw["conv2"]
    p["w2"] = w2.transpose(2, 3, 1, 0).reshape(512, 64).astype(cdt)
    p["b2"] = b2.reshape(1, 64).astype(f32)

    # conv3 (64,64,3,3): rows ordered (offset o=3*kh+kw, cin).
    w3, b3 = raw["conv3"]
    p["w3"] = w3.transpose(2, 3, 1, 0).reshape(576, 64).astype(cdt)
    p["b3"] = b3.reshape(1, 64).astype(f32)

    # Head stage 0 = [actor0 | feature_transform]; PyTorch flattens NCHW so
    # feature index f = 4*c + r with r = 2*h + w.  Our features are stored as
    # (r, c), so reorder rows to (r major, c minor).
    wa0, ba0 = raw["actor0"]
    wft, bft = raw["feature_transform"]
    w0cat = jnp.concatenate([wa0.T, wft.T], axis=1)          # (256, 128)
    idx = (4 * np.arange(64)[None, :] + np.arange(4)[:, None]).reshape(-1)
    p["wh0"] = w0cat[idx].astype(f32)
    p["bh0"] = jnp.concatenate([ba0, bft]).reshape(1, 128).astype(f32)

    for name, (wk, bk) in (("a1", raw["actor1"]), ("a2", raw["actor2"]),
                           ("c0", raw["critic0"]), ("c1", raw["critic1"]),
                           ("c2", raw["critic2"])):
        p["w" + name] = wk.T.astype(f32)
        p["b" + name] = bk.reshape(1, -1).astype(f32)

    act_dim = p["wa2"].shape[1]
    assert act_dim + 1 <= 128, "action_dim must fit in the 128-lane output slab"
    p["log_sigmas"] = raw["log_sigmas"].astype(f32)
    return p


_PARAM_ORDER = ("s1", "w1", "b1", "s2", "w2", "b2", "t2",
                "s3", "w3", "b3", "t3",
                "wh0", "bh0", "wa1", "ba1", "wa2", "ba2",
                "wc0", "bc0", "wc1", "bc1", "wc2", "bc2")


# ----------------------------------------------------------------------------
# Forward pass
# ----------------------------------------------------------------------------
def a2c_forward(params, inputs):
    x = inputs.reshape(-1, 80, 80).astype(jnp.float32)       # Cin == 1
    n = x.shape[0]
    cdt = params["w1"].dtype

    # Expansion-free layout prep for conv1's stride-4 kernel: pad 2 and do a
    # 4x4 space-to-depth -> (N, 21*21 blocks, 16).  Pure layout plumbing.
    xp = jnp.pad(x, ((0, 0), (2, 2), (2, 2)))
    xs2d = (xp.reshape(n, 21, 4, 21, 4).transpose(0, 1, 3, 2, 4)
              .reshape(n, 441, 16).astype(cdt))

    ordered = [params[k] for k in _PARAM_ORDER]
    in_specs = [pl.BlockSpec((1, 441, 16), lambda b: (b, 0, 0))]
    for arr in ordered:
        in_specs.append(
            pl.BlockSpec(arr.shape, lambda b, _nd=arr.ndim: (0,) * _nd))

    per_image_flops = 33_000_000        # gathers + convs + pools + head
    bytes_accessed = (xs2d.size * xs2d.dtype.itemsize
                      + sum(a.size * a.dtype.itemsize for a in ordered)
                      + n * 128 * 4)

    head_out = pl.pallas_call(
        _a2c_fused_kernel,
        out_shape=jax.ShapeDtypeStruct((n, 1, 128), jnp.float32),
        grid=(n,),
        in_specs=in_specs,
        out_specs=pl.BlockSpec((1, 1, 128), lambda b: (b, 0, 0)),
        compiler_params=pltpu.CompilerParams(
            dimension_semantics=("parallel",),
            vmem_limit_bytes=32 * 1024 * 1024),
        cost_estimate=pl.CostEstimate(flops=per_image_flops * n,
                                      transcendentals=256 * n,
                                      bytes_accessed=int(bytes_accessed)),
    )(xs2d, *ordered)

    act_dim = params["log_sigmas"].shape[0]
    out2d = head_out[:, 0, :]
    mu = out2d[:, :act_dim]
    value = out2d[:, act_dim:act_dim + 1]

    # TODO(synk): torch.distributions.Normal has no Pallas equivalent; we
    # return its parameters (mu, sigma) instead of a distribution object.
    sigma = jnp.clip(jnp.exp(params["log_sigmas"]), 0.001, 50.0)
    sigma = jnp.broadcast_to(sigma, mu.shape)
    return mu, sigma, value


# ----------------------------------------------------------------------------
# Pure-XLA reference (self-check only)
# ----------------------------------------------------------------------------
def _reference_forward(raw, inputs):
    hp = jax.lax.Precision.HIGHEST
    x = inputs.reshape(-1, 1, 80, 80).astype(jnp.float32)

    def conv(x, wb, s, p):
        w, b = wb
        y = jax.lax.conv_general_dilated(
            x, w, (s, s), [(p, p), (p, p)],
            dimension_numbers=("NCHW", "OIHW", "NCHW"), precision=hp)
        return jax.nn.relu(y + b.reshape(1, -1, 1, 1))

    def pool(x):
        n, c, h, w = x.shape
        ho, wo = -(-h // 2), -(-w // 2)
        xp = jnp.pad(x, ((0, 0), (0, 0), (0, ho * 2 - h), (0, wo * 2 - w)),
                     constant_values=-jnp.inf)
        return xp.reshape(n, c, ho, 2, wo, 2).max(axis=(3, 5))

    out = pool(conv(x, raw["conv1"], 4, 2))
    out = pool(conv(out, raw["conv2"], 2, 1))
    out = pool(conv(out, raw["conv3"], 1, 1))
    feats = out.reshape(out.shape[0], -1)

    def lin(h, wb, act=None):
        w, b = wb
        y = jnp.dot(h, w.T, precision=hp) + b
        return jnp.tanh(y) if act == "tanh" else y

    h = lin(feats, raw["actor0"], "tanh")
    h = lin(h, raw["actor1"], "tanh")
    mu = lin(h, raw["actor2"])
    red = lin(feats, raw["feature_transform"])
    c = lin(red, raw["critic0"], "tanh")
    c = lin(c, raw["critic1"], "tanh")
    value = lin(c, raw["critic2"])
    return mu, value


if __name__ == "__main__":
    key = jax.random.PRNGKey(0)
    pkey, xkey = jax.random.split(key)
    action_dim = 4
    batch = 2

    raw = init_params(pkey, action_dim)
    x = jax.random.normal(xkey, (batch, 1, 80, 80), jnp.float32)
    mu_ref, val_ref = _reference_forward(raw, x)

    fwd = jax.jit(a2c_forward)

    # 1) All-f32 kernel path: tight check of the gather/packing layout.
    params_f32 = prepare_params(raw, compute_dtype=jnp.float32)
    mu32, sig32, val32 = fwd(params_f32, x)
    jax.block_until_ready((mu32, sig32, val32))
    assert mu32.shape == (batch, action_dim) and val32.shape == (batch, 1)
    assert float(jnp.max(jnp.abs(mu32 - mu_ref))) < 1e-3
    assert float(jnp.max(jnp.abs(val32 - val_ref))) < 1e-3

    # 2) Default bf16-trunk path (MXU-friendly): f32 accumulation + f32 head;
    #    expected drift from bf16 operands is ~1e-2.
    params = prepare_params(raw, compute_dtype=jnp.bfloat16)
    mu, sigma, value = fwd(params, x)
    jax.block_until_ready((mu, sigma, value))
    assert mu.shape == (batch, action_dim)
    assert sigma.shape == (batch, action_dim)
    assert value.shape == (batch, 1)
    assert bool(jnp.all(jnp.isfinite(mu))) and bool(jnp.all(jnp.isfinite(value)))
    assert float(jnp.max(jnp.abs(mu - mu_ref))) < 5e-2
    assert float(jnp.max(jnp.abs(value - val_ref))) < 5e-2

    print("KERNEL_OK")
</pallas_src>

<mosaic_0001>
module attributes {stable_mosaic.version = 11 : i64} {
  func.func @_a2c_fused_kernel(%arg0: i32, %arg1: memref<1x441x16xf32, #tpu.memory_space<vmem>>, %arg2: memref<4x448x441xf32, #tpu.memory_space<vmem>>, %arg3: memref<64x32xf32, #tpu.memory_space<vmem>>, %arg4: memref<1x32xf32, #tpu.memory_space<vmem>>, %arg5: memref<16x25x112xf32, #tpu.memory_space<vmem>>, %arg6: memref<512x64xf32, #tpu.memory_space<vmem>>, %arg7: memref<1x64xf32, #tpu.memory_space<vmem>>, %arg8: memref<4x9x25xf32, #tpu.memory_space<vmem>>, %arg9: memref<9x9x9xf32, #tpu.memory_space<vmem>>, %arg10: memref<576x64xf32, #tpu.memory_space<vmem>>, %arg11: memref<1x64xf32, #tpu.memory_space<vmem>>, %arg12: memref<4x4x9xf32, #tpu.memory_space<vmem>>, %arg13: memref<256x128xf32, #tpu.memory_space<vmem>>, %arg14: memref<1x128xf32, #tpu.memory_space<vmem>>, %arg15: memref<64x64xf32, #tpu.memory_space<vmem>>, %arg16: memref<1x64xf32, #tpu.memory_space<vmem>>, %arg17: memref<64x4xf32, #tpu.memory_space<vmem>>, %arg18: memref<1x4xf32, #tpu.memory_space<vmem>>, %arg19: memref<64x64xf32, #tpu.memory_space<vmem>>, %arg20: memref<1x64xf32, #tpu.memory_space<vmem>>, %arg21: memref<64x64xf32, #tpu.memory_space<vmem>>, %arg22: memref<1x64xf32, #tpu.memory_space<vmem>>, %arg23: memref<64x1xf32, #tpu.memory_space<vmem>>, %arg24: memref<1x1xf32, #tpu.memory_space<vmem>>, %arg25: memref<1x1x128xf32, #tpu.memory_space<vmem>>) attributes {dimension_semantics = [#tpu.dimension_semantics<parallel>], iteration_bounds = array<i64: 2>, scalar_prefetch = 0 : i64, scratch_operands = 0 : i64, tpu.core_type = #tpu.core_type<tc>, window_params = [{transform_indices = @transform_0, window_bounds = array<i64: 1, 441, 16>}, {pipeline_mode = #tpu.pipeline_mode<synchronous>, transform_indices = @transform_1, window_bounds = array<i64: 4, 448, 441>}, {pipeline_mode = #tpu.pipeline_mode<synchronous>, transform_indices = @transform_2, window_bounds = array<i64: 64, 32>}, {pipeline_mode = #tpu.pipeline_mode<synchronous>, transform_indices = @transform_3, window_bounds = array<i64: 1, 32>}, {pipeline_mode = #tpu.pipeline_mode<synchronous>, transform_indices = @transform_4, window_bounds = array<i64: 16, 25, 112>}, {pipeline_mode = #tpu.pipeline_mode<synchronous>, transform_indices = @transform_5, window_bounds = array<i64: 512, 64>}, {pipeline_mode = #tpu.pipeline_mode<synchronous>, transform_indices = @transform_6, window_bounds = array<i64: 1, 64>}, {pipeline_mode = #tpu.pipeline_mode<synchronous>, transform_indices = @transform_7, window_bounds = array<i64: 4, 9, 25>}, {pipeline_mode = #tpu.pipeline_mode<synchronous>, transform_indices = @transform_8, window_bounds = array<i64: 9, 9, 9>}, {pipeline_mode = #tpu.pipeline_mode<synchronous>, transform_indices = @transform_9, window_bounds = array<i64: 576, 64>}, {pipeline_mode = #tpu.pipeline_mode<synchronous>, transform_indices = @transform_10, window_bounds = array<i64: 1, 64>}, {pipeline_mode = #tpu.pipeline_mode<synchronous>, transform_indices = @transform_11, window_bounds = array<i64: 4, 4, 9>}, {pipeline_mode = #tpu.pipeline_mode<synchronous>, transform_indices = @transform_12, window_bounds = array<i64: 256, 128>}, {pipeline_mode = #tpu.pipeline_mode<synchronous>, transform_indices = @transform_13, window_bounds = array<i64: 1, 128>}, {pipeline_mode = #tpu.pipeline_mode<synchronous>, transform_indices = @transform_14, window_bounds = array<i64: 64, 64>}, {pipeline_mode = #tpu.pipeline_mode<synchronous>, transform_indices = @transform_15, window_bounds = array<i64: 1, 64>}, {pipeline_mode = #tpu.pipeline_mode<synchronous>, transform_indices = @transform_16, window_bounds = array<i64: 64, 4>}, {pipeline_mode = #tpu.pipeline_mode<synchronous>, transform_indices = @transform_17, window_bounds = array<i64: 1, 4>}, {pipeline_mode = #tpu.pipeline_mode<synchronous>, transform_indices = @transform_18, window_bounds = array<i64: 64, 64>}, {pipeline_mode = #tpu.pipeline_mode<synchronous>, transform_indices = @transform_19, window_bounds = array<i64: 1, 64>}, {pipeline_mode = #tpu.pipeline_mode<synchronous>, transform_indices = @transform_20, window_bounds = array<i64: 64, 64>}, {pipeline_mode = #tpu.pipeline_mode<synchronous>, transform_indices = @transform_21, window_bounds = array<i64: 1, 64>}, {pipeline_mode = #tpu.pipeline_mode<synchronous>, transform_indices = @transform_22, window_bounds = array<i64: 64, 1>}, {pipeline_mode = #tpu.pipeline_mode<synchronous>, transform_indices = @transform_23, window_bounds = array<i64: 1, 1>}, {transform_indices = @transform_24, window_bounds = array<i64: 1, 1, 128>}]} {
    %c0 = arith.constant 0 : index
    %c0_0 = arith.constant 0 : index
    %c0_1 = arith.constant 0 : index
    %0 = vector.load %arg1[%c0, %c0_0, %c0_1] : memref<1x441x16xf32, #tpu.memory_space<vmem>>, vector<1x441x16xf32>
    %1 = vector.shape_cast %0 : vector<1x441x16xf32> to vector<441x16xf32>
    %c0_2 = arith.constant 0 : index
    %c0_3 = arith.constant 0 : index
    %c0_4 = arith.constant 0 : index
    %2 = vector.load %arg2[%c0_2, %c0_3, %c0_4] : memref<4x448x441xf32, #tpu.memory_space<vmem>>, vector<1x448x441xf32>
    %3 = vector.shape_cast %2 : vector<1x448x441xf32> to vector<448x441xf32>
    %cst = arith.constant dense<0.000000e+00> : vector<448x16xf32>
    %4 = tpu.matmul %3, %1, %cst {dimension_numbers = #tpu.dot_dimension_numbers<[1], [0], [0], [1], [0, 0, 1, 1], [], []>} : vector<448x441xf32>, vector<441x16xf32>, vector<448x16xf32> -> vector<448x16xf32>
    %c0_5 = arith.constant 0 : index
    %c0_6 = arith.constant 0 : index
    %5 = vector.load %arg3[%c0_5, %c0_6] : memref<64x32xf32, #tpu.memory_space<vmem>>, vector<16x32xf32>
    %cst_7 = arith.constant dense<0.000000e+00> : vector<448x32xf32>
    %6 = tpu.matmul %4, %5, %cst_7 {dimension_numbers = #tpu.dot_dimension_numbers<[1], [0], [0], [1], [0, 0, 1, 1], [], []>} : vector<448x16xf32>, vector<16x32xf32>, vector<448x32xf32> -> vector<448x32xf32>
    %c1 = arith.constant 1 : index
    %c0_8 = arith.constant 0 : index
    %c0_9 = arith.constant 0 : index
    %7 = vector.load %arg2[%c1, %c0_8, %c0_9] : memref<4x448x441xf32, #tpu.memory_space<vmem>>, vector<1x448x441xf32>
    %8 = vector.shape_cast %7 : vector<1x448x441xf32> to vector<448x441xf32>
    %cst_10 = arith.constant dense<0.000000e+00> : vector<448x16xf32>
    %9 = tpu.matmul %8, %1, %cst_10 {dimension_numbers = #tpu.dot_dimension_numbers<[1], [0], [0], [1], [0, 0, 1, 1], [], []>} : vector<448x441xf32>, vector<441x16xf32>, vector<448x16xf32> -> vector<448x16xf32>
    %c16 = arith.constant 16 : index
    %c0_11 = arith.constant 0 : index
    %10 = vector.load %arg3[%c16, %c0_11] : memref<64x32xf32, #tpu.memory_space<vmem>>, vector<16x32xf32>
    %cst_12 = arith.constant dense<0.000000e+00> : vector<448x32xf32>
    %11 = tpu.matmul %9, %10, %cst_12 {dimension_numbers = #tpu.dot_dimension_numbers<[1], [0], [0], [1], [0, 0, 1, 1], [], []>} : vector<448x16xf32>, vector<16x32xf32>, vector<448x32xf32> -> vector<448x32xf32>
    %12 = arith.addf %6, %11 : vector<448x32xf32>
    %c2 = arith.constant 2 : index
    %c0_13 = arith.constant 0 : index
    %c0_14 = arith.constant 0 : index
    %13 = vector.load %arg2[%c2, %c0_13, %c0_14] : memref<4x448x441xf32, #tpu.memory_space<vmem>>, vector<1x448x441xf32>
    %14 = vector.shape_cast %13 : vector<1x448x441xf32> to vector<448x441xf32>
    %cst_15 = arith.constant dense<0.000000e+00> : vector<448x16xf32>
    %15 = tpu.matmul %14, %1, %cst_15 {dimension_numbers = #tpu.dot_dimension_numbers<[1], [0], [0], [1], [0, 0, 1, 1], [], []>} : vector<448x441xf32>, vector<441x16xf32>, vector<448x16xf32> -> vector<448x16xf32>
    %c32 = arith.constant 32 : index
    %c0_16 = arith.constant 0 : index
    %16 = vector.load %arg3[%c32, %c0_16] : memref<64x32xf32, #tpu.memory_space<vmem>>, vector<16x32xf32>
    %cst_17 = arith.constant dense<0.000000e+00> : vector<448x32xf32>
    %17 = tpu.matmul %15, %16, %cst_17 {dimension_numbers = #tpu.dot_dimension_numbers<[1], [0], [0], [1], [0, 0, 1, 1], [], []>} : vector<448x16xf32>, vector<16x32xf32>, vector<448x32xf32> -> vector<448x32xf32>
    %18 = arith.addf %12, %17 : vector<448x32xf32>
    %c3 = arith.constant 3 : index
    %c0_18 = arith.constant 0 : index
    %c0_19 = arith.constant 0 : index
    %19 = vector.load %arg2[%c3, %c0_18, %c0_19] : memref<4x448x441xf32, #tpu.memory_space<vmem>>, vector<1x448x441xf32>
    %20 = vector.shape_cast %19 : vector<1x448x441xf32> to vector<448x441xf32>
    %cst_20 = arith.constant dense<0.000000e+00> : vector<448x16xf32>
    %21 = tpu.matmul %20, %1, %cst_20 {dimension_numbers = #tpu.dot_dimension_numbers<[1], [0], [0], [1], [0, 0, 1, 1], [], []>} : vector<448x441xf32>, vector<441x16xf32>, vector<448x16xf32> -> vector<448x16xf32>
    %c48 = arith.constant 48 : index
    %c0_21 = arith.constant 0 : index
    %22 = vector.load %arg3[%c48, %c0_21] : memref<64x32xf32, #tpu.memory_space<vmem>>, vector<16x32xf32>
    %cst_22 = arith.constant dense<0.000000e+00> : vector<448x32xf32>
    %23 = tpu.matmul %21, %22, %cst_22 {dimension_numbers = #tpu.dot_dimension_numbers<[1], [0], [0], [1], [0, 0, 1, 1], [], []>} : vector<448x16xf32>, vector<16x32xf32>, vector<448x32xf32> -> vector<448x32xf32>
    %24 = arith.addf %18, %23 : vector<448x32xf32>
    %c0_23 = arith.constant 0 : index
    %c0_24 = arith.constant 0 : index
    %25 = vector.load %arg4[%c0_23, %c0_24] : memref<1x32xf32, #tpu.memory_space<vmem>>, vector<1x32xf32>
    %26 = vector.broadcast %25 : vector<1x32xf32> to vector<448x32xf32>
    %27 = arith.addf %24, %26 : vector<448x32xf32>
    %cst_25 = arith.constant 0.000000e+00 : f32
    %28 = vector.broadcast %cst_25 : f32 to vector<448x32xf32>
    %29 = arith.maximumf %27, %28 : vector<448x32xf32>
    %30 = vector.extract_strided_slice %29 {offsets = [0, 0], sizes = [112, 32], strides = [1, 1]} : vector<448x32xf32> to vector<112x32xf32>
    %31 = vector.extract_strided_slice %29 {offsets = [112, 0], sizes = [112, 32], strides = [1, 1]} : vector<448x32xf32> to vector<112x32xf32>
    %32 = arith.maximumf %30, %31 : vector<112x32xf32>
    %33 = vector.extract_strided_slice %29 {offsets = [224, 0], sizes = [112, 32], strides = [1, 1]} : vector<448x32xf32> to vector<112x32xf32>
    %34 = vector.extract_strided_slice %29 {offsets = [336, 0], sizes = [112, 32], strides = [1, 1]} : vector<448x32xf32> to vector<112x32xf32>
    %35 = arith.maximumf %33, %34 : vector<112x32xf32>
    %36 = arith.maximumf %32, %35 : vector<112x32xf32>
    %c0_26 = arith.constant 0 : index
    %c0_27 = arith.constant 0 : index
    %c0_28 = arith.constant 0 : index
    %37 = vector.load %arg5[%c0_26, %c0_27, %c0_28] : memref<16x25x112xf32, #tpu.memory_space<vmem>>, vector<1x25x112xf32>
    %38 = vector.shape_cast %37 : vector<1x25x112xf32> to vector<25x112xf32>
    %cst_29 = arith.constant dense<0.000000e+00> : vector<25x32xf32>
    %39 = tpu.matmul %38, %36, %cst_29 {dimension_numbers = #tpu.dot_dimension_numbers<[1], [0], [0], [1], [0, 0, 1, 1], [], []>} : vector<25x112xf32>, vector<112x32xf32>, vector<25x32xf32> -> vector<25x32xf32>
    %c0_30 = arith.constant 0 : index
    %c0_31 = arith.constant 0 : index
    %40 = vector.load %arg6[%c0_30, %c0_31] : memref<512x64xf32, #tpu.memory_space<vmem>>, vector<32x64xf32>
    %cst_32 = arith.constant dense<0.000000e+00> : vector<25x64xf32>
    %41 = tpu.matmul %39, %40, %cst_32 {dimension_numbers = #tpu.dot_dimension_numbers<[1], [0], [0], [1], [0, 0, 1, 1], [], []>} : vector<25x32xf32>, vector<32x64xf32>, vector<25x64xf32> -> vector<25x64xf32>
    %c1_33 = arith.constant 1 : index
    %c0_34 = arith.constant 0 : index
    %c0_35 = arith.constant 0 : index
    %42 = vector.load %arg5[%c1_33, %c0_34, %c0_35] : memref<16x25x112xf32, #tpu.memory_space<vmem>>, vector<1x25x112xf32>
    %43 = vector.shape_cast %42 : vector<1x25x112xf32> to vector<25x112xf32>
    %cst_36 = arith.constant dense<0.000000e+00> : vector<25x32xf32>
    %44 = tpu.matmul %43, %36, %cst_36 {dimension_numbers = #tpu.dot_dimension_numbers<[1], [0], [0], [1], [0, 0, 1, 1], [], []>} : vector<25x112xf32>, vector<112x32xf32>, vector<25x32xf32> -> vector<25x32xf32>
    %c32_37 = arith.constant 32 : index
    %c0_38 = arith.constant 0 : index
    %45 = vector.load %arg6[%c32_37, %c0_38] : memref<512x64xf32, #tpu.memory_space<vmem>>, vector<32x64xf32>
    %cst_39 = arith.constant dense<0.000000e+00> : vector<25x64xf32>
    %46 = tpu.matmul %44, %45, %cst_39 {dimension_numbers = #tpu.dot_dimension_numbers<[1], [0], [0], [1], [0, 0, 1, 1], [], []>} : vector<25x32xf32>, vector<32x64xf32>, vector<25x64xf32> -> vector<25x64xf32>
    %47 = arith.addf %41, %46 : vector<25x64xf32>
    %c2_40 = arith.constant 2 : index
    %c0_41 = arith.constant 0 : index
    %c0_42 = arith.constant 0 : index
    %48 = vector.load %arg5[%c2_40, %c0_41, %c0_42] : memref<16x25x112xf32, #tpu.memory_space<vmem>>, vector<1x25x112xf32>
    %49 = vector.shape_cast %48 : vector<1x25x112xf32> to vector<25x112xf32>
    %cst_43 = arith.constant dense<0.000000e+00> : vector<25x32xf32>
    %50 = tpu.matmul %49, %36, %cst_43 {dimension_numbers = #tpu.dot_dimension_numbers<[1], [0], [0], [1], [0, 0, 1, 1], [], []>} : vector<25x112xf32>, vector<112x32xf32>, vector<25x32xf32> -> vector<25x32xf32>
    %c64 = arith.constant 64 : index
    %c0_44 = arith.constant 0 : index
    %51 = vector.load %arg6[%c64, %c0_44] : memref<512x64xf32, #tpu.memory_space<vmem>>, vector<32x64xf32>
    %cst_45 = arith.constant dense<0.000000e+00> : vector<25x64xf32>
    %52 = tpu.matmul %50, %51, %cst_45 {dimension_numbers = #tpu.dot_dimension_numbers<[1], [0], [0], [1], [0, 0, 1, 1], [], []>} : vector<25x32xf32>, vector<32x64xf32>, vector<25x64xf32> -> vector<25x64xf32>
    %53 = arith.addf %47, %52 : vector<25x64xf32>
    %c3_46 = arith.constant 3 : index
    %c0_47 = arith.constant 0 : index
    %c0_48 = arith.constant 0 : index
    %54 = vector.load %arg5[%c3_46, %c0_47, %c0_48] : memref<16x25x112xf32, #tpu.memory_space<vmem>>, vector<1x25x112xf32>
    %55 = vector.shape_cast %54 : vector<1x25x112xf32> to vector<25x112xf32>
    %cst_49 = arith.constant dense<0.000000e+00> : vector<25x32xf32>
    %56 = tpu.matmul %55, %36, %cst_49 {dimension_numbers = #tpu.dot_dimension_numbers<[1], [0], [0], [1], [0, 0, 1, 1], [], []>} : vector<25x112xf32>, vector<112x32xf32>, vector<25x32xf32> -> vector<25x32xf32>
    %c96 = arith.constant 96 : index
    %c0_50 = arith.constant 0 : index
    %57 = vector.load %arg6[%c96, %c0_50] : memref<512x64xf32, #tpu.memory_space<vmem>>, vector<32x64xf32>
    %cst_51 = arith.constant dense<0.000000e+00> : vector<25x64xf32>
    %58 = tpu.matmul %56, %57, %cst_51 {dimension_numbers = #tpu.dot_dimension_numbers<[1], [0], [0], [1], [0, 0, 1, 1], [], []>} : vector<25x32xf32>, vector<32x64xf32>, vector<25x64xf32> -> vector<25x64xf32>
    %59 = arith.addf %53, %58 : vector<25x64xf32>
    %c4 = arith.constant 4 : index
    %c0_52 = arith.constant 0 : index
    %c0_53 = arith.constant 0 : index
    %60 = vector.load %arg5[%c4, %c0_52, %c0_53] : memref<16x25x112xf32, #tpu.memory_space<vmem>>, vector<1x25x112xf32>
    %61 = vector.shape_cast %60 : vector<1x25x112xf32> to vector<25x112xf32>
    %cst_54 = arith.constant dense<0.000000e+00> : vector<25x32xf32>
    %62 = tpu.matmul %61, %36, %cst_54 {dimension_numbers = #tpu.dot_dimension_numbers<[1], [0], [0], [1], [0, 0, 1, 1], [], []>} : vector<25x112xf32>, vector<112x32xf32>, vector<25x32xf32> -> vector<25x32xf32>
    %c128 = arith.constant 128 : index
    %c0_55 = arith.constant 0 : index
    %63 = vector.load %arg6[%c128, %c0_55] : memref<512x64xf32, #tpu.memory_space<vmem>>, vector<32x64xf32>
    %cst_56 = arith.constant dense<0.000000e+00> : vector<25x64xf32>
    %64 = tpu.matmul %62, %63, %cst_56 {dimension_numbers = #tpu.dot_dimension_numbers<[1], [0], [0], [1], [0, 0, 1, 1], [], []>} : vector<25x32xf32>, vector<32x64xf32>, vector<25x64xf32> -> vector<25x64xf32>
    %65 = arith.addf %59, %64 : vector<25x64xf32>
    %c5 = arith.constant 5 : index
    %c0_57 = arith.constant 0 : index
    %c0_58 = arith.constant 0 : index
    %66 = vector.load %arg5[%c5, %c0_57, %c0_58] : memref<16x25x112xf32, #tpu.memory_space<vmem>>, vector<1x25x112xf32>
    %67 = vector.shape_cast %66 : vector<1x25x112xf32> to vector<25x112xf32>
    %cst_59 = arith.constant dense<0.000000e+00> : vector<25x32xf32>
    %68 = tpu.matmul %67, %36, %cst_59 {dimension_numbers = #tpu.dot_dimension_numbers<[1], [0], [0], [1], [0, 0, 1, 1], [], []>} : vector<25x112xf32>, vector<112x32xf32>, vector<25x32xf32> -> vector<25x32xf32>
    %c160 = arith.constant 160 : index
    %c0_60 = arith.constant 0 : index
    %69 = vector.load %arg6[%c160, %c0_60] : memref<512x64xf32, #tpu.memory_space<vmem>>, vector<32x64xf32>
    %cst_61 = arith.constant dense<0.000000e+00> : vector<25x64xf32>
    %70 = tpu.matmul %68, %69, %cst_61 {dimension_numbers = #tpu.dot_dimension_numbers<[1], [0], [0], [1], [0, 0, 1, 1], [], []>} : vector<25x32xf32>, vector<32x64xf32>, vector<25x64xf32> -> vector<25x64xf32>
    %71 = arith.addf %65, %70 : vector<25x64xf32>
    %c6 = arith.constant 6 : index
    %c0_62 = arith.constant 0 : index
    %c0_63 = arith.constant 0 : index
    %72 = vector.load %arg5[%c6, %c0_62, %c0_63] : memref<16x25x112xf32, #tpu.memory_space<vmem>>, vector<1x25x112xf32>
    %73 = vector.shape_cast %72 : vector<1x25x112xf32> to vector<25x112xf32>
    %cst_64 = arith.constant dense<0.000000e+00> : vector<25x32xf32>
    %74 = tpu.matmul %73, %36, %cst_64 {dimension_numbers = #tpu.dot_dimension_numbers<[1], [0], [0], [1], [0, 0, 1, 1], [], []>} : vector<25x112xf32>, vector<112x32xf32>, vector<25x32xf32> -> vector<25x32xf32>
    %c192 = arith.constant 192 : index
    %c0_65 = arith.constant 0 : index
    %75 = vector.load %arg6[%c192, %c0_65] : memref<512x64xf32, #tpu.memory_space<vmem>>, vector<32x64xf32>
    %cst_66 = arith.constant dense<0.000000e+00> : vector<25x64xf32>
    %76 = tpu.matmul %74, %75, %cst_66 {dimension_numbers = #tpu.dot_dimension_numbers<[1], [0], [0], [1], [0, 0, 1, 1], [], []>} : vector<25x32xf32>, vector<32x64xf32>, vector<25x64xf32> -> vector<25x64xf32>
    %77 = arith.addf %71, %76 : vector<25x64xf32>
    %c7 = arith.constant 7 : index
    %c0_67 = arith.constant 0 : index
    %c0_68 = arith.constant 0 : index
    %78 = vector.load %arg5[%c7, %c0_67, %c0_68] : memref<16x25x112xf32, #tpu.memory_space<vmem>>, vector<1x25x112xf32>
    %79 = vector.shape_cast %78 : vector<1x25x112xf32> to vector<25x112xf32>
    %cst_69 = arith.constant dense<0.000000e+00> : vector<25x32xf32>
    %80 = tpu.matmul %79, %36, %cst_69 {dimension_numbers = #tpu.dot_dimension_numbers<[1], [0], [0], [1], [0, 0, 1, 1], [], []>} : vector<25x112xf32>, vector<112x32xf32>, vector<25x32xf32> -> vector<25x32xf32>
    %c224 = arith.constant 224 : index
    %c0_70 = arith.constant 0 : index
    %81 = vector.load %arg6[%c224, %c0_70] : memref<512x64xf32, #tpu.memory_space<vmem>>, vector<32x64xf32>
    %cst_71 = arith.constant dense<0.000000e+00> : vector<25x64xf32>
    %82 = tpu.matmul %80, %81, %cst_71 {dimension_numbers = #tpu.dot_dimension_numbers<[1], [0], [0], [1], [0, 0, 1, 1], [], []>} : vector<25x32xf32>, vector<32x64xf32>, vector<25x64xf32> -> vector<25x64xf32>
    %83 = arith.addf %77, %82 : vector<25x64xf32>
    %c8 = arith.constant 8 : index
    %c0_72 = arith.constant 0 : index
    %c0_73 = arith.constant 0 : index
    %84 = vector.load %arg5[%c8, %c0_72, %c0_73] : memref<16x25x112xf32, #tpu.memory_space<vmem>>, vector<1x25x112xf32>
    %85 = vector.shape_cast %84 : vector<1x25x112xf32> to vector<25x112xf32>
    %cst_74 = arith.constant dense<0.000000e+00> : vector<25x32xf32>
    %86 = tpu.matmul %85, %36, %cst_74 {dimension_numbers = #tpu.dot_dimension_numbers<[1], [0], [0], [1], [0, 0, 1, 1], [], []>} : vector<25x112xf32>, vector<112x32xf32>, vector<25x32xf32> -> vector<25x32xf32>
    %c256 = arith.constant 256 : index
    %c0_75 = arith.constant 0 : index
    %87 = vector.load %arg6[%c256, %c0_75] : memref<512x64xf32, #tpu.memory_space<vmem>>, vector<32x64xf32>
    %cst_76 = arith.constant dense<0.000000e+00> : vector<25x64xf32>
    %88 = tpu.matmul %86, %87, %cst_76 {dimension_numbers = #tpu.dot_dimension_numbers<[1], [0], [0], [1], [0, 0, 1, 1], [], []>} : vector<25x32xf32>, vector<32x64xf32>, vector<25x64xf32> -> vector<25x64xf32>
    %89 = arith.addf %83, %88 : vector<25x64xf32>
    %c9 = arith.constant 9 : index
    %c0_77 = arith.constant 0 : index
    %c0_78 = arith.constant 0 : index
    %90 = vector.load %arg5[%c9, %c0_77, %c0_78] : memref<16x25x112xf32, #tpu.memory_space<vmem>>, vector<1x25x112xf32>
    %91 = vector.shape_cast %90 : vector<1x25x112xf32> to vector<25x112xf32>
    %cst_79 = arith.constant dense<0.000000e+00> : vector<25x32xf32>
    %92 = tpu.matmul %91, %36, %cst_79 {dimension_numbers = #tpu.dot_dimension_numbers<[1], [0], [0], [1], [0, 0, 1, 1], [], []>} : vector<25x112xf32>, vector<112x32xf32>, vector<25x32xf32> -> vector<25x32xf32>
    %c288 = arith.constant 288 : index
    %c0_80 = arith.constant 0 : index
    %93 = vector.load %arg6[%c288, %c0_80] : memref<512x64xf32, #tpu.memory_space<vmem>>, vector<32x64xf32>
    %cst_81 = arith.constant dense<0.000000e+00> : vector<25x64xf32>
    %94 = tpu.matmul %92, %93, %cst_81 {dimension_numbers = #tpu.dot_dimension_numbers<[1], [0], [0], [1], [0, 0, 1, 1], [], []>} : vector<25x32xf32>, vector<32x64xf32>, vector<25x64xf32> -> vector<25x64xf32>
    %95 = arith.addf %89, %94 : vector<25x64xf32>
    %c10 = arith.constant 10 : index
    %c0_82 = arith.constant 0 : index
    %c0_83 = arith.constant 0 : index
    %96 = vector.load %arg5[%c10, %c0_82, %c0_83] : memref<16x25x112xf32, #tpu.memory_space<vmem>>, vector<1x25x112xf32>
    %97 = vector.shape_cast %96 : vector<1x25x112xf32> to vector<25x112xf32>
    %cst_84 = arith.constant dense<0.000000e+00> : vector<25x32xf32>
    %98 = tpu.matmul %97, %36, %cst_84 {dimension_numbers = #tpu.dot_dimension_numbers<[1], [0], [0], [1], [0, 0, 1, 1], [], []>} : vector<25x112xf32>, vector<112x32xf32>, vector<25x32xf32> -> vector<25x32xf32>
    %c320 = arith.constant 320 : index
    %c0_85 = arith.constant 0 : index
    %99 = vector.load %arg6[%c320, %c0_85] : memref<512x64xf32, #tpu.memory_space<vmem>>, vector<32x64xf32>
    %cst_86 = arith.constant dense<0.000000e+00> : vector<25x64xf32>
    %100 = tpu.matmul %98, %99, %cst_86 {dimension_numbers = #tpu.dot_dimension_numbers<[1], [0], [0], [1], [0, 0, 1, 1], [], []>} : vector<25x32xf32>, vector<32x64xf32>, vector<25x64xf32> -> vector<25x64xf32>
    %101 = arith.addf %95, %100 : vector<25x64xf32>
    %c11 = arith.constant 11 : index
    %c0_87 = arith.constant 0 : index
    %c0_88 = arith.constant 0 : index
    %102 = vector.load %arg5[%c11, %c0_87, %c0_88] : memref<16x25x112xf32, #tpu.memory_space<vmem>>, vector<1x25x112xf32>
    %103 = vector.shape_cast %102 : vector<1x25x112xf32> to vector<25x112xf32>
    %cst_89 = arith.constant dense<0.000000e+00> : vector<25x32xf32>
    %104 = tpu.matmul %103, %36, %cst_89 {dimension_numbers = #tpu.dot_dimension_numbers<[1], [0], [0], [1], [0, 0, 1, 1], [], []>} : vector<25x112xf32>, vector<112x32xf32>, vector<25x32xf32> -> vector<25x32xf32>
    %c352 = arith.constant 352 : index
    %c0_90 = arith.constant 0 : index
    %105 = vector.load %arg6[%c352, %c0_90] : memref<512x64xf32, #tpu.memory_space<vmem>>, vector<32x64xf32>
    %cst_91 = arith.constant dense<0.000000e+00> : vector<25x64xf32>
    %106 = tpu.matmul %104, %105, %cst_91 {dimension_numbers = #tpu.dot_dimension_numbers<[1], [0], [0], [1], [0, 0, 1, 1], [], []>} : vector<25x32xf32>, vector<32x64xf32>, vector<25x64xf32> -> vector<25x64xf32>
    %107 = arith.addf %101, %106 : vector<25x64xf32>
    %c12 = arith.constant 12 : index
    %c0_92 = arith.constant 0 : index
    %c0_93 = arith.constant 0 : index
    %108 = vector.load %arg5[%c12, %c0_92, %c0_93] : memref<16x25x112xf32, #tpu.memory_space<vmem>>, vector<1x25x112xf32>
    %109 = vector.shape_cast %108 : vector<1x25x112xf32> to vector<25x112xf32>
    %cst_94 = arith.constant dense<0.000000e+00> : vector<25x32xf32>
    %110 = tpu.matmul %109, %36, %cst_94 {dimension_numbers = #tpu.dot_dimension_numbers<[1], [0], [0], [1], [0, 0, 1, 1], [], []>} : vector<25x112xf32>, vector<112x32xf32>, vector<25x32xf32> -> vector<25x32xf32>
    %c384 = arith.constant 384 : index
    %c0_95 = arith.constant 0 : index
    %111 = vector.load %arg6[%c384, %c0_95] : memref<512x64xf32, #tpu.memory_space<vmem>>, vector<32x64xf32>
    %cst_96 = arith.constant dense<0.000000e+00> : vector<25x64xf32>
    %112 = tpu.matmul %110, %111, %cst_96 {dimension_numbers = #tpu.dot_dimension_numbers<[1], [0], [0], [1], [0, 0, 1, 1], [], []>} : vector<25x32xf32>, vector<32x64xf32>, vector<25x64xf32> -> vector<25x64xf32>
    %113 = arith.addf %107, %112 : vector<25x64xf32>
    %c13 = arith.constant 13 : index
    %c0_97 = arith.constant 0 : index
    %c0_98 = arith.constant 0 : index
    %114 = vector.load %arg5[%c13, %c0_97, %c0_98] : memref<16x25x112xf32, #tpu.memory_space<vmem>>, vector<1x25x112xf32>
    %115 = vector.shape_cast %114 : vector<1x25x112xf32> to vector<25x112xf32>
    %cst_99 = arith.constant dense<0.000000e+00> : vector<25x32xf32>
    %116 = tpu.matmul %115, %36, %cst_99 {dimension_numbers = #tpu.dot_dimension_numbers<[1], [0], [0], [1], [0, 0, 1, 1], [], []>} : vector<25x112xf32>, vector<112x32xf32>, vector<25x32xf32> -> vector<25x32xf32>
    %c416 = arith.constant 416 : index
    %c0_100 = arith.constant 0 : index
    %117 = vector.load %arg6[%c416, %c0_100] : memref<512x64xf32, #tpu.memory_space<vmem>>, vector<32x64xf32>
    %cst_101 = arith.constant dense<0.000000e+00> : vector<25x64xf32>
    %118 = tpu.matmul %116, %117, %cst_101 {dimension_numbers = #tpu.dot_dimension_numbers<[1], [0], [0], [1], [0, 0, 1, 1], [], []>} : vector<25x32xf32>, vector<32x64xf32>, vector<25x64xf32> -> vector<25x64xf32>
    %119 = arith.addf %113, %118 : vector<25x64xf32>
    %c14 = arith.constant 14 : index
    %c0_102 = arith.constant 0 : index
    %c0_103 = arith.constant 0 : index
    %120 = vector.load %arg5[%c14, %c0_102, %c0_103] : memref<16x25x112xf32, #tpu.memory_space<vmem>>, vector<1x25x112xf32>
    %121 = vector.shape_cast %120 : vector<1x25x112xf32> to vector<25x112xf32>
    %cst_104 = arith.constant dense<0.000000e+00> : vector<25x32xf32>
    %122 = tpu.matmul %121, %36, %cst_104 {dimension_numbers = #tpu.dot_dimension_numbers<[1], [0], [0], [1], [0, 0, 1, 1], [], []>} : vector<25x112xf32>, vector<112x32xf32>, vector<25x32xf32> -> vector<25x32xf32>
    %c448 = arith.constant 448 : index
    %c0_105 = arith.constant 0 : index
    %123 = vector.load %arg6[%c448, %c0_105] : memref<512x64xf32, #tpu.memory_space<vmem>>, vector<32x64xf32>
    %cst_106 = arith.constant dense<0.000000e+00> : vector<25x64xf32>
    %124 = tpu.matmul %122, %123, %cst_106 {dimension_numbers = #tpu.dot_dimension_numbers<[1], [0], [0], [1], [0, 0, 1, 1], [], []>} : vector<25x32xf32>, vector<32x64xf32>, vector<25x64xf32> -> vector<25x64xf32>
    %125 = arith.addf %119, %124 : vector<25x64xf32>
    %c15 = arith.constant 15 : index
    %c0_107 = arith.constant 0 : index
    %c0_108 = arith.constant 0 : index
    %126 = vector.load %arg5[%c15, %c0_107, %c0_108] : memref<16x25x112xf32, #tpu.memory_space<vmem>>, vector<1x25x112xf32>
    %127 = vector.shape_cast %126 : vector<1x25x112xf32> to vector<25x112xf32>
    %cst_109 = arith.constant dense<0.000000e+00> : vector<25x32xf32>
    %128 = tpu.matmul %127, %36, %cst_109 {dimension_numbers = #tpu.dot_dimension_numbers<[1], [0], [0], [1], [0, 0, 1, 1], [], []>} : vector<25x112xf32>, vector<112x32xf32>, vector<25x32xf32> -> vector<25x32xf32>
    %c480 = arith.constant 480 : index
    %c0_110 = arith.constant 0 : index
    %129 = vector.load %arg6[%c480, %c0_110] : memref<512x64xf32, #tpu.memory_space<vmem>>, vector<32x64xf32>
    %cst_111 = arith.constant dense<0.000000e+00> : vector<25x64xf32>
    %130 = tpu.matmul %128, %129, %cst_111 {dimension_numbers = #tpu.dot_dimension_numbers<[1], [0], [0], [1], [0, 0, 1, 1], [], []>} : vector<25x32xf32>, vector<32x64xf32>, vector<25x64xf32> -> vector<25x64xf32>
    %131 = arith.addf %125, %130 : vector<25x64xf32>
    %c0_112 = arith.constant 0 : index
    %c0_113 = arith.constant 0 : index
    %132 = vector.load %arg7[%c0_112, %c0_113] : memref<1x64xf32, #tpu.memory_space<vmem>>, vector<1x64xf32>
    %133 = vector.broadcast %132 : vector<1x64xf32> to vector<25x64xf32>
    %134 = arith.addf %131, %133 : vector<25x64xf32>
    %cst_114 = arith.constant 0.000000e+00 : f32
    %135 = vector.broadcast %cst_114 : f32 to vector<25x64xf32>
    %136 = arith.maximumf %134, %135 : vector<25x64xf32>
    %c0_115 = arith.constant 0 : index
    %c0_116 = arith.constant 0 : index
    %c0_117 = arith.constant 0 : index
    %137 = vector.load %arg8[%c0_115, %c0_116, %c0_117] : memref<4x9x25xf32, #tpu.memory_space<vmem>>, vector<1x9x25xf32>
    %138 = vector.shape_cast %137 : vector<1x9x25xf32> to vector<9x25xf32>
    %cst_118 = arith.constant dense<0.000000e+00> : vector<9x64xf32>
    %139 = tpu.matmul %138, %136, %cst_118 {dimension_numbers = #tpu.dot_dimension_numbers<[1], [0], [0], [1], [0, 0, 1, 1], [], []>} : vector<9x25xf32>, vector<25x64xf32>, vector<9x64xf32> -> vector<9x64xf32>
    %c1_119 = arith.constant 1 : index
    %c0_120 = arith.constant 0 : index
    %c0_121 = arith.constant 0 : index
    %140 = vector.load %arg8[%c1_119, %c0_120, %c0_121] : memref<4x9x25xf32, #tpu.memory_space<vmem>>, vector<1x9x25xf32>
    %141 = vector.shape_cast %140 : vector<1x9x25xf32> to vector<9x25xf32>
    %cst_122 = arith.constant dense<0.000000e+00> : vector<9x64xf32>
    %142 = tpu.matmul %141, %136, %cst_122 {dimension_numbers = #tpu.dot_dimension_numbers<[1], [0], [0], [1], [0, 0, 1, 1], [], []>} : vector<9x25xf32>, vector<25x64xf32>, vector<9x64xf32> -> vector<9x64xf32>
    %143 = arith.maximumf %139, %142 : vector<9x64xf32>
    %c2_123 = arith.constant 2 : index
    %c0_124 = arith.constant 0 : index
    %c0_125 = arith.constant 0 : index
    %144 = vector.load %arg8[%c2_123, %c0_124, %c0_125] : memref<4x9x25xf32, #tpu.memory_space<vmem>>, vector<1x9x25xf32>
    %145 = vector.shape_cast %144 : vector<1x9x25xf32> to vector<9x25xf32>
    %cst_126 = arith.constant dense<0.000000e+00> : vector<9x64xf32>
    %146 = tpu.matmul %145, %136, %cst_126 {dimension_numbers = #tpu.dot_dimension_numbers<[1], [0], [0], [1], [0, 0, 1, 1], [], []>} : vector<9x25xf32>, vector<25x64xf32>, vector<9x64xf32> -> vector<9x64xf32>
    %147 = arith.maximumf %143, %146 : vector<9x64xf32>
    %c3_127 = arith.constant 3 : index
    %c0_128 = arith.constant 0 : index
    %c0_129 = arith.constant 0 : index
    %148 = vector.load %arg8[%c3_127, %c0_128, %c0_129] : memref<4x9x25xf32, #tpu.memory_space<vmem>>, vector<1x9x25xf32>
    %149 = vector.shape_cast %148 : vector<1x9x25xf32> to vector<9x25xf32>
    %cst_130 = arith.constant dense<0.000000e+00> : vector<9x64xf32>
    %150 = tpu.matmul %149, %136, %cst_130 {dimension_numbers = #tpu.dot_dimension_numbers<[1], [0], [0], [1], [0, 0, 1, 1], [], []>} : vector<9x25xf32>, vector<25x64xf32>, vector<9x64xf32> -> vector<9x64xf32>
    %151 = arith.maximumf %147, %150 : vector<9x64xf32>
    %c0_131 = arith.constant 0 : index
    %c0_132 = arith.constant 0 : index
    %c0_133 = arith.constant 0 : index
    %152 = vector.load %arg9[%c0_131, %c0_132, %c0_133] : memref<9x9x9xf32, #tpu.memory_space<vmem>>, vector<1x9x9xf32>
    %153 = vector.shape_cast %152 : vector<1x9x9xf32> to vector<9x9xf32>
    %cst_134 = arith.constant dense<0.000000e+00> : vector<9x64xf32>
    %154 = tpu.matmul %153, %151, %cst_134 {dimension_numbers = #tpu.dot_dimension_numbers<[1], [0], [0], [1], [0, 0, 1, 1], [], []>} : vector<9x9xf32>, vector<9x64xf32>, vector<9x64xf32> -> vector<9x64xf32>
    %c0_135 = arith.constant 0 : index
    %c0_136 = arith.constant 0 : index
    %155 = vector.load %arg10[%c0_135, %c0_136] : memref<576x64xf32, #tpu.memory_space<vmem>>, vector<64x64xf32>
    %cst_137 = arith.constant dense<0.000000e+00> : vector<9x64xf32>
    %156 = tpu.matmul %154, %155, %cst_137 {dimension_numbers = #tpu.dot_dimension_numbers<[1], [0], [0], [1], [0, 0, 1, 1], [], []>} : vector<9x64xf32>, vector<64x64xf32>, vector<9x64xf32> -> vector<9x64xf32>
    %c1_138 = arith.constant 1 : index
    %c0_139 = arith.constant 0 : index
    %c0_140 = arith.constant 0 : index
    %157 = vector.load %arg9[%c1_138, %c0_139, %c0_140] : memref<9x9x9xf32, #tpu.memory_space<vmem>>, vector<1x9x9xf32>
    %158 = vector.shape_cast %157 : vector<1x9x9xf32> to vector<9x9xf32>
    %cst_141 = arith.constant dense<0.000000e+00> : vector<9x64xf32>
    %159 = tpu.matmul %158, %151, %cst_141 {dimension_numbers = #tpu.dot_dimension_numbers<[1], [0], [0], [1], [0, 0, 1, 1], [], []>} : vector<9x9xf32>, vector<9x64xf32>, vector<9x64xf32> -> vector<9x64xf32>
    %c64_142 = arith.constant 64 : index
    %c0_143 = arith.constant 0 : index
    %160 = vector.load %arg10[%c64_142, %c0_143] : memref<576x64xf32, #tpu.memory_space<vmem>>, vector<64x64xf32>
    %cst_144 = arith.constant dense<0.000000e+00> : vector<9x64xf32>
    %161 = tpu.matmul %159, %160, %cst_144 {dimension_numbers = #tpu.dot_dimension_numbers<[1], [0], [0], [1], [0, 0, 1, 1], [], []>} : vector<9x64xf32>, vector<64x64xf32>, vector<9x64xf32> -> vector<9x64xf32>
    %162 = arith.addf %156, %161 : vector<9x64xf32>
    %c2_145 = arith.constant 2 : index
    %c0_146 = arith.constant 0 : index
    %c0_147 = arith.constant 0 : index
    %163 = vector.load %arg9[%c2_145, %c0_146, %c0_147] : memref<9x9x9xf32, #tpu.memory_space<vmem>>, vector<1x9x9xf32>
    %164 = vector.shape_cast %163 : vector<1x9x9xf32> to vector<9x9xf32>
    %cst_148 = arith.constant dense<0.000000e+00> : vector<9x64xf32>
    %165 = tpu.matmul %164, %151, %cst_148 {dimension_numbers = #tpu.dot_dimension_numbers<[1], [0], [0], [1], [0, 0, 1, 1], [], []>} : vector<9x9xf32>, vector<9x64xf32>, vector<9x64xf32> -> vector<9x64xf32>
    %c128_149 = arith.constant 128 : index
    %c0_150 = arith.constant 0 : index
    %166 = vector.load %arg10[%c128_149, %c0_150] : memref<576x64xf32, #tpu.memory_space<vmem>>, vector<64x64xf32>
    %cst_151 = arith.constant dense<0.000000e+00> : vector<9x64xf32>
    %167 = tpu.matmul %165, %166, %cst_151 {dimension_numbers = #tpu.dot_dimension_numbers<[1], [0], [0], [1], [0, 0, 1, 1], [], []>} : vector<9x64xf32>, vector<64x64xf32>, vector<9x64xf32> -> vector<9x64xf32>
    %168 = arith.addf %162, %167 : vector<9x64xf32>
    %c3_152 = arith.constant 3 : index
    %c0_153 = arith.constant 0 : index
    %c0_154 = arith.constant 0 : index
    %169 = vector.load %arg9[%c3_152, %c0_153, %c0_154] : memref<9x9x9xf32, #tpu.memory_space<vmem>>, vector<1x9x9xf32>
    %170 = vector.shape_cast %169 : vector<1x9x9xf32> to vector<9x9xf32>
    %cst_155 = arith.constant dense<0.000000e+00> : vector<9x64xf32>
    %171 = tpu.matmul %170, %151, %cst_155 {dimension_numbers = #tpu.dot_dimension_numbers<[1], [0], [0], [1], [0, 0, 1, 1], [], []>} : vector<9x9xf32>, vector<9x64xf32>, vector<9x64xf32> -> vector<9x64xf32>
    %c192_156 = arith.constant 192 : index
    %c0_157 = arith.constant 0 : index
    %172 = vector.load %arg10[%c192_156, %c0_157] : memref<576x64xf32, #tpu.memory_space<vmem>>, vector<64x64xf32>
    %cst_158 = arith.constant dense<0.000000e+00> : vector<9x64xf32>
    %173 = tpu.matmul %171, %172, %cst_158 {dimension_numbers = #tpu.dot_dimension_numbers<[1], [0], [0], [1], [0, 0, 1, 1], [], []>} : vector<9x64xf32>, vector<64x64xf32>, vector<9x64xf32> -> vector<9x64xf32>
    %174 = arith.addf %168, %173 : vector<9x64xf32>
    %c4_159 = arith.constant 4 : index
    %c0_160 = arith.constant 0 : index
    %c0_161 = arith.constant 0 : index
    %175 = vector.load %arg9[%c4_159, %c0_160, %c0_161] : memref<9x9x9xf32, #tpu.memory_space<vmem>>, vector<1x9x9xf32>
    %176 = vector.shape_cast %175 : vector<1x9x9xf32> to vector<9x9xf32>
    %cst_162 = arith.constant dense<0.000000e+00> : vector<9x64xf32>
    %177 = tpu.matmul %176, %151, %cst_162 {dimension_numbers = #tpu.dot_dimension_numbers<[1], [0], [0], [1], [0, 0, 1, 1], [], []>} : vector<9x9xf32>, vector<9x64xf32>, vector<9x64xf32> -> vector<9x64xf32>
    %c256_163 = arith.constant 256 : index
    %c0_164 = arith.constant 0 : index
    %178 = vector.load %arg10[%c256_163, %c0_164] : memref<576x64xf32, #tpu.memory_space<vmem>>, vector<64x64xf32>
    %cst_165 = arith.constant dense<0.000000e+00> : vector<9x64xf32>
    %179 = tpu.matmul %177, %178, %cst_165 {dimension_numbers = #tpu.dot_dimension_numbers<[1], [0], [0], [1], [0, 0, 1, 1], [], []>} : vector<9x64xf32>, vector<64x64xf32>, vector<9x64xf32> -> vector<9x64xf32>
    %180 = arith.addf %174, %179 : vector<9x64xf32>
    %c5_166 = arith.constant 5 : index
    %c0_167 = arith.constant 0 : index
    %c0_168 = arith.constant 0 : index
    %181 = vector.load %arg9[%c5_166, %c0_167, %c0_168] : memref<9x9x9xf32, #tpu.memory_space<vmem>>, vector<1x9x9xf32>
    %182 = vector.shape_cast %181 : vector<1x9x9xf32> to vector<9x9xf32>
    %cst_169 = arith.constant dense<0.000000e+00> : vector<9x64xf32>
    %183 = tpu.matmul %182, %151, %cst_169 {dimension_numbers = #tpu.dot_dimension_numbers<[1], [0], [0], [1], [0, 0, 1, 1], [], []>} : vector<9x9xf32>, vector<9x64xf32>, vector<9x64xf32> -> vector<9x64xf32>
    %c320_170 = arith.constant 320 : index
    %c0_171 = arith.constant 0 : index
    %184 = vector.load %arg10[%c320_170, %c0_171] : memref<576x64xf32, #tpu.memory_space<vmem>>, vector<64x64xf32>
    %cst_172 = arith.constant dense<0.000000e+00> : vector<9x64xf32>
    %185 = tpu.matmul %183, %184, %cst_172 {dimension_numbers = #tpu.dot_dimension_numbers<[1], [0], [0], [1], [0, 0, 1, 1], [], []>} : vector<9x64xf32>, vector<64x64xf32>, vector<9x64xf32> -> vector<9x64xf32>
    %186 = arith.addf %180, %185 : vector<9x64xf32>
    %c6_173 = arith.constant 6 : index
    %c0_174 = arith.constant 0 : index
    %c0_175 = arith.constant 0 : index
    %187 = vector.load %arg9[%c6_173, %c0_174, %c0_175] : memref<9x9x9xf32, #tpu.memory_space<vmem>>, vector<1x9x9xf32>
    %188 = vector.shape_cast %187 : vector<1x9x9xf32> to vector<9x9xf32>
    %cst_176 = arith.constant dense<0.000000e+00> : vector<9x64xf32>
    %189 = tpu.matmul %188, %151, %cst_176 {dimension_numbers = #tpu.dot_dimension_numbers<[1], [0], [0], [1], [0, 0, 1, 1], [], []>} : vector<9x9xf32>, vector<9x64xf32>, vector<9x64xf32> -> vector<9x64xf32>
    %c384_177 = arith.constant 384 : index
    %c0_178 = arith.constant 0 : index
    %190 = vector.load %arg10[%c384_177, %c0_178] : memref<576x64xf32, #tpu.memory_space<vmem>>, vector<64x64xf32>
    %cst_179 = arith.constant dense<0.000000e+00> : vector<9x64xf32>
    %191 = tpu.matmul %189, %190, %cst_179 {dimension_numbers = #tpu.dot_dimension_numbers<[1], [0], [0], [1], [0, 0, 1, 1], [], []>} : vector<9x64xf32>, vector<64x64xf32>, vector<9x64xf32> -> vector<9x64xf32>
    %192 = arith.addf %186, %191 : vector<9x64xf32>
    %c7_180 = arith.constant 7 : index
    %c0_181 = arith.constant 0 : index
    %c0_182 = arith.constant 0 : index
    %193 = vector.load %arg9[%c7_180, %c0_181, %c0_182] : memref<9x9x9xf32, #tpu.memory_space<vmem>>, vector<1x9x9xf32>
    %194 = vector.shape_cast %193 : vector<1x9x9xf32> to vector<9x9xf32>
    %cst_183 = arith.constant dense<0.000000e+00> : vector<9x64xf32>
    %195 = tpu.matmul %194, %151, %cst_183 {dimension_numbers = #tpu.dot_dimension_numbers<[1], [0], [0], [1], [0, 0, 1, 1], [], []>} : vector<9x9xf32>, vector<9x64xf32>, vector<9x64xf32> -> vector<9x64xf32>
    %c448_184 = arith.constant 448 : index
    %c0_185 = arith.constant 0 : index
    %196 = vector.load %arg10[%c448_184, %c0_185] : memref<576x64xf32, #tpu.memory_space<vmem>>, vector<64x64xf32>
    %cst_186 = arith.constant dense<0.000000e+00> : vector<9x64xf32>
    %197 = tpu.matmul %195, %196, %cst_186 {dimension_numbers = #tpu.dot_dimension_numbers<[1], [0], [0], [1], [0, 0, 1, 1], [], []>} : vector<9x64xf32>, vector<64x64xf32>, vector<9x64xf32> -> vector<9x64xf32>
    %198 = arith.addf %192, %197 : vector<9x64xf32>
    %c8_187 = arith.constant 8 : index
    %c0_188 = arith.constant 0 : index
    %c0_189 = arith.constant 0 : index
    %199 = vector.load %arg9[%c8_187, %c0_188, %c0_189] : memref<9x9x9xf32, #tpu.memory_space<vmem>>, vector<1x9x9xf32>
    %200 = vector.shape_cast %199 : vector<1x9x9xf32> to vector<9x9xf32>
    %cst_190 = arith.constant dense<0.000000e+00> : vector<9x64xf32>
    %201 = tpu.matmul %200, %151, %cst_190 {dimension_numbers = #tpu.dot_dimension_numbers<[1], [0], [0], [1], [0, 0, 1, 1], [], []>} : vector<9x9xf32>, vector<9x64xf32>, vector<9x64xf32> -> vector<9x64xf32>
    %c512 = arith.constant 512 : index
    %c0_191 = arith.constant 0 : index
    %202 = vector.load %arg10[%c512, %c0_191] : memref<576x64xf32, #tpu.memory_space<vmem>>, vector<64x64xf32>
    %cst_192 = arith.constant dense<0.000000e+00> : vector<9x64xf32>
    %203 = tpu.matmul %201, %202, %cst_192 {dimension_numbers = #tpu.dot_dimension_numbers<[1], [0], [0], [1], [0, 0, 1, 1], [], []>} : vector<9x64xf32>, vector<64x64xf32>, vector<9x64xf32> -> vector<9x64xf32>
    %204 = arith.addf %198, %203 : vector<9x64xf32>
    %c0_193 = arith.constant 0 : index
    %c0_194 = arith.constant 0 : index
    %205 = vector.load %arg11[%c0_193, %c0_194] : memref<1x64xf32, #tpu.memory_space<vmem>>, vector<1x64xf32>
    %206 = vector.broadcast %205 : vector<1x64xf32> to vector<9x64xf32>
    %207 = arith.addf %204, %206 : vector<9x64xf32>
    %cst_195 = arith.constant 0.000000e+00 : f32
    %208 = vector.broadcast %cst_195 : f32 to vector<9x64xf32>
    %209 = arith.maximumf %207, %208 : vector<9x64xf32>
    %c0_196 = arith.constant 0 : index
    %c0_197 = arith.constant 0 : index
    %c0_198 = arith.constant 0 : index
    %210 = vector.load %arg12[%c0_196, %c0_197, %c0_198] : memref<4x4x9xf32, #tpu.memory_space<vmem>>, vector<1x4x9xf32>
    %211 = vector.shape_cast %210 : vector<1x4x9xf32> to vector<4x9xf32>
    %cst_199 = arith.constant dense<0.000000e+00> : vector<4x64xf32>
    %212 = tpu.matmul %211, %209, %cst_199 {dimension_numbers = #tpu.dot_dimension_numbers<[1], [0], [0], [1], [0, 0, 1, 1], [], []>} : vector<4x9xf32>, vector<9x64xf32>, vector<4x64xf32> -> vector<4x64xf32>
    %c1_200 = arith.constant 1 : index
    %c0_201 = arith.constant 0 : index
    %c0_202 = arith.constant 0 : index
    %213 = vector.load %arg12[%c1_200, %c0_201, %c0_202] : memref<4x4x9xf32, #tpu.memory_space<vmem>>, vector<1x4x9xf32>
    %214 = vector.shape_cast %213 : vector<1x4x9xf32> to vector<4x9xf32>
    %cst_203 = arith.constant dense<0.000000e+00> : vector<4x64xf32>
    %215 = tpu.matmul %214, %209, %cst_203 {dimension_numbers = #tpu.dot_dimension_numbers<[1], [0], [0], [1], [0, 0, 1, 1], [], []>} : vector<4x9xf32>, vector<9x64xf32>, vector<4x64xf32> -> vector<4x64xf32>
    %216 = arith.maximumf %212, %215 : vector<4x64xf32>
    %c2_204 = arith.constant 2 : index
    %c0_205 = arith.constant 0 : index
    %c0_206 = arith.constant 0 : index
    %217 = vector.load %arg12[%c2_204, %c0_205, %c0_206] : memref<4x4x9xf32, #tpu.memory_space<vmem>>, vector<1x4x9xf32>
    %218 = vector.shape_cast %217 : vector<1x4x9xf32> to vector<4x9xf32>
    %cst_207 = arith.constant dense<0.000000e+00> : vector<4x64xf32>
    %219 = tpu.matmul %218, %209, %cst_207 {dimension_numbers = #tpu.dot_dimension_numbers<[1], [0], [0], [1], [0, 0, 1, 1], [], []>} : vector<4x9xf32>, vector<9x64xf32>, vector<4x64xf32> -> vector<4x64xf32>
    %220 = arith.maximumf %216, %219 : vector<4x64xf32>
    %c3_208 = arith.constant 3 : index
    %c0_209 = arith.constant 0 : index
    %c0_210 = arith.constant 0 : index
    %221 = vector.load %arg12[%c3_208, %c0_209, %c0_210] : memref<4x4x9xf32, #tpu.memory_space<vmem>>, vector<1x4x9xf32>
    %222 = vector.shape_cast %221 : vector<1x4x9xf32> to vector<4x9xf32>
    %cst_211 = arith.constant dense<0.000000e+00> : vector<4x64xf32>
    %223 = tpu.matmul %222, %209, %cst_211 {dimension_numbers = #tpu.dot_dimension_numbers<[1], [0], [0], [1], [0, 0, 1, 1], [], []>} : vector<4x9xf32>, vector<9x64xf32>, vector<4x64xf32> -> vector<4x64xf32>
    %224 = arith.maximumf %220, %223 : vector<4x64xf32>
    %c0_212 = arith.constant 0 : index
    %c0_213 = arith.constant 0 : index
    %225 = vector.load %arg14[%c0_212, %c0_213] : memref<1x128xf32, #tpu.memory_space<vmem>>, vector<1x128xf32>
    %226 = vector.extract_strided_slice %224 {offsets = [0, 0], sizes = [1, 64], strides = [1, 1]} : vector<4x64xf32> to vector<1x64xf32>
    %c0_214 = arith.constant 0 : index
    %c0_215 = arith.constant 0 : index
    %227 = vector.load %arg13[%c0_214, %c0_215] : memref<256x128xf32, #tpu.memory_space<vmem>>, vector<64x128xf32>
    %cst_216 = arith.constant dense<0.000000e+00> : vector<1x128xf32>
    %228 = tpu.matmul %226, %227, %cst_216 {dimension_numbers = #tpu.dot_dimension_numbers<[1], [0], [0], [1], [0, 0, 1, 1], [], []>} : vector<1x64xf32>, vector<64x128xf32>, vector<1x128xf32> -> vector<1x128xf32>
    %229 = arith.addf %225, %228 : vector<1x128xf32>
    %230 = vector.extract_strided_slice %224 {offsets = [1, 0], sizes = [1, 64], strides = [1, 1]} : vector<4x64xf32> to vector<1x64xf32>
    %c64_217 = arith.constant 64 : index
    %c0_218 = arith.constant 0 : index
    %231 = vector.load %arg13[%c64_217, %c0_218] : memref<256x128xf32, #tpu.memory_space<vmem>>, vector<64x128xf32>
    %cst_219 = arith.constant dense<0.000000e+00> : vector<1x128xf32>
    %232 = tpu.matmul %230, %231, %cst_219 {dimension_numbers = #tpu.dot_dimension_numbers<[1], [0], [0], [1], [0, 0, 1, 1], [], []>} : vector<1x64xf32>, vector<64x128xf32>, vector<1x128xf32> -> vector<1x128xf32>
    %233 = arith.addf %229, %232 : vector<1x128xf32>
    %234 = vector.extract_strided_slice %224 {offsets = [2, 0], sizes = [1, 64], strides = [1, 1]} : vector<4x64xf32> to vector<1x64xf32>
    %c128_220 = arith.constant 128 : index
    %c0_221 = arith.constant 0 : index
    %235 = vector.load %arg13[%c128_220, %c0_221] : memref<256x128xf32, #tpu.memory_space<vmem>>, vector<64x128xf32>
    %cst_222 = arith.constant dense<0.000000e+00> : vector<1x128xf32>
    %236 = tpu.matmul %234, %235, %cst_222 {dimension_numbers = #tpu.dot_dimension_numbers<[1], [0], [0], [1], [0, 0, 1, 1], [], []>} : vector<1x64xf32>, vector<64x128xf32>, vector<1x128xf32> -> vector<1x128xf32>
    %237 = arith.addf %233, %236 : vector<1x128xf32>
    %238 = vector.extract_strided_slice %224 {offsets = [3, 0], sizes = [1, 64], strides = [1, 1]} : vector<4x64xf32> to vector<1x64xf32>
    %c192_223 = arith.constant 192 : index
    %c0_224 = arith.constant 0 : index
    %239 = vector.load %arg13[%c192_223, %c0_224] : memref<256x128xf32, #tpu.memory_space<vmem>>, vector<64x128xf32>
    %cst_225 = arith.constant dense<0.000000e+00> : vector<1x128xf32>
    %240 = tpu.matmul %238, %239, %cst_225 {dimension_numbers = #tpu.dot_dimension_numbers<[1], [0], [0], [1], [0, 0, 1, 1], [], []>} : vector<1x64xf32>, vector<64x128xf32>, vector<1x128xf32> -> vector<1x128xf32>
    %241 = arith.addf %237, %240 : vector<1x128xf32>
    %242 = vector.extract_strided_slice %241 {offsets = [0, 0], sizes = [1, 64], strides = [1, 1]} : vector<1x128xf32> to vector<1x64xf32>
    %243 = math.tanh %242 : vector<1x64xf32>
    %244 = vector.extract_strided_slice %241 {offsets = [0, 64], sizes = [1, 64], strides = [1, 1]} : vector<1x128xf32> to vector<1x64xf32>
    %c0_226 = arith.constant 0 : index
    %c0_227 = arith.constant 0 : index
    %245 = vector.load %arg15[%c0_226, %c0_227] : memref<64x64xf32, #tpu.memory_space<vmem>>, vector<64x64xf32>
    %cst_228 = arith.constant dense<0.000000e+00> : vector<1x64xf32>
    %246 = tpu.matmul %243, %245, %cst_228 {dimension_numbers = #tpu.dot_dimension_numbers<[1], [0], [0], [1], [0, 0, 1, 1], [], []>} : vector<1x64xf32>, vector<64x64xf32>, vector<1x64xf32> -> vector<1x64xf32>
    %c0_229 = arith.constant 0 : index
    %c0_230 = arith.constant 0 : index
    %247 = vector.load %arg16[%c0_229, %c0_230] : memref<1x64xf32, #tpu.memory_space<vmem>>, vector<1x64xf32>
    %248 = arith.addf %246, %247 : vector<1x64xf32>
    %249 = math.tanh %248 : vector<1x64xf32>
    %c0_231 = arith.constant 0 : index
    %c0_232 = arith.constant 0 : index
    %250 = vector.load %arg17[%c0_231, %c0_232] : memref<64x4xf32, #tpu.memory_space<vmem>>, vector<64x4xf32>
    %cst_233 = arith.constant dense<0.000000e+00> : vector<1x4xf32>
    %251 = tpu.matmul %249, %250, %cst_233 {dimension_numbers = #tpu.dot_dimension_numbers<[1], [0], [0], [1], [0, 0, 1, 1], [], []>} : vector<1x64xf32>, vector<64x4xf32>, vector<1x4xf32> -> vector<1x4xf32>
    %c0_234 = arith.constant 0 : index
    %c0_235 = arith.constant 0 : index
    %252 = vector.load %arg18[%c0_234, %c0_235] : memref<1x4xf32, #tpu.memory_space<vmem>>, vector<1x4xf32>
    %253 = arith.addf %251, %252 : vector<1x4xf32>
    %c0_236 = arith.constant 0 : index
    %c0_237 = arith.constant 0 : index
    %254 = vector.load %arg19[%c0_236, %c0_237] : memref<64x64xf32, #tpu.memory_space<vmem>>, vector<64x64xf32>
    %cst_238 = arith.constant dense<0.000000e+00> : vector<1x64xf32>
    %255 = tpu.matmul %244, %254, %cst_238 {dimension_numbers = #tpu.dot_dimension_numbers<[1], [0], [0], [1], [0, 0, 1, 1], [], []>} : vector<1x64xf32>, vector<64x64xf32>, vector<1x64xf32> -> vector<1x64xf32>
    %c0_239 = arith.constant 0 : index
    %c0_240 = arith.constant 0 : index
    %256 = vector.load %arg20[%c0_239, %c0_240] : memref<1x64xf32, #tpu.memory_space<vmem>>, vector<1x64xf32>
    %257 = arith.addf %255, %256 : vector<1x64xf32>
    %258 = math.tanh %257 : vector<1x64xf32>
    %c0_241 = arith.constant 0 : index
    %c0_242 = arith.constant 0 : index
    %259 = vector.load %arg21[%c0_241, %c0_242] : memref<64x64xf32, #tpu.memory_space<vmem>>, vector<64x64xf32>
    %cst_243 = arith.constant dense<0.000000e+00> : vector<1x64xf32>
    %260 = tpu.matmul %258, %259, %cst_243 {dimension_numbers = #tpu.dot_dimension_numbers<[1], [0], [0], [1], [0, 0, 1, 1], [], []>} : vector<1x64xf32>, vector<64x64xf32>, vector<1x64xf32> -> vector<1x64xf32>
    %c0_244 = arith.constant 0 : index
    %c0_245 = arith.constant 0 : index
    %261 = vector.load %arg22[%c0_244, %c0_245] : memref<1x64xf32, #tpu.memory_space<vmem>>, vector<1x64xf32>
    %262 = arith.addf %260, %261 : vector<1x64xf32>
    %263 = math.tanh %262 : vector<1x64xf32>
    %c0_246 = arith.constant 0 : index
    %c0_247 = arith.constant 0 : index
    %264 = vector.load %arg23[%c0_246, %c0_247] : memref<64x1xf32, #tpu.memory_space<vmem>>, vector<64x1xf32>
    %cst_248 = arith.constant dense<0.000000e+00> : vector<1x1xf32>
    %265 = tpu.matmul %263, %264, %cst_248 {dimension_numbers = #tpu.dot_dimension_numbers<[1], [0], [0], [1], [0, 0, 1, 1], [], []>} : vector<1x64xf32>, vector<64x1xf32>, vector<1x1xf32> -> vector<1x1xf32>
    %c0_249 = arith.constant 0 : index
    %c0_250 = arith.constant 0 : index
    %266 = vector.load %arg24[%c0_249, %c0_250] : memref<1x1xf32, #tpu.memory_space<vmem>>, vector<1x1xf32>
    %267 = arith.addf %265, %266 : vector<1x1xf32>
    %cst_251 = arith.constant 0.000000e+00 : f32
    %268 = vector.broadcast %cst_251 : f32 to vector<1x1x128xf32>
    %c0_252 = arith.constant 0 : index
    %c0_253 = arith.constant 0 : index
    %c0_254 = arith.constant 0 : index
    %269 = vector.load %arg25[%c0_252, %c0_253, %c0_254] : memref<1x1x128xf32, #tpu.memory_space<vmem>>, vector<1x1x128xf32>
    tpu.vector_store %arg25[%c0_252, %c0_253, %c0_254], %268 {strides = array<i32>} : memref<1x1x128xf32, #tpu.memory_space<vmem>>, vector<1x1x128xf32>,
    %270 = vector.shape_cast %253 : vector<1x4xf32> to vector<1x1x4xf32>
    %c0_255 = arith.constant 0 : index
    %c0_256 = arith.constant 0 : index
    %c0_257 = arith.constant 0 : index
    %271 = vector.load %arg25[%c0_255, %c0_256, %c0_257] : memref<1x1x128xf32, #tpu.memory_space<vmem>>, vector<1x1x4xf32>
    tpu.vector_store %arg25[%c0_255, %c0_256, %c0_257], %270 {strides = array<i32>} : memref<1x1x128xf32, #tpu.memory_space<vmem>>, vector<1x1x4xf32>,
    %272 = vector.shape_cast %267 : vector<1x1xf32> to vector<1x1x1xf32>
    %c0_258 = arith.constant 0 : index
    %c0_259 = arith.constant 0 : index
    %c4_260 = arith.constant 4 : index
    %273 = vector.load %arg25[%c0_258, %c0_259, %c4_260] : memref<1x1x128xf32, #tpu.memory_space<vmem>>, vector<1x1x1xf32>
    tpu.vector_store %arg25[%c0_258, %c0_259, %c4_260], %272 {strides = array<i32>} : memref<1x1x128xf32, #tpu.memory_space<vmem>>, vector<1x1x1xf32>,
    return
  }
  func.func @transform_0(%arg0: i32) -> (i32, i32, i32) {
    %c0_i32 = arith.constant 0 : i32
    %c0_i32_0 = arith.constant 0 : i32
    %c0_i32_1 = arith.constant 0 : i32
    return %arg0, %c0_i32, %c0_i32_0 : i32, i32, i32
  }
  func.func @transform_1(%arg0: i32) -> (i32, i32, i32) {
    %c0_i32 = arith.constant 0 : i32
    %c0_i32_0 = arith.constant 0 : i32
    %c0_i32_1 = arith.constant 0 : i32
    %c0_i32_2 = arith.constant 0 : i32
    return %c0_i32, %c0_i32_0, %c0_i32_1 : i32, i32, i32
  }
  func.func @transform_2(%arg0: i32) -> (i32, i32) {
    %c0_i32 = arith.constant 0 : i32
    %c0_i32_0 = arith.constant 0 : i32
    %c0_i32_1 = arith.constant 0 : i32
    return %c0_i32, %c0_i32_0 : i32, i32
  }
  func.func @transform_3(%arg0: i32) -> (i32, i32) {
    %c0_i32 = arith.constant 0 : i32
    %c0_i32_0 = arith.constant 0 : i32
    %c0_i32_1 = arith.constant 0 : i32
    return %c0_i32, %c0_i32_0 : i32, i32
  }
  func.func @transform_4(%arg0: i32) -> (i32, i32, i32) {
    %c0_i32 = arith.constant 0 : i32
    %c0_i32_0 = arith.constant 0 : i32
    %c0_i32_1 = arith.constant 0 : i32
    %c0_i32_2 = arith.constant 0 : i32
    return %c0_i32, %c0_i32_0, %c0_i32_1 : i32, i32, i32
  }
  func.func @transform_5(%arg0: i32) -> (i32, i32) {
    %c0_i32 = arith.constant 0 : i32
    %c0_i32_0 = arith.constant 0 : i32
    %c0_i32_1 = arith.constant 0 : i32
    return %c0_i32, %c0_i32_0 : i32, i32
  }
  func.func @transform_6(%arg0: i32) -> (i32, i32) {
    %c0_i32 = arith.constant 0 : i32
    %c0_i32_0 = arith.constant 0 : i32
    %c0_i32_1 = arith.constant 0 : i32
    return %c0_i32, %c0_i32_0 : i32, i32
  }
  func.func @transform_7(%arg0: i32) -> (i32, i32, i32) {
    %c0_i32 = arith.constant 0 : i32
    %c0_i32_0 = arith.constant 0 : i32
    %c0_i32_1 = arith.constant 0 : i32
    %c0_i32_2 = arith.constant 0 : i32
    return %c0_i32, %c0_i32_0, %c0_i32_1 : i32, i32, i32
  }
  func.func @transform_8(%arg0: i32) -> (i32, i32, i32) {
    %c0_i32 = arith.constant 0 : i32
    %c0_i32_0 = arith.constant 0 : i32
    %c0_i32_1 = arith.constant 0 : i32
    %c0_i32_2 = arith.constant 0 : i32
    return %c0_i32, %c0_i32_0, %c0_i32_1 : i32, i32, i32
  }
  func.func @transform_9(%arg0: i32) -> (i32, i32) {
    %c0_i32 = arith.constant 0 : i32
    %c0_i32_0 = arith.constant 0 : i32
    %c0_i32_1 = arith.constant 0 : i32
    return %c0_i32, %c0_i32_0 : i32, i32
  }
  func.func @transform_10(%arg0: i32) -> (i32, i32) {
    %c0_i32 = arith.constant 0 : i32
    %c0_i32_0 = arith.constant 0 : i32
    %c0_i32_1 = arith.constant 0 : i32
    return %c0_i32, %c0_i32_0 : i32, i32
  }
  func.func @transform_11(%arg0: i32) -> (i32, i32, i32) {
    %c0_i32 = arith.constant 0 : i32
    %c0_i32_0 = arith.constant 0 : i32
    %c0_i32_1 = arith.constant 0 : i32
    %c0_i32_2 = arith.constant 0 : i32
    return %c0_i32, %c0_i32_0, %c0_i32_1 : i32, i32, i32
  }
  func.func @transform_12(%arg0: i32) -> (i32, i32) {
    %c0_i32 = arith.constant 0 : i32
    %c0_i32_0 = arith.constant 0 : i32
    %c0_i32_1 = arith.constant 0 : i32
    return %c0_i32, %c0_i32_0 : i32, i32
  }
  func.func @transform_13(%arg0: i32) -> (i32, i32) {
    %c0_i32 = arith.constant 0 : i32
    %c0_i32_0 = arith.constant 0 : i32
    %c0_i32_1 = arith.constant 0 : i32
    return %c0_i32, %c0_i32_0 : i32, i32
  }
  func.func @transform_14(%arg0: i32) -> (i32, i32) {
    %c0_i32 = arith.constant 0 : i32
    %c0_i32_0 = arith.constant 0 : i32
    %c0_i32_1 = arith.constant 0 : i32
    return %c0_i32, %c0_i32_0 : i32, i32
  }
  func.func @transform_15(%arg0: i32) -> (i32, i32) {
    %c0_i32 = arith.constant 0 : i32
    %c0_i32_0 = arith.constant 0 : i32
    %c0_i32_1 = arith.constant 0 : i32
    return %c0_i32, %c0_i32_0 : i32, i32
  }
  func.func @transform_16(%arg0: i32) -> (i32, i32) {
    %c0_i32 = arith.constant 0 : i32
    %c0_i32_0 = arith.constant 0 : i32
    %c0_i32_1 = arith.constant 0 : i32
    return %c0_i32, %c0_i32_0 : i32, i32
  }
  func.func @transform_17(%arg0: i32) -> (i32, i32) {
    %c0_i32 = arith.constant 0 : i32
    %c0_i32_0 = arith.constant 0 : i32
    %c0_i32_1 = arith.constant 0 : i32
    return %c0_i32, %c0_i32_0 : i32, i32
  }
  func.func @transform_18(%arg0: i32) -> (i32, i32) {
    %c0_i32 = arith.constant 0 : i32
    %c0_i32_0 = arith.constant 0 : i32
    %c0_i32_1 = arith.constant 0 : i32
    return %c0_i32, %c0_i32_0 : i32, i32
  }
  func.func @transform_19(%arg0: i32) -> (i32, i32) {
    %c0_i32 = arith.constant 0 : i32
    %c0_i32_0 = arith.constant 0 : i32
    %c0_i32_1 = arith.constant 0 : i32
    return %c0_i32, %c0_i32_0 : i32, i32
  }
  func.func @transform_20(%arg0: i32) -> (i32, i32) {
    %c0_i32 = arith.constant 0 : i32
    %c0_i32_0 = arith.constant 0 : i32
    %c0_i32_1 = arith.constant 0 : i32
    return %c0_i32, %c0_i32_0 : i32, i32
  }
  func.func @transform_21(%arg0: i32) -> (i32, i32) {
    %c0_i32 = arith.constant 0 : i32
    %c0_i32_0 = arith.constant 0 : i32
    %c0_i32_1 = arith.constant 0 : i32
    return %c0_i32, %c0_i32_0 : i32, i32
  }
  func.func @transform_22(%arg0: i32) -> (i32, i32) {
    %c0_i32 = arith.constant 0 : i32
    %c0_i32_0 = arith.constant 0 : i32
    %c0_i32_1 = arith.constant 0 : i32
    return %c0_i32, %c0_i32_0 : i32, i32
  }
  func.func @transform_23(%arg0: i32) -> (i32, i32) {
    %c0_i32 = arith.constant 0 : i32
    %c0_i32_0 = arith.constant 0 : i32
    %c0_i32_1 = arith.constant 0 : i32
    return %c0_i32, %c0_i32_0 : i32, i32
  }
  func.func @transform_24(%arg0: i32) -> (i32, i32, i32) {
    %c0_i32 = arith.constant 0 : i32
    %c0_i32_0 = arith.constant 0 : i32
    %c0_i32_1 = arith.constant 0 : i32
    return %arg0, %c0_i32, %c0_i32_0 : i32, i32, i32
  }
}

</mosaic_0001>

<bundles_post_ra>
// kernel: a2c_forward.1
= control target key start
LH: loop header
LB: loop body
LE: loop exit
PB: predicated region body
PF: predicated region fallthrough
CT: control target
= control target key end

     0   :  { %s11446_s27 = smov 0   ;;  %s18556_s0 = inlined_call_operand.vmem [shape: f32[2,441,16], index: 0, kind: input, shape index: {}]   ;;  %s18557_s1 = inlined_call_operand.vmem [shape: f32[4,448,441], index: 1, kind: input, shape index: {}]   ;;  %s18558_s2 = inlined_call_operand.vmem [shape: f32[64,32], index: 2, kind: input, shape index: {}]   ;;  %s18559_s3 = inlined_call_operand.vmem [shape: f32[1,32], index: 3, kind: input, shape index: {}]   ;;  %s18560_s4 = inlined_call_operand.vmem [shape: f32[16,25,112], index: 4, kind: input, shape index: {}]   ;;  %s18561_s5 = inlined_call_operand.vmem [shape: f32[512,64], index: 5, kind: input, shape index: {}]   ;;  %s18562_s6 = inlined_call_operand.vmem [shape: f32[1,64], index: 6, kind: input, shape index: {}]   ;;  %s18563_s7 = inlined_call_operand.vmem [shape: f32[4,9,25], index: 7, kind: input, shape index: {}]   ;;  %s18564_s8 = inlined_call_operand.vmem [shape: f32[9,9,9], index: 8, kind: input, shape index: {}]   ;;  %s18565_s9 = inlined_call_operand.vmem [shape: f32[576,64], index: 9, kind: input, shape index: {}]   ;;  %s18566_s10 = inlined_call_operand.vmem [shape: f32[1,64], index: 10, kind: input, shape index: {}]   ;;  %s18567_s11 = inlined_call_operand.vmem [shape: f32[4,4,9], index: 11, kind: input, shape index: {}]   ;;  %s18568_s12 = inlined_call_operand.vmem [shape: f32[256,128], index: 12, kind: input, shape index: {}]   ;;  %s18569_s13 = inlined_call_operand.vmem [shape: f32[1,128], index: 13, kind: input, shape index: {}]   ;;  %s18570_s14 = inlined_call_operand.vmem [shape: f32[64,64], index: 14, kind: input, shape index: {}]   ;;  %s18571_s15 = inlined_call_operand.vmem [shape: f32[1,64], index: 15, kind: input, shape index: {}]   ;;  %s18572_s16 = inlined_call_operand.vmem [shape: f32[64,4], index: 16, kind: input, shape index: {}]   ;;  %s18573_s17 = inlined_call_operand.vmem [shape: f32[1,4], index: 17, kind: input, shape index: {}]   ;;  %s18574_s18 = inlined_call_operand.vmem [shape: f32[64,64], index: 18, kind: input, shape index: {}]   ;;  %s18575_s19 = inlined_call_operand.vmem [shape: f32[1,64], index: 19, kind: input, shape index: {}]   ;;  %s18576_s20 = inlined_call_operand.vmem [shape: f32[64,64], index: 20, kind: input, shape index: {}]   ;;  %s18577_s21 = inlined_call_operand.vmem [shape: f32[1,64], index: 21, kind: input, shape index: {}]   ;;  %s18578_s22 = inlined_call_operand.vmem [shape: f32[64,1], index: 22, kind: input, shape index: {}]   ;;  %s18579_s23 = inlined_call_operand.<no memory space> [shape: f32[1,1], index: 23, kind: input, shape index: {}]   ;;  %s18580_s24 = inlined_call_operand.vmem [shape: f32[2,1,128], index: 24, kind: output, shape index: {}]  }
   0x1   :  { %18589 = sst [smem:[#allocation186_spill]] %s18556_s0  ;;  %v29_v0 = vstv %s18579_s23 }
   0x2   :  { %18590 = sst [smem:[#allocation187_spill]] %s18557_s1  ;;  %30 = vst [vmem:[#allocation2] sm:$0x1] %v29_v0 }
   0x3   :  { %18591 = sst [smem:[#allocation188_spill]] %s18558_s2 }
   0x4   :  { %18592 = sst [smem:[#allocation189_spill]] %s18559_s3 }
   0x5   :  { %18593 = sst [smem:[#allocation190_spill]] %s18560_s4 }
   0x6   :  { %18594 = sst [smem:[#allocation191_spill]] %s18561_s5 }
   0x7   :  { %18595 = sst [smem:[#allocation192_spill]] %s18562_s6 }
   0x8   :  { %18596 = sst [smem:[#allocation193_spill]] %s18563_s7 }
   0x9   :  { %18597 = sst [smem:[#allocation194_spill]] %s18564_s8 }
   0xa LB: > { %s9785_s28 = sadd.s32 4294967295, %s11313_s27   ;;  %p9789_p0 = scmp.ge.s32.totalorder %s11313_s27, 1  ;;  %s11313_s27 = sphi %s11446_s27, %s36_s27  }
   0xb   : > { %p664_p1 = scmp.lt.s32.totalorder %s11313_s27, 3 }
   0xd   : > { %p665_p2 = pnand %p9789_p0, %p664_p1 }
   0xf   : > { %668 = sbr.rel (%p665_p2) target bundleno = 4881 (0x1311), region = 116 }
  0x14   : > { %p728_p3 = scmp.lt.s32.totalorder %s9785_s28, 1  ;;  %s18598_s29 = sld [smem:[#allocation186_spill]]  ;;  %vm1185_vm0 = vcmask 1040384   ;;  %vm1016_vm1 = vcmask 465920   ;;  %vm3066_vm2 = vcmask 130048   ;;  %vm7023_vm3 = vcmask 916480  }
  0x15   : > { %s18599_s3 = sld [smem:[#allocation187_spill]]  ;;  %vm7119_vm4 = vcmask 261120   ;;  %vm8546_vm5 = vcmask 203776   ;;  %vm8683_vm6 = vcmask 72704   ;;  %vm8764_vm7 = vcmask 523264   ;;  %s11317_s4 = smov 4  }
  0x16   : > { %s19214_s28 = smov (!%p728_p3, %s9785_s28), 1  ;;  %s18646_s2 = sld [smem:[#allocation188_spill]]  ;;  %vm9730_vm8 = vcmask 24576   ;;  %vm9736_vm9 = vcmask 32800  }
  0x17   : > { %s11220_s23 = smul.u32 448, %s19214_s28  ;;  %s19070_s30 = sld [smem:[#allocation189_spill]] }
  0x18   : > { %s19187_s6 = sld [smem:[#allocation191_spill]] }
  0x19   : > { %s19209_s26 = sld [smem:[#allocation190_spill]] }
  0x1a   : > { %s11460_s0 = scalar_lea.vmem %s18598_s29, %s11220_s23  ;;  %s19210_s1 = sld [smem:[#allocation192_spill]] }
  0x1b   : > { %v11463_v1 = vld [vmem:[%s11460_s0 + $0x78] sm:$0xff]  ;;  %v11477_v5 = vld [vmem:[%s11460_s0 + $0x70] sm:$0xff]  ;;  %v11492_v9 = vld [vmem:[%s11460_s0 + $0x68] sm:$0xff]  ;;  %s19212_s25 = sld [smem:[#allocation194_spill]] }
  0x1c   : > { %v11466_v2 = vld [vmem:[%s11460_s0 + $0xf8] sm:$0xff]  ;;  %1189 = vmatpush.msra.mxu0 %v11463_v1  ;;  %v11480_v6 = vld [vmem:[%s11460_s0 + $0xf0] sm:$0xff]  ;;  %v11497_v10 = vld [vmem:[%s11460_s0 + $0xe8] sm:$0xff] }
  0x1d   : > { %v11469_v3 = vld [vmem:[%s11460_s0 + $0x178] sm:$0xff]  ;;  %1374 = vmatpush.msra.mxu1 %v11466_v2  ;;  %v11486_v7 = vld [vmem:[%s11460_s0 + $0x170] sm:$0xff]  ;;  %v11500_v11 = vld [vmem:[%s11460_s0 + $0x168] sm:$0xff] }
  0x1e   : > { %v11474_v4 = vld [vmem:[%s11460_s0 + $0x1b8] sm:$0x1]  ;;  %1559 = vmatpush.msra.mxu2 %v11469_v3  ;;  %v11489_v8 = vld [vmem:[%s11460_s0 + $0x1b0] sm:$0xff]  ;;  %1190 = vmatpush.msra.mxu0 %v11477_v5  ;;  %v11503_v12 = vld [vmem:[%s11460_s0 + $0x1a8] sm:$0xff] }
  0x1f   : > { %9791 = vmatpush.msk.msra.mxu3 %vm1185_vm0, %v11474_v4  ;;  %1375 = vmatpush.msra.mxu1 %v11480_v6  ;;  %v11508_v13 = vld [vmem:[%s11460_s0 + $0x60] sm:$0xff]  ;;  %v11524_v17 = vld [vmem:[%s11460_s0 + $0x58] sm:$0xff]  ;;  %v11540_v21 = vld [vmem:[%s11460_s0 + $0x50] sm:$0xff] }
  0x20   : > { %1560 = vmatpush.msra.mxu2 %v11486_v7  ;;  %v11511_v14 = vld [vmem:[%s11460_s0 + $0xe0] sm:$0xff]  ;;  %1191 = vmatpush.msra.mxu0 %v11492_v9  ;;  %v11527_v18 = vld [vmem:[%s11460_s0 + $0xd8] sm:$0xff]  ;;  %v11543_v22 = vld [vmem:[%s11460_s0 + $0xd0] sm:$0xff] }
  0x21   : > { %1753 = vmatpush.msra.mxu3 %v11489_v8  ;;  %1376 = vmatpush.msra.mxu1 %v11497_v10  ;;  %v11516_v15 = vld [vmem:[%s11460_s0 + $0x160] sm:$0xff]  ;;  %v11532_v19 = vld [vmem:[%s11460_s0 + $0x158] sm:$0xff]  ;;  %v11548_v23 = vld [vmem:[%s11460_s0 + $0x150] sm:$0xff] }
  0x22   : > { %v11519_v16 = vld [vmem:[%s11460_s0 + $0x1a0] sm:$0xff]  ;;  %1561 = vmatpush.msra.mxu2 %v11500_v11  ;;  %1192 = vmatpush.msra.mxu0 %v11508_v13  ;;  %v11535_v20 = vld [vmem:[%s11460_s0 + $0x198] sm:$0xff]  ;;  %v11551_v24 = vld [vmem:[%s11460_s0 + $0x190] sm:$0xff] }
  0x23   : > { %1754 = vmatpush.msra.mxu3 %v11503_v12  ;;  %1377 = vmatpush.msra.mxu1 %v11511_v14  ;;  %v11556_v25 = vld [vmem:[%s11460_s0 + $0x48] sm:$0xff]  ;;  %v11572_v29 = vld [vmem:[%s11460_s0 + $0x40] sm:$0xff]  ;;  %v795_v33 = vld [vmem:[%s18599_s3 + $0x18] sm:$0xff] }
  0x24   : > { %1562 = vmatpush.msra.mxu2 %v11516_v15  ;;  %1193 = vmatpush.msra.mxu0 %v11524_v17  ;;  %v11559_v26 = vld [vmem:[%s11460_s0 + $0xc8] sm:$0xff]  ;;  %v11575_v30 = vld [vmem:[%s11460_s0 + $0xc0] sm:$0xff]  ;;  %v11591_v34 = vld [vmem:[%s11460_s0 + $0x38] sm:$0xff] }
  0x25   : > { %1755 = vmatpush.msra.mxu3 %v11519_v16  ;;  %1378 = vmatpush.msra.mxu1 %v11527_v18  ;;  %v11564_v27 = vld [vmem:[%s11460_s0 + $0x148] sm:$0xff]  ;;  %v11580_v31 = vld [vmem:[%s11460_s0 + $0x140] sm:$0xff]  ;;  %v11596_v35 = vld [vmem:[%s11460_s0 + $0xb8] sm:$0xff] }
  0x26   : > { %1563 = vmatpush.msra.mxu2 %v11532_v19  ;;  %1194 = vmatpush.msra.mxu0 %v11540_v21  ;;  %v11567_v28 = vld [vmem:[%s11460_s0 + $0x188] sm:$0xff]  ;;  %v11583_v32 = vld [vmem:[%s11460_s0 + $0x180] sm:$0xff]  ;;  %v11599_v36 = vld [vmem:[%s11460_s0 + $0x138] sm:$0xff] }
  0x27   : > { %1756 = vmatpush.msra.mxu3 %v11535_v20  ;;  %1379 = vmatpush.msra.mxu1 %v11543_v22  ;;  %v11604_v37 = vld [vmem:[%s11460_s0 + $0x30] sm:$0xff]  ;;  %v11617_v40 = vld [vmem:[%s11460_s0 + $0x28] sm:$0xff]  ;;  %v11630_v43 = vld [vmem:[%s11460_s0 + $0x20] sm:$0xff] }
  0x28   : > { %1564 = vmatpush.msra.mxu2 %v11548_v23  ;;  %1195 = vmatpush.msra.mxu0 %v11556_v25  ;;  %v11609_v38 = vld [vmem:[%s11460_s0 + $0xb0] sm:$0xff]  ;;  %v11621_v41 = vld [vmem:[%s11460_s0 + $0xa8] sm:$0xff]  ;;  %v11634_v44 = vld [vmem:[%s11460_s0 + $0xa0] sm:$0xff] }
  0x29   : > { %1757 = vmatpush.msra.mxu3 %v11551_v24  ;;  %1380 = vmatpush.msra.mxu1 %v11559_v26  ;;  %v11612_v39 = vld [vmem:[%s11460_s0 + $0x130] sm:$0xff]  ;;  %v11624_v42 = vld [vmem:[%s11460_s0 + $0x128] sm:$0xff]  ;;  %v11637_v45 = vld [vmem:[%s11460_s0 + $0x120] sm:$0xff] }
  0x2a   : > { %1565 = vmatpush.msra.mxu2 %v11564_v27  ;;  %1196 = vmatpush.msra.mxu0 %v11572_v29  ;;  %v799_v46 = vld [vmem:[%s18599_s3 + $0x38] sm:$0xff]  ;;  %v11659_v50 = vld [vmem:[%s11460_s0 + $0x10] sm:$0xff]  ;;  %v11672_v53 = vld [vmem:[%s11460_s0 + $0x8] sm:$0xff] }
  0x2b   : > { %1758 = vmatpush.msra.mxu3 %v11567_v28  ;;  %1381 = vmatpush.msra.mxu1 %v11575_v30  ;;  %v11646_v47 = vld [vmem:[%s11460_s0 + $0x18] sm:$0xff]  ;;  %v11664_v51 = vld [vmem:[%s11460_s0 + $0x90] sm:$0xff]  ;;  %v11676_v54 = vld [vmem:[%s11460_s0 + $0x88] sm:$0xff] }
  0x2c   : > { %1566 = vmatpush.msra.mxu2 %v11580_v31  ;;  %1197 = vmatpush.msra.mxu0 %v11591_v34  ;;  %v11650_v48 = vld [vmem:[%s11460_s0 + $0x98] sm:$0xff]  ;;  %v11667_v52 = vld [vmem:[%s11460_s0 + $0x110] sm:$0xff]  ;;  %v11679_v55 = vld [vmem:[%s11460_s0 + $0x108] sm:$0xff] }
  0x2d   : > { %1759 = vmatpush.msra.mxu3 %v11583_v32  ;;  %1382 = vmatpush.msra.mxu1 %v11596_v35  ;;  %v11653_v49 = vld [vmem:[%s11460_s0 + $0x118] sm:$0xff]  ;;  %v11685_v56 = vld [vmem:[%s11460_s0] sm:$0xff]  ;;  %v793_v60 = vld [vmem:[%s18599_s3 + $0x8] sm:$0xff] }
  0x2e   : > { %9792 = vmatmul.msk.f32.vlgmr.msra.gmra.mxu3 %vm1016_vm1, %v795_v33  ;;  %1567 = vmatpush.msra.mxu2 %v11599_v36  ;;  %v11689_v57 = vld [vmem:[%s11460_s0 + $0x80] sm:$0xff]  ;;  %v794_v61 = vld [vmem:[%s18599_s3 + $0x10] sm:$0xff]  ;;  %v803_v62 = vld [vmem:[%s18599_s3 + $0x58] sm:$0xff] }
  0x2f   : > { %1198 = vmatpush.msra.mxu0 %v11604_v37  ;;  %2324 = vmatpush.msrb.mxu3 %v11463_v1  ;;  %v11692_v58 = vld [vmem:[%s11460_s0 + $0x100] sm:$0xff]  ;;  %v797_v0 = vld [vmem:[%s18599_s3 + $0x28] sm:$0xff]  ;;  %v830_v33 = vld [vmem:[%s18599_s3 + $0x130] sm:$0xff] }
  0x30   : > { %1383 = vmatpush.msra.mxu1 %v11609_v38  ;;  %1568 = vmatpush.msra.mxu2 %v11612_v39  ;;  %v792_v59 = vld [vmem:[%s18599_s3] sm:$0xff] }
  0x31   : > { %1199 = vmatpush.msra.mxu0 %v11617_v40  ;;  %2325 = vmatpush.msrb.mxu3 %v11477_v5  ;;  %v796_v63 = vld [vmem:[%s18599_s3 + $0x20] sm:$0xff] }
  0x32   : > { %1384 = vmatpush.msra.mxu1 %v11621_v41  ;;  %1569 = vmatpush.msra.mxu2 %v11624_v42 }
  0x33   : > { %1200 = vmatpush.msra.mxu0 %v11630_v43  ;;  %2326 = vmatpush.msrb.mxu3 %v11492_v9 }
  0x34   : > { %1385 = vmatpush.msra.mxu1 %v11634_v44  ;;  %1570 = vmatpush.msra.mxu2 %v11637_v45 }
  0x35   : > { %1201 = vmatpush.msra.mxu0 %v11646_v47  ;;  %2327 = vmatpush.msrb.mxu3 %v11508_v13 }
  0x36   : > { %9793 = vmatmul.msk.f32.gmra.mxu3 %vm1016_vm1, %v799_v46  ;;  %1386 = vmatpush.msra.mxu1 %v11650_v48  ;;  %v851_v46 = vld [vmem:[%s18599_s3 + $0x1d8] sm:$0xff] }
  0x37   : > { %1571 = vmatpush.msra.mxu2 %v11653_v49  ;;  %1202 = vmatpush.msra.mxu0 %v11659_v50 }
  0x38   : > { %1387 = vmatpush.msra.mxu1 %v11664_v51  ;;  %2328 = vmatpush.msrb.mxu3 %v11524_v17 }
  0x39   : > { %1572 = vmatpush.msra.mxu2 %v11667_v52  ;;  %1203 = vmatpush.msra.mxu0 %v11672_v53 }
  0x3a   : > { %1388 = vmatpush.msra.mxu1 %v11676_v54  ;;  %2329 = vmatpush.msrb.mxu3 %v11540_v21 }
  0x3b   : > { %1573 = vmatpush.msra.mxu2 %v11679_v55  ;;  %1204 = vmatpush.msra.mxu0 %v11685_v56 }
  0x3c   : > { %1389 = vmatpush.msra.mxu1 %v11689_v57  ;;  %1205 = vmatmul.f32.vlgmr.msra.gmra.mxu0 %v792_v59  ;;  %v863_v59 = vld [vmem:[%s18599_s3 + $0x238] sm:$0xff] }
  0x3d   : > { %1574 = vmatpush.msra.mxu2 %v11692_v58  ;;  %1390 = vmatmul.f32.vlgmr.msra.gmra.mxu1 %v793_v60 }
  0x3e   : > { %1575 = vmatmul.f32.vlgmr.msra.gmra.mxu2 %v794_v61  ;;  %9794 = vmatmul.msk.f32.gmra.mxu3 %vm1016_vm1, %v803_v62 }
  0x3f   : > { %2330 = vmatpush.msrb.mxu3 %v11556_v25  ;;  %2509 = vmatpush.msrb.mxu0 %v11466_v2 }
  0x40   : > { %2694 = vmatpush.msrb.mxu1 %v11469_v3  ;;  %10072 = vmatpush.msk.msrb.mxu2 %vm1185_vm0, %v11474_v4  ;;  %v798_v3 = vld [vmem:[%s18599_s3 + $0x30] sm:$0xff]  ;;  %v807_v4 = vld [vmem:[%s18599_s3 + $0x78] sm:$0xff] }
  0x41   : > { %2331 = vmatpush.msrb.mxu3 %v11572_v29  ;;  %2510 = vmatpush.msrb.mxu0 %v11480_v6 }
  0x42   : > { %2695 = vmatpush.msrb.mxu1 %v11486_v7  ;;  %2888 = vmatpush.msrb.mxu2 %v11489_v8  ;;  %v800_v7 = vld [vmem:[%s18599_s3 + $0x40] sm:$0xff]  ;;  %v801_v8 = vld [vmem:[%s18599_s3 + $0x48] sm:$0xff] }
  0x43   : > { %2332 = vmatpush.msrb.mxu3 %v11591_v34  ;;  %2511 = vmatpush.msrb.mxu0 %v11497_v10 }
  0x44   : > { %2696 = vmatpush.msrb.mxu1 %v11500_v11  ;;  %2889 = vmatpush.msrb.mxu2 %v11503_v12  ;;  %v802_v11 = vld [vmem:[%s18599_s3 + $0x50] sm:$0xff]  ;;  %v811_v12 = vld [vmem:[%s18599_s3 + $0x98] sm:$0xff] }
  0x45   : > { %1208 = vmatmul.f32.gmra.mxu0 %v796_v63  ;;  %1393 = vmatmul.f32.gmra.mxu1 %v797_v0  ;;  %v856_v63 = vld [vmem:[%s18599_s3 + $0x200] sm:$0xff]  ;;  %v857_v0 = vld [vmem:[%s18599_s3 + $0x208] sm:$0xff] }
  0x46   : > { %1578 = vmatmul.f32.gmra.mxu2 %v798_v3  ;;  %9795 = vmatmul.msk.f32.gmra.mxu3 %vm1016_vm1, %v807_v4  ;;  %v858_v3 = vld [vmem:[%s18599_s3 + $0x210] sm:$0xff]  ;;  %v867_v4 = vld [vmem:[%s18599_s3 + $0x258] sm:$0xff] }
  0x47   : > { %2333 = vmatpush.msrb.mxu3 %v11604_v37  ;;  %2512 = vmatpush.msrb.mxu0 %v11511_v14 }
  0x48   : > { %2697 = vmatpush.msrb.mxu1 %v11516_v15  ;;  %2890 = vmatpush.msrb.mxu2 %v11519_v16  ;;  %v804_v15 = vld [vmem:[%s18599_s3 + $0x60] sm:$0xff]  ;;  %v805_v16 = vld [vmem:[%s18599_s3 + $0x68] sm:$0xff] }
  0x49   : > { %2334 = vmatpush.msrb.mxu3 %v11617_v40  ;;  %2513 = vmatpush.msrb.mxu0 %v11527_v18 }
  0x4a   : > { %2698 = vmatpush.msrb.mxu1 %v11532_v19  ;;  %2891 = vmatpush.msrb.mxu2 %v11535_v20  ;;  %v806_v19 = vld [vmem:[%s18599_s3 + $0x70] sm:$0xff]  ;;  %v815_v20 = vld [vmem:[%s18599_s3 + $0xb8] sm:$0xff] }
  0x4b   : > { %2335 = vmatpush.msrb.mxu3 %v11630_v43  ;;  %2514 = vmatpush.msrb.mxu0 %v11543_v22 }
  0x4c   : > { %2699 = vmatpush.msrb.mxu1 %v11548_v23  ;;  %2892 = vmatpush.msrb.mxu2 %v11551_v24  ;;  %v808_v23 = vld [vmem:[%s18599_s3 + $0x80] sm:$0xff]  ;;  %v810_v24 = vld [vmem:[%s18599_s3 + $0x90] sm:$0xff] }
  0x4d   : > { %1211 = vmatmul.f32.gmra.mxu0 %v800_v7  ;;  %1396 = vmatmul.f32.gmra.mxu1 %v801_v8 }
  0x4e   : > { %1581 = vmatmul.f32.gmra.mxu2 %v802_v11  ;;  %9796 = vmatmul.msk.f32.gmra.mxu3 %vm1016_vm1, %v811_v12 }
  0x4f   : > { %2336 = vmatpush.msrb.mxu3 %v11646_v47  ;;  %2515 = vmatpush.msrb.mxu0 %v11559_v26 }
  0x50   : > { %2700 = vmatpush.msrb.mxu1 %v11564_v27  ;;  %2893 = vmatpush.msrb.mxu2 %v11567_v28  ;;  %v814_v27 = vld [vmem:[%s18599_s3 + $0xb0] sm:$0xff] }
  0x51   : > { %2337 = vmatpush.msrb.mxu3 %v11659_v50  ;;  %2516 = vmatpush.msrb.mxu0 %v11575_v30  ;;  %v818_v28 = vld [vmem:[%s18599_s3 + $0xd0] sm:$0xff] }
  0x52   : > { %2701 = vmatpush.msrb.mxu1 %v11580_v31  ;;  %2894 = vmatpush.msrb.mxu2 %v11583_v32  ;;  %v826_v31 = vld [vmem:[%s18599_s3 + $0x110] sm:$0xff]  ;;  %v829_v32 = vld [vmem:[%s18599_s3 + $0x128] sm:$0xff] }
  0x53   : > { %2338 = vmatpush.msrb.mxu3 %v11672_v53  ;;  %2517 = vmatpush.msrb.mxu0 %v11596_v35 }
  0x54   : > { %2702 = vmatpush.msrb.mxu1 %v11599_v36  ;;  %4351 = vmatpush.msra.mxu2 %v11466_v2  ;;  %v809_v2 = vld [vmem:[%s18599_s3 + $0x88] sm:$0xff] }
  0x55   : > { %1214 = vmatmul.f32.gmra.mxu0 %v804_v15  ;;  %1399 = vmatmul.f32.gmra.mxu1 %v805_v16  ;;  %v833_v36 = vld [vmem:[%s18599_s3 + $0x148] sm:$0xff] }
  0x56   : > { %1584 = vmatmul.f32.gmra.mxu2 %v806_v19  ;;  %9797 = vmatmul.msk.f32.gmra.mxu3 %vm1016_vm1, %v815_v20  ;;  %v860_v19 = vld [vmem:[%s18599_s3 + $0x220] sm:$0xff]  ;;  %v861_v20 = vld [vmem:[%s18599_s3 + $0x228] sm:$0xff] }
  0x57   : > { %2339 = vmatpush.msrb.mxu3 %v11685_v56  ;;  %2518 = vmatpush.msrb.mxu0 %v11609_v38 }
  0x58   : > { %2703 = vmatpush.msrb.mxu1 %v11612_v39  ;;  %4352 = vmatpush.msra.mxu2 %v11480_v6  ;;  %v819_v6 = vld [vmem:[%s18599_s3 + $0xd8] sm:$0xff]  ;;  %v836_v39 = vld [vmem:[%s18599_s3 + $0x160] sm:$0xff] }
  0x59   : > { %2519 = vmatpush.msrb.mxu0 %v11621_v41 }
  0x5a   : > { %2704 = vmatpush.msrb.mxu1 %v11624_v42  ;;  %4353 = vmatpush.msra.mxu2 %v11497_v10  ;;  %v812_v10 = vld [vmem:[%s18599_s3 + $0xa0] sm:$0xff]  ;;  %v847_v42 = vld [vmem:[%s18599_s3 + $0x1b8] sm:$0xff] }
  0x5b   : > { %2520 = vmatpush.msrb.mxu0 %v11634_v44 }
  0x5c   : > { %2705 = vmatpush.msrb.mxu1 %v11637_v45  ;;  %4354 = vmatpush.msra.mxu2 %v11511_v14  ;;  %v813_v14 = vld [vmem:[%s18599_s3 + $0xa8] sm:$0xff]  ;;  %v842_v45 = vld [vmem:[%s18599_s3 + $0x190] sm:$0xff] }
  0x5d   : > { %1217 = vmatmul.f32.gmra.mxu0 %v808_v23  ;;  %1402 = vmatmul.f32.gmra.mxu1 %v809_v2  ;;  %v862_v23 = vld [vmem:[%s18599_s3 + $0x230] sm:$0xff]  ;;  %v871_v2 = vld [vmem:[%s18599_s3 + $0x278] sm:$0xff] }
  0x5e   : > { %1587 = vmatmul.f32.gmra.mxu2 %v810_v24  ;;  %9798 = vmatmul.msk.f32.gmra.mxu3 %vm1016_vm1, %v819_v6 }
  0x5f   : > { %2521 = vmatpush.msrb.mxu0 %v11650_v48  ;;  %2706 = vmatpush.msrb.mxu1 %v11653_v49  ;;  %v846_v49 = vld [vmem:[%s18599_s3 + $0x1b0] sm:$0xff] }
  0x60   : > { %4355 = vmatpush.msra.mxu2 %v11527_v18  ;;  %v823_v18 = vld [vmem:[%s18599_s3 + $0xf8] sm:$0xff] }
  0x61   : > { %2522 = vmatpush.msrb.mxu0 %v11664_v51  ;;  %2707 = vmatpush.msrb.mxu1 %v11667_v52  ;;  %v849_v52 = vld [vmem:[%s18599_s3 + $0x1c8] sm:$0xff] }
  0x62   : > { %4356 = vmatpush.msra.mxu2 %v11543_v22  ;;  %v816_v22 = vld [vmem:[%s18599_s3 + $0xc0] sm:$0xff] }
  0x63   : > { %2523 = vmatpush.msrb.mxu0 %v11676_v54  ;;  %2708 = vmatpush.msrb.mxu1 %v11679_v55 }
  0x64   : > { %4357 = vmatpush.msra.mxu2 %v11559_v26  ;;  %v817_v26 = vld [vmem:[%s18599_s3 + $0xc8] sm:$0xff] }
  0x65   : > { %1220 = vmatmul.f32.gmra.mxu0 %v812_v10  ;;  %1405 = vmatmul.f32.gmra.mxu1 %v813_v14 }
  0x66   : > { %1590 = vmatmul.f32.gmra.mxu2 %v814_v27  ;;  %9799 = vmatmul.msk.f32.gmra.mxu3 %vm1016_vm1, %v823_v18 }
  0x67   : > { %2524 = vmatpush.msrb.mxu0 %v11689_v57  ;;  %2709 = vmatpush.msrb.mxu1 %v11692_v58  ;;  %v854_v58 = vld [vmem:[%s18599_s3 + $0x1f0] sm:$0xff] }
  0x68   : > { %4358 = vmatpush.msra.mxu2 %v11575_v30  ;;  %v822_v30 = vld [vmem:[%s18599_s3 + $0xf0] sm:$0xff] }
  0x69   : > { %4166 = vmatpush.msra.mxu1 %v11463_v1  ;;  %v827_v1 = vld [vmem:[%s18599_s3 + $0x118] sm:$0xff] }
  0x6a   : > { %4359 = vmatpush.msra.mxu2 %v11596_v35  ;;  %v832_v35 = vld [vmem:[%s18599_s3 + $0x140] sm:$0xff] }
  0x6b   : > { %4167 = vmatpush.msra.mxu1 %v11477_v5  ;;  %v820_v5 = vld [vmem:[%s18599_s3 + $0xe0] sm:$0xff] }
  0x6c   : > { %4360 = vmatpush.msra.mxu2 %v11609_v38  ;;  %v843_v38 = vld [vmem:[%s18599_s3 + $0x198] sm:$0xff] }
  0x6d   : > { %4168 = vmatpush.msra.mxu1 %v11492_v9  ;;  %1223 = vmatmul.f32.gmra.mxu0 %v816_v22  ;;  %v821_v9 = vld [vmem:[%s18599_s3 + $0xe8] sm:$0xff] }
  0x6e   : > { %1408 = vmatmul.f32.gmra.mxu1 %v817_v26  ;;  %1593 = vmatmul.f32.gmra.mxu2 %v818_v28  ;;  %v864_v26 = vld [vmem:[%s18599_s3 + $0x240] sm:$0xff]  ;;  %v865_v28 = vld [vmem:[%s18599_s3 + $0x248] sm:$0xff] }
  0x6f   : > { %9800 = vmatmul.msk.f32.gmra.mxu3 %vm1016_vm1, %v827_v1  ;;  %4169 = vmatpush.msra.mxu1 %v11508_v13  ;;  %v831_v13 = vld [vmem:[%s18599_s3 + $0x138] sm:$0xff]  ;;  %v866_v1 = vld [vmem:[%s18599_s3 + $0x250] sm:$0xff] }
  0x70   : > { %4361 = vmatpush.msra.mxu2 %v11621_v41  ;;  %v838_v41 = vld [vmem:[%s18599_s3 + $0x170] sm:$0xff] }
  0x71   : > { %4170 = vmatpush.msra.mxu1 %v11524_v17  ;;  %v824_v17 = vld [vmem:[%s18599_s3 + $0x100] sm:$0xff] }
  0x72   : > { %4362 = vmatpush.msra.mxu2 %v11634_v44  ;;  %v841_v44 = vld [vmem:[%s18599_s3 + $0x188] sm:$0xff] }
  0x73   : > { %4171 = vmatpush.msra.mxu1 %v11540_v21  ;;  %v825_v21 = vld [vmem:[%s18599_s3 + $0x108] sm:$0xff] }
  0x74   : > { %4363 = vmatpush.msra.mxu2 %v11650_v48  ;;  %v845_v48 = vld [vmem:[%s18599_s3 + $0x1a8] sm:$0xff] }
  0x75   : > { %1226 = vmatmul.f32.gmra.mxu0 %v820_v5  ;;  %4172 = vmatpush.msra.mxu1 %v11556_v25  ;;  %v835_v25 = vld [vmem:[%s18599_s3 + $0x158] sm:$0xff] }
  0x76   : > { %1411 = vmatmul.f32.gmra.mxu1 %v821_v9  ;;  %1596 = vmatmul.f32.gmra.mxu2 %v822_v30  ;;  %v875_v5 = vld [vmem:[%s18599_s3 + $0x298] sm:$0xff] }
  0x77   : > { %9801 = vmatmul.msk.f32.gmra.mxu3 %vm1016_vm1, %v831_v13  ;;  %4364 = vmatpush.msra.mxu2 %v11664_v51  ;;  %v848_v51 = vld [vmem:[%s18599_s3 + $0x1c0] sm:$0xff] }
  0x78   : > { %4173 = vmatpush.msra.mxu1 %v11572_v29  ;;  %v828_v29 = vld [vmem:[%s18599_s3 + $0x120] sm:$0xff] }
  0x79   : > { %4365 = vmatpush.msra.mxu2 %v11676_v54  ;;  %v859_v54 = vld [vmem:[%s18599_s3 + $0x218] sm:$0xff] }
  0x7a   : > { %4174 = vmatpush.msra.mxu1 %v11591_v34  ;;  %v839_v34 = vld [vmem:[%s18599_s3 + $0x178] sm:$0xff] }
  0x7b   : > { %4366 = vmatpush.msra.mxu2 %v11689_v57  ;;  %v853_v57 = vld [vmem:[%s18599_s3 + $0x1e8] sm:$0xff] }
  0x7c   : > { %4175 = vmatpush.msra.mxu1 %v11604_v37  ;;  %v834_v37 = vld [vmem:[%s18599_s3 + $0x150] sm:$0xff] }
  0x7d   : > { %1229 = vmatmul.f32.gmra.mxu0 %v824_v17 }
  0x7e   : > { %1414 = vmatmul.f32.gmra.mxu1 %v825_v21  ;;  %1599 = vmatmul.f32.gmra.mxu2 %v826_v31 }
  0x7f   : > { %9802 = vmatmul.msk.f32.gmra.mxu3 %vm1016_vm1, %v835_v25  ;;  %4176 = vmatpush.msra.mxu1 %v11617_v40  ;;  %v837_v40 = vld [vmem:[%s18599_s3 + $0x168] sm:$0xff] }
  0x81   : > { %4177 = vmatpush.msra.mxu1 %v11630_v43  ;;  %v840_v43 = vld [vmem:[%s18599_s3 + $0x180] sm:$0xff] }
  0x83   : > { %4178 = vmatpush.msra.mxu1 %v11646_v47  ;;  %v844_v47 = vld [vmem:[%s18599_s3 + $0x1a0] sm:$0xff] }
  0x85   : > { %1232 = vmatmul.f32.gmra.mxu0 %v828_v29  ;;  %4179 = vmatpush.msra.mxu1 %v11659_v50  ;;  %v855_v50 = vld [vmem:[%s18599_s3 + $0x1f8] sm:$0xff]  ;;  %v868_v29 = vld [vmem:[%s18599_s3 + $0x260] sm:$0xff] }
  0x86   : > { %1417 = vmatmul.f32.gmra.mxu1 %v829_v32  ;;  %1602 = vmatmul.f32.gmra.mxu2 %v830_v33  ;;  %v869_v32 = vld [vmem:[%s18599_s3 + $0x268] sm:$0xff]  ;;  %v870_v33 = vld [vmem:[%s18599_s3 + $0x270] sm:$0xff] }
  0x87   : > { %9803 = vmatmul.msk.f32.gmra.mxu3 %vm1016_vm1, %v839_v34  ;;  %4180 = vmatpush.msra.mxu1 %v11672_v53  ;;  %v850_v53 = vld [vmem:[%s18599_s3 + $0x1d0] sm:$0xff]  ;;  %v879_v34 = vld [vmem:[%s18599_s3 + $0x2b8] sm:$0xff] }
  0x89   : > { %4181 = vmatpush.msra.mxu1 %v11685_v56  ;;  %v852_v56 = vld [vmem:[%s18599_s3 + $0x1e0] sm:$0xff] }
  0x8d   : > { %1235 = vmatmul.f32.gmra.mxu0 %v832_v35 }
  0x8e   : > { %1420 = vmatmul.f32.gmra.mxu1 %v833_v36  ;;  %1605 = vmatmul.f32.gmra.mxu2 %v834_v37 }
  0x8f   : > { %9804 = vmatmul.msk.f32.gmra.mxu3 %vm1016_vm1, %v843_v38 }
  0x95   : > { %1238 = vmatmul.f32.gmra.mxu0 %v836_v39 }
  0x96   : > { %1423 = vmatmul.f32.gmra.mxu1 %v837_v40  ;;  %1608 = vmatmul.f32.gmra.mxu2 %v838_v41 }
  0x97   : > { %9805 = vmatmul.msk.f32.gmra.mxu3 %vm1016_vm1, %v847_v42  ;;  %v872_v42 = vld [vmem:[%s18599_s3 + $0x280] sm:$0xff] }
  0x9d   : > { %1241 = vmatmul.f32.gmra.mxu0 %v840_v43  ;;  %v873_v43 = vld [vmem:[%s18599_s3 + $0x288] sm:$0xff] }
  0x9e   : > { %1426 = vmatmul.f32.gmra.mxu1 %v841_v44  ;;  %1611 = vmatmul.f32.gmra.mxu2 %v842_v45  ;;  %v874_v44 = vld [vmem:[%s18599_s3 + $0x290] sm:$0xff]  ;;  %v883_v45 = vld [vmem:[%s18599_s3 + $0x2d8] sm:$0xff] }
  0x9f   : > { %9806 = vmatmul.msk.f32.gmra.mxu3 %vm1016_vm1, %v851_v46 }
  0xa5   : > { %1244 = vmatmul.f32.gmra.mxu0 %v844_v47 }
  0xa6   : > { %1429 = vmatmul.f32.gmra.mxu1 %v845_v48  ;;  %1614 = vmatmul.f32.gmra.mxu2 %v846_v49 }
  0xa7   : > { %9807 = vmatmul.msk.f32.gmra.mxu3 %vm1016_vm1, %v855_v50 }
  0xad   : > { %1247 = vmatmul.f32.gmra.mxu0 %v848_v51 }
  0xae   : > { %1432 = vmatmul.f32.gmra.mxu1 %v849_v52  ;;  %1617 = vmatmul.f32.gmra.mxu2 %v850_v53  ;;  %v876_v53 = vld [vmem:[%s18599_s3 + $0x2a0] sm:$0xff] }
  0xaf   : > { %9808 = vmatmul.msk.f32.gmra.mxu3 %vm1016_vm1, %v859_v54  ;;  %v877_v54 = vld [vmem:[%s18599_s3 + $0x2a8] sm:$0xff] }
  0xb1   : > { %v1761_v55 = vpop.f32.mrf.mxu3 }
  0xb5   : > { %1250 = vmatmul.f32.gmra.mxu0 %v852_v56  ;;  %v887_v56 = vld [vmem:[%s18599_s3 + $0x2f8] sm:$0xff] }
  0xb6   : > { %1435 = vmatmul.f32.gmra.mxu1 %v853_v57  ;;  %1620 = vmatmul.f32.gmra.mxu2 %v854_v58 }
  0xb7   : > { %9809 = vmatmul.msk.f32.gmra.mxu3 %vm1016_vm1, %v863_v59 }
  0xb9   : > { %v1764_v60 = vpop.f32.mrf.mxu3  ;;  %v1206_v61 = vpop.f32.mrf.mxu0 }
  0xba   : > { %v1391_v62 = vpop.f32.mrf.mxu1 }
  0xbb   : > { %v1392_v7 = vadd.f32 %v1391_v62, %v1206_v61 }
  0xbd   : > { %1253 = vmatmul.f32.gmra.mxu0 %v856_v63 }
  0xbe   : > { %1438 = vmatmul.f32.gmra.mxu1 %v857_v0  ;;  %1623 = vmatmul.f32.gmra.mxu2 %v858_v3  ;;  %v880_v0 = vld [vmem:[%s18599_s3 + $0x2c0] sm:$0xff]  ;;  %v881_v3 = vld [vmem:[%s18599_s3 + $0x2c8] sm:$0xff] }
  0xbf   : > { %9810 = vmatmul.msk.f32.gmra.mxu3 %vm1016_vm1, %v867_v4  ;;  %v882_v4 = vld [vmem:[%s18599_s3 + $0x2d0] sm:$0xff] }
  0xc1   : > { %v1576_v8 = vpop.f32.mrf.mxu2  ;;  %v1767_v11 = vpop.f32.mrf.mxu3 }
  0xc2   : > { %v1577_v12 = vadd.f32 %v1576_v8, %v1392_v7  ;;  %v1209_v15 = vpop.f32.mrf.mxu0  ;;  %v1394_v16 = vpop.f32.mrf.mxu1  ;;  %v891_v7 = vld [vmem:[%s18599_s3 + $0x318] sm:$0xff] }
  0xc3   : > { %v1395_v6 = vadd.f32 %v1394_v16, %v1209_v15 }
  0xc4   : > { %v12017_v24 = vadd.f32 %v1761_v55, %v1577_v12  ;;  %v878_v55 = vld [vmem:[%s18599_s3 + $0x2b0] sm:$0xff] }
  0xc5   : > { %1256 = vmatmul.f32.gmra.mxu0 %v860_v19 }
  0xc6   : > { %1441 = vmatmul.f32.gmra.mxu1 %v861_v20  ;;  %1626 = vmatmul.f32.gmra.mxu2 %v862_v23  ;;  %v884_v23 = vld [vmem:[%s18599_s3 + $0x2e0] sm:$0xff] }
  0xc7   : > { %9811 = vmatmul.msk.f32.gmra.mxu3 %vm1016_vm1, %v871_v2  ;;  %v885_v2 = vld [vmem:[%s18599_s3 + $0x2e8] sm:$0xff] }
  0xc9   : > { %v1579_v10 = vpop.f32.mrf.mxu2  ;;  %v1770_v14 = vpop.f32.mrf.mxu3 }
  0xca   : > { %v1580_v27 = vadd.f32 %v1579_v10, %v1395_v6  ;;  %v1212_v18 = vpop.f32.mrf.mxu0  ;;  %v1397_v22 = vpop.f32.mrf.mxu1  ;;  %v886_v6 = vld [vmem:[%s18599_s3 + $0x2f0] sm:$0xff]  ;;  %v895_v10 = vld [vmem:[%s18599_s3 + $0x338] sm:$0xff] }
  0xcb   : > { %v1398_v30 = vadd.f32 %v1397_v22, %v1212_v18 }
  0xcc   : > { %v12032_v9 = vadd.f32 %v1764_v60, %v1580_v27 }
  0xcd   : > { %1259 = vmatmul.f32.gmra.mxu0 %v864_v26 }
  0xce   : > { %1444 = vmatmul.f32.gmra.mxu1 %v865_v28  ;;  %1629 = vmatmul.f32.gmra.mxu2 %v866_v1 }
  0xcf   : > { %9812 = vmatmul.msk.f32.gmra.mxu3 %vm1016_vm1, %v875_v5  ;;  %v888_v5 = vld [vmem:[%s18599_s3 + $0x300] sm:$0xff] }
  0xd1   : > { %v1582_v13 = vpop.f32.mrf.mxu2  ;;  %v1773_v17 = vpop.f32.mrf.mxu3 }
  0xd2   : > { %v1583_v21 = vadd.f32 %v1582_v13, %v1398_v30  ;;  %v1215_v31 = vpop.f32.mrf.mxu0  ;;  %v1400_v25 = vpop.f32.mrf.mxu1  ;;  %v889_v30 = vld [vmem:[%s18599_s3 + $0x308] sm:$0xff]  ;;  %v890_v13 = vld [vmem:[%s18599_s3 + $0x310] sm:$0xff] }
  0xd3   : > { %v1401_v36 = vadd.f32 %v1400_v25, %v1215_v31 }
  0xd4   : > { %v12047_v35 = vadd.f32 %v1767_v11, %v1583_v21 }
  0xd5   : > { %1262 = vmatmul.f32.gmra.mxu0 %v868_v29 }
  0xd6   : > { %1447 = vmatmul.f32.gmra.mxu1 %v869_v32  ;;  %1632 = vmatmul.f32.gmra.mxu2 %v870_v33 }
  0xd7   : > { %9813 = vmatmul.msk.f32.gmra.mxu3 %vm1016_vm1, %v879_v34 }
  0xd9   : > { %v1585_v37 = vpop.f32.mrf.mxu2  ;;  %v1776_v38 = vpop.f32.mrf.mxu3 }
  0xda   : > { %v1586_v39 = vadd.f32 %v1585_v37, %v1401_v36  ;;  %v1218_v40 = vpop.f32.mrf.mxu0  ;;  %v1403_v41 = vpop.f32.mrf.mxu1  ;;  %v892_v36 = vld [vmem:[%s18599_s3 + $0x320] sm:$0xff]  ;;  %v893_v37 = vld [vmem:[%s18599_s3 + $0x328] sm:$0xff] }
  0xdb   : > { %v1404_v47 = vadd.f32 %v1403_v41, %v1218_v40 }
  0xdc   : > { %v12062_v46 = vadd.f32 %v1770_v14, %v1586_v39  ;;  %v903_v39 = vld [vmem:[%s18599_s3 + $0x378] sm:$0xff] }
  0xdd   : > { %1265 = vmatmul.f32.gmra.mxu0 %v872_v42 }
  0xde   : > { %1450 = vmatmul.f32.gmra.mxu1 %v873_v43  ;;  %1635 = vmatmul.f32.gmra.mxu2 %v874_v44 }
  0xdf   : > { %9814 = vmatmul.msk.f32.gmra.mxu3 %vm1016_vm1, %v883_v45 }
  0xe1   : > { %v1588_v48 = vpop.f32.mrf.mxu2  ;;  %v1779_v49 = vpop.f32.mrf.mxu3 }
  0xe2   : > { %v1589_v50 = vadd.f32 %v1588_v48, %v1404_v47  ;;  %v1221_v51 = vpop.f32.mrf.mxu0  ;;  %v1406_v52 = vpop.f32.mrf.mxu1  ;;  %v896_v48 = vld [vmem:[%s18599_s3 + $0x340] sm:$0xff] }
  0xe3   : > { %v1407_v58 = vadd.f32 %v1406_v52, %v1221_v51  ;;  %v907_v51 = vld [vmem:[%s18599_s3 + $0x398] sm:$0xff] }
  0xe4   : > { %v12077_v57 = vadd.f32 %v1773_v17, %v1589_v50  ;;  %v899_v17 = vld [vmem:[%s18599_s3 + $0x358] sm:$0xff]  ;;  %v898_v50 = vld [vmem:[%s18599_s3 + $0x350] sm:$0xff] }
  0xe5   : > { %1268 = vmatmul.f32.gmra.mxu0 %v876_v53 }
  0xe6   : > { %1453 = vmatmul.f32.gmra.mxu1 %v877_v54  ;;  %1638 = vmatmul.f32.gmra.mxu2 %v878_v55 }
  0xe7   : > { %9815 = vmatmul.msk.f32.gmra.mxu3 %vm1016_vm1, %v887_v56 }
  0xe9   : > { %v1591_v59 = vpop.f32.mrf.mxu2  ;;  %v1782_v60 = vpop.f32.mrf.mxu3 }
  0xea   : > { %v1592_v61 = vadd.f32 %v1591_v59, %v1407_v58  ;;  %v1224_v62 = vpop.f32.mrf.mxu0 }
  0xeb   : > { %v1409_v63 = vpop.f32.mrf.mxu1 }
  0xec   : > { %v12092_v8 = vadd.f32 %v1776_v38, %v1592_v61  ;;  %v1410_v11 = vadd.f32 %v1409_v63, %v1224_v62  ;;  %v894_v38 = vld [vmem:[%s18599_s3 + $0x330] sm:$0xff]  ;;  %v901_v61 = vld [vmem:[%s18599_s3 + $0x368] sm:$0xff]  ;;  %v911_v63 = vld [vmem:[%s18599_s3 + $0x3b8] sm:$0xff] }
  0xed   : > { %1271 = vmatmul.f32.gmra.mxu0 %v880_v0  ;;  %v902_v62 = vld [vmem:[%s18599_s3 + $0x370] sm:$0xff] }
  0xee   : > { %1456 = vmatmul.f32.gmra.mxu1 %v881_v3  ;;  %1641 = vmatmul.f32.gmra.mxu2 %v882_v4 }
  0xef   : > { %9816 = vmatmul.msk.f32.gmra.mxu3 %vm1016_vm1, %v891_v7 }
  0xf1   : > { %v1594_v12 = vpop.f32.mrf.mxu2 }
  0xf2   : > { %v1785_v15 = vpop.f32.mrf.mxu3  ;;  %v1595_v16 = vadd.f32 %v1594_v12, %v1410_v11  ;;  %v1227_v19 = vpop.f32.mrf.mxu0 }
  0xf3   : > { %v1412_v20 = vpop.f32.mrf.mxu1 }
  0xf4   : > { %v12107_v14 = vadd.f32 %v1779_v49, %v1595_v16  ;;  %v1413_v27 = vadd.f32 %v1412_v20, %v1227_v19  ;;  %v897_v49 = vld [vmem:[%s18599_s3 + $0x348] sm:$0xff]  ;;  %v904_v16 = vld [vmem:[%s18599_s3 + $0x380] sm:$0xff]  ;;  %v906_v20 = vld [vmem:[%s18599_s3 + $0x390] sm:$0xff] }
  0xf5   : > { %1274 = vmatmul.f32.gmra.mxu0 %v884_v23  ;;  %v905_v19 = vld [vmem:[%s18599_s3 + $0x388] sm:$0xff]  ;;  %v915_v23 = vld [vmem:[%s18599_s3 + $0x3d8] sm:$0xff] }
  0xf6   : > { %1459 = vmatmul.f32.gmra.mxu1 %v885_v2  ;;  %1644 = vmatmul.f32.gmra.mxu2 %v886_v6 }
  0xf7   : > { %9817 = vmatmul.msk.f32.gmra.mxu3 %vm1016_vm1, %v895_v10 }
  0xf9   : > { %v1597_v18 = vpop.f32.mrf.mxu2 }
  0xfa   : > { %v1788_v22 = vpop.f32.mrf.mxu3  ;;  %v1598_v26 = vadd.f32 %v1597_v18, %v1413_v27  ;;  %v1230_v28 = vpop.f32.mrf.mxu0 }
  0xfb   : > { %v1415_v1 = vpop.f32.mrf.mxu1 }
  0xfc   : > { %v12122_v21 = vadd.f32 %v1782_v60, %v1598_v26  ;;  %v1416_v31 = vadd.f32 %v1415_v1, %v1230_v28  ;;  %v900_v60 = vld [vmem:[%s18599_s3 + $0x360] sm:$0xff]  ;;  %v909_v1 = vld [vmem:[%s18599_s3 + $0x3a8] sm:$0xff] }
  0xfd   : > { %1277 = vmatmul.f32.gmra.mxu0 %v888_v5  ;;  %v908_v28 = vld [vmem:[%s18599_s3 + $0x3a0] sm:$0xff]  ;;  %v910_v5 = vld [vmem:[%s18599_s3 + $0x3b0] sm:$0xff] }
  0xfe   : > { %1462 = vmatmul.f32.gmra.mxu1 %v889_v30  ;;  %1647 = vmatmul.f32.gmra.mxu2 %v890_v13  ;;  %v919_v30 = vld [vmem:[%s18599_s3 + $0x3f8] sm:$0xff] }
  0xff   : > { %9818 = vmatmul.msk.f32.gmra.mxu3 %vm1016_vm1, %v899_v17 }
 0x101   : > { %v1600_v25 = vpop.f32.mrf.mxu2 }
 0x102   : > { %v1791_v29 = vpop.f32.mrf.mxu3  ;;  %v1601_v32 = vadd.f32 %v1600_v25, %v1416_v31  ;;  %v1233_v33 = vpop.f32.mrf.mxu0 }
 0x103   : > { %v1418_v34 = vpop.f32.mrf.mxu1 }
 0x104   : > { %v12137_v40 = vadd.f32 %v1785_v15, %v1601_v32  ;;  %v1419_v41 = vadd.f32 %v1418_v34, %v1233_v33  ;;  %v912_v34 = vld [vmem:[%s18599_s3 + $0x3c0] sm:$0xff] }
 0x105   : > { %1280 = vmatmul.f32.gmra.mxu0 %v892_v36  ;;  %v913_v36 = vld [vmem:[%s18599_s3 + $0x3c8] sm:$0xff] }
 0x106   : > { %1465 = vmatmul.f32.gmra.mxu1 %v893_v37  ;;  %1650 = vmatmul.f32.gmra.mxu2 %v894_v38  ;;  %v914_v37 = vld [vmem:[%s18599_s3 + $0x3d0] sm:$0xff]  ;;  %v923_v38 = vld [vmem:[%s18599_s3 + $0x418] sm:$0xff] }
 0x107   : > { %9819 = vmatmul.msk.f32.gmra.mxu3 %vm1016_vm1, %v903_v39 }
 0x109   : > { %v1603_v42 = vpop.f32.mrf.mxu2 }
 0x10a   : > { %v1794_v43 = vpop.f32.mrf.mxu3  ;;  %v1604_v44 = vadd.f32 %v1603_v42, %v1419_v41  ;;  %v1236_v45 = vpop.f32.mrf.mxu0 }
 0x10b   : > { %v1421_v47 = vpop.f32.mrf.mxu1 }
 0x10c   : > { %v12152_v52 = vadd.f32 %v1788_v22, %v1604_v44  ;;  %v1422_v53 = vadd.f32 %v1421_v47, %v1236_v45 }
 0x10d   : > { %1283 = vmatmul.f32.gmra.mxu0 %v896_v48  ;;  %v916_v48 = vld [vmem:[%s18599_s3 + $0x3e0] sm:$0xff] }
 0x10e   : > { %1468 = vmatmul.f32.gmra.mxu1 %v897_v49  ;;  %1653 = vmatmul.f32.gmra.mxu2 %v898_v50  ;;  %v917_v49 = vld [vmem:[%s18599_s3 + $0x3e8] sm:$0xff]  ;;  %v918_v50 = vld [vmem:[%s18599_s3 + $0x3f0] sm:$0xff] }
 0x10f   : > { %9820 = vmatmul.msk.f32.gmra.mxu3 %vm1016_vm1, %v907_v51  ;;  %v927_v51 = vld [vmem:[%s18599_s3 + $0x438] sm:$0xff] }
 0x111   : > { %v1606_v54 = vpop.f32.mrf.mxu2 }
 0x112   : > { %v1797_v55 = vpop.f32.mrf.mxu3  ;;  %v1607_v56 = vadd.f32 %v1606_v54, %v1422_v53  ;;  %v1239_v58 = vpop.f32.mrf.mxu0 }
 0x113   : > { %v1424_v59 = vpop.f32.mrf.mxu1 }
 0x114   : > { %v12167_v0 = vadd.f32 %v1791_v29, %v1607_v56  ;;  %v1425_v3 = vadd.f32 %v1424_v59, %v1239_v58 }
 0x115   : > { %1286 = vmatmul.f32.gmra.mxu0 %v900_v60 }
 0x116   : > { %1471 = vmatmul.f32.gmra.mxu1 %v901_v61  ;;  %1656 = vmatmul.f32.gmra.mxu2 %v902_v62  ;;  %v920_v61 = vld [vmem:[%s18599_s3 + $0x400] sm:$0xff]  ;;  %v921_v62 = vld [vmem:[%s18599_s3 + $0x408] sm:$0xff] }
 0x117   : > { %9821 = vmatmul.msk.f32.gmra.mxu3 %vm1016_vm1, %v911_v63  ;;  %v922_v63 = vld [vmem:[%s18599_s3 + $0x410] sm:$0xff] }
 0x119   : > { %v1609_v4 = vpop.f32.mrf.mxu2 }
 0x11a   : > { %v1800_v7 = vpop.f32.mrf.mxu3  ;;  %v1610_v11 = vadd.f32 %v1609_v4, %v1425_v3  ;;  %v1242_v12 = vpop.f32.mrf.mxu0  ;;  %v931_v3 = vld [vmem:[%s18599_s3 + $0x458] sm:$0xff] }
 0x11b   : > { %v1427_v15 = vpop.f32.mrf.mxu1 }
 0x11c   : > { %v12182_v2 = vadd.f32 %v1794_v43, %v1610_v11  ;;  %v1428_v6 = vadd.f32 %v1427_v15, %v1242_v12 }
 0x11d   : > { %1289 = vmatmul.f32.gmra.mxu0 %v904_v16 }
 0x11e   : > { %1474 = vmatmul.f32.gmra.mxu1 %v905_v19  ;;  %1659 = vmatmul.f32.gmra.mxu2 %v906_v20  ;;  %v924_v20 = vld [vmem:[%s18599_s3 + $0x420] sm:$0xff] }
 0x11f   : > { %9822 = vmatmul.msk.f32.gmra.mxu3 %vm1016_vm1, %v915_v23  ;;  %v925_v23 = vld [vmem:[%s18599_s3 + $0x428] sm:$0xff] }
 0x121   : > { %v1612_v10 = vpop.f32.mrf.mxu2 }
 0x122   : > { %v1803_v27 = vpop.f32.mrf.mxu3  ;;  %v1613_v18 = vadd.f32 %v1612_v10, %v1428_v6  ;;  %v1245_v22 = vpop.f32.mrf.mxu0  ;;  %v926_v6 = vld [vmem:[%s18599_s3 + $0x430] sm:$0xff]  ;;  %v935_v10 = vld [vmem:[%s18599_s3 + $0x478] sm:$0xff] }
 0x123   : > { %v1430_v26 = vpop.f32.mrf.mxu1 }
 0x124   : > { %v12197_v13 = vadd.f32 %v1797_v55, %v1613_v18  ;;  %v1431_v17 = vadd.f32 %v1430_v26, %v1245_v22 }
 0x125   : > { %1292 = vmatmul.f32.gmra.mxu0 %v908_v28 }
 0x126   : > { %1477 = vmatmul.f32.gmra.mxu1 %v909_v1  ;;  %1662 = vmatmul.f32.gmra.mxu2 %v910_v5 }
 0x127   : > { %9823 = vmatmul.msk.f32.gmra.mxu3 %vm1016_vm1, %v919_v30  ;;  %v928_v30 = vld [vmem:[%s18599_s3 + $0x440] sm:$0xff] }
 0x129   : > { %v1615_v31 = vpop.f32.mrf.mxu2 }
 0x12a   : > { %v1806_v25 = vpop.f32.mrf.mxu3  ;;  %v1616_v29 = vadd.f32 %v1615_v31, %v1431_v17  ;;  %v1248_v32 = vpop.f32.mrf.mxu0  ;;  %v929_v17 = vld [vmem:[%s18599_s3 + $0x448] sm:$0xff]  ;;  %v930_v31 = vld [vmem:[%s18599_s3 + $0x450] sm:$0xff] }
 0x12b   : > { %v1433_v33 = vpop.f32.mrf.mxu1 }
 0x12c   : > { %v12212_v39 = vadd.f32 %v1800_v7, %v1616_v29  ;;  %v1434_v41 = vadd.f32 %v1433_v33, %v1248_v32 }
 0x12d   : > { %1295 = vmatmul.f32.gmra.mxu0 %v912_v34 }
 0x12e   : > { %1480 = vmatmul.f32.gmra.mxu1 %v913_v36  ;;  %1665 = vmatmul.f32.gmra.mxu2 %v914_v37 }
 0x12f   : > { %9824 = vmatmul.msk.f32.gmra.mxu3 %vm1016_vm1, %v923_v38 }
 0x131   : > { %v1618_v42 = vpop.f32.mrf.mxu2 }
 0x132   : > { %v1809_v43 = vpop.f32.mrf.mxu3  ;;  %v1619_v44 = vadd.f32 %v1618_v42, %v1434_v41  ;;  %v1251_v45 = vpop.f32.mrf.mxu0  ;;  %v932_v41 = vld [vmem:[%s18599_s3 + $0x460] sm:$0xff]  ;;  %v933_v42 = vld [vmem:[%s18599_s3 + $0x468] sm:$0xff] }
 0x133   : > { %v1436_v47 = vpop.f32.mrf.mxu1 }
 0x134   : > { %v12227_v53 = vadd.f32 %v1803_v27, %v1619_v44  ;;  %v1437_v54 = vadd.f32 %v1436_v47, %v1251_v45  ;;  %v943_v44 = vld [vmem:[%s18599_s3 + $0x4b8] sm:$0xff] }
 0x135   : > { %1298 = vmatmul.f32.gmra.mxu0 %v916_v48 }
 0x136   : > { %1483 = vmatmul.f32.gmra.mxu1 %v917_v49  ;;  %1668 = vmatmul.f32.gmra.mxu2 %v918_v50 }
 0x137   : > { %9825 = vmatmul.msk.f32.gmra.mxu3 %vm1016_vm1, %v927_v51 }
 0x139   : > { %v1621_v55 = vpop.f32.mrf.mxu2 }
 0x13a   : > { %v1812_v56 = vpop.f32.mrf.mxu3  ;;  %v1622_v58 = vadd.f32 %v1621_v55, %v1437_v54  ;;  %v1254_v59 = vpop.f32.mrf.mxu0  ;;  %v936_v55 = vld [vmem:[%s18599_s3 + $0x480] sm:$0xff] }
 0x13b   : > { %v1439_v60 = vpop.f32.mrf.mxu1 }
 0x13c   : > { %v12242_v4 = vadd.f32 %v1806_v25, %v1622_v58  ;;  %v1440_v7 = vadd.f32 %v1439_v60, %v1254_v59  ;;  %v939_v25 = vld [vmem:[%s18599_s3 + $0x498] sm:$0xff]  ;;  %v938_v58 = vld [vmem:[%s18599_s3 + $0x490] sm:$0xff] }
 0x13d   : > { %1301 = vmatmul.f32.gmra.mxu0 %v920_v61  ;;  %v947_v59 = vld [vmem:[%s18599_s3 + $0x4d8] sm:$0xff] }
 0x13e   : > { %1486 = vmatmul.f32.gmra.mxu1 %v921_v62  ;;  %1671 = vmatmul.f32.gmra.mxu2 %v922_v63 }
 0x13f   : > { %9826 = vmatmul.msk.f32.gmra.mxu3 %vm1016_vm1, %v931_v3 }
 0x141   : > { %v1624_v11 = vpop.f32.mrf.mxu2 }
 0x142   : > { %v1815_v12 = vpop.f32.mrf.mxu3  ;;  %v1625_v15 = vadd.f32 %v1624_v11, %v1440_v7  ;;  %v1257_v16 = vpop.f32.mrf.mxu0 }
 0x143   : > { %v1442_v19 = vpop.f32.mrf.mxu1 }
 0x144   : > { %v12257_v27 = vadd.f32 %v1809_v43, %v1625_v15  ;;  %v1443_v18 = vadd.f32 %v1442_v19, %v1257_v16  ;;  %v934_v43 = vld [vmem:[%s18599_s3 + $0x470] sm:$0xff]  ;;  %v941_v15 = vld [vmem:[%s18599_s3 + $0x4a8] sm:$0xff]  ;;  %v951_v19 = vld [vmem:[%s18599_s3 + $0x4f8] sm:$0xff] }
 0x145   : > { %1304 = vmatmul.f32.gmra.mxu0 %v924_v20  ;;  %v942_v16 = vld [vmem:[%s18599_s3 + $0x4b0] sm:$0xff] }
 0x146   : > { %1489 = vmatmul.f32.gmra.mxu1 %v925_v23  ;;  %1674 = vmatmul.f32.gmra.mxu2 %v926_v6 }
 0x147   : > { %9827 = vmatmul.msk.f32.gmra.mxu3 %vm1016_vm1, %v935_v10 }
 0x149   : > { %v1627_v22 = vpop.f32.mrf.mxu2 }
 0x14a   : > { %v1818_v26 = vpop.f32.mrf.mxu3  ;;  %v1628_v28 = vadd.f32 %v1627_v22, %v1443_v18  ;;  %v1260_v1 = vpop.f32.mrf.mxu0 }
 0x14b   : > { %v1445_v5 = vpop.f32.mrf.mxu1 }
 0x14c   : > { %v12272_v29 = vadd.f32 %v1812_v56, %v1628_v28  ;;  %v1446_v32 = vadd.f32 %v1445_v5, %v1260_v1  ;;  %v937_v56 = vld [vmem:[%s18599_s3 + $0x488] sm:$0xff]  ;;  %v944_v28 = vld [vmem:[%s18599_s3 + $0x4c0] sm:$0xff]  ;;  %v946_v5 = vld [vmem:[%s18599_s3 + $0x4d0] sm:$0xff] }
 0x14d   : > { %1307 = vmatmul.f32.gmra.mxu0 %v928_v30  ;;  %v945_v1 = vld [vmem:[%s18599_s3 + $0x4c8] sm:$0xff]  ;;  %v955_v30 = vld [vmem:[%s18599_s3 + $0x518] sm:$0xff] }
 0x14e   : > { %1492 = vmatmul.f32.gmra.mxu1 %v929_v17  ;;  %1677 = vmatmul.f32.gmra.mxu2 %v930_v31 }
 0x14f   : > { %9828 = vmatmul.msk.f32.gmra.mxu3 %vm1016_vm1, %v939_v25 }
 0x151   : > { %v1630_v33 = vpop.f32.mrf.mxu2 }
 0x152   : > { %v1821_v34 = vpop.f32.mrf.mxu3  ;;  %v1631_v36 = vadd.f32 %v1630_v33, %v1446_v32  ;;  %v1263_v37 = vpop.f32.mrf.mxu0 }
 0x153   : > { %v1448_v38 = vpop.f32.mrf.mxu1 }
 0x154   : > { %v12287_v45 = vadd.f32 %v1815_v12, %v1631_v36  ;;  %v1449_v47 = vadd.f32 %v1448_v38, %v1263_v37  ;;  %v940_v12 = vld [vmem:[%s18599_s3 + $0x4a0] sm:$0xff]  ;;  %v949_v38 = vld [vmem:[%s18599_s3 + $0x4e8] sm:$0xff] }
 0x155   : > { %1310 = vmatmul.f32.gmra.mxu0 %v932_v41  ;;  %v948_v37 = vld [vmem:[%s18599_s3 + $0x4e0] sm:$0xff]  ;;  %v950_v41 = vld [vmem:[%s18599_s3 + $0x4f0] sm:$0xff] }
 0x156   : > { %1495 = vmatmul.f32.gmra.mxu1 %v933_v42  ;;  %1680 = vmatmul.f32.gmra.mxu2 %v934_v43  ;;  %v959_v42 = vld [vmem:[%s18599_s3 + $0x538] sm:$0xff] }
 0x157   : > { %9829 = vmatmul.msk.f32.gmra.mxu3 %vm1016_vm1, %v943_v44 }
 0x159   : > { %v1633_v48 = vpop.f32.mrf.mxu2 }
 0x15a   : > { %v1824_v49 = vpop.f32.mrf.mxu3  ;;  %v1634_v50 = vadd.f32 %v1633_v48, %v1449_v47  ;;  %v1266_v51 = vpop.f32.mrf.mxu0 }
 0x15b   : > { %v1451_v54 = vpop.f32.mrf.mxu1 }
 0x15c   : > { %v12302_v60 = vadd.f32 %v1818_v26, %v1634_v50  ;;  %v1452_v61 = vadd.f32 %v1451_v54, %v1266_v51  ;;  %v952_v54 = vld [vmem:[%s18599_s3 + $0x500] sm:$0xff] }
 0x15d   : > { %1313 = vmatmul.f32.gmra.mxu0 %v936_v55  ;;  %v953_v55 = vld [vmem:[%s18599_s3 + $0x508] sm:$0xff] }
 0x15e   : > { %1498 = vmatmul.f32.gmra.mxu1 %v937_v56  ;;  %1683 = vmatmul.f32.gmra.mxu2 %v938_v58  ;;  %v954_v56 = vld [vmem:[%s18599_s3 + $0x510] sm:$0xff]  ;;  %v963_v58 = vld [vmem:[%s18599_s3 + $0x558] sm:$0xff] }
 0x15f   : > { %9830 = vmatmul.msk.f32.gmra.mxu3 %vm1016_vm1, %v947_v59 }
 0x161   : > { %v1636_v62 = vpop.f32.mrf.mxu2 }
 0x162   : > { %v1827_v63 = vpop.f32.mrf.mxu3  ;;  %v1637_v3 = vadd.f32 %v1636_v62, %v1452_v61  ;;  %v1269_v7 = vpop.f32.mrf.mxu0 }
 0x163   : > { %v1454_v11 = vpop.f32.mrf.mxu1 }
 0x164   : > { %v12317_v20 = vadd.f32 %v1821_v34, %v1637_v3  ;;  %v1455_v23 = vadd.f32 %v1454_v11, %v1269_v7 }
 0x165   : > { %1316 = vmatmul.f32.gmra.mxu0 %v940_v12  ;;  %v956_v12 = vld [vmem:[%s18599_s3 + $0x520] sm:$0xff] }
 0x166   : > { %18600 = vst [vmem:[#allocation3_spill] sm:$0xff] %v12317_v20  ;;  %1501 = vmatmul.f32.gmra.mxu1 %v941_v15  ;;  %1686 = vmatmul.f32.gmra.mxu2 %v942_v16  ;;  %v957_v15 = vld [vmem:[%s18599_s3 + $0x528] sm:$0xff]  ;;  %v958_v16 = vld [vmem:[%s18599_s3 + $0x530] sm:$0xff] }
 0x167   : > { %9831 = vmatmul.msk.f32.gmra.mxu3 %vm1016_vm1, %v951_v19  ;;  %v967_v19 = vld [vmem:[%s18599_s3 + $0x578] sm:$0xff] }
 0x169   : > { %v1639_v6 = vpop.f32.mrf.mxu2 }
 0x16a   : > { %v1830_v10 = vpop.f32.mrf.mxu3  ;;  %v1640_v18 = vadd.f32 %v1639_v6, %v1455_v23  ;;  %v1272_v22 = vpop.f32.mrf.mxu0 }
 0x16b   : > { %v1457_v26 = vpop.f32.mrf.mxu1 }
 0x16c   : > { %v12332_v17 = vadd.f32 %v1824_v49, %v1640_v18  ;;  %v1458_v31 = vadd.f32 %v1457_v26, %v1272_v22 }
 0x16d   : > { %1319 = vmatmul.f32.gmra.mxu0 %v944_v28 }
 0x16e   : > { %18601 = vst [vmem:[#allocation4_spill] sm:$0xff] %v12332_v17  ;;  %1504 = vmatmul.f32.gmra.mxu1 %v945_v1  ;;  %1689 = vmatmul.f32.gmra.mxu2 %v946_v5  ;;  %v960_v1 = vld [vmem:[%s18599_s3 + $0x540] sm:$0xff]  ;;  %v961_v5 = vld [vmem:[%s18599_s3 + $0x548] sm:$0xff] }
 0x16f   : > { %9832 = vmatmul.msk.f32.gmra.mxu3 %vm1016_vm1, %v955_v30  ;;  %v962_v30 = vld [vmem:[%s18599_s3 + $0x550] sm:$0xff]  ;;  %v11278_v17 = vld [vmem:[%s11460_s0 + $0x188] sm:$0xff] }
 0x171   : > { %v1642_v25 = vpop.f32.mrf.mxu2 }
 0x172   : > { %v1833_v32 = vpop.f32.mrf.mxu3  ;;  %v1643_v33 = vadd.f32 %v1642_v25, %v1458_v31  ;;  %v1275_v34 = vpop.f32.mrf.mxu0  ;;  %v971_v31 = vld [vmem:[%s18599_s3 + $0x598] sm:$0xff] }
 0x173   : > { %v1460_v36 = vpop.f32.mrf.mxu1 }
 0x174   : > { %v12347_v43 = vadd.f32 %v1827_v63, %v1643_v33  ;;  %v1461_v44 = vadd.f32 %v1460_v36, %v1275_v34 }
 0x175   : > { %1322 = vmatmul.f32.gmra.mxu0 %v948_v37 }
 0x176   : > { %18602 = vst [vmem:[#allocation5_spill] sm:$0xff] %v12347_v43  ;;  %1507 = vmatmul.f32.gmra.mxu1 %v949_v38  ;;  %1692 = vmatmul.f32.gmra.mxu2 %v950_v41  ;;  %v964_v41 = vld [vmem:[%s18599_s3 + $0x560] sm:$0xff]  ;;  %v13490_v43 = vld [vmem:[%s11460_s0 + $0x128] sm:$0xff] }
 0x177   : > { %9833 = vmatmul.msk.f32.gmra.mxu3 %vm1016_vm1, %v959_v42  ;;  %v965_v42 = vld [vmem:[%s18599_s3 + $0x568] sm:$0xff] }
 0x179   : > { %v1645_v47 = vpop.f32.mrf.mxu2 }
 0x17a   : > { %v1836_v48 = vpop.f32.mrf.mxu3  ;;  %v1646_v49 = vadd.f32 %v1645_v47, %v1461_v44  ;;  %v1278_v50 = vpop.f32.mrf.mxu0  ;;  %v966_v44 = vld [vmem:[%s18599_s3 + $0x570] sm:$0xff]  ;;  %v975_v47 = vld [vmem:[%s18599_s3 + $0x5b8] sm:$0xff] }
 0x17b   : > { %v1463_v51 = vpop.f32.mrf.mxu1 }
 0x17c   : > { %v12362_v59 = vadd.f32 %v1830_v10, %v1646_v49  ;;  %v1464_v61 = vadd.f32 %v1463_v51, %v1278_v50 }
 0x17d   : > { %1325 = vmatmul.f32.gmra.mxu0 %v952_v54 }
 0x17e   : > { %18603 = vst [vmem:[#allocation6_spill] sm:$0xff] %v12362_v59  ;;  %1510 = vmatmul.f32.gmra.mxu1 %v953_v55  ;;  %1695 = vmatmul.f32.gmra.mxu2 %v954_v56  ;;  %v11272_v59 = vld [vmem:[%s11460_s0 + $0x1a0] sm:$0xff] }
 0x17f   : > { %9834 = vmatmul.msk.f32.gmra.mxu3 %vm1016_vm1, %v963_v58  ;;  %v968_v58 = vld [vmem:[%s18599_s3 + $0x580] sm:$0xff] }
 0x181   : > { %v1648_v62 = vpop.f32.mrf.mxu2 }
 0x182   : > { %v1839_v63 = vpop.f32.mrf.mxu3  ;;  %v1649_v3 = vadd.f32 %v1648_v62, %v1464_v61  ;;  %v1281_v7 = vpop.f32.mrf.mxu0  ;;  %v969_v61 = vld [vmem:[%s18599_s3 + $0x588] sm:$0xff]  ;;  %v970_v62 = vld [vmem:[%s18599_s3 + $0x590] sm:$0xff] }
 0x183   : > { %v1466_v11 = vpop.f32.mrf.mxu1 }
 0x184   : > { %v12377_v23 = vadd.f32 %v1833_v32, %v1649_v3  ;;  %v1467_v6 = vadd.f32 %v1466_v11, %v1281_v7 }
 0x185   : > { %1328 = vmatmul.f32.gmra.mxu0 %v956_v12 }
 0x186   : > { %18604 = vst [vmem:[#allocation7_spill] sm:$0xff] %v12377_v23  ;;  %1513 = vmatmul.f32.gmra.mxu1 %v957_v15  ;;  %1698 = vmatmul.f32.gmra.mxu2 %v958_v16  ;;  %v10018_v23 = vld [vmem:[%s18599_s3 + $0xc50] sm:$0xff] }
 0x187   : > { %9835 = vmatmul.msk.f32.gmra.mxu3 %vm1016_vm1, %v967_v19 }
 0x189   : > { %v1651_v10 = vpop.f32.mrf.mxu2 }
 0x18a   : > { %v1842_v18 = vpop.f32.mrf.mxu3  ;;  %v1652_v22 = vadd.f32 %v1651_v10, %v1467_v6  ;;  %v1284_v26 = vpop.f32.mrf.mxu0  ;;  %v972_v6 = vld [vmem:[%s18599_s3 + $0x5a0] sm:$0xff]  ;;  %v973_v10 = vld [vmem:[%s18599_s3 + $0x5a8] sm:$0xff] }
 0x18b   : > { %v1469_v28 = vpop.f32.mrf.mxu1 }
 0x18c   : > { %v12392_v25 = vadd.f32 %v1836_v48, %v1652_v22  ;;  %v1470_v32 = vadd.f32 %v1469_v28, %v1284_v26  ;;  %v983_v22 = vld [vmem:[%s18599_s3 + $0x5f8] sm:$0xff] }
 0x18d   : > { %1331 = vmatmul.f32.gmra.mxu0 %v960_v1 }
 0x18e   : > { %18605 = vst [vmem:[#allocation8_spill] sm:$0xff] %v12392_v25  ;;  %1516 = vmatmul.f32.gmra.mxu1 %v961_v5  ;;  %1701 = vmatmul.f32.gmra.mxu2 %v962_v30  ;;  %v10014_v25 = vld [vmem:[%s18599_s3 + $0xc30] sm:$0xff] }
 0x18f   : > { %9836 = vmatmul.msk.f32.gmra.mxu3 %vm1016_vm1, %v971_v31 }
 0x191   : > { %v1654_v33 = vpop.f32.mrf.mxu2 }
 0x192   : > { %v1845_v34 = vpop.f32.mrf.mxu3  ;;  %v1655_v36 = vadd.f32 %v1654_v33, %v1470_v32  ;;  %v1287_v37 = vpop.f32.mrf.mxu0  ;;  %v976_v33 = vld [vmem:[%s18599_s3 + $0x5c0] sm:$0xff] }
 0x193   : > { %v1472_v38 = vpop.f32.mrf.mxu1 }
 0x194   : > { %v12407_v48 = vadd.f32 %v1839_v63, %v1655_v36  ;;  %v1473_v49 = vadd.f32 %v1472_v38, %v1287_v37  ;;  %v979_v63 = vld [vmem:[%s18599_s3 + $0x5d8] sm:$0xff]  ;;  %v978_v36 = vld [vmem:[%s18599_s3 + $0x5d0] sm:$0xff] }
 0x195   : > { %1334 = vmatmul.f32.gmra.mxu0 %v964_v41  ;;  %v987_v37 = vld [vmem:[%s18599_s3 + $0x618] sm:$0xff] }
 0x196   : > { %18606 = vst [vmem:[#allocation9_spill] sm:$0xff] %v12407_v48  ;;  %1519 = vmatmul.f32.gmra.mxu1 %v965_v42  ;;  %1704 = vmatmul.f32.gmra.mxu2 %v966_v44  ;;  %v10010_v48 = vld [vmem:[%s18599_s3 + $0xc10] sm:$0xff] }
 0x197   : > { %9837 = vmatmul.msk.f32.gmra.mxu3 %vm1016_vm1, %v975_v47 }
 0x199   : > { %v1657_v50 = vpop.f32.mrf.mxu2 }
 0x19a   : > { %v1848_v51 = vpop.f32.mrf.mxu3  ;;  %v1658_v54 = vadd.f32 %v1657_v50, %v1473_v49  ;;  %v1290_v55 = vpop.f32.mrf.mxu0 }
 0x19b   : > { %v1475_v56 = vpop.f32.mrf.mxu1 }
 0x19c   : > { %v12422_v3 = vadd.f32 %v1842_v18, %v1658_v54  ;;  %v1476_v7 = vadd.f32 %v1475_v56, %v1290_v55  ;;  %v974_v18 = vld [vmem:[%s18599_s3 + $0x5b0] sm:$0xff]  ;;  %v980_v54 = vld [vmem:[%s18599_s3 + $0x5e0] sm:$0xff]  ;;  %v991_v56 = vld [vmem:[%s18599_s3 + $0x638] sm:$0xff] }
 0x19d   : > { %1337 = vmatmul.f32.gmra.mxu0 %v968_v58  ;;  %v982_v55 = vld [vmem:[%s18599_s3 + $0x5f0] sm:$0xff] }
 0x19e   : > { %18607 = vst [vmem:[#allocation10_spill] sm:$0xff] %v12422_v3  ;;  %1522 = vmatmul.f32.gmra.mxu1 %v969_v61  ;;  %1707 = vmatmul.f32.gmra.mxu2 %v970_v62  ;;  %v10006_v3 = vld [vmem:[%s18599_s3 + $0xbf0] sm:$0xff] }
 0x19f   : > { %9838 = vmatmul.msk.f32.gmra.mxu3 %vm1016_vm1, %v979_v63 }
 0x1a1   : > { %v1660_v11 = vpop.f32.mrf.mxu2 }
 0x1a2   : > { %v1851_v12 = vpop.f32.mrf.mxu3  ;;  %v1661_v15 = vadd.f32 %v1660_v11, %v1476_v7  ;;  %v1293_v16 = vpop.f32.mrf.mxu0 }
 0x1a3   : > { %v1478_v19 = vpop.f32.mrf.mxu1 }
 0x1a4   : > { %v12437_v26 = vadd.f32 %v1845_v34, %v1661_v15  ;;  %v1479_v28 = vadd.f32 %v1478_v19, %v1293_v16  ;;  %v977_v34 = vld [vmem:[%s18599_s3 + $0x5c8] sm:$0xff]  ;;  %v984_v16 = vld [vmem:[%s18599_s3 + $0x600] sm:$0xff]  ;;  %v986_v19 = vld [vmem:[%s18599_s3 + $0x610] sm:$0xff] }
 0x1a5   : > { %1340 = vmatmul.f32.gmra.mxu0 %v972_v6  ;;  %v995_v6 = vld [vmem:[%s18599_s3 + $0x658] sm:$0xff] }
 0x1a6   : > { %18608 = vst [vmem:[#allocation11_spill] sm:$0xff] %v12437_v26  ;;  %1525 = vmatmul.f32.gmra.mxu1 %v973_v10  ;;  %1710 = vmatmul.f32.gmra.mxu2 %v974_v18  ;;  %v10002_v26 = vld [vmem:[%s18599_s3 + $0xbd0] sm:$0xff] }
 0x1a7   : > { %9839 = vmatmul.msk.f32.gmra.mxu3 %vm1016_vm1, %v983_v22 }
 0x1a9   : > { %v1663_v1 = vpop.f32.mrf.mxu2 }
 0x1aa   : > { %v1854_v5 = vpop.f32.mrf.mxu3  ;;  %v1664_v30 = vadd.f32 %v1663_v1, %v1479_v28  ;;  %v1296_v31 = vpop.f32.mrf.mxu0 }
 0x1ab   : > { %v1481_v32 = vpop.f32.mrf.mxu1 }
 0x1ac   : > { %v12452_v38 = vadd.f32 %v1848_v51, %v1664_v30  ;;  %v1482_v41 = vadd.f32 %v1481_v32, %v1296_v31  ;;  %v981_v51 = vld [vmem:[%s18599_s3 + $0x5e8] sm:$0xff]  ;;  %v988_v32 = vld [vmem:[%s18599_s3 + $0x620] sm:$0xff] }
 0x1ad   : > { %1343 = vmatmul.f32.gmra.mxu0 %v976_v33  ;;  %v990_v33 = vld [vmem:[%s18599_s3 + $0x630] sm:$0xff] }
 0x1ae   : > { %18609 = vst [vmem:[#allocation12_spill] sm:$0xff] %v12452_v38  ;;  %1528 = vmatmul.f32.gmra.mxu1 %v977_v34  ;;  %1713 = vmatmul.f32.gmra.mxu2 %v978_v36  ;;  %v999_v34 = vld [vmem:[%s18599_s3 + $0x678] sm:$0xff]  ;;  %v9998_v38 = vld [vmem:[%s18599_s3 + $0xbb0] sm:$0xff] }
 0x1af   : > { %9840 = vmatmul.msk.f32.gmra.mxu3 %vm1016_vm1, %v987_v37 }
 0x1b1   : > { %v1666_v42 = vpop.f32.mrf.mxu2 }
 0x1b2   : > { %v1857_v44 = vpop.f32.mrf.mxu3  ;;  %v1667_v47 = vadd.f32 %v1666_v42, %v1482_v41  ;;  %v1299_v49 = vpop.f32.mrf.mxu0 }
 0x1b3   : > { %v1484_v50 = vpop.f32.mrf.mxu1 }
 0x1b4   : > { %v12467_v58 = vadd.f32 %v1851_v12, %v1667_v47  ;;  %v1485_v61 = vadd.f32 %v1484_v50, %v1299_v49  ;;  %v985_v12 = vld [vmem:[%s18599_s3 + $0x608] sm:$0xff] }
 0x1b5   : > { %1346 = vmatmul.f32.gmra.mxu0 %v980_v54  ;;  %v992_v54 = vld [vmem:[%s18599_s3 + $0x640] sm:$0xff] }
 0x1b6   : > { %18610 = vst [vmem:[#allocation13_spill] sm:$0xff] %v12467_v58  ;;  %1531 = vmatmul.f32.gmra.mxu1 %v981_v51  ;;  %1716 = vmatmul.f32.gmra.mxu2 %v982_v55  ;;  %v994_v51 = vld [vmem:[%s18599_s3 + $0x650] sm:$0xff]  ;;  %v1003_v55 = vld [vmem:[%s18599_s3 + $0x698] sm:$0xff] }
 0x1b7   : > { %9841 = vmatmul.msk.f32.gmra.mxu3 %vm1016_vm1, %v991_v56  ;;  %v9994_v58 = vld [vmem:[%s18599_s3 + $0xb90] sm:$0xff] }
 0x1b9   : > { %v1669_v62 = vpop.f32.mrf.mxu2 }
 0x1ba   : > { %v1860_v63 = vpop.f32.mrf.mxu3  ;;  %v1670_v7 = vadd.f32 %v1669_v62, %v1485_v61  ;;  %v1302_v11 = vpop.f32.mrf.mxu0 }
 0x1bb   : > { %v1487_v15 = vpop.f32.mrf.mxu1 }
 0x1bc   : > { %v12482_v10 = vadd.f32 %v1854_v5, %v1670_v7  ;;  %v1488_v18 = vadd.f32 %v1487_v15, %v1302_v11  ;;  %v989_v5 = vld [vmem:[%s18599_s3 + $0x628] sm:$0xff] }
 0x1bd   : > { %1349 = vmatmul.f32.gmra.mxu0 %v984_v16 }
 0x1be   : > { %18611 = vst [vmem:[#allocation14_spill] sm:$0xff] %v12482_v10  ;;  %1534 = vmatmul.f32.gmra.mxu1 %v985_v12  ;;  %1719 = vmatmul.f32.gmra.mxu2 %v986_v19  ;;  %v996_v12 = vld [vmem:[%s18599_s3 + $0x660] sm:$0xff]  ;;  %v998_v19 = vld [vmem:[%s18599_s3 + $0x670] sm:$0xff] }
 0x1bf   : > { %9842 = vmatmul.msk.f32.gmra.mxu3 %vm1016_vm1, %v995_v6  ;;  %v1007_v6 = vld [vmem:[%s18599_s3 + $0x6b8] sm:$0xff]  ;;  %v9990_v10 = vld [vmem:[%s18599_s3 + $0xb70] sm:$0xff] }
 0x1c1   : > { %v1672_v22 = vpop.f32.mrf.mxu2 }
 0x1c2   : > { %v1863_v28 = vpop.f32.mrf.mxu3  ;;  %v1673_v1 = vadd.f32 %v1672_v22, %v1488_v18  ;;  %v1305_v30 = vpop.f32.mrf.mxu0 }
 0x1c3   : > { %v1490_v31 = vpop.f32.mrf.mxu1 }
 0x1c4   : > { %v12497_v36 = vadd.f32 %v1857_v44, %v1673_v1  ;;  %v1491_v37 = vadd.f32 %v1490_v31, %v1305_v30  ;;  %v993_v44 = vld [vmem:[%s18599_s3 + $0x648] sm:$0xff] }
 0x1c5   : > { %1352 = vmatmul.f32.gmra.mxu0 %v988_v32 }
 0x1c6   : > { %18612 = vst [vmem:[#allocation15_spill] sm:$0xff] %v12497_v36  ;;  %1537 = vmatmul.f32.gmra.mxu1 %v989_v5  ;;  %1722 = vmatmul.f32.gmra.mxu2 %v990_v33  ;;  %v1000_v33 = vld [vmem:[%s18599_s3 + $0x680] sm:$0xff]  ;;  %v9986_v36 = vld [vmem:[%s18599_s3 + $0xb50] sm:$0xff] }
 0x1c7   : > { %9843 = vmatmul.msk.f32.gmra.mxu3 %vm1016_vm1, %v999_v34  ;;  %v1002_v34 = vld [vmem:[%s18599_s3 + $0x690] sm:$0xff] }
 0x1c9   : > { %v1675_v41 = vpop.f32.mrf.mxu2 }
 0x1ca   : > { %v1866_v42 = vpop.f32.mrf.mxu3  ;;  %v1676_v47 = vadd.f32 %v1675_v41, %v1491_v37  ;;  %v1308_v49 = vpop.f32.mrf.mxu0  ;;  %v1011_v37 = vld [vmem:[%s18599_s3 + $0x6d8] sm:$0xff] }
 0x1cb   : > { %v1493_v50 = vpop.f32.mrf.mxu1 }
 0x1cc   : > { %v12512_v56 = vadd.f32 %v1860_v63, %v1676_v47  ;;  %v1494_v61 = vadd.f32 %v1493_v50, %v1308_v49  ;;  %v997_v63 = vld [vmem:[%s18599_s3 + $0x668] sm:$0xff] }
 0x1cd   : > { %1355 = vmatmul.f32.gmra.mxu0 %v992_v54 }
 0x1ce   : > { %18613 = vst [vmem:[#allocation16_spill] sm:$0xff] %v12512_v56  ;;  %1540 = vmatmul.f32.gmra.mxu1 %v993_v44  ;;  %1725 = vmatmul.f32.gmra.mxu2 %v994_v51  ;;  %v9982_v56 = vld [vmem:[%s18599_s3 + $0xb30] sm:$0xff] }
 0x1cf   : > { %9844 = vmatmul.msk.f32.gmra.mxu3 %vm1016_vm1, %v1003_v55  ;;  %v1004_v55 = vld [vmem:[%s18599_s3 + $0x6a0] sm:$0xff] }
 0x1d1   : > { %v1678_v62 = vpop.f32.mrf.mxu2 }
 0x1d2   : > { %v1869_v7 = vpop.f32.mrf.mxu3  ;;  %v1679_v11 = vadd.f32 %v1678_v62, %v1494_v61  ;;  %v1311_v15 = vpop.f32.mrf.mxu0  ;;  %v1006_v61 = vld [vmem:[%s18599_s3 + $0x6b0] sm:$0xff]  ;;  %v1015_v62 = vld [vmem:[%s18599_s3 + $0x6f8] sm:$0xff] }
 0x1d3   : > { %v1496_v16 = vpop.f32.mrf.mxu1 }
 0x1d4   : > { %v12527_v18 = vadd.f32 %v1863_v28, %v1679_v11  ;;  %v1497_v22 = vadd.f32 %v1496_v16, %v1311_v15  ;;  %v1001_v28 = vld [vmem:[%s18599_s3 + $0x688] sm:$0xff] }
 0x1d5   : > { %1358 = vmatmul.f32.gmra.mxu0 %v996_v12 }
 0x1d6   : > { %18614 = vst [vmem:[#allocation17_spill] sm:$0xff] %v12527_v18  ;;  %1543 = vmatmul.f32.gmra.mxu1 %v997_v63  ;;  %1728 = vmatmul.f32.gmra.mxu2 %v998_v19  ;;  %v9978_v18 = vld [vmem:[%s18599_s3 + $0xb10] sm:$0xff] }
 0x1d7   : > { %9845 = vmatmul.msk.f32.gmra.mxu3 %vm1016_vm1, %v1007_v6 }
 0x1d9   : > { %v1681_v1 = vpop.f32.mrf.mxu2 }
 0x1da   : > { %v1872_v30 = vpop.f32.mrf.mxu3  ;;  %v1682_v31 = vadd.f32 %v1681_v1, %v1497_v22  ;;  %v1314_v32 = vpop.f32.mrf.mxu0  ;;  %v1008_v22 = vld [vmem:[%s18599_s3 + $0x6c0] sm:$0xff]  ;;  %v1010_v1 = vld [vmem:[%s18599_s3 + $0x6d0] sm:$0xff] }
 0x1db   : > { %v1499_v5 = vpop.f32.mrf.mxu1 }
 0x1dc   : > { %v12542_v41 = vadd.f32 %v1866_v42, %v1682_v31  ;;  %v1500_v47 = vadd.f32 %v1499_v5, %v1314_v32  ;;  %v1005_v42 = vld [vmem:[%s18599_s3 + $0x6a8] sm:$0xff]  ;;  %v9848_v31 = vld [vmem:[%s18599_s3 + $0x700] sm:$0xff] }
 0x1dd   : > { %1361 = vmatmul.f32.gmra.mxu0 %v1000_v33 }
 0x1de   : > { %18615 = vst [vmem:[#allocation18_spill] sm:$0xff] %v12542_v41  ;;  %1546 = vmatmul.f32.gmra.mxu1 %v1001_v28  ;;  %1731 = vmatmul.f32.gmra.mxu2 %v1002_v34  ;;  %v9974_v41 = vld [vmem:[%s18599_s3 + $0xaf0] sm:$0xff] }
 0x1df   : > { %9846 = vmatmul.msk.f32.gmra.mxu3 %vm1016_vm1, %v1011_v37 }
 0x1e1   : > { %v1684_v49 = vpop.f32.mrf.mxu2 }
 0x1e2   : > { %v1875_v50 = vpop.f32.mrf.mxu3  ;;  %v1685_v54 = vadd.f32 %v1684_v49, %v1500_v47  ;;  %v1317_v44 = vpop.f32.mrf.mxu0  ;;  %v1012_v49 = vld [vmem:[%s18599_s3 + $0x6e0] sm:$0xff] }
 0x1e3   : > { %v1502_v51 = vpop.f32.mrf.mxu1 }
 0x1e4   : > { %v12557_v11 = vadd.f32 %v1869_v7, %v1685_v54  ;;  %v1503_v15 = vadd.f32 %v1502_v51, %v1317_v44  ;;  %v1009_v7 = vld [vmem:[%s18599_s3 + $0x6c8] sm:$0xff]  ;;  %v9852_v44 = vld [vmem:[%s18599_s3 + $0x720] sm:$0xff] }
 0x1e5   : > { %1364 = vmatmul.f32.gmra.mxu0 %v1004_v55  ;;  %v1013_v54 = vld [vmem:[%s18599_s3 + $0x6e8] sm:$0xff] }
 0x1e6   : > { %18616 = vst [vmem:[#allocation19_spill] sm:$0xff] %v12557_v11  ;;  %1549 = vmatmul.f32.gmra.mxu1 %v1005_v42  ;;  %1734 = vmatmul.f32.gmra.mxu2 %v1006_v61  ;;  %v9970_v11 = vld [vmem:[%s18599_s3 + $0xad0] sm:$0xff] }
 0x1e7   : > { %9847 = vmatmul.msk.f32.gmra.mxu3 %vm1016_vm1, %v1015_v62 }
 0x1e9   : > { %v1687_v16 = vpop.f32.mrf.mxu2 }
 0x1ea   : > { %v1878_v12 = vpop.f32.mrf.mxu3  ;;  %v1688_v63 = vadd.f32 %v1687_v16, %v1503_v15  ;;  %v1320_v19 = vpop.f32.mrf.mxu0 }
 0x1eb   : > { %v1505_v6 = vpop.f32.mrf.mxu1 }
 0x1ec   : > { %v12572_v32 = vadd.f32 %v1872_v30, %v1688_v63  ;;  %v1506_v5 = vadd.f32 %v1505_v6, %v1320_v19  ;;  %v1014_v30 = vld [vmem:[%s18599_s3 + $0x6f0] sm:$0xff]  ;;  %v9849_v63 = vld [vmem:[%s18599_s3 + $0x708] sm:$0xff]  ;;  %v9856_v19 = vld [vmem:[%s18599_s3 + $0x740] sm:$0xff] }
 0x1ed   : > { %1367 = vmatmul.f32.gmra.mxu0 %v1008_v22  ;;  %v9851_v6 = vld [vmem:[%s18599_s3 + $0x718] sm:$0xff] }
 0x1ee   : > { %18617 = vst [vmem:[#allocation20_spill] sm:$0xff] %v12572_v32  ;;  %1552 = vmatmul.f32.gmra.mxu1 %v1009_v7  ;;  %1737 = vmatmul.f32.gmra.mxu2 %v1010_v1  ;;  %v11243_v7 = vld [vmem:[%s11460_s0 + $0x78] sm:$0xff]  ;;  %v9966_v32 = vld [vmem:[%s18599_s3 + $0xab0] sm:$0xff] }
 0x1ef   : > { %2340 = vmatmul.f32.vlgmr.msrb.gmra.mxu3 %v9848_v31 }
 0x1f1   : > { %v1690_v33 = vpop.f32.mrf.mxu2 }
 0x1f2   : > { %v1881_v28 = vpop.f32.mrf.mxu3  ;;  %v1691_v34 = vadd.f32 %v1690_v33, %v1506_v5  ;;  %v1323_v37 = vpop.f32.mrf.mxu0  ;;  %v11244_v33 = vld [vmem:[%s11460_s0 + $0x70] sm:$0xff] }
 0x1f3   : > { %v1508_v47 = vpop.f32.mrf.mxu1 }
 0x1f4   : > { %v12586_v51 = vadd.f32 %v1875_v50, %v1691_v34  ;;  %v1509_v55 = vadd.f32 %v1508_v47, %v1323_v37  ;;  %v9850_v50 = vld [vmem:[%s18599_s3 + $0x710] sm:$0xff] }
 0x1f5   : > { %1370 = vmatmul.f32.gmra.mxu0 %v1012_v49  ;;  %v9854_v49 = vld [vmem:[%s18599_s3 + $0x730] sm:$0xff] }
 0x1f6   : > { %18618 = vst [vmem:[#allocation21_spill] sm:$0xff] %v12586_v51  ;;  %1555 = vmatmul.f32.gmra.mxu1 %v1013_v54  ;;  %1740 = vmatmul.f32.gmra.mxu2 %v1014_v30  ;;  %v9860_v54 = vld [vmem:[%s18599_s3 + $0x760] sm:$0xff]  ;;  %v9855_v30 = vld [vmem:[%s18599_s3 + $0x738] sm:$0xff]  ;;  %v9962_v51 = vld [vmem:[%s18599_s3 + $0xa90] sm:$0xff] }
 0x1f7   : > { %2343 = vmatmul.f32.gmra.mxu3 %v9852_v44  ;;  %v11245_v44 = vld [vmem:[%s11460_s0 + $0x68] sm:$0xff] }
 0x1f9   : > { %v1693_v42 = vpop.f32.mrf.mxu2 }
 0x1fa   : > { %v1884_v61 = vpop.f32.mrf.mxu3  ;;  %v1694_v62 = vadd.f32 %v1693_v42, %v1509_v55  ;;  %v1326_v15 = vpop.f32.mrf.mxu0  ;;  %v11246_v42 = vld [vmem:[%s11460_s0 + $0x60] sm:$0xff] }
 0x1fb   : > { %v1511_v16 = vpop.f32.mrf.mxu1 }
 0x1fc   : > { %v12600_v22 = vadd.f32 %v1878_v12, %v1694_v62  ;;  %v1512_v1 = vadd.f32 %v1511_v16, %v1326_v15  ;;  %v9853_v12 = vld [vmem:[%s18599_s3 + $0x728] sm:$0xff] }
 0x1fd   : > { %2525 = vmatmul.f32.vlgmr.msrb.gmra.mxu0 %v9849_v63  ;;  %v11247_v63 = vld [vmem:[%s11460_s0 + $0x58] sm:$0xff] }
 0x1fe   : > { %18619 = vst [vmem:[#allocation22_spill] sm:$0xff] %v12600_v22  ;;  %2710 = vmatmul.f32.vlgmr.msrb.gmra.mxu1 %v9850_v50  ;;  %10073 = vmatmul.msk.f32.vlgmr.msrb.gmra.mxu2 %vm1016_vm1, %v9851_v6  ;;  %v9958_v22 = vld [vmem:[%s18599_s3 + $0xa70] sm:$0xff] }
 0x1ff   : > { %2346 = vmatmul.f32.gmra.mxu3 %v9856_v19  ;;  %5710 = vmatpush.msrb.mxu2 %v11243_v7  ;;  %v9858_v7 = vld [vmem:[%s18599_s3 + $0x750] sm:$0xff] }
 0x201   : > { %v1696_v31 = vpop.f32.mrf.mxu2  ;;  %5711 = vmatpush.msrb.mxu2 %v11244_v33  ;;  %v11248_v33 = vld [vmem:[%s11460_s0 + $0x50] sm:$0xff] }
 0x202   : > { %v1887_v5 = vpop.f32.mrf.mxu3  ;;  %v1697_v34 = vadd.f32 %v1696_v31, %v1512_v1  ;;  %v1329_v37 = vpop.f32.mrf.mxu0  ;;  %v9864_v1 = vld [vmem:[%s18599_s3 + $0x780] sm:$0xff]  ;;  %v9859_v31 = vld [vmem:[%s18599_s3 + $0x758] sm:$0xff] }
 0x203   : > { %v1514_v47 = vpop.f32.mrf.mxu1  ;;  %5712 = vmatpush.msrb.mxu2 %v11245_v44 }
 0x204   : > { %v12618_v55 = vadd.f32 %v1881_v28, %v1697_v34  ;;  %v1515_v62 = vadd.f32 %v1514_v47, %v1329_v37  ;;  %v9857_v28 = vld [vmem:[%s18599_s3 + $0x748] sm:$0xff] }
 0x205   : > { %2528 = vmatmul.f32.gmra.mxu0 %v9853_v12  ;;  %5713 = vmatpush.msrb.mxu2 %v11246_v42  ;;  %v11249_v37 = vld [vmem:[%s11460_s0 + $0x48] sm:$0xff] }
 0x206   : > { %18620 = vst [vmem:[#allocation23_spill] sm:$0xff] %v12618_v55  ;;  %2713 = vmatmul.f32.gmra.mxu1 %v9854_v49  ;;  %10074 = vmatmul.msk.f32.gmra.mxu2 %vm1016_vm1, %v9855_v30  ;;  %v9954_v55 = vld [vmem:[%s18599_s3 + $0xa50] sm:$0xff] }
 0x207   : > { %2349 = vmatmul.f32.gmra.mxu3 %v9860_v54  ;;  %5714 = vmatpush.msrb.mxu2 %v11247_v63  ;;  %v11250_v54 = vld [vmem:[%s11460_s0 + $0x40] sm:$0xff]  ;;  %v9863_v63 = vld [vmem:[%s18599_s3 + $0x778] sm:$0xff] }
 0x209   : > { %v1699_v15 = vpop.f32.mrf.mxu2  ;;  %5715 = vmatpush.msrb.mxu2 %v11248_v33 }
 0x20a   : > { %v1890_v16 = vpop.f32.mrf.mxu3  ;;  %v1700_v50 = vadd.f32 %v1699_v15, %v1515_v62  ;;  %v1332_v19 = vpop.f32.mrf.mxu0  ;;  %v9862_v62 = vld [vmem:[%s18599_s3 + $0x770] sm:$0xff]  ;;  %v9868_v15 = vld [vmem:[%s18599_s3 + $0x7a0] sm:$0xff] }
 0x20b   : > { %v1517_v6 = vpop.f32.mrf.mxu1  ;;  %5716 = vmatpush.msrb.mxu2 %v11249_v37 }
 0x20c   : > { %v12636_v34 = vadd.f32 %v1884_v61, %v1700_v50  ;;  %v1518_v47 = vadd.f32 %v1517_v6, %v1332_v19  ;;  %v9861_v61 = vld [vmem:[%s18599_s3 + $0x768] sm:$0xff]  ;;  %v11251_v50 = vld [vmem:[%s11460_s0 + $0x38] sm:$0xff]  ;;  %v11252_v6 = vld [vmem:[%s11460_s0 + $0x30] sm:$0xff] }
 0x20d   : > { %2531 = vmatmul.f32.gmra.mxu0 %v9857_v28  ;;  %5717 = vmatpush.msrb.mxu2 %v11250_v54  ;;  %v9872_v54 = vld [vmem:[%s18599_s3 + $0x7c0] sm:$0xff] }
 0x20e   : > { %18621 = vst [vmem:[#allocation24_spill] sm:$0xff] %v12636_v34  ;;  %2716 = vmatmul.f32.gmra.mxu1 %v9858_v7  ;;  %10075 = vmatmul.msk.f32.gmra.mxu2 %vm1016_vm1, %v9859_v31  ;;  %v11253_v31 = vld [vmem:[%s11460_s0 + $0x28] sm:$0xff]  ;;  %v9950_v34 = vld [vmem:[%s18599_s3 + $0xa30] sm:$0xff] }
 0x20f   : > { %2352 = vmatmul.f32.gmra.mxu3 %v9864_v1  ;;  %5718 = vmatpush.msrb.mxu2 %v11251_v50  ;;  %v11256_v50 = vld [vmem:[%s11460_s0 + $0x10] sm:$0xff] }
 0x211   : > { %v1702_v12 = vpop.f32.mrf.mxu2  ;;  %5719 = vmatpush.msrb.mxu2 %v11252_v6 }
 0x212   : > { %v1893_v49 = vpop.f32.mrf.mxu3  ;;  %v1703_v30 = vadd.f32 %v1702_v12, %v1518_v47  ;;  %v1335_v44 = vpop.f32.mrf.mxu0  ;;  %v9866_v12 = vld [vmem:[%s18599_s3 + $0x790] sm:$0xff] }
 0x213   : > { %v1520_v42 = vpop.f32.mrf.mxu1  ;;  %5720 = vmatpush.msrb.mxu2 %v11253_v31  ;;  %v9870_v31 = vld [vmem:[%s18599_s3 + $0x7b0] sm:$0xff] }
 0x214   : > { %v12654_v19 = vadd.f32 %v1887_v5, %v1703_v30  ;;  %v1521_v28 = vadd.f32 %v1520_v42, %v1335_v44  ;;  %v9865_v5 = vld [vmem:[%s18599_s3 + $0x788] sm:$0xff]  ;;  %v9867_v30 = vld [vmem:[%s18599_s3 + $0x798] sm:$0xff]  ;;  %v11254_v44 = vld [vmem:[%s11460_s0 + $0x20] sm:$0xff] }
 0x215   : > { %2534 = vmatmul.f32.gmra.mxu0 %v9861_v61  ;;  %5721 = vmatpush.msrb.mxu2 %v11254_v44  ;;  %v11255_v61 = vld [vmem:[%s11460_s0 + $0x18] sm:$0xff] }
 0x216   : > { %18622 = vst [vmem:[#allocation25_spill] sm:$0xff] %v12654_v19  ;;  %2719 = vmatmul.f32.gmra.mxu1 %v9862_v62  ;;  %10076 = vmatmul.msk.f32.gmra.mxu2 %vm1016_vm1, %v9863_v63  ;;  %v9946_v19 = vld [vmem:[%s18599_s3 + $0xa10] sm:$0xff] }
 0x217   : > { %2355 = vmatmul.f32.gmra.mxu3 %v9868_v15  ;;  %5722 = vmatpush.msrb.mxu2 %v11255_v61 }
 0x219   : > { %v1705_v7 = vpop.f32.mrf.mxu2  ;;  %5723 = vmatpush.msrb.mxu2 %v11256_v50  ;;  %v9873_v50 = vld [vmem:[%s18599_s3 + $0x7c8] sm:$0xff] }
 0x21a   : > { %v1896_v1 = vpop.f32.mrf.mxu3  ;;  %v1706_v33 = vadd.f32 %v1705_v7, %v1521_v28  ;;  %v1338_v37 = vpop.f32.mrf.mxu0 }
 0x21b   : > { %v1523_v47 = vpop.f32.mrf.mxu1 }
 0x21c   : > { %v12672_v42 = vadd.f32 %v1890_v16, %v1706_v33  ;;  %v1524_v62 = vadd.f32 %v1523_v47, %v1338_v37  ;;  %v9869_v16 = vld [vmem:[%s18599_s3 + $0x7a8] sm:$0xff]  ;;  %v9876_v33 = vld [vmem:[%s18599_s3 + $0x7e0] sm:$0xff]  ;;  %v9871_v37 = vld [vmem:[%s18599_s3 + $0x7b8] sm:$0xff] }
 0x21d   : > { %2537 = vmatmul.f32.gmra.mxu0 %v9865_v5  ;;  %v11257_v47 = vld [vmem:[%s11460_s0 + $0x8] sm:$0xff] }
 0x21e   : > { %18623 = vst [vmem:[#allocation26_spill] sm:$0xff] %v12672_v42  ;;  %2722 = vmatmul.f32.gmra.mxu1 %v9866_v12  ;;  %10077 = vmatmul.msk.f32.gmra.mxu2 %vm1016_vm1, %v9867_v30  ;;  %v11258_v12 = vld [vmem:[%s11460_s0] sm:$0xff]  ;;  %v9942_v42 = vld [vmem:[%s18599_s3 + $0x9f0] sm:$0xff] }
 0x21f   : > { %2358 = vmatmul.f32.gmra.mxu3 %v9872_v54  ;;  %5724 = vmatpush.msrb.mxu2 %v11257_v47 }
 0x221   : > { %v1708_v15 = vpop.f32.mrf.mxu2  ;;  %5725 = vmatpush.msrb.mxu2 %v11258_v12 }
 0x222   : > { %v1899_v63 = vpop.f32.mrf.mxu3  ;;  %v1709_v6 = vadd.f32 %v1708_v15, %v1524_v62  ;;  %v1341_v28 = vpop.f32.mrf.mxu0 }
 0x223   : > { %v1526_v7 = vpop.f32.mrf.mxu1 }
 0x224   : > { %v12690_v5 = vadd.f32 %v1893_v49, %v1709_v6  ;;  %v1527_v54 = vadd.f32 %v1526_v7, %v1341_v28  ;;  %v9874_v49 = vld [vmem:[%s18599_s3 + $0x7d0] sm:$0xff]  ;;  %v9880_v6 = vld [vmem:[%s18599_s3 + $0x800] sm:$0xff]  ;;  %v9875_v28 = vld [vmem:[%s18599_s3 + $0x7d8] sm:$0xff] }
 0x225   : > { %2540 = vmatmul.f32.gmra.mxu0 %v9869_v16 }
 0x226   : > { %18624 = vst [vmem:[#allocation27_spill] sm:$0xff] %v12690_v5  ;;  %2725 = vmatmul.f32.gmra.mxu1 %v9870_v31  ;;  %10078 = vmatmul.msk.f32.gmra.mxu2 %vm1016_vm1, %v9871_v37  ;;  %v9938_v5 = vld [vmem:[%s18599_s3 + $0x9d0] sm:$0xff] }
 0x227   : > { %2361 = vmatmul.f32.gmra.mxu3 %v9876_v33 }
 0x229   : > { %v1711_v30 = vpop.f32.mrf.mxu2 }
 0x22a   : > { %v1902_v44 = vpop.f32.mrf.mxu3  ;;  %v1712_v61 = vadd.f32 %v1711_v30, %v1527_v54  ;;  %v1344_v62 = vpop.f32.mrf.mxu0  ;;  %v9877_v54 = vld [vmem:[%s18599_s3 + $0x7e8] sm:$0xff]  ;;  %v9884_v30 = vld [vmem:[%s18599_s3 + $0x820] sm:$0xff] }
 0x22b   : > { %v1529_v15 = vpop.f32.mrf.mxu1 }
 0x22c   : > { %v12706_v7 = vadd.f32 %v1896_v1, %v1712_v61  ;;  %v1530_v16 = vadd.f32 %v1529_v15, %v1344_v62  ;;  %v9878_v1 = vld [vmem:[%s18599_s3 + $0x7f0] sm:$0xff]  ;;  %v9879_v61 = vld [vmem:[%s18599_s3 + $0x7f8] sm:$0xff] }
 0x22d   : > { %2543 = vmatmul.f32.gmra.mxu0 %v9873_v50 }
 0x22e   : > { %18625 = vst [vmem:[#allocation28_spill] sm:$0xff] %v12706_v7  ;;  %2728 = vmatmul.f32.gmra.mxu1 %v9874_v49  ;;  %10079 = vmatmul.msk.f32.gmra.mxu2 %vm1016_vm1, %v9875_v28  ;;  %v9934_v7 = vld [vmem:[%s18599_s3 + $0x9b0] sm:$0xff] }
 0x22f   : > { %2364 = vmatmul.f32.gmra.mxu3 %v9880_v6 }
 0x231   : > { %v1714_v31 = vpop.f32.mrf.mxu2 }
 0x232   : > { %v1905_v33 = vpop.f32.mrf.mxu3  ;;  %v1715_v37 = vadd.f32 %v1714_v31, %v1530_v16  ;;  %v1347_v47 = vpop.f32.mrf.mxu0  ;;  %v9881_v31 = vld [vmem:[%s18599_s3 + $0x808] sm:$0xff] }
 0x233   : > { %v1532_v12 = vpop.f32.mrf.mxu1 }
 0x234   : > { %v12721_v62 = vadd.f32 %v1899_v63, %v1715_v37  ;;  %v1533_v15 = vadd.f32 %v1532_v12, %v1347_v47  ;;  %v9882_v63 = vld [vmem:[%s18599_s3 + $0x810] sm:$0xff]  ;;  %v9888_v37 = vld [vmem:[%s18599_s3 + $0x840] sm:$0xff]  ;;  %v9883_v47 = vld [vmem:[%s18599_s3 + $0x818] sm:$0xff] }
 0x235   : > { %2546 = vmatmul.f32.gmra.mxu0 %v9877_v54 }
 0x236   : > { %18626 = vst [vmem:[#allocation29_spill] sm:$0xff] %v12721_v62  ;;  %2731 = vmatmul.f32.gmra.mxu1 %v9878_v1  ;;  %10080 = vmatmul.msk.f32.gmra.mxu2 %vm1016_vm1, %v9879_v61  ;;  %v9885_v62 = vld [vmem:[%s18599_s3 + $0x828] sm:$0xff] }
 0x237   : > { %2367 = vmatmul.f32.gmra.mxu3 %v9884_v30 }
 0x239   : > { %v1717_v50 = vpop.f32.mrf.mxu2 }
 0x23a   : > { %v1908_v49 = vpop.f32.mrf.mxu3  ;;  %v1718_v6 = vadd.f32 %v1717_v50, %v1533_v15  ;;  %v1350_v28 = vpop.f32.mrf.mxu0 }
 0x23b   : > { %v1535_v16 = vpop.f32.mrf.mxu1 }
 0x23c   : > { %v12736_v12 = vadd.f32 %v1902_v44, %v1718_v6  ;;  %v1536_v54 = vadd.f32 %v1535_v16, %v1350_v28  ;;  %v9886_v44 = vld [vmem:[%s18599_s3 + $0x830] sm:$0xff]  ;;  %v9892_v6 = vld [vmem:[%s18599_s3 + $0x860] sm:$0xff]  ;;  %v9887_v28 = vld [vmem:[%s18599_s3 + $0x838] sm:$0xff] }
 0x23d   : > { %2549 = vmatmul.f32.gmra.mxu0 %v9881_v31 }
 0x23e   : > { %18627 = vst [vmem:[#allocation30_spill] sm:$0xff] %v12736_v12  ;;  %2734 = vmatmul.f32.gmra.mxu1 %v9882_v63  ;;  %10081 = vmatmul.msk.f32.gmra.mxu2 %vm1016_vm1, %v9883_v47  ;;  %v9889_v12 = vld [vmem:[%s18599_s3 + $0x848] sm:$0xff] }
 0x23f   : > { %2370 = vmatmul.f32.gmra.mxu3 %v9888_v37 }
 0x241   : > { %v1720_v1 = vpop.f32.mrf.mxu2 }
 0x242   : > { %v1911_v30 = vpop.f32.mrf.mxu3  ;;  %v1721_v61 = vadd.f32 %v1720_v1, %v1536_v54  ;;  %v1353_v15 = vpop.f32.mrf.mxu0 }
 0x243   : > { %v1538_v50 = vpop.f32.mrf.mxu1 }
 0x244   : > { %v12751_v16 = vadd.f32 %v1905_v33, %v1721_v61  ;;  %v1539_v31 = vadd.f32 %v1538_v50, %v1353_v15  ;;  %v9890_v33 = vld [vmem:[%s18599_s3 + $0x850] sm:$0xff]  ;;  %v9891_v61 = vld [vmem:[%s18599_s3 + $0x858] sm:$0xff] }
 0x245   : > { %2552 = vmatmul.f32.gmra.mxu0 %v9885_v62  ;;  %v9896_v62 = vld [vmem:[%s18599_s3 + $0x880] sm:$0xff] }
 0x246   : > { %18628 = vst [vmem:[#allocation31_spill] sm:$0xff] %v12751_v16  ;;  %2737 = vmatmul.f32.gmra.mxu1 %v9886_v44  ;;  %10082 = vmatmul.msk.f32.gmra.mxu2 %vm1016_vm1, %v9887_v28  ;;  %v9893_v16 = vld [vmem:[%s18599_s3 + $0x868] sm:$0xff] }
 0x247   : > { %2373 = vmatmul.f32.gmra.mxu3 %v9892_v6 }
 0x249   : > { %v1723_v63 = vpop.f32.mrf.mxu2 }
 0x24a   : > { %v1914_v37 = vpop.f32.mrf.mxu3  ;;  %v1724_v47 = vadd.f32 %v1723_v63, %v1539_v31  ;;  %v1356_v54 = vpop.f32.mrf.mxu0 }
 0x24b   : > { %v1541_v1 = vpop.f32.mrf.mxu1 }
 0x24c   : > { %v12766_v15 = vadd.f32 %v1908_v49, %v1724_v47  ;;  %v1542_v50 = vadd.f32 %v1541_v1, %v1356_v54  ;;  %v9894_v49 = vld [vmem:[%s18599_s3 + $0x870] sm:$0xff]  ;;  %v9895_v47 = vld [vmem:[%s18599_s3 + $0x878] sm:$0xff] }
 0x24d   : > { %2555 = vmatmul.f32.gmra.mxu0 %v9889_v12  ;;  %v9900_v12 = vld [vmem:[%s18599_s3 + $0x8a0] sm:$0xff] }
 0x24e   : > { %18629 = vst [vmem:[#allocation32_spill] sm:$0xff] %v12766_v15  ;;  %2740 = vmatmul.f32.gmra.mxu1 %v9890_v33  ;;  %10083 = vmatmul.msk.f32.gmra.mxu2 %vm1016_vm1, %v9891_v61  ;;  %v9897_v15 = vld [vmem:[%s18599_s3 + $0x888] sm:$0xff] }
 0x24f   : > { %2376 = vmatmul.f32.gmra.mxu3 %v9896_v62 }
 0x251   : > { %v1726_v44 = vpop.f32.mrf.mxu2 }
 0x252   : > { %v1917_v6 = vpop.f32.mrf.mxu3  ;;  %v1727_v28 = vadd.f32 %v1726_v44, %v1542_v50  ;;  %v1359_v31 = vpop.f32.mrf.mxu0 }
 0x253   : > { %v1544_v63 = vpop.f32.mrf.mxu1 }
 0x254   : > { %v12781_v54 = vadd.f32 %v1911_v30, %v1727_v28  ;;  %v1545_v1 = vadd.f32 %v1544_v63, %v1359_v31  ;;  %v9898_v30 = vld [vmem:[%s18599_s3 + $0x890] sm:$0xff]  ;;  %v9899_v28 = vld [vmem:[%s18599_s3 + $0x898] sm:$0xff] }
 0x255   : > { %2558 = vmatmul.f32.gmra.mxu0 %v9893_v16  ;;  %v9904_v16 = vld [vmem:[%s18599_s3 + $0x8c0] sm:$0xff] }
 0x256   : > { %18630 = vst [vmem:[#allocation33_spill] sm:$0xff] %v12781_v54  ;;  %2743 = vmatmul.f32.gmra.mxu1 %v9894_v49  ;;  %10084 = vmatmul.msk.f32.gmra.mxu2 %vm1016_vm1, %v9895_v47  ;;  %v9901_v54 = vld [vmem:[%s18599_s3 + $0x8a8] sm:$0xff] }
 0x257   : > { %2379 = vmatmul.f32.gmra.mxu3 %v9900_v12 }
 0x259   : > { %v1729_v33 = vpop.f32.mrf.mxu2 }
 0x25a   : > { %v1920_v62 = vpop.f32.mrf.mxu3  ;;  %v1730_v61 = vadd.f32 %v1729_v33, %v1545_v1  ;;  %v1362_v50 = vpop.f32.mrf.mxu0 }
 0x25b   : > { %v1547_v44 = vpop.f32.mrf.mxu1 }
 0x25c   : > { %v12796_v31 = vadd.f32 %v1914_v37, %v1730_v61  ;;  %v1548_v63 = vadd.f32 %v1547_v44, %v1362_v50  ;;  %v9902_v37 = vld [vmem:[%s18599_s3 + $0x8b0] sm:$0xff]  ;;  %v9903_v61 = vld [vmem:[%s18599_s3 + $0x8b8] sm:$0xff] }
 0x25d   : > { %2561 = vmatmul.f32.gmra.mxu0 %v9897_v15  ;;  %v9908_v15 = vld [vmem:[%s18599_s3 + $0x8e0] sm:$0xff] }
 0x25e   : > { %18631 = vst [vmem:[#allocation34_spill] sm:$0xff] %v12796_v31  ;;  %2746 = vmatmul.f32.gmra.mxu1 %v9898_v30  ;;  %10085 = vmatmul.msk.f32.gmra.mxu2 %vm1016_vm1, %v9899_v28  ;;  %v9905_v31 = vld [vmem:[%s18599_s3 + $0x8c8] sm:$0xff] }
 0x25f   : > { %2382 = vmatmul.f32.gmra.mxu3 %v9904_v16 }
 0x261   : > { %v1732_v49 = vpop.f32.mrf.mxu2 }
 0x262   : > { %v1923_v12 = vpop.f32.mrf.mxu3  ;;  %v1733_v47 = vadd.f32 %v1732_v49, %v1548_v63  ;;  %v1365_v1 = vpop.f32.mrf.mxu0 }
 0x263   : > { %v1550_v33 = vpop.f32.mrf.mxu1 }
 0x264   : > { %v12811_v50 = vadd.f32 %v1917_v6, %v1733_v47  ;;  %v1551_v44 = vadd.f32 %v1550_v33, %v1365_v1  ;;  %v9906_v6 = vld [vmem:[%s18599_s3 + $0x8d0] sm:$0xff]  ;;  %v9907_v47 = vld [vmem:[%s18599_s3 + $0x8d8] sm:$0xff] }
 0x265   : > { %2564 = vmatmul.f32.gmra.mxu0 %v9901_v54  ;;  %v9912_v54 = vld [vmem:[%s18599_s3 + $0x900] sm:$0xff] }
 0x266   : > { %18632 = vst [vmem:[#allocation35_spill] sm:$0xff] %v12811_v50  ;;  %2749 = vmatmul.f32.gmra.mxu1 %v9902_v37  ;;  %10086 = vmatmul.msk.f32.gmra.mxu2 %vm1016_vm1, %v9903_v61  ;;  %v9909_v50 = vld [vmem:[%s18599_s3 + $0x8e8] sm:$0xff] }
 0x267   : > { %2385 = vmatmul.f32.gmra.mxu3 %v9908_v15 }
 0x269   : > { %v1735_v30 = vpop.f32.mrf.mxu2 }
 0x26a   : > { %v1926_v16 = vpop.f32.mrf.mxu3  ;;  %v1736_v28 = vadd.f32 %v1735_v30, %v1551_v44  ;;  %v1368_v63 = vpop.f32.mrf.mxu0 }
 0x26b   : > { %v1553_v49 = vpop.f32.mrf.mxu1 }
 0x26c   : > { %v12826_v1 = vadd.f32 %v1920_v62, %v1736_v28  ;;  %v1554_v33 = vadd.f32 %v1553_v49, %v1368_v63  ;;  %v9910_v62 = vld [vmem:[%s18599_s3 + $0x8f0] sm:$0xff]  ;;  %v9911_v28 = vld [vmem:[%s18599_s3 + $0x8f8] sm:$0xff] }
 0x26d   : > { %2567 = vmatmul.f32.gmra.mxu0 %v9905_v31  ;;  %v9916_v31 = vld [vmem:[%s18599_s3 + $0x920] sm:$0xff] }
 0x26e   : > { %18633 = vst [vmem:[#allocation36_spill] sm:$0xff] %v12826_v1  ;;  %2752 = vmatmul.f32.gmra.mxu1 %v9906_v6  ;;  %10087 = vmatmul.msk.f32.gmra.mxu2 %vm1016_vm1, %v9907_v47  ;;  %v9913_v1 = vld [vmem:[%s18599_s3 + $0x908] sm:$0xff] }
 0x26f   : > { %2388 = vmatmul.f32.gmra.mxu3 %v9912_v54 }
 0x271   : > { %v1738_v37 = vpop.f32.mrf.mxu2 }
 0x272   : > { %v2341_v15 = vpop.f32.mrf.mxu3  ;;  %v1739_v61 = vadd.f32 %v1738_v37, %v1554_v33  ;;  %v1371_v44 = vpop.f32.mrf.mxu0 }
 0x273   : > { %v1556_v30 = vpop.f32.mrf.mxu1 }
 0x274   : > { %v12841_v63 = vadd.f32 %v1923_v12, %v1739_v61  ;;  %v1557_v49 = vadd.f32 %v1556_v30, %v1371_v44  ;;  %v9914_v12 = vld [vmem:[%s18599_s3 + $0x910] sm:$0xff]  ;;  %v9915_v44 = vld [vmem:[%s18599_s3 + $0x918] sm:$0xff] }
 0x275   : > { %2570 = vmatmul.f32.gmra.mxu0 %v9909_v50  ;;  %v9920_v50 = vld [vmem:[%s18599_s3 + $0x940] sm:$0xff] }
 0x276   : > { %18634 = vst [vmem:[#allocation37_spill] sm:$0xff] %v12841_v63  ;;  %2755 = vmatmul.f32.gmra.mxu1 %v9910_v62  ;;  %10088 = vmatmul.msk.f32.gmra.mxu2 %vm1016_vm1, %v9911_v28  ;;  %v9930_v63 = vld [vmem:[%s18599_s3 + $0x990] sm:$0xff] }
 0x277   : > { %2391 = vmatmul.f32.gmra.mxu3 %v9916_v31 }
 0x279   : > { %v1741_v6 = vpop.f32.mrf.mxu2 }
 0x27a   : > { %v2344_v54 = vpop.f32.mrf.mxu3  ;;  %v1742_v47 = vadd.f32 %v1741_v6, %v1557_v49  ;;  %v2526_v33 = vpop.f32.mrf.mxu0 }
 0x27b   : > { %v2711_v37 = vpop.f32.mrf.mxu1  ;;  %v2527_v61 = vadd.f32 %v2526_v33, %v2341_v15  ;;  %v9917_v33 = vld [vmem:[%s18599_s3 + $0x928] sm:$0xff] }
 0x27c   : > { %v12856_v30 = vadd.f32 %v1926_v16, %v1742_v47  ;;  %v9918_v16 = vld [vmem:[%s18599_s3 + $0x930] sm:$0xff] }
 0x27d   : > { %v2712_v62 = vadd.f32 %v2711_v37, %v2527_v61  ;;  %2573 = vmatmul.f32.gmra.mxu0 %v9913_v1  ;;  %v9924_v1 = vld [vmem:[%s18599_s3 + $0x960] sm:$0xff]  ;;  %v9919_v37 = vld [vmem:[%s18599_s3 + $0x938] sm:$0xff] }
 0x27e   : > { %18635 = vst [vmem:[#allocation38_spill] sm:$0xff] %v12856_v30  ;;  %2758 = vmatmul.f32.gmra.mxu1 %v9914_v12  ;;  %10089 = vmatmul.msk.f32.gmra.mxu2 %vm1016_vm1, %v9915_v44  ;;  %v9926_v30 = vld [vmem:[%s18599_s3 + $0x970] sm:$0xff] }
 0x27f   : > { %2394 = vmatmul.f32.gmra.mxu3 %v9920_v50 }
 0x281   : > { %v2896_v28 = vpop.f32.mrf.mxu2 }
 0x282   : > { %v2347_v31 = vpop.f32.mrf.mxu3  ;;  %v12859_v49 = vadd.f32 %v2896_v28, %v2712_v62  ;;  %v2529_v15 = vpop.f32.mrf.mxu0  ;;  %v9921_v28 = vld [vmem:[%s18599_s3 + $0x948] sm:$0xff] }
 0x283   : > { %v2714_v6 = vpop.f32.mrf.mxu1  ;;  %v2530_v47 = vadd.f32 %v2529_v15, %v2344_v54  ;;  %v9922_v15 = vld [vmem:[%s18599_s3 + $0x950] sm:$0xff] }
 0x285   : > { %v2715_v12 = vadd.f32 %v2714_v6, %v2530_v47  ;;  %2576 = vmatmul.f32.gmra.mxu0 %v9917_v33  ;;  %v9928_v33 = vld [vmem:[%s18599_s3 + $0x980] sm:$0xff] }
 0x286   : > { %2761 = vmatmul.f32.gmra.mxu1 %v9918_v16  ;;  %10090 = vmatmul.msk.f32.gmra.mxu2 %vm1016_vm1, %v9919_v37  ;;  %v9923_v16 = vld [vmem:[%s18599_s3 + $0x958] sm:$0xff] }
 0x287   : > { %2397 = vmatmul.f32.gmra.mxu3 %v9924_v1 }
 0x289   : > { %v2899_v50 = vpop.f32.mrf.mxu2 }
 0x28a   : > { %v2350_v61 = vpop.f32.mrf.mxu3  ;;  %v12874_v44 = vadd.f32 %v2899_v50, %v2715_v12  ;;  %v2532_v62 = vpop.f32.mrf.mxu0 }
 0x28b   : > { %v2717_v54 = vpop.f32.mrf.mxu1  ;;  %v2533_v6 = vadd.f32 %v2532_v62, %v2347_v31  ;;  %v9925_v62 = vld [vmem:[%s18599_s3 + $0x968] sm:$0xff] }
 0x28d   : > { %v2718_v47 = vadd.f32 %v2717_v54, %v2533_v6  ;;  %2579 = vmatmul.f32.gmra.mxu0 %v9921_v28  ;;  %v9932_v28 = vld [vmem:[%s18599_s3 + $0x9a0] sm:$0xff] }
 0x28e   : > { %2764 = vmatmul.f32.gmra.mxu1 %v9922_v15  ;;  %10091 = vmatmul.msk.f32.gmra.mxu2 %vm1016_vm1, %v9923_v16  ;;  %v9927_v15 = vld [vmem:[%s18599_s3 + $0x978] sm:$0xff] }
 0x28f   : > { %2400 = vmatmul.f32.gmra.mxu3 %v9928_v33 }
 0x291   : > { %v2902_v37 = vpop.f32.mrf.mxu2 }
 0x292   : > { %v2353_v1 = vpop.f32.mrf.mxu3  ;;  %v12889_v12 = vadd.f32 %v2902_v37, %v2718_v47  ;;  %v2535_v50 = vpop.f32.mrf.mxu0 }
 0x293   : > { %v2720_v31 = vpop.f32.mrf.mxu1  ;;  %v2536_v54 = vadd.f32 %v2535_v50, %v2350_v61  ;;  %v9929_v50 = vld [vmem:[%s18599_s3 + $0x988] sm:$0xff] }
 0x295   : > { %v2721_v6 = vadd.f32 %v2720_v31, %v2536_v54  ;;  %2582 = vmatmul.f32.gmra.mxu0 %v9925_v62  ;;  %v9931_v62 = vld [vmem:[%s18599_s3 + $0x998] sm:$0xff] }
 0x296   : > { %2767 = vmatmul.f32.gmra.mxu1 %v9926_v30  ;;  %10092 = vmatmul.msk.f32.gmra.mxu2 %vm1016_vm1, %v9927_v15  ;;  %v9936_v30 = vld [vmem:[%s18599_s3 + $0x9c0] sm:$0xff] }
 0x297   : > { %2403 = vmatmul.f32.gmra.mxu3 %v9932_v28 }
 0x299   : > { %v2905_v16 = vpop.f32.mrf.mxu2 }
 0x29a   : > { %v2356_v33 = vpop.f32.mrf.mxu3  ;;  %v12904_v47 = vadd.f32 %v2905_v16, %v2721_v6  ;;  %v2538_v37 = vpop.f32.mrf.mxu0 }
 0x29b   : > { %v2723_v61 = vpop.f32.mrf.mxu1  ;;  %v2539_v31 = vadd.f32 %v2538_v37, %v2353_v1  ;;  %v9933_v37 = vld [vmem:[%s18599_s3 + $0x9a8] sm:$0xff] }
 0x29d   : > { %v2724_v54 = vadd.f32 %v2723_v61, %v2539_v31  ;;  %2585 = vmatmul.f32.gmra.mxu0 %v9929_v50  ;;  %v9935_v50 = vld [vmem:[%s18599_s3 + $0x9b8] sm:$0xff] }
 0x29e   : > { %2770 = vmatmul.f32.gmra.mxu1 %v9930_v63  ;;  %10093 = vmatmul.msk.f32.gmra.mxu2 %vm1016_vm1, %v9931_v62  ;;  %v9940_v63 = vld [vmem:[%s18599_s3 + $0x9e0] sm:$0xff] }
 0x29f   : > { %2406 = vmatmul.f32.gmra.mxu3 %v9936_v30 }
 0x2a1   : > { %v2908_v15 = vpop.f32.mrf.mxu2 }
 0x2a2   : > { %v2359_v28 = vpop.f32.mrf.mxu3  ;;  %v12919_v6 = vadd.f32 %v2908_v15, %v2724_v54  ;;  %v2541_v16 = vpop.f32.mrf.mxu0 }
 0x2a3   : > { %v2726_v1 = vpop.f32.mrf.mxu1  ;;  %v2542_v61 = vadd.f32 %v2541_v16, %v2356_v33  ;;  %v9937_v16 = vld [vmem:[%s18599_s3 + $0x9c8] sm:$0xff] }
 0x2a5   : > { %v2727_v31 = vadd.f32 %v2726_v1, %v2542_v61  ;;  %2588 = vmatmul.f32.gmra.mxu0 %v9933_v37  ;;  %v9939_v37 = vld [vmem:[%s18599_s3 + $0x9d8] sm:$0xff] }
 0x2a6   : > { %2773 = vmatmul.f32.gmra.mxu1 %v9934_v7  ;;  %10094 = vmatmul.msk.f32.gmra.mxu2 %vm1016_vm1, %v9935_v50  ;;  %v9944_v7 = vld [vmem:[%s18599_s3 + $0xa00] sm:$0xff] }
 0x2a7   : > { %2409 = vmatmul.f32.gmra.mxu3 %v9940_v63 }
 0x2a9   : > { %v2911_v62 = vpop.f32.mrf.mxu2 }
 0x2aa   : > { %v2362_v30 = vpop.f32.mrf.mxu3  ;;  %v12934_v54 = vadd.f32 %v2911_v62, %v2727_v31  ;;  %v2544_v15 = vpop.f32.mrf.mxu0 }
 0x2ab   : > { %v2729_v33 = vpop.f32.mrf.mxu1  ;;  %v2545_v1 = vadd.f32 %v2544_v15, %v2359_v28  ;;  %v9941_v15 = vld [vmem:[%s18599_s3 + $0x9e8] sm:$0xff] }
 0x2ad   : > { %v2730_v61 = vadd.f32 %v2729_v33, %v2545_v1  ;;  %2591 = vmatmul.f32.gmra.mxu0 %v9937_v16  ;;  %v9943_v16 = vld [vmem:[%s18599_s3 + $0x9f8] sm:$0xff] }
 0x2ae   : > { %2776 = vmatmul.f32.gmra.mxu1 %v9938_v5  ;;  %10095 = vmatmul.msk.f32.gmra.mxu2 %vm1016_vm1, %v9939_v37  ;;  %v9948_v5 = vld [vmem:[%s18599_s3 + $0xa20] sm:$0xff] }
 0x2af   : > { %2412 = vmatmul.f32.gmra.mxu3 %v9944_v7 }
 0x2b1   : > { %v2914_v50 = vpop.f32.mrf.mxu2 }
 0x2b2   : > { %v2365_v63 = vpop.f32.mrf.mxu3  ;;  %v12949_v31 = vadd.f32 %v2914_v50, %v2730_v61  ;;  %v2547_v62 = vpop.f32.mrf.mxu0 }
 0x2b3   : > { %v2732_v28 = vpop.f32.mrf.mxu1  ;;  %v2548_v33 = vadd.f32 %v2547_v62, %v2362_v30  ;;  %v9945_v62 = vld [vmem:[%s18599_s3 + $0xa08] sm:$0xff] }
 0x2b5   : > { %v2733_v1 = vadd.f32 %v2732_v28, %v2548_v33  ;;  %2594 = vmatmul.f32.gmra.mxu0 %v9941_v15  ;;  %v9947_v15 = vld [vmem:[%s18599_s3 + $0xa18] sm:$0xff] }
 0x2b6   : > { %2779 = vmatmul.f32.gmra.mxu1 %v9942_v42  ;;  %10096 = vmatmul.msk.f32.gmra.mxu2 %vm1016_vm1, %v9943_v16  ;;  %v9952_v42 = vld [vmem:[%s18599_s3 + $0xa40] sm:$0xff] }
 0x2b7   : > { %2415 = vmatmul.f32.gmra.mxu3 %v9948_v5 }
 0x2b9   : > { %v2917_v37 = vpop.f32.mrf.mxu2 }
 0x2ba   : > { %v2368_v7 = vpop.f32.mrf.mxu3  ;;  %v12964_v61 = vadd.f32 %v2917_v37, %v2733_v1  ;;  %v2550_v50 = vpop.f32.mrf.mxu0 }
 0x2bb   : > { %v2735_v30 = vpop.f32.mrf.mxu1  ;;  %v2551_v28 = vadd.f32 %v2550_v50, %v2365_v63  ;;  %v9949_v50 = vld [vmem:[%s18599_s3 + $0xa28] sm:$0xff] }
 0x2bd   : > { %v2736_v33 = vadd.f32 %v2735_v30, %v2551_v28  ;;  %2597 = vmatmul.f32.gmra.mxu0 %v9945_v62  ;;  %v9951_v62 = vld [vmem:[%s18599_s3 + $0xa38] sm:$0xff] }
 0x2be   : > { %2782 = vmatmul.f32.gmra.mxu1 %v9946_v19  ;;  %10097 = vmatmul.msk.f32.gmra.mxu2 %vm1016_vm1, %v9947_v15  ;;  %v9956_v19 = vld [vmem:[%s18599_s3 + $0xa60] sm:$0xff] }
 0x2bf   : > { %2418 = vmatmul.f32.gmra.mxu3 %v9952_v42 }
 0x2c1   : > { %v2920_v16 = vpop.f32.mrf.mxu2 }
 0x2c2   : > { %v2371_v5 = vpop.f32.mrf.mxu3  ;;  %v12979_v1 = vadd.f32 %v2920_v16, %v2736_v33  ;;  %v2553_v37 = vpop.f32.mrf.mxu0 }
 0x2c3   : > { %v2738_v63 = vpop.f32.mrf.mxu1  ;;  %v2554_v30 = vadd.f32 %v2553_v37, %v2368_v7  ;;  %v9953_v37 = vld [vmem:[%s18599_s3 + $0xa48] sm:$0xff] }
 0x2c5   : > { %v2739_v28 = vadd.f32 %v2738_v63, %v2554_v30  ;;  %2600 = vmatmul.f32.gmra.mxu0 %v9949_v50  ;;  %v9955_v50 = vld [vmem:[%s18599_s3 + $0xa58] sm:$0xff] }
 0x2c6   : > { %2785 = vmatmul.f32.gmra.mxu1 %v9950_v34  ;;  %10098 = vmatmul.msk.f32.gmra.mxu2 %vm1016_vm1, %v9951_v62  ;;  %v9960_v34 = vld [vmem:[%s18599_s3 + $0xa80] sm:$0xff] }
 0x2c7   : > { %2421 = vmatmul.f32.gmra.mxu3 %v9956_v19 }
 0x2c9   : > { %v2923_v15 = vpop.f32.mrf.mxu2 }
 0x2ca   : > { %v2374_v42 = vpop.f32.mrf.mxu3  ;;  %v12994_v33 = vadd.f32 %v2923_v15, %v2739_v28  ;;  %v2556_v16 = vpop.f32.mrf.mxu0 }
 0x2cb   : > { %v2741_v7 = vpop.f32.mrf.mxu1  ;;  %v2557_v63 = vadd.f32 %v2556_v16, %v2371_v5  ;;  %v9957_v16 = vld [vmem:[%s18599_s3 + $0xa68] sm:$0xff] }
 0x2cd   : > { %v2742_v30 = vadd.f32 %v2741_v7, %v2557_v63  ;;  %2603 = vmatmul.f32.gmra.mxu0 %v9953_v37  ;;  %v9959_v37 = vld [vmem:[%s18599_s3 + $0xa78] sm:$0xff] }
 0x2ce   : > { %2788 = vmatmul.f32.gmra.mxu1 %v9954_v55  ;;  %10099 = vmatmul.msk.f32.gmra.mxu2 %vm1016_vm1, %v9955_v50  ;;  %v9964_v55 = vld [vmem:[%s18599_s3 + $0xaa0] sm:$0xff] }
 0x2cf   : > { %2424 = vmatmul.f32.gmra.mxu3 %v9960_v34 }
 0x2d1   : > { %v2926_v62 = vpop.f32.mrf.mxu2 }
 0x2d2   : > { %v2377_v19 = vpop.f32.mrf.mxu3  ;;  %v13009_v28 = vadd.f32 %v2926_v62, %v2742_v30  ;;  %v2559_v15 = vpop.f32.mrf.mxu0 }
 0x2d3   : > { %v2744_v5 = vpop.f32.mrf.mxu1  ;;  %v2560_v7 = vadd.f32 %v2559_v15, %v2374_v42  ;;  %v9961_v15 = vld [vmem:[%s18599_s3 + $0xa88] sm:$0xff] }
 0x2d5   : > { %v2745_v63 = vadd.f32 %v2744_v5, %v2560_v7  ;;  %2606 = vmatmul.f32.gmra.mxu0 %v9957_v16  ;;  %v9963_v16 = vld [vmem:[%s18599_s3 + $0xa98] sm:$0xff] }
 0x2d6   : > { %2791 = vmatmul.f32.gmra.mxu1 %v9958_v22  ;;  %10100 = vmatmul.msk.f32.gmra.mxu2 %vm1016_vm1, %v9959_v37  ;;  %v9968_v22 = vld [vmem:[%s18599_s3 + $0xac0] sm:$0xff] }
 0x2d7   : > { %2427 = vmatmul.f32.gmra.mxu3 %v9964_v55 }
 0x2d9   : > { %v2929_v50 = vpop.f32.mrf.mxu2 }
 0x2da   : > { %v2380_v34 = vpop.f32.mrf.mxu3  ;;  %v13024_v30 = vadd.f32 %v2929_v50, %v2745_v63  ;;  %v2562_v62 = vpop.f32.mrf.mxu0 }
 0x2db   : > { %v2747_v42 = vpop.f32.mrf.mxu1  ;;  %v2563_v5 = vadd.f32 %v2562_v62, %v2377_v19  ;;  %v9965_v62 = vld [vmem:[%s18599_s3 + $0xaa8] sm:$0xff] }
 0x2dd   : > { %v2748_v7 = vadd.f32 %v2747_v42, %v2563_v5  ;;  %2609 = vmatmul.f32.gmra.mxu0 %v9961_v15  ;;  %v9967_v15 = vld [vmem:[%s18599_s3 + $0xab8] sm:$0xff] }
 0x2de   : > { %2794 = vmatmul.f32.gmra.mxu1 %v9962_v51  ;;  %10101 = vmatmul.msk.f32.gmra.mxu2 %vm1016_vm1, %v9963_v16  ;;  %v9972_v51 = vld [vmem:[%s18599_s3 + $0xae0] sm:$0xff] }
 0x2df   : > { %2430 = vmatmul.f32.gmra.mxu3 %v9968_v22 }
 0x2e1   : > { %v2932_v37 = vpop.f32.mrf.mxu2 }
 0x2e2   : > { %v2383_v55 = vpop.f32.mrf.mxu3  ;;  %v13039_v63 = vadd.f32 %v2932_v37, %v2748_v7  ;;  %v2565_v50 = vpop.f32.mrf.mxu0 }
 0x2e3   : > { %v2750_v19 = vpop.f32.mrf.mxu1  ;;  %v2566_v42 = vadd.f32 %v2565_v50, %v2380_v34  ;;  %v9969_v50 = vld [vmem:[%s18599_s3 + $0xac8] sm:$0xff] }
 0x2e5   : > { %v2751_v5 = vadd.f32 %v2750_v19, %v2566_v42  ;;  %2612 = vmatmul.f32.gmra.mxu0 %v9965_v62  ;;  %v9971_v62 = vld [vmem:[%s18599_s3 + $0xad8] sm:$0xff] }
 0x2e6   : > { %2797 = vmatmul.f32.gmra.mxu1 %v9966_v32  ;;  %10102 = vmatmul.msk.f32.gmra.mxu2 %vm1016_vm1, %v9967_v15  ;;  %v9976_v32 = vld [vmem:[%s18599_s3 + $0xb00] sm:$0xff] }
 0x2e7   : > { %2433 = vmatmul.f32.gmra.mxu3 %v9972_v51 }
 0x2e9   : > { %v2935_v16 = vpop.f32.mrf.mxu2 }
 0x2ea   : > { %v2386_v22 = vpop.f32.mrf.mxu3  ;;  %v13054_v7 = vadd.f32 %v2935_v16, %v2751_v5  ;;  %v2568_v37 = vpop.f32.mrf.mxu0 }
 0x2eb   : > { %v2753_v34 = vpop.f32.mrf.mxu1  ;;  %v2569_v19 = vadd.f32 %v2568_v37, %v2383_v55  ;;  %v9973_v37 = vld [vmem:[%s18599_s3 + $0xae8] sm:$0xff] }
 0x2ed   : > { %v2754_v42 = vadd.f32 %v2753_v34, %v2569_v19  ;;  %2615 = vmatmul.f32.gmra.mxu0 %v9969_v50  ;;  %v9975_v50 = vld [vmem:[%s18599_s3 + $0xaf8] sm:$0xff] }
 0x2ee   : > { %2800 = vmatmul.f32.gmra.mxu1 %v9970_v11  ;;  %10103 = vmatmul.msk.f32.gmra.mxu2 %vm1016_vm1, %v9971_v62  ;;  %v9980_v11 = vld [vmem:[%s18599_s3 + $0xb20] sm:$0xff] }
 0x2ef   : > { %2436 = vmatmul.f32.gmra.mxu3 %v9976_v32 }
 0x2f1   : > { %v2938_v15 = vpop.f32.mrf.mxu2 }
 0x2f2   : > { %v2389_v51 = vpop.f32.mrf.mxu3  ;;  %v13069_v5 = vadd.f32 %v2938_v15, %v2754_v42  ;;  %v2571_v16 = vpop.f32.mrf.mxu0 }
 0x2f3   : > { %v2756_v55 = vpop.f32.mrf.mxu1  ;;  %v2572_v34 = vadd.f32 %v2571_v16, %v2386_v22  ;;  %v9977_v16 = vld [vmem:[%s18599_s3 + $0xb08] sm:$0xff] }
 0x2f5   : > { %v2757_v19 = vadd.f32 %v2756_v55, %v2572_v34  ;;  %2618 = vmatmul.f32.gmra.mxu0 %v9973_v37  ;;  %v9979_v37 = vld [vmem:[%s18599_s3 + $0xb18] sm:$0xff] }
 0x2f6   : > { %2803 = vmatmul.f32.gmra.mxu1 %v9974_v41  ;;  %10104 = vmatmul.msk.f32.gmra.mxu2 %vm1016_vm1, %v9975_v50  ;;  %v9984_v41 = vld [vmem:[%s18599_s3 + $0xb40] sm:$0xff] }
 0x2f7   : > { %2439 = vmatmul.f32.gmra.mxu3 %v9980_v11 }
 0x2f9   : > { %v2941_v62 = vpop.f32.mrf.mxu2 }
 0x2fa   : > { %v2392_v32 = vpop.f32.mrf.mxu3  ;;  %v13084_v42 = vadd.f32 %v2941_v62, %v2757_v19  ;;  %v2574_v15 = vpop.f32.mrf.mxu0 }
 0x2fb   : > { %v2759_v22 = vpop.f32.mrf.mxu1  ;;  %v2575_v55 = vadd.f32 %v2574_v15, %v2389_v51  ;;  %v9981_v15 = vld [vmem:[%s18599_s3 + $0xb28] sm:$0xff] }
 0x2fd   : > { %v2760_v34 = vadd.f32 %v2759_v22, %v2575_v55  ;;  %2621 = vmatmul.f32.gmra.mxu0 %v9977_v16  ;;  %v9983_v16 = vld [vmem:[%s18599_s3 + $0xb38] sm:$0xff] }
 0x2fe   : > { %2806 = vmatmul.f32.gmra.mxu1 %v9978_v18  ;;  %10105 = vmatmul.msk.f32.gmra.mxu2 %vm1016_vm1, %v9979_v37  ;;  %v9988_v18 = vld [vmem:[%s18599_s3 + $0xb60] sm:$0xff] }
 0x2ff   : > { %2442 = vmatmul.f32.gmra.mxu3 %v9984_v41 }
 0x301   : > { %v2944_v50 = vpop.f32.mrf.mxu2 }
 0x302   : > { %v2395_v11 = vpop.f32.mrf.mxu3  ;;  %v13099_v19 = vadd.f32 %v2944_v50, %v2760_v34  ;;  %v2577_v62 = vpop.f32.mrf.mxu0 }
 0x303   : > { %v2762_v51 = vpop.f32.mrf.mxu1  ;;  %v2578_v22 = vadd.f32 %v2577_v62, %v2392_v32  ;;  %v9985_v62 = vld [vmem:[%s18599_s3 + $0xb48] sm:$0xff] }
 0x305   : > { %v2763_v55 = vadd.f32 %v2762_v51, %v2578_v22  ;;  %2624 = vmatmul.f32.gmra.mxu0 %v9981_v15  ;;  %v9987_v15 = vld [vmem:[%s18599_s3 + $0xb58] sm:$0xff] }
 0x306   : > { %2809 = vmatmul.f32.gmra.mxu1 %v9982_v56  ;;  %10106 = vmatmul.msk.f32.gmra.mxu2 %vm1016_vm1, %v9983_v16  ;;  %v9992_v56 = vld [vmem:[%s18599_s3 + $0xb80] sm:$0xff] }
 0x307   : > { %2445 = vmatmul.f32.gmra.mxu3 %v9988_v18 }
 0x309   : > { %v2947_v37 = vpop.f32.mrf.mxu2 }
 0x30a   : > { %v2398_v41 = vpop.f32.mrf.mxu3  ;;  %v13114_v34 = vadd.f32 %v2947_v37, %v2763_v55  ;;  %v2580_v50 = vpop.f32.mrf.mxu0 }
 0x30b   : > { %v2765_v32 = vpop.f32.mrf.mxu1  ;;  %v2581_v51 = vadd.f32 %v2580_v50, %v2395_v11  ;;  %v9989_v50 = vld [vmem:[%s18599_s3 + $0xb68] sm:$0xff] }
 0x30d   : > { %v2766_v22 = vadd.f32 %v2765_v32, %v2581_v51  ;;  %2627 = vmatmul.f32.gmra.mxu0 %v9985_v62  ;;  %v9991_v62 = vld [vmem:[%s18599_s3 + $0xb78] sm:$0xff] }
 0x30e   : > { %2812 = vmatmul.f32.gmra.mxu1 %v9986_v36  ;;  %10107 = vmatmul.msk.f32.gmra.mxu2 %vm1016_vm1, %v9987_v15  ;;  %v9996_v36 = vld [vmem:[%s18599_s3 + $0xba0] sm:$0xff] }
 0x30f   : > { %2448 = vmatmul.f32.gmra.mxu3 %v9992_v56 }
 0x311   : > { %v2950_v16 = vpop.f32.mrf.mxu2 }
 0x312   : > { %v2401_v18 = vpop.f32.mrf.mxu3  ;;  %v13129_v55 = vadd.f32 %v2950_v16, %v2766_v22  ;;  %v2583_v37 = vpop.f32.mrf.mxu0 }
 0x313   : > { %v2768_v11 = vpop.f32.mrf.mxu1  ;;  %v2584_v32 = vadd.f32 %v2583_v37, %v2398_v41  ;;  %v9993_v37 = vld [vmem:[%s18599_s3 + $0xb88] sm:$0xff] }
 0x315   : > { %v2769_v51 = vadd.f32 %v2768_v11, %v2584_v32  ;;  %2630 = vmatmul.f32.gmra.mxu0 %v9989_v50  ;;  %v9995_v50 = vld [vmem:[%s18599_s3 + $0xb98] sm:$0xff] }
 0x316   : > { %2815 = vmatmul.f32.gmra.mxu1 %v9990_v10  ;;  %10108 = vmatmul.msk.f32.gmra.mxu2 %vm1016_vm1, %v9991_v62  ;;  %v10000_v10 = vld [vmem:[%s18599_s3 + $0xbc0] sm:$0xff] }
 0x317   : > { %2451 = vmatmul.f32.gmra.mxu3 %v9996_v36 }
 0x319   : > { %v2953_v15 = vpop.f32.mrf.mxu2 }
 0x31a   : > { %v2404_v56 = vpop.f32.mrf.mxu3  ;;  %v13144_v22 = vadd.f32 %v2953_v15, %v2769_v51  ;;  %v2586_v16 = vpop.f32.mrf.mxu0 }
 0x31b   : > { %v2771_v41 = vpop.f32.mrf.mxu1  ;;  %v2587_v11 = vadd.f32 %v2586_v16, %v2401_v18  ;;  %v9997_v16 = vld [vmem:[%s18599_s3 + $0xba8] sm:$0xff] }
 0x31d   : > { %v2772_v32 = vadd.f32 %v2771_v41, %v2587_v11  ;;  %2633 = vmatmul.f32.gmra.mxu0 %v9993_v37  ;;  %v9999_v37 = vld [vmem:[%s18599_s3 + $0xbb8] sm:$0xff] }
 0x31e   : > { %2818 = vmatmul.f32.gmra.mxu1 %v9994_v58  ;;  %10109 = vmatmul.msk.f32.gmra.mxu2 %vm1016_vm1, %v9995_v50  ;;  %v10004_v58 = vld [vmem:[%s18599_s3 + $0xbe0] sm:$0xff] }
 0x31f   : > { %2454 = vmatmul.f32.gmra.mxu3 %v10000_v10 }
 0x321   : > { %v2956_v62 = vpop.f32.mrf.mxu2 }
 0x322   : > { %v2407_v36 = vpop.f32.mrf.mxu3  ;;  %v13159_v51 = vadd.f32 %v2956_v62, %v2772_v32  ;;  %v2589_v15 = vpop.f32.mrf.mxu0 }
 0x323   : > { %v2774_v18 = vpop.f32.mrf.mxu1  ;;  %v2590_v41 = vadd.f32 %v2589_v15, %v2404_v56  ;;  %v10001_v15 = vld [vmem:[%s18599_s3 + $0xbc8] sm:$0xff] }
 0x325   : > { %v2775_v11 = vadd.f32 %v2774_v18, %v2590_v41  ;;  %2636 = vmatmul.f32.gmra.mxu0 %v9997_v16  ;;  %v10003_v16 = vld [vmem:[%s18599_s3 + $0xbd8] sm:$0xff] }
 0x326   : > { %2821 = vmatmul.f32.gmra.mxu1 %v9998_v38  ;;  %10110 = vmatmul.msk.f32.gmra.mxu2 %vm1016_vm1, %v9999_v37  ;;  %v10008_v38 = vld [vmem:[%s18599_s3 + $0xc00] sm:$0xff] }
 0x327   : > { %2457 = vmatmul.f32.gmra.mxu3 %v10004_v58 }
 0x329   : > { %v2959_v50 = vpop.f32.mrf.mxu2 }
 0x32a   : > { %v2410_v10 = vpop.f32.mrf.mxu3  ;;  %v13174_v32 = vadd.f32 %v2959_v50, %v2775_v11  ;;  %v2592_v62 = vpop.f32.mrf.mxu0 }
 0x32b   : > { %v2777_v56 = vpop.f32.mrf.mxu1  ;;  %v2593_v18 = vadd.f32 %v2592_v62, %v2407_v36  ;;  %v10005_v62 = vld [vmem:[%s18599_s3 + $0xbe8] sm:$0xff] }
 0x32d   : > { %v2778_v41 = vadd.f32 %v2777_v56, %v2593_v18  ;;  %2639 = vmatmul.f32.gmra.mxu0 %v10001_v15  ;;  %v10007_v15 = vld [vmem:[%s18599_s3 + $0xbf8] sm:$0xff] }
 0x32e   : > { %2824 = vmatmul.f32.gmra.mxu1 %v10002_v26  ;;  %10111 = vmatmul.msk.f32.gmra.mxu2 %vm1016_vm1, %v10003_v16  ;;  %v10012_v26 = vld [vmem:[%s18599_s3 + $0xc20] sm:$0xff] }
 0x32f   : > { %2460 = vmatmul.f32.gmra.mxu3 %v10008_v38 }
 0x331   : > { %v2962_v37 = vpop.f32.mrf.mxu2 }
 0x332   : > { %v2413_v58 = vpop.f32.mrf.mxu3  ;;  %v13189_v11 = vadd.f32 %v2962_v37, %v2778_v41  ;;  %v2595_v50 = vpop.f32.mrf.mxu0 }
 0x333   : > { %v2780_v36 = vpop.f32.mrf.mxu1  ;;  %v2596_v56 = vadd.f32 %v2595_v50, %v2410_v10  ;;  %v10009_v50 = vld [vmem:[%s18599_s3 + $0xc08] sm:$0xff] }
 0x334   : > { %18636 = vst [vmem:[#allocation39_spill] sm:$0xff] %v13189_v11 }
 0x335   : > { %v2781_v18 = vadd.f32 %v2780_v36, %v2596_v56  ;;  %2642 = vmatmul.f32.gmra.mxu0 %v10005_v62  ;;  %v10011_v62 = vld [vmem:[%s18599_s3 + $0xc18] sm:$0xff] }
 0x336   : > { %2827 = vmatmul.f32.gmra.mxu1 %v10006_v3  ;;  %10112 = vmatmul.msk.f32.gmra.mxu2 %vm1016_vm1, %v10007_v15  ;;  %v10016_v3 = vld [vmem:[%s18599_s3 + $0xc40] sm:$0xff] }
 0x337   : > { %2463 = vmatmul.f32.gmra.mxu3 %v10012_v26 }
 0x339   : > { %v2965_v16 = vpop.f32.mrf.mxu2 }
 0x33a   : > { %v2416_v38 = vpop.f32.mrf.mxu3  ;;  %v13204_v41 = vadd.f32 %v2965_v16, %v2781_v18  ;;  %v2598_v37 = vpop.f32.mrf.mxu0 }
 0x33b   : > { %v2783_v10 = vpop.f32.mrf.mxu1  ;;  %v2599_v36 = vadd.f32 %v2598_v37, %v2413_v58  ;;  %v10013_v37 = vld [vmem:[%s18599_s3 + $0xc28] sm:$0xff] }
 0x33c   : > { %18637 = vst [vmem:[#allocation40_spill] sm:$0xff] %v13204_v41  ;;  %v13518_v41 = vld [vmem:[%s11460_s0 + $0x118] sm:$0xff] }
 0x33d   : > { %v2784_v56 = vadd.f32 %v2783_v10, %v2599_v36  ;;  %2645 = vmatmul.f32.gmra.mxu0 %v10009_v50  ;;  %v10015_v50 = vld [vmem:[%s18599_s3 + $0xc38] sm:$0xff] }
 0x33e   : > { %2830 = vmatmul.f32.gmra.mxu1 %v10010_v48  ;;  %10113 = vmatmul.msk.f32.gmra.mxu2 %vm1016_vm1, %v10011_v62  ;;  %v10020_v48 = vld [vmem:[%s18599_s3 + $0xc60] sm:$0xff] }
 0x33f   : > { %2466 = vmatmul.f32.gmra.mxu3 %v10016_v3 }
 0x341   : > { %v2968_v15 = vpop.f32.mrf.mxu2 }
 0x342   : > { %v2419_v26 = vpop.f32.mrf.mxu3  ;;  %v13219_v18 = vadd.f32 %v2968_v15, %v2784_v56  ;;  %v2601_v16 = vpop.f32.mrf.mxu0 }
 0x343   : > { %v2786_v58 = vpop.f32.mrf.mxu1  ;;  %v2602_v10 = vadd.f32 %v2601_v16, %v2416_v38  ;;  %v10017_v16 = vld [vmem:[%s18599_s3 + $0xc48] sm:$0xff] }
 0x344   : > { %18638 = vst [vmem:[#allocation41_spill] sm:$0xff] %v13219_v18 }
 0x345   : > { %v2787_v36 = vadd.f32 %v2786_v58, %v2602_v10  ;;  %2648 = vmatmul.f32.gmra.mxu0 %v10013_v37  ;;  %v10019_v37 = vld [vmem:[%s18599_s3 + $0xc58] sm:$0xff] }
 0x346   : > { %2833 = vmatmul.f32.gmra.mxu1 %v10014_v25  ;;  %10114 = vmatmul.msk.f32.gmra.mxu2 %vm1016_vm1, %v10015_v50  ;;  %v10024_v25 = vld [vmem:[%s18599_s3 + $0xc80] sm:$0xff] }
 0x347   : > { %2469 = vmatmul.f32.gmra.mxu3 %v10020_v48 }
 0x349   : > { %v2971_v62 = vpop.f32.mrf.mxu2 }
 0x34a   : > { %v2422_v3 = vpop.f32.mrf.mxu3  ;;  %v13234_v56 = vadd.f32 %v2971_v62, %v2787_v36  ;;  %v2604_v15 = vpop.f32.mrf.mxu0 }
 0x34b   : > { %v2789_v38 = vpop.f32.mrf.mxu1  ;;  %v2605_v58 = vadd.f32 %v2604_v15, %v2419_v26  ;;  %v10021_v15 = vld [vmem:[%s18599_s3 + $0xc68] sm:$0xff] }
 0x34c   : > { %18639 = vst [vmem:[#allocation42_spill] sm:$0xff] %v13234_v56  ;;  %v10022_v56 = vld [vmem:[%s18599_s3 + $0xc70] sm:$0xff] }
 0x34d   : > { %v2790_v10 = vadd.f32 %v2789_v38, %v2605_v58  ;;  %2651 = vmatmul.f32.gmra.mxu0 %v10017_v16  ;;  %v10023_v16 = vld [vmem:[%s18599_s3 + $0xc78] sm:$0xff] }
 0x34e   : > { %2836 = vmatmul.f32.gmra.mxu1 %v10018_v23  ;;  %10115 = vmatmul.msk.f32.gmra.mxu2 %vm1016_vm1, %v10019_v37  ;;  %v10028_v23 = vld [vmem:[%s18599_s3 + $0xca0] sm:$0xff] }
 0x34f   : > { %2472 = vmatmul.f32.gmra.mxu3 %v10024_v25 }
 0x351   : > { %v2974_v50 = vpop.f32.mrf.mxu2 }
 0x352   : > { %v2425_v48 = vpop.f32.mrf.mxu3  ;;  %v13249_v36 = vadd.f32 %v2974_v50, %v2790_v10  ;;  %v2607_v62 = vpop.f32.mrf.mxu0 }
 0x353   : > { %v2792_v26 = vpop.f32.mrf.mxu1  ;;  %v2608_v38 = vadd.f32 %v2607_v62, %v2422_v3  ;;  %v10025_v62 = vld [vmem:[%s18599_s3 + $0xc88] sm:$0xff] }
 0x354   : > { %18640 = vst [vmem:[#allocation43_spill] sm:$0xff] %v13249_v36  ;;  %v10026_v36 = vld [vmem:[%s18599_s3 + $0xc90] sm:$0xff] }
 0x355   : > { %v2793_v58 = vadd.f32 %v2792_v26, %v2608_v38  ;;  %2654 = vmatmul.f32.gmra.mxu0 %v10021_v15  ;;  %v10027_v15 = vld [vmem:[%s18599_s3 + $0xc98] sm:$0xff] }
 0x356   : > { %2839 = vmatmul.f32.gmra.mxu1 %v10022_v56  ;;  %10116 = vmatmul.msk.f32.gmra.mxu2 %vm1016_vm1, %v10023_v16  ;;  %v10032_v56 = vld [vmem:[%s18599_s3 + $0xcc0] sm:$0xff] }
 0x357   : > { %2475 = vmatmul.f32.gmra.mxu3 %v10028_v23 }
 0x359   : > { %v2977_v37 = vpop.f32.mrf.mxu2 }
 0x35a   : > { %v2428_v25 = vpop.f32.mrf.mxu3  ;;  %v13264_v10 = vadd.f32 %v2977_v37, %v2793_v58  ;;  %v2610_v50 = vpop.f32.mrf.mxu0 }
 0x35b   : > { %v2795_v3 = vpop.f32.mrf.mxu1  ;;  %v2611_v26 = vadd.f32 %v2610_v50, %v2425_v48  ;;  %v10029_v50 = vld [vmem:[%s18599_s3 + $0xca8] sm:$0xff] }
 0x35c   : > { %18641 = vst [vmem:[#allocation44_spill] sm:$0xff] %v13264_v10  ;;  %v10030_v10 = vld [vmem:[%s18599_s3 + $0xcb0] sm:$0xff] }
 0x35d   : > { %v2796_v38 = vadd.f32 %v2795_v3, %v2611_v26  ;;  %2657 = vmatmul.f32.gmra.mxu0 %v10025_v62  ;;  %v10031_v62 = vld [vmem:[%s18599_s3 + $0xcb8] sm:$0xff] }
 0x35e   : > { %2842 = vmatmul.f32.gmra.mxu1 %v10026_v36  ;;  %10117 = vmatmul.msk.f32.gmra.mxu2 %vm1016_vm1, %v10027_v15  ;;  %v10036_v36 = vld [vmem:[%s18599_s3 + $0xce0] sm:$0xff] }
 0x35f   : > { %2478 = vmatmul.f32.gmra.mxu3 %v10032_v56 }
 0x361   : > { %v2980_v16 = vpop.f32.mrf.mxu2 }
 0x362   : > { %v2431_v23 = vpop.f32.mrf.mxu3  ;;  %v13279_v58 = vadd.f32 %v2980_v16, %v2796_v38  ;;  %v2613_v37 = vpop.f32.mrf.mxu0 }
 0x363   : > { %v2798_v48 = vpop.f32.mrf.mxu1  ;;  %v2614_v3 = vadd.f32 %v2613_v37, %v2428_v25  ;;  %v10033_v37 = vld [vmem:[%s18599_s3 + $0xcc8] sm:$0xff] }
 0x364   : > { %18642 = vst [vmem:[#allocation45_spill] sm:$0xff] %v13279_v58  ;;  %v10034_v58 = vld [vmem:[%s18599_s3 + $0xcd0] sm:$0xff] }
 0x365   : > { %v2799_v26 = vadd.f32 %v2798_v48, %v2614_v3  ;;  %2660 = vmatmul.f32.gmra.mxu0 %v10029_v50  ;;  %v10035_v50 = vld [vmem:[%s18599_s3 + $0xcd8] sm:$0xff] }
 0x366   : > { %2845 = vmatmul.f32.gmra.mxu1 %v10030_v10  ;;  %10118 = vmatmul.msk.f32.gmra.mxu2 %vm1016_vm1, %v10031_v62  ;;  %v10040_v10 = vld [vmem:[%s18599_s3 + $0xd00] sm:$0xff] }
 0x367   : > { %2481 = vmatmul.f32.gmra.mxu3 %v10036_v36 }
 0x369   : > { %v2983_v15 = vpop.f32.mrf.mxu2 }
 0x36a   : > { %v2434_v56 = vpop.f32.mrf.mxu3  ;;  %v13294_v38 = vadd.f32 %v2983_v15, %v2799_v26  ;;  %v2616_v16 = vpop.f32.mrf.mxu0 }
 0x36b   : > { %v2801_v25 = vpop.f32.mrf.mxu1  ;;  %v2617_v48 = vadd.f32 %v2616_v16, %v2431_v23  ;;  %v10037_v16 = vld [vmem:[%s18599_s3 + $0xce8] sm:$0xff] }
 0x36c   : > { %18643 = vst [vmem:[#allocation46_spill] sm:$0xff] %v13294_v38  ;;  %v13458_v38 = vld [vmem:[%s11460_s0 + $0x140] sm:$0xff] }
 0x36d   : > { %v2802_v3 = vadd.f32 %v2801_v25, %v2617_v48  ;;  %2663 = vmatmul.f32.gmra.mxu0 %v10033_v37  ;;  %v10038_v25 = vld [vmem:[%s18599_s3 + $0xcf0] sm:$0xff]  ;;  %v10039_v48 = vld [vmem:[%s18599_s3 + $0xcf8] sm:$0xff] }
 0x36e   : > { %2848 = vmatmul.f32.gmra.mxu1 %v10034_v58  ;;  %10119 = vmatmul.msk.f32.gmra.mxu2 %vm1016_vm1, %v10035_v50  ;;  %v10044_v58 = vld [vmem:[%s18599_s3 + $0xd20] sm:$0xff] }
 0x36f   : > { %2484 = vmatmul.f32.gmra.mxu3 %v10040_v10  ;;  %v3065_v10 = vld [vmem:[%s18646_s2 + $0x18] sm:$0xff] }
 0x370   : > { %3249 = vmatpush.msra.mxu3 %v3065_v10  ;;  %v10045_v10 = vld [vmem:[%s18599_s3 + $0xd28] sm:$0xff] }
 0x371   : > { %v2986_v62 = vpop.f32.mrf.mxu2 }
 0x372   : > { %v13309_v36 = vpop.f32.mrf.mxu3  ;;  %v13311_v26 = vadd.f32 %v2986_v62, %v2802_v3  ;;  %v2619_v23 = vpop.f32.mrf.mxu0 }
 0x373   : > { %18644 = vst [vmem:[#allocation47_spill] sm:$0xff] %v13309_v36  ;;  %v2804_v15 = vpop.f32.mrf.mxu1  ;;  %v2620_v37 = vadd.f32 %v2619_v23, %v2434_v56  ;;  %v10041_v36 = vld [vmem:[%s18599_s3 + $0xd08] sm:$0xff] }
 0x374   : > { %18645 = vst [vmem:[#allocation48_spill] sm:$0xff] %v13311_v26 }
 0x375   : > { %v2805_v50 = vadd.f32 %v2804_v15, %v2620_v37  ;;  %2666 = vmatmul.f32.gmra.mxu0 %v10037_v16  ;;  %v10042_v15 = vld [vmem:[%s18599_s3 + $0xd10] sm:$0xff]  ;;  %v10048_v16 = vld [vmem:[%s18599_s3 + $0xd40] sm:$0xff]  ;;  %v1930_v37 = vld [vmem:[%s18646_s2 + $0x8] sm:$0xff] }
 0x376   : > { %2851 = vmatmul.f32.gmra.mxu1 %v10038_v25  ;;  %10120 = vmatmul.msk.f32.gmra.mxu2 %vm1016_vm1, %v10039_v48  ;;  %v10043_v25 = vld [vmem:[%s18599_s3 + $0xd18] sm:$0xff] }
 0x377   : > { %2487 = vmatmul.f32.gmra.mxu3 %v10044_v58  ;;  %3602 = vmatpush.msra.mxu0 %v1930_v37  ;;  %v10050_v37 = vld [vmem:[%s18599_s3 + $0xd50] sm:$0xff] }
 0x379   : > { %v2989_v3 = vpop.f32.mrf.mxu2 }
 0x37a   : > { %v13329_v56 = vpop.f32.mrf.mxu3  ;;  %v13331_v62 = vadd.f32 %v2989_v3, %v2805_v50  ;;  %v13333_v23 = vpop.f32.mrf.mxu0  ;;  %v10046_v50 = vld [vmem:[%s18599_s3 + $0xd30] sm:$0xff]  ;;  %v10047_v3 = vld [vmem:[%s18599_s3 + $0xd38] sm:$0xff] }
 0x37b   : > { %18647 = vst [vmem:[#allocation49_spill] sm:$0xff] %v13329_v56 }
 0x37c   : > { %18648 = vst [vmem:[#allocation50_spill] sm:$0xff] %v13331_v62  ;;  %v13450_v62 = vld [vmem:[%s11460_s0 + $0x148] sm:$0xff] }
 0x37d   : > { %18649 = vst [vmem:[#allocation51_spill] sm:$0xff] %v13333_v23  ;;  %2669 = vmatmul.f32.gmra.mxu0 %v10041_v36  ;;  %v10052_v36 = vld [vmem:[%s18599_s3 + $0xd60] sm:$0xff]  ;;  %v11266_v23 = vld [vmem:[%s11460_s0 + $0x1b8] sm:$0x1] }
 0x37e   : > { %2854 = vmatmul.f32.gmra.mxu1 %v10042_v15  ;;  %10121 = vmatmul.msk.f32.gmra.mxu2 %vm1016_vm1, %v10043_v25  ;;  %v10049_v25 = vld [vmem:[%s18599_s3 + $0xd48] sm:$0xff] }
 0x37f   : > { %2490 = vmatmul.f32.gmra.mxu3 %v10048_v16 }
 0x382   : > { %v13351_v58 = vpop.f32.mrf.mxu3  ;;  %v13353_v48 = vpop.f32.mrf.mxu0 }
 0x383   : > { %18650 = vst [vmem:[#allocation52_spill] sm:$0xff] %v13351_v58  ;;  %v10053_v58 = vld [vmem:[%s18599_s3 + $0xd68] sm:$0xff] }
 0x384   : > { %18651 = vst [vmem:[#allocation53_spill] sm:$0xff] %v13353_v48  ;;  %v13424_v48 = vld [vmem:[%s11460_s0 + $0x158] sm:$0xff] }
 0x385   : > { %2672 = vmatmul.f32.gmra.mxu0 %v10045_v10  ;;  %v10056_v10 = vld [vmem:[%s18599_s3 + $0xd80] sm:$0xff] }
 0x386   : > { %2857 = vmatmul.f32.gmra.mxu1 %v10046_v50  ;;  %10122 = vmatmul.msk.f32.gmra.mxu2 %vm1016_vm1, %v10047_v3  ;;  %v10051_v50 = vld [vmem:[%s18599_s3 + $0xd58] sm:$0xff] }
 0x387   : > { %2493 = vmatmul.f32.gmra.mxu3 %v10052_v36  ;;  %v3064_v36 = vld [vmem:[%s18646_s2 + $0x10] sm:$0xff]  ;;  %v13389_v3 = vld [vmem:[%s11460_s0 + $0x178] sm:$0xff] }
 0x388   : > { %3250 = vmatpush.msra.mxu3 %v3064_v36  ;;  %v13413_v36 = vld [vmem:[%s11460_s0 + $0x168] sm:$0xff] }
 0x38a   : > { %v13368_v15 = vpop.f32.mrf.mxu3  ;;  %v13370_v16 = vpop.f32.mrf.mxu0  ;;  %4536 = vmatpush.msrb.mxu3 %v13389_v3 }
 0x38b   : > { %18652 = vst [vmem:[#allocation54_spill] sm:$0xff] %v13368_v15 }
 0x38c   : > { %18653 = vst [vmem:[#allocation55_spill] sm:$0xff] %v13370_v16 }
 0x38d   : > { %2675 = vmatmul.f32.gmra.mxu0 %v10049_v25  ;;  %v10054_v25 = vld [vmem:[%s18599_s3 + $0xd70] sm:$0xff] }
 0x38e   : > { %2860 = vmatmul.f32.gmra.mxu1 %v10050_v37  ;;  %10123 = vmatmul.msk.f32.gmra.mxu2 %vm1016_vm1, %v10051_v50  ;;  %v13403_v37 = vld [vmem:[%s11460_s0 + $0x170] sm:$0xff]  ;;  %v10055_v50 = vld [vmem:[%s18599_s3 + $0xd78] sm:$0xff] }
 0x38f   : > { %2496 = vmatmul.f32.gmra.mxu3 %v10056_v10  ;;  %v10060_v10 = vld [vmem:[%s18599_s3 + $0xda0] sm:$0xff] }
 0x390   : > { %4537 = vmatpush.msrb.mxu3 %v13403_v37 }
 0x392   : > { %v13392_v15 = vpop.f32.mrf.mxu3  ;;  %v13394_v16 = vpop.f32.mrf.mxu0  ;;  %4538 = vmatpush.msrb.mxu3 %v13413_v36 }
 0x393   : > { %18654 = vst [vmem:[#allocation56_spill] sm:$0xff] %v13392_v15  ;;  %v13418_v15 = vld [vmem:[%s11460_s0 + $0x160] sm:$0xff] }
 0x394   : > { %18655 = vst [vmem:[#allocation57_spill] sm:$0xff] %v13394_v16  ;;  %4539 = vmatpush.msrb.mxu3 %v13418_v15 }
 0x395   : > { %2678 = vmatmul.f32.gmra.mxu0 %v10053_v58  ;;  %v10057_v58 = vld [vmem:[%s18599_s3 + $0xd88] sm:$0xff] }
 0x396   : > { %2863 = vmatmul.f32.gmra.mxu1 %v10054_v25  ;;  %10124 = vmatmul.msk.f32.gmra.mxu2 %vm1016_vm1, %v10055_v50  ;;  %v10058_v25 = vld [vmem:[%s18599_s3 + $0xd90] sm:$0xff]  ;;  %v10059_v50 = vld [vmem:[%s18599_s3 + $0xd98] sm:$0xff] }
 0x397   : > { %2499 = vmatmul.f32.gmra.mxu3 %v10060_v10  ;;  %v10064_v10 = vld [vmem:[%s18599_s3 + $0xdc0] sm:$0xff] }
 0x398   : > { %4540 = vmatpush.msrb.mxu3 %v13424_v48 }
 0x39a   : > { %v13421_v16 = vpop.f32.mrf.mxu3  ;;  %v13427_v56 = vpop.f32.mrf.mxu0 }
 0x39b   : > { %18656 = vst [vmem:[#allocation58_spill] sm:$0xff] %v13421_v16  ;;  %v13442_v16 = vld [vmem:[%s11460_s0 + $0x150] sm:$0xff] }
 0x39c   : > { %18657 = vst [vmem:[#allocation59_spill] sm:$0xff] %v13427_v56  ;;  %4541 = vmatpush.msrb.mxu3 %v13442_v16  ;;  %v1929_v56 = vld [vmem:[%s18646_s2] sm:$0xff] }
 0x39d   : > { %2681 = vmatmul.f32.gmra.mxu0 %v10057_v58 }
 0x39e   : > { %2866 = vmatmul.f32.gmra.mxu1 %v10058_v25  ;;  %10125 = vmatmul.msk.f32.gmra.mxu2 %vm1016_vm1, %v10059_v50  ;;  %v10062_v25 = vld [vmem:[%s18599_s3 + $0xdb0] sm:$0xff]  ;;  %v10063_v50 = vld [vmem:[%s18599_s3 + $0xdb8] sm:$0xff] }
 0x39f   : > { %2502 = vmatmul.f32.gmra.mxu3 %v10064_v10  ;;  %3603 = vmatpush.msra.mxu0 %v1929_v56  ;;  %v10061_v56 = vld [vmem:[%s18599_s3 + $0xda8] sm:$0xff]  ;;  %v11268_v10 = vld [vmem:[%s11460_s0 + $0x1b0] sm:$0xff] }
 0x3a0   : > { %4542 = vmatpush.msrb.mxu3 %v13450_v62 }
 0x3a1   : > { %10465 = vmatpush.msk.msrb.mxu0 %vm1185_vm0, %v11266_v23  ;;  %v10068_v23 = vld [vmem:[%s18599_s3 + $0xde0] sm:$0xff] }
 0x3a2   : > { %v13455_v26 = vpop.f32.mrf.mxu3  ;;  %4543 = vmatpush.msrb.mxu3 %v13458_v38  ;;  %v13461_v58 = vpop.f32.mrf.mxu0 }
 0x3a3   : > { %18658 = vst [vmem:[#allocation60_spill] sm:$0xff] %v13455_v26  ;;  %4730 = vmatpush.msrb.mxu0 %v11268_v10  ;;  %v13477_v26 = vld [vmem:[%s11460_s0 + $0x138] sm:$0xff]  ;;  %v13483_v10 = vld [vmem:[%s11460_s0 + $0x130] sm:$0xff] }
 0x3a4   : > { %18659 = vst [vmem:[#allocation61_spill] sm:$0xff] %v13461_v58  ;;  %4544 = vmatpush.msrb.mxu3 %v13477_v26  ;;  %v11270_v58 = vld [vmem:[%s11460_s0 + $0x1a8] sm:$0xff] }
 0x3a5   : > { %4731 = vmatpush.msrb.mxu0 %v11270_v58  ;;  %v11274_v58 = vld [vmem:[%s11460_s0 + $0x198] sm:$0xff] }
 0x3a6   : > { %2684 = vmatmul.f32.gmra.mxu0 %v10061_v56  ;;  %2869 = vmatmul.f32.gmra.mxu1 %v10062_v25  ;;  %v10065_v25 = vld [vmem:[%s18599_s3 + $0xdc8] sm:$0xff] }
 0x3a7   : > { %2505 = vmatmul.f32.gmra.mxu3 %v10068_v23  ;;  %10126 = vmatmul.msk.f32.gmra.mxu2 %vm1016_vm1, %v10063_v50  ;;  %v10067_v23 = vld [vmem:[%s18599_s3 + $0xdd8] sm:$0xff]  ;;  %v13506_v50 = vld [vmem:[%s11460_s0 + $0x120] sm:$0xff] }
 0x3a8   : > { %4545 = vmatpush.msrb.mxu3 %v13483_v10  ;;  %4732 = vmatpush.msrb.mxu0 %v11272_v59  ;;  %v10066_v59 = vld [vmem:[%s18599_s3 + $0xdd0] sm:$0xff] }
 0x3aa   : > { %v13487_v18 = vpop.f32.mrf.mxu3  ;;  %4546 = vmatpush.msrb.mxu3 %v13490_v43  ;;  %4733 = vmatpush.msrb.mxu0 %v11274_v58  ;;  %v13494_v56 = vpop.f32.mrf.mxu0  ;;  %v11276_v58 = vld [vmem:[%s11460_s0 + $0x190] sm:$0xff] }
 0x3ab   : > { %18660 = vst [vmem:[#allocation62_spill] sm:$0xff] %v13487_v18  ;;  %v13510_v18 = vpop.f32.mrf.mxu1 }
 0x3ac   : > { %18661 = vst [vmem:[#allocation63_spill] sm:$0xff] %v13494_v56  ;;  %4547 = vmatpush.msrb.mxu3 %v13506_v50  ;;  %4734 = vmatpush.msrb.mxu0 %v11276_v58  ;;  %v13512_v56 = vpop.f32.mrf.mxu2  ;;  %v13525_v58 = vld [vmem:[%s11460_s0 + $0x110] sm:$0xff] }
 0x3ad   : > { %18662 = vst [vmem:[#allocation64_spill] sm:$0xff] %v13510_v18  ;;  %v11283_v18 = vld [vmem:[%s11460_s0 + $0xf8] sm:$0xff] }
 0x3ae   : > { %18663 = vst [vmem:[#allocation65_spill] sm:$0xff] %v13512_v56  ;;  %2687 = vmatmul.f32.gmra.mxu0 %v10065_v25  ;;  %2872 = vmatmul.f32.gmra.mxu1 %v10066_v59  ;;  %v11280_v25 = vld [vmem:[%s11460_s0 + $0x180] sm:$0xff] }
 0x3af   : > { %10127 = vmatmul.msk.f32.gmra.mxu2 %vm1016_vm1, %v10067_v23  ;;  %10129 = vmatmul.msk.f32.vlgmr.msra.gmra.mxu3 %vm3066_vm2, %v12859_v49  ;;  %v10069_v49 = vld [vmem:[%s18599_s3 + $0xde8] sm:$0xff]  ;;  %v10071_v23 = vld [vmem:[%s18599_s3 + $0xdf8] sm:$0xff]  ;;  %v13552_v56 = vld [vmem:[%s11460_s0 + $0x100] sm:$0xff] }
 0x3b0   : > { %4548 = vmatpush.msrb.mxu3 %v13518_v41  ;;  %4735 = vmatpush.msrb.mxu0 %v11278_v17  ;;  %v10070_v17 = vld [vmem:[%s18599_s3 + $0xdf0] sm:$0xff] }
 0x3b2   : > { %v13522_v11 = vpop.f32.mrf.mxu3  ;;  %4549 = vmatpush.msrb.mxu3 %v13525_v58  ;;  %4736 = vmatpush.msrb.mxu0 %v11280_v25  ;;  %v13529_v59 = vpop.f32.mrf.mxu0 }
 0x3b3   : > { %18664 = vst [vmem:[#allocation66_spill] sm:$0xff] %v13522_v11  ;;  %v13541_v11 = vld [vmem:[%s11460_s0 + $0x108] sm:$0xff]  ;;  %v13544_v25 = vpop.f32.mrf.mxu1 }
 0x3b4   : > { %18665 = vst [vmem:[#allocation67_spill] sm:$0xff] %v13529_v59  ;;  %4550 = vmatpush.msrb.mxu3 %v13541_v11  ;;  %v13549_v59 = vpop.f32.mrf.mxu2 }
 0x3b6   : > { %2690 = vmatmul.f32.gmra.mxu0 %v10069_v49  ;;  %2875 = vmatmul.f32.gmra.mxu1 %v10070_v17  ;;  %v11284_v17 = vld [vmem:[%s11460_s0 + $0xf0] sm:$0xff] }
 0x3b7   : > { %10128 = vmatmul.msk.f32.gmra.mxu2 %vm1016_vm1, %v10071_v23  ;;  %10130 = vmatmul.msk.f32.gmra.mxu3 %vm3066_vm2, %v12874_v44  ;;  %v11285_v23 = vld [vmem:[%s11460_s0 + $0xe8] sm:$0xff]  ;;  %v11286_v44 = vld [vmem:[%s11460_s0 + $0xe0] sm:$0xff] }
 0x3b8   : > { %4551 = vmatpush.msrb.mxu3 %v13552_v56 }
 0x3ba   : > { %5895 = vmatpush.msra.mxu3 %v11283_v18  ;;  %v13556_v20 = vpop.f32.mrf.mxu3  ;;  %v13558_v49 = vpop.f32.mrf.mxu0 }
 0x3bb   : > { %18666 = vst [vmem:[#allocation68_spill] sm:$0xff] %v13556_v20  ;;  %v13568_v18 = vpop.f32.mrf.mxu1 }
 0x3bc   : > { %5896 = vmatpush.msra.mxu3 %v11284_v17  ;;  %v13571_v17 = vpop.f32.mrf.mxu2 }
 0x3be   : > { %5897 = vmatpush.msra.mxu3 %v11285_v23  ;;  %10185 = vmatmul.msk.f32.vlgmr.msra.gmra.mxu0 %vm3066_vm2, %v12017_v24  ;;  %v11287_v23 = vld [vmem:[%s11460_s0 + $0xd8] sm:$0xff] }
 0x3bf   : > { %10131 = vmatmul.msk.f32.gmra.mxu3 %vm3066_vm2, %v12889_v12  ;;  %6080 = vmatpush.msra.mxu0 %v13389_v3  ;;  %v11288_v12 = vld [vmem:[%s11460_s0 + $0xd0] sm:$0xff] }
 0x3c0   : > { %5898 = vmatpush.msra.mxu3 %v11286_v44  ;;  %v11289_v44 = vld [vmem:[%s11460_s0 + $0xc8] sm:$0xff] }
 0x3c1   : > { %6081 = vmatpush.msra.mxu0 %v13403_v37 }
 0x3c2   : > { %v13573_v20 = vpop.f32.mrf.mxu3  ;;  %5899 = vmatpush.msra.mxu3 %v11287_v23  ;;  %v13576_v24 = vpop.f32.mrf.mxu0  ;;  %v11290_v23 = vld [vmem:[%s11460_s0 + $0xc0] sm:$0xff] }
 0x3c3   : > { %18667 = vst [vmem:[#allocation69_spill] sm:$0xff] %v13573_v20  ;;  %6082 = vmatpush.msra.mxu0 %v13413_v36  ;;  %v11291_v20 = vld [vmem:[%s11460_s0 + $0xb8] sm:$0xff] }
 0x3c4   : > { %18668 = vst [vmem:[#allocation70_spill] sm:$0xff] %v13576_v24  ;;  %5900 = vmatpush.msra.mxu3 %v11288_v12  ;;  %v13592_v24 = vpop.f32.mrf.mxu1 }
 0x3c5   : > { %6083 = vmatpush.msra.mxu0 %v13418_v15 }
 0x3c6   : > { %10186 = vmatmul.msk.f32.gmra.mxu0 %vm3066_vm2, %v12032_v9  ;;  %5901 = vmatpush.msra.mxu3 %v11289_v44  ;;  %v11292_v44 = vld [vmem:[%s11460_s0 + $0xb0] sm:$0xff] }
 0x3c7   : > { %10132 = vmatmul.msk.f32.gmra.mxu3 %vm3066_vm2, %v12904_v47  ;;  %6084 = vmatpush.msra.mxu0 %v13424_v48  ;;  %v13597_v47 = vpop.f32.mrf.mxu2 }
 0x3c8   : > { %5902 = vmatpush.msra.mxu3 %v11290_v23  ;;  %v11293_v23 = vld [vmem:[%s11460_s0 + $0xa8] sm:$0xff] }
 0x3c9   : > { %6085 = vmatpush.msra.mxu0 %v13442_v16 }
 0x3ca   : > { %v13589_v12 = vpop.f32.mrf.mxu3  ;;  %5903 = vmatpush.msra.mxu3 %v11291_v20  ;;  %v13594_v9 = vpop.f32.mrf.mxu0  ;;  %v11294_v20 = vld [vmem:[%s11460_s0 + $0xa0] sm:$0xff] }
 0x3cb   : > { %18669 = vst [vmem:[#allocation71_spill] sm:$0xff] %v13589_v12  ;;  %6086 = vmatpush.msra.mxu0 %v13450_v62 }
 0x3cc   : > { %18670 = vst [vmem:[#allocation72_spill] sm:$0xff] %v13594_v9  ;;  %5904 = vmatpush.msra.mxu3 %v11292_v44  ;;  %v11295_v44 = vld [vmem:[%s11460_s0 + $0x98] sm:$0xff] }
 0x3cd   : > { %6087 = vmatpush.msra.mxu0 %v13458_v38 }
 0x3ce   : > { %10187 = vmatmul.msk.f32.gmra.mxu0 %vm3066_vm2, %v12047_v35  ;;  %5905 = vmatpush.msra.mxu3 %v11293_v23  ;;  %v11296_v35 = vld [vmem:[%s11460_s0 + $0x90] sm:$0xff]  ;;  %v13616_v23 = vpop.f32.mrf.mxu1 }
 0x3cf   : > { %10133 = vmatmul.msk.f32.gmra.mxu3 %vm3066_vm2, %v12919_v6  ;;  %6088 = vmatpush.msra.mxu0 %v13477_v26  ;;  %v13619_v6 = vpop.f32.mrf.mxu2 }
 0x3d0   : > { %5906 = vmatpush.msra.mxu3 %v11294_v20  ;;  %v11297_v20 = vld [vmem:[%s11460_s0 + $0x88] sm:$0xff] }
 0x3d1   : > { %6089 = vmatpush.msra.mxu0 %v13483_v10 }
 0x3d2   : > { %v13609_v12 = vpop.f32.mrf.mxu3  ;;  %5907 = vmatpush.msra.mxu3 %v11295_v44  ;;  %v13612_v9 = vpop.f32.mrf.mxu0  ;;  %v11298_v44 = vld [vmem:[%s11460_s0 + $0x80] sm:$0xff] }
 0x3d3   : > { %18671 = vst [vmem:[#allocation73_spill] sm:$0xff] %v13609_v12  ;;  %6090 = vmatpush.msra.mxu0 %v13490_v43 }
 0x3d4   : > { %18672 = vst [vmem:[#allocation74_spill] sm:$0xff] %v13612_v9  ;;  %5908 = vmatpush.msra.mxu3 %v11296_v35 }
 0x3d5   : > { %6091 = vmatpush.msra.mxu0 %v13506_v50 }
 0x3d6   : > { %10188 = vmatmul.msk.f32.gmra.mxu0 %vm3066_vm2, %v12062_v46  ;;  %5909 = vmatpush.msra.mxu3 %v11297_v20  ;;  %v13637_v46 = vpop.f32.mrf.mxu1 }
 0x3d7   : > { %10134 = vmatmul.msk.f32.gmra.mxu3 %vm3066_vm2, %v12934_v54  ;;  %6092 = vmatpush.msra.mxu0 %v13518_v41  ;;  %v13641_v54 = vpop.f32.mrf.mxu2 }
 0x3d8   : > { %5910 = vmatpush.msra.mxu3 %v11298_v44 }
 0x3d9   : > { %6093 = vmatpush.msra.mxu0 %v13525_v58 }
 0x3da   : > { %v13629_v35 = vpop.f32.mrf.mxu3  ;;  %v13631_v12 = vpop.f32.mrf.mxu0 }
 0x3db   : > { %18673 = vst [vmem:[#allocation75_spill] sm:$0xff] %v13629_v35  ;;  %6094 = vmatpush.msra.mxu0 %v13541_v11 }
 0x3dc   : > { %18674 = vst [vmem:[#allocation76_spill] sm:$0xff] %v13631_v12 }
 0x3dd   : > { %6095 = vmatpush.msra.mxu0 %v13552_v56 }
 0x3de   : > { %10189 = vmatmul.msk.f32.gmra.mxu0 %vm3066_vm2, %v12077_v57  ;;  %v13651_v35 = vpop.f32.mrf.mxu1 }
 0x3df   : > { %10135 = vmatmul.msk.f32.gmra.mxu3 %vm3066_vm2, %v12949_v31  ;;  %v13653_v57 = vpop.f32.mrf.mxu2 }
 0x3e2   : > { %v13643_v20 = vpop.f32.mrf.mxu3  ;;  %v13645_v44 = vpop.f32.mrf.mxu0 }
 0x3e3   : > { %18675 = vst [vmem:[#allocation77_spill] sm:$0xff] %v13643_v20 }
 0x3e6   : > { %10190 = vmatmul.msk.f32.gmra.mxu0 %vm3066_vm2, %v12092_v8  ;;  %v13665_v8 = vpop.f32.mrf.mxu1 }
 0x3e7   : > { %10136 = vmatmul.msk.f32.gmra.mxu3 %vm3066_vm2, %v12964_v61  ;;  %v13669_v61 = vpop.f32.mrf.mxu2 }
 0x3ea   : > { %v13655_v12 = vpop.f32.mrf.mxu3  ;;  %v13657_v9 = vpop.f32.mrf.mxu0 }
 0x3eb   : > { %18676 = vst [vmem:[#allocation78_spill] sm:$0xff] %v13655_v12 }
 0x3ec   : > { %18677 = vst [vmem:[#allocation79_spill] sm:$0xff] %v13657_v9 }
 0x3ee   : > { %10191 = vmatmul.msk.f32.gmra.mxu0 %vm3066_vm2, %v12107_v14  ;;  %v13679_v9 = vpop.f32.mrf.mxu1 }
 0x3ef   : > { %10137 = vmatmul.msk.f32.gmra.mxu3 %vm3066_vm2, %v12979_v1  ;;  %v13681_v1 = vpop.f32.mrf.mxu2 }
 0x3f2   : > { %v13663_v31 = vpop.f32.mrf.mxu3  ;;  %v13667_v20 = vpop.f32.mrf.mxu0 }
 0x3f3   : > { %18678 = vst [vmem:[#allocation80_spill] sm:$0xff] %v13663_v31 }
 0x3f6   : > { %10192 = vmatmul.msk.f32.gmra.mxu0 %vm3066_vm2, %v12122_v21 }
 0x3f7   : > { %10138 = vmatmul.msk.f32.gmra.mxu3 %vm3066_vm2, %v12994_v33  ;;  %v13693_v33 = vpop.f32.mrf.mxu1 }
 0x3fa   : > { %v13675_v12 = vpop.f32.mrf.mxu3  ;;  %v13677_v14 = vpop.f32.mrf.mxu0 }
 0x3fb   : > { %18679 = vst [vmem:[#allocation81_spill] sm:$0xff] %v13675_v12  ;;  %v13697_v12 = vpop.f32.mrf.mxu2 }
 0x3fc   : > { %18680 = vst [vmem:[#allocation82_spill] sm:$0xff] %v13677_v14 }
 0x3fe   : > { %10193 = vmatmul.msk.f32.gmra.mxu0 %vm3066_vm2, %v12137_v40 }
 0x3ff   : > { %10139 = vmatmul.msk.f32.gmra.mxu3 %vm3066_vm2, %v13009_v28  ;;  %v13707_v28 = vpop.f32.mrf.mxu1 }
 0x402   : > { %v13687_v31 = vpop.f32.mrf.mxu3  ;;  %v13689_v21 = vpop.f32.mrf.mxu0 }
 0x403   : > { %18681 = vst [vmem:[#allocation83_spill] sm:$0xff] %v13687_v31 }
 0x404   : > { %18682 = vst [vmem:[#allocation84_spill] sm:$0xff] %v13689_v21 }
 0x406   : > { %10194 = vmatmul.msk.f32.gmra.mxu0 %vm3066_vm2, %v12152_v52  ;;  %v13709_v52 = vpop.f32.mrf.mxu2 }
 0x407   : > { %10140 = vmatmul.msk.f32.gmra.mxu3 %vm3066_vm2, %v13024_v30 }
 0x40a   : > { %v13699_v14 = vpop.f32.mrf.mxu3  ;;  %v13701_v40 = vpop.f32.mrf.mxu0 }
 0x40e   : > { %10195 = vmatmul.msk.f32.gmra.mxu0 %vm3066_vm2, %v12167_v0  ;;  %v10242_v0 = vld [vmem:[%s18599_s3 + $0xe08] sm:$0xff] }
 0x40f   : > { %10141 = vmatmul.msk.f32.gmra.mxu3 %vm3066_vm2, %v13039_v63  ;;  %4367 = vmatmul.f32.vlgmr.msra.gmra.mxu2 %v10242_v0  ;;  %v13725_v63 = vpop.f32.mrf.mxu1 }
 0x410   : > { %11204 = vmatpush.msra.mxu2 %v13389_v3 }
 0x412   : > { %v13711_v31 = vpop.f32.mrf.mxu3  ;;  %v13713_v21 = vpop.f32.mrf.mxu0  ;;  %11205 = vmatpush.msra.mxu2 %v13403_v37 }
 0x413   : > { %18683 = vst [vmem:[#allocation85_spill] sm:$0xff] %v13711_v31 }
 0x414   : > { %18684 = vst [vmem:[#allocation86_spill] sm:$0xff] %v13713_v21  ;;  %v13730_v21 = vpop.f32.mrf.mxu2  ;;  %11206 = vmatpush.msra.mxu2 %v13413_v36 }
 0x416   : > { %10196 = vmatmul.msk.f32.gmra.mxu0 %vm3066_vm2, %v12182_v2  ;;  %v10241_v2 = vld [vmem:[%s18599_s3 + $0xe00] sm:$0xff]  ;;  %11207 = vmatpush.msra.mxu2 %v13418_v15 }
 0x417   : > { %10142 = vmatmul.msk.f32.gmra.mxu3 %vm3066_vm2, %v13054_v7  ;;  %4182 = vmatmul.f32.vlgmr.msra.gmra.mxu1 %v10241_v2  ;;  %v10246_v7 = vld [vmem:[%s18599_s3 + $0xe28] sm:$0xff] }
 0x418   : > { %4370 = vmatmul.f32.gmra.mxu2 %v10246_v7 }
 0x419   : > { %11208 = vmatpush.msra.mxu2 %v13424_v48  ;;  %v10250_v48 = vld [vmem:[%s18599_s3 + $0xe48] sm:$0xff] }
 0x41a   : > { %v13723_v30 = vpop.f32.mrf.mxu3  ;;  %v13727_v31 = vpop.f32.mrf.mxu0 }
 0x41b   : > { %11209 = vmatpush.msra.mxu2 %v13442_v16 }
 0x41c   : > { %v13752_v36 = vpop.f32.mrf.mxu2 }
 0x41d   : > { %11210 = vmatpush.msra.mxu2 %v13450_v62  ;;  %v10254_v62 = vld [vmem:[%s18599_s3 + $0xe68] sm:$0xff] }
 0x41e   : > { %10197 = vmatmul.msk.f32.gmra.mxu0 %vm3066_vm2, %v12197_v13  ;;  %v13749_v13 = vpop.f32.mrf.mxu1 }
 0x41f   : > { %10143 = vmatmul.msk.f32.gmra.mxu3 %vm3066_vm2, %v13069_v5  ;;  %v10245_v5 = vld [vmem:[%s18599_s3 + $0xe20] sm:$0xff]  ;;  %11211 = vmatpush.msra.mxu2 %v13458_v38 }
 0x420   : > { %4185 = vmatmul.f32.gmra.mxu1 %v10245_v5  ;;  %4373 = vmatmul.f32.gmra.mxu2 %v10250_v48 }
 0x421   : > { %11212 = vmatpush.msra.mxu2 %v13477_v26 }
 0x422   : > { %v13744_v3 = vpop.f32.mrf.mxu3 }
 0x423   : > { %v13746_v37 = vpop.f32.mrf.mxu0  ;;  %11213 = vmatpush.msra.mxu2 %v13483_v10  ;;  %v10258_v10 = vld [vmem:[%s18599_s3 + $0xe88] sm:$0xff] }
 0x424   : > { %v13783_v38 = vpop.f32.mrf.mxu2 }
 0x425   : > { %11214 = vmatpush.msra.mxu2 %v13490_v43 }
 0x426   : > { %10198 = vmatmul.msk.f32.gmra.mxu0 %vm3066_vm2, %v12212_v39  ;;  %v10249_v39 = vld [vmem:[%s18599_s3 + $0xe40] sm:$0xff] }
 0x427   : > { %10144 = vmatmul.msk.f32.gmra.mxu3 %vm3066_vm2, %v13084_v42  ;;  %v13776_v42 = vpop.f32.mrf.mxu1  ;;  %11215 = vmatpush.msra.mxu2 %v13506_v50 }
 0x428   : > { %4188 = vmatmul.f32.gmra.mxu1 %v10249_v39  ;;  %4376 = vmatmul.f32.gmra.mxu2 %v10254_v62  ;;  %v10270_v39 = vld [vmem:[%s18599_s3 + $0xee8] sm:$0xff] }
 0x429   : > { %11216 = vmatpush.msra.mxu2 %v13518_v41  ;;  %v10262_v41 = vld [vmem:[%s18599_s3 + $0xea8] sm:$0xff] }
 0x42a   : > { %v13765_v15 = vpop.f32.mrf.mxu3 }
 0x42b   : > { %18685 = vst [vmem:[#allocation87_spill] sm:$0xff] %v13765_v15  ;;  %v13767_v16 = vpop.f32.mrf.mxu0  ;;  %11217 = vmatpush.msra.mxu2 %v13525_v58 }
 0x42c   : > { %18686 = vst [vmem:[#allocation88_spill] sm:$0xff] %v13767_v16  ;;  %v13805_v43 = vpop.f32.mrf.mxu2 }
 0x42d   : > { %11218 = vmatpush.msra.mxu2 %v13541_v11 }
 0x42e   : > { %10199 = vmatmul.msk.f32.gmra.mxu0 %vm3066_vm2, %v12227_v53 }
 0x42f   : > { %10145 = vmatmul.msk.f32.gmra.mxu3 %vm3066_vm2, %v13099_v19  ;;  %v10253_v19 = vld [vmem:[%s18599_s3 + $0xe60] sm:$0xff]  ;;  %v13802_v0 = vpop.f32.mrf.mxu1  ;;  %11219 = vmatpush.msra.mxu2 %v13552_v56  ;;  %v10266_v56 = vld [vmem:[%s18599_s3 + $0xec8] sm:$0xff] }
 0x430   : > { %4191 = vmatmul.f32.gmra.mxu1 %v10253_v19  ;;  %4379 = vmatmul.f32.gmra.mxu2 %v10258_v10 }
 0x432   : > { %v13786_v53 = vpop.f32.mrf.mxu3 }
 0x433   : > { %18687 = vst [vmem:[#allocation89_spill] sm:$0xff] %v13786_v53  ;;  %v13788_v26 = vpop.f32.mrf.mxu0  ;;  %v18731_v53 = vld [vmem:[#allocation10_spill] sm:$0xff] }
 0x434   : > { %18688 = vst [vmem:[#allocation90_spill] sm:$0xff] %v13788_v26  ;;  %v13830_v2 = vpop.f32.mrf.mxu2  ;;  %v18745_v26 = vld [vmem:[#allocation51_spill] sm:$0xff] }
 0x436   : > { %10200 = vmatmul.msk.f32.gmra.mxu0 %vm3066_vm2, %v12242_v4 }
 0x437   : > { %10146 = vmatmul.msk.f32.gmra.mxu3 %vm3066_vm2, %v13114_v34  ;;  %v10257_v34 = vld [vmem:[%s18599_s3 + $0xe80] sm:$0xff]  ;;  %v13826_v11 = vpop.f32.mrf.mxu1 }
 0x438   : > { %4194 = vmatmul.f32.gmra.mxu1 %v10257_v34  ;;  %4382 = vmatmul.f32.gmra.mxu2 %v10262_v41 }
 0x43a   : > { %v13807_v4 = vpop.f32.mrf.mxu3 }
 0x43b   : > { %18689 = vst [vmem:[#allocation91_spill] sm:$0xff] %v13807_v4  ;;  %v13809_v50 = vpop.f32.mrf.mxu0  ;;  %v18725_v4 = vld [vmem:[#allocation9_spill] sm:$0xff] }
 0x43c   : > { %18690 = vst [vmem:[#allocation92_spill] sm:$0xff] %v13809_v50 }
 0x43e   : > { %10201 = vmatmul.msk.f32.gmra.mxu0 %vm3066_vm2, %v12257_v27 }
 0x43f   : > { %10147 = vmatmul.msk.f32.gmra.mxu3 %vm3066_vm2, %v13129_v55  ;;  %v10261_v55 = vld [vmem:[%s18599_s3 + $0xea0] sm:$0xff]  ;;  %v13846_v48 = vpop.f32.mrf.mxu1 }
 0x440   : > { %4197 = vmatmul.f32.gmra.mxu1 %v10261_v55  ;;  %4385 = vmatmul.f32.gmra.mxu2 %v10266_v56  ;;  %v18699_v55 = vld [vmem:[#allocation3_spill] sm:$0xff] }
 0x441   : > { %v10273_v56 = vld [vmem:[%s18599_s3 + $0xf00] sm:$0xff] }
 0x442   : > { %v13824_v58 = vpop.f32.mrf.mxu3 }
 0x443   : > { %18691 = vst [vmem:[#allocation93_spill] sm:$0xff] %v13824_v58  ;;  %v13828_v27 = vpop.f32.mrf.mxu0 }
 0x444   : > { %18692 = vst [vmem:[#allocation94_spill] sm:$0xff] %v13828_v27  ;;  %v10293_v27 = vld [vmem:[%s18599_s3 + $0xfa0] sm:$0xff] }
 0x446   : > { %10202 = vmatmul.msk.f32.gmra.mxu0 %vm3066_vm2, %v12272_v29  ;;  %v13848_v29 = vpop.f32.mrf.mxu2 }
 0x447   : > { %10148 = vmatmul.msk.f32.gmra.mxu3 %vm3066_vm2, %v13144_v22  ;;  %v10265_v22 = vld [vmem:[%s18599_s3 + $0xec0] sm:$0xff]  ;;  %v13869_v10 = vpop.f32.mrf.mxu1 }
 0x448   : > { %4200 = vmatmul.f32.gmra.mxu1 %v10265_v22  ;;  %4388 = vmatmul.f32.gmra.mxu2 %v10270_v39  ;;  %v10278_v22 = vld [vmem:[%s18599_s3 + $0xf28] sm:$0xff] }
 0x44a   : > { %v13842_v7 = vpop.f32.mrf.mxu3 }
 0x44b   : > { %18693 = vst [vmem:[#allocation95_spill] sm:$0xff] %v13842_v7  ;;  %v13844_v5 = vpop.f32.mrf.mxu0  ;;  %v18711_v7 = vld [vmem:[#allocation6_spill] sm:$0xff] }
 0x44c   : > { %18694 = vst [vmem:[#allocation96_spill] sm:$0xff] %v13844_v5  ;;  %v18715_v5 = vld [vmem:[#allocation7_spill] sm:$0xff] }
 0x44e   : > { %10203 = vmatmul.msk.f32.gmra.mxu0 %vm3066_vm2, %v12287_v45  ;;  %v10269_v45 = vld [vmem:[%s18599_s3 + $0xee0] sm:$0xff]  ;;  %v13876_v34 = vpop.f32.mrf.mxu2 }
 0x44f   : > { %10149 = vmatmul.msk.f32.gmra.mxu3 %vm3066_vm2, %v13159_v51  ;;  %v10274_v51 = vld [vmem:[%s18599_s3 + $0xf08] sm:$0xff]  ;;  %v13892_v39 = vpop.f32.mrf.mxu1 }
 0x450   : > { %4203 = vmatmul.f32.gmra.mxu1 %v10269_v45  ;;  %4391 = vmatmul.f32.gmra.mxu2 %v10274_v51 }
 0x452   : > { %v13860_v62 = vpop.f32.mrf.mxu3 }
 0x453   : > { %18695 = vst [vmem:[#allocation97_spill] sm:$0xff] %v13860_v62  ;;  %v13862_v19 = vpop.f32.mrf.mxu0  ;;  %v18707_v62 = vld [vmem:[#allocation5_spill] sm:$0xff] }
 0x454   : > { %18696 = vst [vmem:[#allocation98_spill] sm:$0xff] %v13862_v19 }
 0x456   : > { %10204 = vmatmul.msk.f32.gmra.mxu0 %vm3066_vm2, %v12302_v60  ;;  %v13894_v45 = vpop.f32.mrf.mxu2 }
 0x457   : > { %10150 = vmatmul.msk.f32.gmra.mxu3 %vm3066_vm2, %v13174_v32  ;;  %v18700_v32 = vld [vmem:[#allocation39_spill] sm:$0xff] }
 0x458   : > { %4206 = vmatmul.f32.gmra.mxu1 %v10273_v56  ;;  %4394 = vmatmul.f32.gmra.mxu2 %v10278_v22  ;;  %v10277_v56 = vld [vmem:[%s18599_s3 + $0xf20] sm:$0xff]  ;;  %v10282_v22 = vld [vmem:[%s18599_s3 + $0xf48] sm:$0xff] }
 0x45a   : > { %v13878_v41 = vpop.f32.mrf.mxu3 }
 0x45b   : > { %18697 = vst [vmem:[#allocation99_spill] sm:$0xff] %v13878_v41  ;;  %v13880_v60 = vpop.f32.mrf.mxu0  ;;  %v18703_v41 = vld [vmem:[#allocation4_spill] sm:$0xff] }
 0x45c   : > { %18698 = vst [vmem:[#allocation100_spill] sm:$0xff] %v13880_v60 }
 0x45e   : > { %10205 = vmatmul.msk.f32.gmra.mxu0 %vm3066_vm2, %v18699_v55 }
 0x45f   : > { %10151 = vmatmul.msk.f32.gmra.mxu3 %vm3066_vm2, %v18700_v32  ;;  %v18704_v32 = vld [vmem:[#allocation40_spill] sm:$0xff] }
 0x460   : > { %4209 = vmatmul.f32.gmra.mxu1 %v10277_v56  ;;  %4397 = vmatmul.f32.gmra.mxu2 %v10282_v22  ;;  %v10281_v56 = vld [vmem:[%s18599_s3 + $0xf40] sm:$0xff]  ;;  %v10286_v22 = vld [vmem:[%s18599_s3 + $0xf68] sm:$0xff] }
 0x462   : > { %v13896_v51 = vpop.f32.mrf.mxu3 }
 0x463   : > { %18701 = vst [vmem:[#allocation3_spill] sm:$0xff] %v13896_v51  ;;  %v13898_v55 = vpop.f32.mrf.mxu0  ;;  %v13912_v51 = vpop.f32.mrf.mxu1 }
 0x464   : > { %18702 = vst [vmem:[#allocation39_spill] sm:$0xff] %v13898_v55 }
 0x466   : > { %10206 = vmatmul.msk.f32.gmra.mxu0 %vm3066_vm2, %v18703_v41  ;;  %v13916_v41 = vpop.f32.mrf.mxu2 }
 0x467   : > { %10152 = vmatmul.msk.f32.gmra.mxu3 %vm3066_vm2, %v18704_v32  ;;  %v18708_v32 = vld [vmem:[#allocation41_spill] sm:$0xff] }
 0x468   : > { %4212 = vmatmul.f32.gmra.mxu1 %v10281_v56  ;;  %4400 = vmatmul.f32.gmra.mxu2 %v10286_v22  ;;  %v10285_v56 = vld [vmem:[%s18599_s3 + $0xf60] sm:$0xff]  ;;  %v10290_v22 = vld [vmem:[%s18599_s3 + $0xf88] sm:$0xff] }
 0x46a   : > { %v13910_v60 = vpop.f32.mrf.mxu3 }
 0x46b   : > { %18705 = vst [vmem:[#allocation4_spill] sm:$0xff] %v13910_v60  ;;  %v13914_v55 = vpop.f32.mrf.mxu0  ;;  %v13932_v19 = vpop.f32.mrf.mxu1 }
 0x46c   : > { %18706 = vst [vmem:[#allocation40_spill] sm:$0xff] %v13914_v55 }
 0x46e   : > { %10207 = vmatmul.msk.f32.gmra.mxu0 %vm3066_vm2, %v18707_v62  ;;  %v13934_v62 = vpop.f32.mrf.mxu2 }
 0x46f   : > { %10153 = vmatmul.msk.f32.gmra.mxu3 %vm3066_vm2, %v18708_v32  ;;  %v18712_v32 = vld [vmem:[#allocation42_spill] sm:$0xff] }
 0x470   : > { %4215 = vmatmul.f32.gmra.mxu1 %v10285_v56  ;;  %4403 = vmatmul.f32.gmra.mxu2 %v10290_v22  ;;  %v10294_v56 = vld [vmem:[%s18599_s3 + $0xfa8] sm:$0xff] }
 0x472   : > { %v13928_v60 = vpop.f32.mrf.mxu3 }
 0x473   : > { %18709 = vst [vmem:[#allocation5_spill] sm:$0xff] %v13928_v60  ;;  %v13930_v55 = vpop.f32.mrf.mxu0  ;;  %v13955_v58 = vpop.f32.mrf.mxu1 }
 0x474   : > { %18710 = vst [vmem:[#allocation41_spill] sm:$0xff] %v13930_v55 }
 0x476   : > { %10208 = vmatmul.msk.f32.gmra.mxu0 %vm3066_vm2, %v18711_v7  ;;  %v10289_v7 = vld [vmem:[%s18599_s3 + $0xf80] sm:$0xff]  ;;  %v13962_v22 = vpop.f32.mrf.mxu2 }
 0x477   : > { %10154 = vmatmul.msk.f32.gmra.mxu3 %vm3066_vm2, %v18712_v32  ;;  %v18716_v32 = vld [vmem:[#allocation43_spill] sm:$0xff] }
 0x478   : > { %4218 = vmatmul.f32.gmra.mxu1 %v10289_v7  ;;  %4406 = vmatmul.f32.gmra.mxu2 %v10294_v56  ;;  %v10298_v7 = vld [vmem:[%s18599_s3 + $0xfc8] sm:$0xff] }
 0x47a   : > { %v13946_v60 = vpop.f32.mrf.mxu3 }
 0x47b   : > { %18713 = vst [vmem:[#allocation6_spill] sm:$0xff] %v13946_v60  ;;  %v13948_v55 = vpop.f32.mrf.mxu0  ;;  %v13978_v56 = vpop.f32.mrf.mxu1 }
 0x47c   : > { %18714 = vst [vmem:[#allocation42_spill] sm:$0xff] %v13948_v55  ;;  %v18719_v55 = vld [vmem:[#allocation8_spill] sm:$0xff] }
 0x47d   : > { %18721 = vst [vmem:[#allocation8_spill] sm:$0xff] %v13978_v56  ;;  %v18750_v56 = vld [vmem:[#allocation65_spill] sm:$0xff] }
 0x47e   : > { %10209 = vmatmul.msk.f32.gmra.mxu0 %vm3066_vm2, %v18715_v5 }
 0x47f   : > { %10155 = vmatmul.msk.f32.gmra.mxu3 %vm3066_vm2, %v18716_v32  ;;  %v18720_v32 = vld [vmem:[#allocation44_spill] sm:$0xff] }
 0x480   : > { %4221 = vmatmul.f32.gmra.mxu1 %v10293_v27  ;;  %4409 = vmatmul.f32.gmra.mxu2 %v10298_v7  ;;  %v10297_v27 = vld [vmem:[%s18599_s3 + $0xfc0] sm:$0xff]  ;;  %v10302_v7 = vld [vmem:[%s18599_s3 + $0xfe8] sm:$0xff] }
 0x482   : > { %v13964_v60 = vpop.f32.mrf.mxu3 }
 0x483   : > { %18717 = vst [vmem:[#allocation7_spill] sm:$0xff] %v13964_v60  ;;  %v13966_v5 = vpop.f32.mrf.mxu0  ;;  %v13980_v60 = vpop.f32.mrf.mxu2 }
 0x484   : > { %18718 = vst [vmem:[#allocation43_spill] sm:$0xff] %v13966_v5 }
 0x485   : > { %18722 = vst [vmem:[#allocation44_spill] sm:$0xff] %v13980_v60  ;;  %v18746_v60 = vld [vmem:[#allocation50_spill] sm:$0xff] }
 0x486   : > { %10210 = vmatmul.msk.f32.gmra.mxu0 %vm3066_vm2, %v18719_v55 }
 0x487   : > { %10156 = vmatmul.msk.f32.gmra.mxu3 %vm3066_vm2, %v18720_v32  ;;  %v18726_v32 = vld [vmem:[#allocation45_spill] sm:$0xff] }
 0x488   : > { %4224 = vmatmul.f32.gmra.mxu1 %v10297_v27  ;;  %4412 = vmatmul.f32.gmra.mxu2 %v10302_v7  ;;  %v10301_v27 = vld [vmem:[%s18599_s3 + $0xfe0] sm:$0xff]  ;;  %v10306_v7 = vld [vmem:[%s18599_s3 + $0x1008] sm:$0xff] }
 0x48a   : > { %v13982_v5 = vpop.f32.mrf.mxu3 }
 0x48b   : > { %18723 = vst [vmem:[#allocation101_spill] sm:$0xff] %v13982_v5  ;;  %v13984_v55 = vpop.f32.mrf.mxu0 }
 0x48c   : > { %18724 = vst [vmem:[#allocation102_spill] sm:$0xff] %v13984_v55  ;;  %v14000_v55 = vpop.f32.mrf.mxu1 }
 0x48d   : > { %18729 = vst [vmem:[#allocation103_spill] sm:$0xff] %v14000_v55  ;;  %v18737_v55 = vld [vmem:[#allocation11_spill] sm:$0xff] }
 0x48e   : > { %10211 = vmatmul.msk.f32.gmra.mxu0 %vm3066_vm2, %v18725_v4  ;;  %v14002_v4 = vpop.f32.mrf.mxu2 }
 0x48f   : > { %10157 = vmatmul.msk.f32.gmra.mxu3 %vm3066_vm2, %v18726_v32  ;;  %18730 = vst [vmem:[#allocation104_spill] sm:$0xff] %v14002_v4  ;;  %v18732_v32 = vld [vmem:[#allocation46_spill] sm:$0xff] }
 0x490   : > { %4227 = vmatmul.f32.gmra.mxu1 %v10301_v27  ;;  %4415 = vmatmul.f32.gmra.mxu2 %v10306_v7  ;;  %v10305_v27 = vld [vmem:[%s18599_s3 + $0x1000] sm:$0xff]  ;;  %v10310_v7 = vld [vmem:[%s18599_s3 + $0x1028] sm:$0xff] }
 0x492   : > { %v13996_v50 = vpop.f32.mrf.mxu3 }
 0x493   : > { %18727 = vst [vmem:[#allocation9_spill] sm:$0xff] %v13996_v50  ;;  %v13998_v5 = vpop.f32.mrf.mxu0 }
 0x494   : > { %18728 = vst [vmem:[#allocation45_spill] sm:$0xff] %v13998_v5  ;;  %v14018_v4 = vpop.f32.mrf.mxu1 }
 0x495   : > { %18735 = vst [vmem:[#allocation105_spill] sm:$0xff] %v14018_v4  ;;  %v18743_v4 = vld [vmem:[#allocation12_spill] sm:$0xff] }
 0x496   : > { %10212 = vmatmul.msk.f32.gmra.mxu0 %vm3066_vm2, %v18731_v53  ;;  %v14020_v53 = vpop.f32.mrf.mxu2 }
 0x497   : > { %10158 = vmatmul.msk.f32.gmra.mxu3 %vm3066_vm2, %v18732_v32  ;;  %18736 = vst [vmem:[#allocation106_spill] sm:$0xff] %v14020_v53  ;;  %v18738_v32 = vld [vmem:[#allocation48_spill] sm:$0xff] }
 0x498   : > { %4230 = vmatmul.f32.gmra.mxu1 %v10305_v27  ;;  %4418 = vmatmul.f32.gmra.mxu2 %v10310_v7  ;;  %v10309_v27 = vld [vmem:[%s18599_s3 + $0x1020] sm:$0xff]  ;;  %v10314_v7 = vld [vmem:[%s18599_s3 + $0x1048] sm:$0xff] }
 0x49a   : > { %v14014_v50 = vpop.f32.mrf.mxu3 }
 0x49b   : > { %18733 = vst [vmem:[#allocation10_spill] sm:$0xff] %v14014_v50  ;;  %v14016_v5 = vpop.f32.mrf.mxu0 }
 0x49c   : > { %18734 = vst [vmem:[#allocation46_spill] sm:$0xff] %v14016_v5 }
 0x49d   : > { %v14036_v53 = vpop.f32.mrf.mxu1 }
 0x49e   : > { %10213 = vmatmul.msk.f32.gmra.mxu0 %vm3066_vm2, %v18737_v55  ;;  %18741 = vst [vmem:[#allocation107_spill] sm:$0xff] %v14036_v53  ;;  %v14038_v55 = vpop.f32.mrf.mxu2 }
 0x49f   : > { %10159 = vmatmul.msk.f32.gmra.mxu3 %vm3066_vm2, %v18738_v32  ;;  %18742 = vst [vmem:[#allocation108_spill] sm:$0xff] %v14038_v55  ;;  %v18744_v32 = vld [vmem:[#allocation47_spill] sm:$0xff] }
 0x4a0   : > { %v2623_v15 = vadd.f32 %v18745_v26, %v18744_v32  ;;  %4233 = vmatmul.f32.gmra.mxu1 %v10309_v27  ;;  %4421 = vmatmul.f32.gmra.mxu2 %v10314_v7  ;;  %v18751_v26 = vld [vmem:[#allocation13_spill] sm:$0xff]  ;;  %v10313_v27 = vld [vmem:[%s18599_s3 + $0x1040] sm:$0xff] }
 0x4a1   : > { %v18753_v32 = vld [vmem:[#allocation49_spill] sm:$0xff] }
 0x4a2   : > { %v14032_v50 = vpop.f32.mrf.mxu3  ;;  %v18754_v7 = vld [vmem:[#allocation53_spill] sm:$0xff] }
 0x4a3   : > { %18739 = vst [vmem:[#allocation11_spill] sm:$0xff] %v14032_v50  ;;  %v14034_v5 = vpop.f32.mrf.mxu0 }
 0x4a4   : > { %18740 = vst [vmem:[#allocation48_spill] sm:$0xff] %v14034_v5  ;;  %v18748_v5 = vld [vmem:[#allocation64_spill] sm:$0xff] }
 0x4a5   : > { %v14057_v53 = vpop.f32.mrf.mxu1 }
 0x4a6   : > { %10214 = vmatmul.msk.f32.gmra.mxu0 %vm3066_vm2, %v18743_v4  ;;  %v2808_v4 = vadd.f32 %v18748_v5, %v2623_v15  ;;  %v10318_v15 = vld [vmem:[%s18599_s3 + $0x1068] sm:$0xff] }
 0x4a7   : > { %10160 = vmatmul.msk.f32.gmra.mxu3 %vm3066_vm2, %v18746_v60  ;;  %v14062_v60 = vpop.f32.mrf.mxu2 }
 0x4a8   : > { %v2993_v16 = vadd.f32 %v18750_v56, %v2808_v4  ;;  %18752 = vst [vmem:[#allocation51_spill] sm:$0xff] %v14062_v60  ;;  %4236 = vmatmul.f32.gmra.mxu1 %v10313_v27  ;;  %4424 = vmatmul.f32.gmra.mxu2 %v10318_v15  ;;  %v18757_v60 = vld [vmem:[#allocation14_spill] sm:$0xff]  ;;  %v18758_v27 = vld [vmem:[#allocation52_spill] sm:$0xff] }
 0x4aa   : > { %v14052_v50 = vpop.f32.mrf.mxu3 }
 0x4ab   : > { %18747 = vst [vmem:[#allocation12_spill] sm:$0xff] %v14052_v50  ;;  %v14055_v55 = vpop.f32.mrf.mxu0  ;;  %v2626_v50 = vadd.f32 %v18754_v7, %v18753_v32  ;;  %v18759_v32 = vld [vmem:[#allocation55_spill] sm:$0xff] }
 0x4ac   : > { %18749 = vst [vmem:[#allocation47_spill] sm:$0xff] %v14055_v55  ;;  %v2629_v7 = vadd.f32 %v18759_v32, %v18758_v27  ;;  %v18762_v32 = vld [vmem:[#allocation15_spill] sm:$0xff] }
 0x4ad   : > { %v2811_v56 = vadd.f32 %v13544_v25, %v2626_v50  ;;  %v10322_v25 = vld [vmem:[%s18599_s3 + $0x1088] sm:$0xff] }
 0x4ae   : > { %10215 = vmatmul.msk.f32.gmra.mxu0 %vm3066_vm2, %v18751_v26  ;;  %v14078_v26 = vpop.f32.mrf.mxu1 }
 0x4af   : > { %10161 = vmatmul.msk.f32.gmra.mxu3 %vm3066_vm2, %v2993_v16  ;;  %v2996_v55 = vadd.f32 %v13549_v59, %v2811_v56  ;;  %v10317_v16 = vld [vmem:[%s18599_s3 + $0x1060] sm:$0xff]  ;;  %v14092_v50 = vpop.f32.mrf.mxu2 }
 0x4b0   : > { %4239 = vmatmul.f32.gmra.mxu1 %v10317_v16  ;;  %4427 = vmatmul.f32.gmra.mxu2 %v10322_v25  ;;  %v18763_v16 = vld [vmem:[#allocation54_spill] sm:$0xff] }
 0x4b2   : > { %v14073_v5 = vpop.f32.mrf.mxu3 }
 0x4b3   : > { %18755 = vst [vmem:[#allocation50_spill] sm:$0xff] %v14073_v5  ;;  %v14076_v4 = vpop.f32.mrf.mxu0  ;;  %v18764_v5 = vld [vmem:[#allocation57_spill] sm:$0xff] }
 0x4b4   : > { %18756 = vst [vmem:[#allocation64_spill] sm:$0xff] %v14076_v4  ;;  %v2632_v25 = vadd.f32 %v18764_v5, %v18763_v16  ;;  %v18767_v16 = vld [vmem:[#allocation16_spill] sm:$0xff]  ;;  %v10268_v4 = vld [vmem:[%s18599_s3 + $0xed8] sm:$0xff] }
 0x4b6   : > { %10216 = vmatmul.msk.f32.gmra.mxu0 %vm3066_vm2, %v18757_v60  ;;  %v2814_v60 = vadd.f32 %v13568_v18, %v2629_v7  ;;  %v14099_v56 = vpop.f32.mrf.mxu1  ;;  %v10326_v18 = vld [vmem:[%s18599_s3 + $0x10a8] sm:$0xff] }
 0x4b7   : > { %10162 = vmatmul.msk.f32.gmra.mxu3 %vm3066_vm2, %v2996_v55  ;;  %v10321_v55 = vld [vmem:[%s18599_s3 + $0x1080] sm:$0xff] }
 0x4b8   : > { %v2999_v27 = vadd.f32 %v13571_v17, %v2814_v60  ;;  %4242 = vmatmul.f32.gmra.mxu1 %v10321_v55  ;;  %4430 = vmatmul.f32.gmra.mxu2 %v10326_v18  ;;  %v14115_v17 = vpop.f32.mrf.mxu2  ;;  %v2817_v60 = vadd.f32 %v13592_v24, %v2632_v25  ;;  %v18768_v55 = vld [vmem:[#allocation56_spill] sm:$0xff]  ;;  %v18769_v18 = vld [vmem:[#allocation59_spill] sm:$0xff] }
 0x4b9   : > { %v10330_v24 = vld [vmem:[%s18599_s3 + $0x10c8] sm:$0xff] }
 0x4ba   : > { %v14094_v59 = vpop.f32.mrf.mxu3  ;;  %v3002_v5 = vadd.f32 %v13597_v47, %v2817_v60 }
 0x4bb   : > { %18760 = vst [vmem:[#allocation65_spill] sm:$0xff] %v14094_v59  ;;  %v14097_v15 = vpop.f32.mrf.mxu0 }
 0x4bc   : > { %18761 = vst [vmem:[#allocation13_spill] sm:$0xff] %v14097_v15  ;;  %v18777_v15 = vld [vmem:[#allocation18_spill] sm:$0xff] }
 0x4be   : > { %10217 = vmatmul.msk.f32.gmra.mxu0 %vm3066_vm2, %v18762_v32  ;;  %v14120_v59 = vpop.f32.mrf.mxu1 }
 0x4bf   : > { %10163 = vmatmul.msk.f32.gmra.mxu3 %vm3066_vm2, %v2999_v27  ;;  %v10325_v27 = vld [vmem:[%s18599_s3 + $0x10a0] sm:$0xff] }
 0x4c0   : > { %4245 = vmatmul.f32.gmra.mxu1 %v10325_v27  ;;  %4433 = vmatmul.f32.gmra.mxu2 %v10330_v24  ;;  %v18773_v27 = vld [vmem:[#allocation58_spill] sm:$0xff]  ;;  %v18774_v24 = vld [vmem:[#allocation61_spill] sm:$0xff] }
 0x4c2   : > { %v14113_v7 = vpop.f32.mrf.mxu3 }
 0x4c3   : > { %18765 = vst [vmem:[#allocation49_spill] sm:$0xff] %v14113_v7  ;;  %v14118_v32 = vpop.f32.mrf.mxu0  ;;  %v2635_v7 = vadd.f32 %v18769_v18, %v18768_v55  ;;  %v18772_v18 = vld [vmem:[#allocation17_spill] sm:$0xff] }
 0x4c4   : > { %18766 = vst [vmem:[#allocation53_spill] sm:$0xff] %v14118_v32 }
 0x4c5   : > { %v2820_v47 = vadd.f32 %v13616_v23, %v2635_v7  ;;  %v10334_v23 = vld [vmem:[%s18599_s3 + $0x10e8] sm:$0xff] }
 0x4c6   : > { %10218 = vmatmul.msk.f32.gmra.mxu0 %vm3066_vm2, %v18767_v16  ;;  %v14139_v16 = vpop.f32.mrf.mxu2  ;;  %v14141_v32 = vpop.f32.mrf.mxu1 }
 0x4c7   : > { %10164 = vmatmul.msk.f32.gmra.mxu3 %vm3066_vm2, %v3002_v5  ;;  %v3005_v55 = vadd.f32 %v13619_v6, %v2820_v47  ;;  %v10329_v5 = vld [vmem:[%s18599_s3 + $0x10c0] sm:$0xff] }
 0x4c8   : > { %4248 = vmatmul.f32.gmra.mxu1 %v10329_v5  ;;  %4436 = vmatmul.f32.gmra.mxu2 %v10334_v23  ;;  %v10333_v5 = vld [vmem:[%s18599_s3 + $0x10e0] sm:$0xff] }
 0x4ca   : > { %v14134_v25 = vpop.f32.mrf.mxu3 }
 0x4cb   : > { %18770 = vst [vmem:[#allocation14_spill] sm:$0xff] %v14134_v25  ;;  %v14137_v60 = vpop.f32.mrf.mxu0  ;;  %v2638_v25 = vadd.f32 %v18774_v24, %v18773_v27  ;;  %v18778_v27 = vld [vmem:[#allocation60_spill] sm:$0xff]  ;;  %v18779_v24 = vld [vmem:[#allocation63_spill] sm:$0xff] }
 0x4cc   : > { %18771 = vst [vmem:[#allocation52_spill] sm:$0xff] %v14137_v60  ;;  %v2641_v23 = vadd.f32 %v18779_v24, %v18778_v27  ;;  %v18784_v27 = vld [vmem:[#allocation67_spill] sm:$0xff] }
 0x4cd   : > { %v2823_v6 = vadd.f32 %v13637_v46, %v2638_v25  ;;  %v10338_v46 = vld [vmem:[%s18599_s3 + $0x1108] sm:$0xff] }
 0x4ce   : > { %10219 = vmatmul.msk.f32.gmra.mxu0 %vm3066_vm2, %v18772_v18  ;;  %v14160_v18 = vpop.f32.mrf.mxu1 }
 0x4cf   : > { %10165 = vmatmul.msk.f32.gmra.mxu3 %vm3066_vm2, %v3005_v55  ;;  %v3008_v60 = vadd.f32 %v13641_v54, %v2823_v6  ;;  %v14165_v55 = vpop.f32.mrf.mxu2 }
 0x4d0   : > { %4251 = vmatmul.f32.gmra.mxu1 %v10333_v5  ;;  %4439 = vmatmul.f32.gmra.mxu2 %v10338_v46  ;;  %v18783_v5 = vld [vmem:[#allocation62_spill] sm:$0xff] }
 0x4d1   : > { %v2644_v24 = vadd.f32 %v18784_v27, %v18783_v5  ;;  %v18787_v27 = vld [vmem:[#allocation20_spill] sm:$0xff] }
 0x4d2   : > { %v14155_v7 = vpop.f32.mrf.mxu3 }
 0x4d3   : > { %18775 = vst [vmem:[#allocation55_spill] sm:$0xff] %v14155_v7  ;;  %v14158_v47 = vpop.f32.mrf.mxu0 }
 0x4d4   : > { %18776 = vst [vmem:[#allocation15_spill] sm:$0xff] %v14158_v47  ;;  %v18782_v47 = vld [vmem:[#allocation19_spill] sm:$0xff] }
 0x4d6   : > { %10220 = vmatmul.msk.f32.gmra.mxu0 %vm3066_vm2, %v18777_v15  ;;  %v2826_v15 = vadd.f32 %v13651_v35, %v2641_v23  ;;  %v14181_v6 = vpop.f32.mrf.mxu1  ;;  %v10342_v35 = vld [vmem:[%s18599_s3 + $0x1128] sm:$0xff] }
 0x4d7   : > { %10166 = vmatmul.msk.f32.gmra.mxu3 %vm3066_vm2, %v3008_v60  ;;  %v10337_v60 = vld [vmem:[%s18599_s3 + $0x1100] sm:$0xff]  ;;  %v14195_v23 = vpop.f32.mrf.mxu2 }
 0x4d8   : > { %v3011_v7 = vadd.f32 %v13653_v57, %v2826_v15  ;;  %4254 = vmatmul.f32.gmra.mxu1 %v10337_v60  ;;  %4442 = vmatmul.f32.gmra.mxu2 %v10342_v35  ;;  %v18788_v60 = vld [vmem:[#allocation66_spill] sm:$0xff] }
 0x4d9   : > { %v2647_v35 = vadd.f32 %v13558_v49, %v18788_v60  ;;  %v18791_v60 = vld [vmem:[#allocation21_spill] sm:$0xff] }
 0x4da   : > { %v14176_v54 = vpop.f32.mrf.mxu3 }
 0x4db   : > { %18780 = vst [vmem:[#allocation54_spill] sm:$0xff] %v14176_v54  ;;  %v14179_v25 = vpop.f32.mrf.mxu0  ;;  %v10264_v54 = vld [vmem:[%s18599_s3 + $0xeb8] sm:$0xff] }
 0x4dc   : > { %18781 = vst [vmem:[#allocation57_spill] sm:$0xff] %v14179_v25  ;;  %v10271_v25 = vld [vmem:[%s18599_s3 + $0xef0] sm:$0xff] }
 0x4de   : > { %10221 = vmatmul.msk.f32.gmra.mxu0 %vm3066_vm2, %v18782_v47  ;;  %v2829_v47 = vadd.f32 %v13665_v8, %v2644_v24  ;;  %v14202_v15 = vpop.f32.mrf.mxu1  ;;  %v10346_v8 = vld [vmem:[%s18599_s3 + $0x1148] sm:$0xff] }
 0x4df   : > { %10167 = vmatmul.msk.f32.gmra.mxu3 %vm3066_vm2, %v3011_v7  ;;  %v10341_v7 = vld [vmem:[%s18599_s3 + $0x1120] sm:$0xff] }
 0x4e0   : > { %v3014_v5 = vadd.f32 %v13669_v61, %v2829_v47  ;;  %4257 = vmatmul.f32.gmra.mxu1 %v10341_v7  ;;  %4445 = vmatmul.f32.gmra.mxu2 %v10346_v8  ;;  %v14218_v61 = vpop.f32.mrf.mxu2  ;;  %v2832_v47 = vadd.f32 %v13679_v9, %v2647_v35  ;;  %v18792_v7 = vld [vmem:[#allocation68_spill] sm:$0xff]  ;;  %v18793_v8 = vld [vmem:[#allocation70_spill] sm:$0xff] }
 0x4e1   : > { %v10350_v9 = vld [vmem:[%s18599_s3 + $0x1168] sm:$0xff] }
 0x4e2   : > { %v14197_v57 = vpop.f32.mrf.mxu3  ;;  %v3017_v49 = vadd.f32 %v13681_v1, %v2832_v47 }
 0x4e3   : > { %18785 = vst [vmem:[#allocation16_spill] sm:$0xff] %v14197_v57  ;;  %v14200_v46 = vpop.f32.mrf.mxu0 }
 0x4e4   : > { %18786 = vst [vmem:[#allocation56_spill] sm:$0xff] %v14200_v46  ;;  %v18801_v46 = vld [vmem:[#allocation23_spill] sm:$0xff] }
 0x4e6   : > { %10222 = vmatmul.msk.f32.gmra.mxu0 %vm3066_vm2, %v18787_v27  ;;  %v14223_v57 = vpop.f32.mrf.mxu1 }
 0x4e7   : > { %10168 = vmatmul.msk.f32.gmra.mxu3 %vm3066_vm2, %v3014_v5  ;;  %v10345_v5 = vld [vmem:[%s18599_s3 + $0x1140] sm:$0xff] }
 0x4e8   : > { %4260 = vmatmul.f32.gmra.mxu1 %v10345_v5  ;;  %4448 = vmatmul.f32.gmra.mxu2 %v10350_v9  ;;  %v18797_v5 = vld [vmem:[#allocation69_spill] sm:$0xff]  ;;  %v18798_v9 = vld [vmem:[#allocation72_spill] sm:$0xff] }
 0x4ea   : > { %v14216_v24 = vpop.f32.mrf.mxu3 }
 0x4eb   : > { %18789 = vst [vmem:[#allocation59_spill] sm:$0xff] %v14216_v24  ;;  %v14221_v27 = vpop.f32.mrf.mxu0  ;;  %v2650_v24 = vadd.f32 %v18793_v8, %v18792_v7  ;;  %v18796_v8 = vld [vmem:[#allocation22_spill] sm:$0xff] }
 0x4ec   : > { %18790 = vst [vmem:[#allocation17_spill] sm:$0xff] %v14221_v27 }
 0x4ed   : > { %v2835_v1 = vadd.f32 %v13693_v33, %v2650_v24  ;;  %v10354_v33 = vld [vmem:[%s18599_s3 + $0x1188] sm:$0xff] }
 0x4ee   : > { %10223 = vmatmul.msk.f32.gmra.mxu0 %vm3066_vm2, %v18791_v60  ;;  %v14242_v60 = vpop.f32.mrf.mxu2  ;;  %v14244_v27 = vpop.f32.mrf.mxu1 }
 0x4ef   : > { %10169 = vmatmul.msk.f32.gmra.mxu3 %vm3066_vm2, %v3017_v49  ;;  %v3020_v7 = vadd.f32 %v13697_v12, %v2835_v1  ;;  %v10349_v49 = vld [vmem:[%s18599_s3 + $0x1160] sm:$0xff] }
 0x4f0   : > { %4263 = vmatmul.f32.gmra.mxu1 %v10349_v49  ;;  %4451 = vmatmul.f32.gmra.mxu2 %v10354_v33  ;;  %v10353_v49 = vld [vmem:[%s18599_s3 + $0x1180] sm:$0xff] }
 0x4f2   : > { %v14237_v35 = vpop.f32.mrf.mxu3 }
 0x4f3   : > { %18794 = vst [vmem:[#allocation58_spill] sm:$0xff] %v14237_v35  ;;  %v14240_v47 = vpop.f32.mrf.mxu0  ;;  %v2653_v35 = vadd.f32 %v18798_v9, %v18797_v5  ;;  %v18802_v5 = vld [vmem:[#allocation71_spill] sm:$0xff]  ;;  %v18803_v9 = vld [vmem:[#allocation74_spill] sm:$0xff] }
 0x4f4   : > { %18795 = vst [vmem:[#allocation61_spill] sm:$0xff] %v14240_v47  ;;  %v2656_v33 = vadd.f32 %v18803_v9, %v18802_v5  ;;  %v18808_v5 = vld [vmem:[#allocation76_spill] sm:$0xff] }
 0x4f5   : > { %v2838_v12 = vadd.f32 %v13707_v28, %v2653_v35  ;;  %v10358_v28 = vld [vmem:[%s18599_s3 + $0x11a8] sm:$0xff] }
 0x4f6   : > { %10224 = vmatmul.msk.f32.gmra.mxu0 %vm3066_vm2, %v18796_v8  ;;  %v14263_v8 = vpop.f32.mrf.mxu1 }
 0x4f7   : > { %10170 = vmatmul.msk.f32.gmra.mxu3 %vm3066_vm2, %v3020_v7  ;;  %v3023_v47 = vadd.f32 %v13709_v52, %v2838_v12  ;;  %v14268_v7 = vpop.f32.mrf.mxu2 }
 0x4f8   : > { %4266 = vmatmul.f32.gmra.mxu1 %v10353_v49  ;;  %4454 = vmatmul.f32.gmra.mxu2 %v10358_v28  ;;  %v18807_v49 = vld [vmem:[#allocation73_spill] sm:$0xff] }
 0x4f9   : > { %v2659_v9 = vadd.f32 %v18808_v5, %v18807_v49  ;;  %v18811_v5 = vld [vmem:[#allocation25_spill] sm:$0xff] }
 0x4fa   : > { %v14258_v24 = vpop.f32.mrf.mxu3 }
 0x4fb   : > { %18799 = vst [vmem:[#allocation18_spill] sm:$0xff] %v14258_v24  ;;  %v14261_v1 = vpop.f32.mrf.mxu0 }
 0x4fc   : > { %18800 = vst [vmem:[#allocation60_spill] sm:$0xff] %v14261_v1  ;;  %v18806_v1 = vld [vmem:[#allocation24_spill] sm:$0xff] }
 0x4fe   : > { %10225 = vmatmul.msk.f32.gmra.mxu0 %vm3066_vm2, %v18801_v46  ;;  %v2841_v46 = vadd.f32 %v13725_v63, %v2656_v33  ;;  %v14284_v12 = vpop.f32.mrf.mxu1  ;;  %v10362_v63 = vld [vmem:[%s18599_s3 + $0x11c8] sm:$0xff] }
 0x4ff   : > { %10171 = vmatmul.msk.f32.gmra.mxu3 %vm3066_vm2, %v3023_v47  ;;  %v10357_v47 = vld [vmem:[%s18599_s3 + $0x11a0] sm:$0xff]  ;;  %v14298_v33 = vpop.f32.mrf.mxu2 }
 0x500   : > { %v3026_v24 = vadd.f32 %v13730_v21, %v2841_v46  ;;  %4269 = vmatmul.f32.gmra.mxu1 %v10357_v47  ;;  %4457 = vmatmul.f32.gmra.mxu2 %v10362_v63  ;;  %v18812_v47 = vld [vmem:[#allocation75_spill] sm:$0xff] }
 0x501   : > { %v2662_v63 = vadd.f32 %v13645_v44, %v18812_v47  ;;  %v18815_v47 = vld [vmem:[#allocation26_spill] sm:$0xff] }
 0x502   : > { %v14279_v52 = vpop.f32.mrf.mxu3 }
 0x503   : > { %18804 = vst [vmem:[#allocation63_spill] sm:$0xff] %v14279_v52  ;;  %v14282_v35 = vpop.f32.mrf.mxu0  ;;  %v10260_v52 = vld [vmem:[%s18599_s3 + $0xe98] sm:$0xff] }
 0x504   : > { %18805 = vst [vmem:[#allocation19_spill] sm:$0xff] %v14282_v35  ;;  %v10267_v35 = vld [vmem:[%s18599_s3 + $0xed0] sm:$0xff] }
 0x506   : > { %10226 = vmatmul.msk.f32.gmra.mxu0 %vm3066_vm2, %v18806_v1  ;;  %v2844_v1 = vadd.f32 %v13749_v13, %v2659_v9  ;;  %v14305_v46 = vpop.f32.mrf.mxu1  ;;  %v10366_v13 = vld [vmem:[%s18599_s3 + $0x11e8] sm:$0xff] }
 0x507   : > { %10172 = vmatmul.msk.f32.gmra.mxu3 %vm3066_vm2, %v3026_v24  ;;  %v10361_v24 = vld [vmem:[%s18599_s3 + $0x11c0] sm:$0xff] }
 0x508   : > { %v3029_v49 = vadd.f32 %v13752_v36, %v2844_v1  ;;  %4272 = vmatmul.f32.gmra.mxu1 %v10361_v24  ;;  %4460 = vmatmul.f32.gmra.mxu2 %v10366_v13  ;;  %v14321_v36 = vpop.f32.mrf.mxu2  ;;  %v2847_v1 = vadd.f32 %v13776_v42, %v2662_v63  ;;  %v18816_v24 = vld [vmem:[#allocation77_spill] sm:$0xff]  ;;  %v18817_v13 = vld [vmem:[#allocation79_spill] sm:$0xff] }
 0x509   : > { %v10370_v42 = vld [vmem:[%s18599_s3 + $0x1208] sm:$0xff] }
 0x50a   : > { %v14300_v21 = vpop.f32.mrf.mxu3  ;;  %v3032_v44 = vadd.f32 %v13783_v38, %v2847_v1 }
 0x50b   : > { %18809 = vst [vmem:[#allocation62_spill] sm:$0xff] %v14300_v21  ;;  %v14303_v28 = vpop.f32.mrf.mxu0 }
 0x50c   : > { %18810 = vst [vmem:[#allocation67_spill] sm:$0xff] %v14303_v28 }
 0x50e   : > { %10227 = vmatmul.msk.f32.gmra.mxu0 %vm3066_vm2, %v18811_v5  ;;  %v14326_v21 = vpop.f32.mrf.mxu1 }
 0x50f   : > { %10173 = vmatmul.msk.f32.gmra.mxu3 %vm3066_vm2, %v3029_v49  ;;  %v10365_v49 = vld [vmem:[%s18599_s3 + $0x11e0] sm:$0xff] }
 0x510   : > { %4275 = vmatmul.f32.gmra.mxu1 %v10365_v49  ;;  %4463 = vmatmul.f32.gmra.mxu2 %v10370_v42  ;;  %v18821_v49 = vld [vmem:[#allocation78_spill] sm:$0xff] }
 0x511   : > { %v2668_v42 = vadd.f32 %v13667_v20, %v18821_v49  ;;  %v18826_v49 = vld [vmem:[#allocation82_spill] sm:$0xff] }
 0x512   : > { %v14319_v9 = vpop.f32.mrf.mxu3 }
 0x513   : > { %18813 = vst [vmem:[#allocation20_spill] sm:$0xff] %v14319_v9  ;;  %v14324_v5 = vpop.f32.mrf.mxu0  ;;  %v2665_v9 = vadd.f32 %v18817_v13, %v18816_v24  ;;  %v18820_v13 = vld [vmem:[#allocation27_spill] sm:$0xff] }
 0x514   : > { %18814 = vst [vmem:[#allocation66_spill] sm:$0xff] %v14324_v5 }
 0x515   : > { %v2850_v38 = vadd.f32 %v13802_v0, %v2665_v9  ;;  %v10374_v0 = vld [vmem:[%s18599_s3 + $0x1228] sm:$0xff] }
 0x516   : > { %10228 = vmatmul.msk.f32.gmra.mxu0 %vm3066_vm2, %v18815_v47  ;;  %v14345_v47 = vpop.f32.mrf.mxu2  ;;  %v14347_v5 = vpop.f32.mrf.mxu1 }
 0x517   : > { %10174 = vmatmul.msk.f32.gmra.mxu3 %vm3066_vm2, %v3032_v44  ;;  %v3035_v24 = vadd.f32 %v13805_v43, %v2850_v38  ;;  %v10369_v44 = vld [vmem:[%s18599_s3 + $0x1200] sm:$0xff]  ;;  %v2853_v43 = vadd.f32 %v13826_v11, %v2668_v42  ;;  %v10378_v11 = vld [vmem:[%s18599_s3 + $0x1248] sm:$0xff] }
 0x518   : > { %4278 = vmatmul.f32.gmra.mxu1 %v10369_v44  ;;  %4466 = vmatmul.f32.gmra.mxu2 %v10374_v0  ;;  %v18825_v44 = vld [vmem:[#allocation80_spill] sm:$0xff] }
 0x519   : > { %v2671_v0 = vadd.f32 %v18826_v49, %v18825_v44  ;;  %v18831_v44 = vld [vmem:[#allocation84_spill] sm:$0xff] }
 0x51a   : > { %v14340_v63 = vpop.f32.mrf.mxu3 }
 0x51b   : > { %18818 = vst [vmem:[#allocation21_spill] sm:$0xff] %v14340_v63  ;;  %v14343_v1 = vpop.f32.mrf.mxu0  ;;  %v3038_v63 = vadd.f32 %v13830_v2, %v2853_v43 }
 0x51c   : > { %18819 = vst [vmem:[#allocation68_spill] sm:$0xff] %v14343_v1  ;;  %v18824_v1 = vld [vmem:[#allocation28_spill] sm:$0xff] }
 0x51e   : > { %10229 = vmatmul.msk.f32.gmra.mxu0 %vm3066_vm2, %v18820_v13  ;;  %v14366_v13 = vpop.f32.mrf.mxu1  ;;  %v14371_v20 = vpop.f32.mrf.mxu2 }
 0x51f   : > { %10175 = vmatmul.msk.f32.gmra.mxu3 %vm3066_vm2, %v3035_v24  ;;  %v10373_v24 = vld [vmem:[%s18599_s3 + $0x1220] sm:$0xff] }
 0x520   : > { %4281 = vmatmul.f32.gmra.mxu1 %v10373_v24  ;;  %4469 = vmatmul.f32.gmra.mxu2 %v10378_v11  ;;  %v18830_v24 = vld [vmem:[#allocation81_spill] sm:$0xff] }
 0x521   : > { %v2674_v49 = vadd.f32 %v18831_v44, %v18830_v24  ;;  %v18834_v44 = vld [vmem:[#allocation30_spill] sm:$0xff] }
 0x522   : > { %v14361_v9 = vpop.f32.mrf.mxu3 }
 0x523   : > { %18822 = vst [vmem:[#allocation70_spill] sm:$0xff] %v14361_v9  ;;  %v14364_v38 = vpop.f32.mrf.mxu0 }
 0x524   : > { %18823 = vst [vmem:[#allocation22_spill] sm:$0xff] %v14364_v38  ;;  %v18829_v38 = vld [vmem:[#allocation29_spill] sm:$0xff] }
 0x526   : > { %10230 = vmatmul.msk.f32.gmra.mxu0 %vm3066_vm2, %v18824_v1  ;;  %v2856_v1 = vadd.f32 %v13846_v48, %v2671_v0  ;;  %v14387_v43 = vpop.f32.mrf.mxu1  ;;  %v10382_v48 = vld [vmem:[%s18599_s3 + $0x1268] sm:$0xff]  ;;  %v14401_v0 = vpop.f32.mrf.mxu2 }
 0x527   : > { %10176 = vmatmul.msk.f32.gmra.mxu3 %vm3066_vm2, %v3038_v63  ;;  %v10377_v63 = vld [vmem:[%s18599_s3 + $0x1240] sm:$0xff] }
 0x528   : > { %v3041_v9 = vadd.f32 %v13848_v29, %v2856_v1  ;;  %4284 = vmatmul.f32.gmra.mxu1 %v10377_v63  ;;  %4472 = vmatmul.f32.gmra.mxu2 %v10382_v48  ;;  %v18835_v63 = vld [vmem:[#allocation83_spill] sm:$0xff] }
 0x529   : > { %v2677_v48 = vadd.f32 %v13701_v40, %v18835_v63  ;;  %v18838_v63 = vld [vmem:[#allocation31_spill] sm:$0xff] }
 0x52a   : > { %v14382_v2 = vpop.f32.mrf.mxu3 }
 0x52b   : > { %18827 = vst [vmem:[#allocation69_spill] sm:$0xff] %v14382_v2  ;;  %v14385_v42 = vpop.f32.mrf.mxu0  ;;  %v10252_v2 = vld [vmem:[%s18599_s3 + $0xe58] sm:$0xff] }
 0x52c   : > { %18828 = vst [vmem:[#allocation72_spill] sm:$0xff] %v14385_v42  ;;  %v10256_v42 = vld [vmem:[%s18599_s3 + $0xe78] sm:$0xff] }
 0x52e   : > { %10231 = vmatmul.msk.f32.gmra.mxu0 %vm3066_vm2, %v18829_v38  ;;  %v2859_v38 = vadd.f32 %v13869_v10, %v2674_v49  ;;  %v14408_v1 = vpop.f32.mrf.mxu1  ;;  %v10386_v10 = vld [vmem:[%s18599_s3 + $0x1288] sm:$0xff] }
 0x52f   : > { %10177 = vmatmul.msk.f32.gmra.mxu3 %vm3066_vm2, %v3041_v9  ;;  %v10381_v9 = vld [vmem:[%s18599_s3 + $0x1260] sm:$0xff] }
 0x530   : > { %v3044_v24 = vadd.f32 %v13876_v34, %v2859_v38  ;;  %4287 = vmatmul.f32.gmra.mxu1 %v10381_v9  ;;  %4475 = vmatmul.f32.gmra.mxu2 %v10386_v10  ;;  %v14424_v34 = vpop.f32.mrf.mxu2  ;;  %v2862_v38 = vadd.f32 %v13892_v39, %v2677_v48  ;;  %v18839_v9 = vld [vmem:[#allocation86_spill] sm:$0xff]  ;;  %v10390_v39 = vld [vmem:[%s18599_s3 + $0x12a8] sm:$0xff] }
 0x531   : > { %v2680_v10 = vadd.f32 %v18839_v9, %v13699_v14  ;;  %v18842_v9 = vld [vmem:[#allocation32_spill] sm:$0xff] }
 0x532   : > { %v14403_v29 = vpop.f32.mrf.mxu3  ;;  %v3047_v40 = vadd.f32 %v13894_v45, %v2862_v38 }
 0x533   : > { %18832 = vst [vmem:[#allocation23_spill] sm:$0xff] %v14403_v29  ;;  %v14406_v11 = vpop.f32.mrf.mxu0  ;;  %v2865_v45 = vadd.f32 %v13912_v51, %v2680_v10  ;;  %v10394_v51 = vld [vmem:[%s18599_s3 + $0x12c8] sm:$0xff] }
 0x534   : > { %18833 = vst [vmem:[#allocation71_spill] sm:$0xff] %v14406_v11 }
 0x535   : > { %v3050_v14 = vadd.f32 %v13916_v41, %v2865_v45 }
 0x536   : > { %10232 = vmatmul.msk.f32.gmra.mxu0 %vm3066_vm2, %v18834_v44  ;;  %v14429_v29 = vpop.f32.mrf.mxu1 }
 0x537   : > { %10178 = vmatmul.msk.f32.gmra.mxu3 %vm3066_vm2, %v3044_v24  ;;  %v10385_v24 = vld [vmem:[%s18599_s3 + $0x1280] sm:$0xff] }
 0x538   : > { %4290 = vmatmul.f32.gmra.mxu1 %v10385_v24  ;;  %4478 = vmatmul.f32.gmra.mxu2 %v10390_v39  ;;  %v18843_v24 = vld [vmem:[#allocation85_spill] sm:$0xff] }
 0x539   : > { %v2683_v39 = vadd.f32 %v13727_v31, %v18843_v24  ;;  %v18846_v31 = vld [vmem:[#allocation33_spill] sm:$0xff] }
 0x53a   : > { %v14422_v49 = vpop.f32.mrf.mxu3 }
 0x53b   : > { %18836 = vst [vmem:[#allocation74_spill] sm:$0xff] %v14422_v49  ;;  %v14427_v44 = vpop.f32.mrf.mxu0  ;;  %v2868_v41 = vadd.f32 %v13932_v19, %v2683_v39  ;;  %v10398_v19 = vld [vmem:[%s18599_s3 + $0x12e8] sm:$0xff] }
 0x53c   : > { %18837 = vst [vmem:[#allocation24_spill] sm:$0xff] %v14427_v44  ;;  %v10248_v44 = vld [vmem:[%s18599_s3 + $0xe38] sm:$0xff] }
 0x53e   : > { %10233 = vmatmul.msk.f32.gmra.mxu0 %vm3066_vm2, %v18838_v63  ;;  %v14448_v63 = vpop.f32.mrf.mxu2  ;;  %v14450_v49 = vpop.f32.mrf.mxu1 }
 0x53f   : > { %10179 = vmatmul.msk.f32.gmra.mxu3 %vm3066_vm2, %v3047_v40  ;;  %v10389_v40 = vld [vmem:[%s18599_s3 + $0x12a0] sm:$0xff] }
 0x540   : > { %4293 = vmatmul.f32.gmra.mxu1 %v10389_v40  ;;  %4481 = vmatmul.f32.gmra.mxu2 %v10394_v51  ;;  %v2686_v40 = vadd.f32 %v13746_v37, %v13723_v30  ;;  %v10397_v30 = vld [vmem:[%s18599_s3 + $0x12e0] sm:$0xff]  ;;  %v18850_v37 = vld [vmem:[#allocation88_spill] sm:$0xff] }
 0x542   : > { %v14443_v48 = vpop.f32.mrf.mxu3  ;;  %v2871_v24 = vadd.f32 %v13955_v58, %v2686_v40  ;;  %v10402_v58 = vld [vmem:[%s18599_s3 + $0x1308] sm:$0xff] }
 0x543   : > { %18840 = vst [vmem:[#allocation73_spill] sm:$0xff] %v14443_v48  ;;  %v14446_v38 = vpop.f32.mrf.mxu0  ;;  %v3053_v48 = vadd.f32 %v13934_v62, %v2868_v41  ;;  %v18852_v40 = vld [vmem:[#allocation8_spill] sm:$0xff] }
 0x544   : > { %18841 = vst [vmem:[#allocation76_spill] sm:$0xff] %v14446_v38  ;;  %v3056_v41 = vadd.f32 %v13962_v22, %v2871_v24 }
 0x546   : > { %10234 = vmatmul.msk.f32.gmra.mxu0 %vm3066_vm2, %v18842_v9  ;;  %v14469_v9 = vpop.f32.mrf.mxu1  ;;  %v14472_v38 = vpop.f32.mrf.mxu2 }
 0x547   : > { %10180 = vmatmul.msk.f32.gmra.mxu3 %vm3066_vm2, %v3050_v14  ;;  %v10393_v14 = vld [vmem:[%s18599_s3 + $0x12c0] sm:$0xff] }
 0x548   : > { %4296 = vmatmul.f32.gmra.mxu1 %v10393_v14  ;;  %4484 = vmatmul.f32.gmra.mxu2 %v10398_v19 }
 0x54a   : > { %v14464_v10 = vpop.f32.mrf.mxu3 }
 0x54b   : > { %18844 = vst [vmem:[#allocation25_spill] sm:$0xff] %v14464_v10  ;;  %v14467_v45 = vpop.f32.mrf.mxu0  ;;  %v10244_v10 = vld [vmem:[%s18599_s3 + $0xe18] sm:$0xff] }
 0x54c   : > { %18845 = vst [vmem:[#allocation75_spill] sm:$0xff] %v14467_v45  ;;  %v10251_v45 = vld [vmem:[%s18599_s3 + $0xe50] sm:$0xff] }
 0x54e   : > { %10235 = vmatmul.msk.f32.gmra.mxu0 %vm3066_vm2, %v18846_v31  ;;  %v14490_v51 = vpop.f32.mrf.mxu1  ;;  %v18849_v31 = vld [vmem:[#allocation34_spill] sm:$0xff]  ;;  %v14504_v14 = vpop.f32.mrf.mxu2 }
 0x54f   : > { %10181 = vmatmul.msk.f32.gmra.mxu3 %vm3066_vm2, %v3053_v48  ;;  %v2689_v48 = vadd.f32 %v18850_v37, %v13744_v3  ;;  %v10401_v3 = vld [vmem:[%s18599_s3 + $0x1300] sm:$0xff] }
 0x550   : > { %4299 = vmatmul.f32.gmra.mxu1 %v10397_v30  ;;  %4487 = vmatmul.f32.gmra.mxu2 %v10402_v58  ;;  %v18855_v37 = vld [vmem:[#allocation35_spill] sm:$0xff] }
 0x551   : > { %v2874_v19 = vadd.f32 %v18852_v40, %v2689_v48  ;;  %v10406_v48 = vld [vmem:[%s18599_s3 + $0x1328] sm:$0xff] }
 0x552   : > { %v14485_v62 = vpop.f32.mrf.mxu3 }
 0x553   : > { %18847 = vst [vmem:[#allocation26_spill] sm:$0xff] %v14485_v62  ;;  %v14488_v39 = vpop.f32.mrf.mxu0  ;;  %v18856_v62 = vld [vmem:[#allocation87_spill] sm:$0xff] }
 0x554   : > { %18848 = vst [vmem:[#allocation77_spill] sm:$0xff] %v14488_v39  ;;  %v18857_v39 = vld [vmem:[#allocation90_spill] sm:$0xff] }
 0x555   : > { %v2692_v58 = vadd.f32 %v18857_v39, %v18856_v62  ;;  %v10405_v62 = vld [vmem:[%s18599_s3 + $0x1320] sm:$0xff]  ;;  %v18861_v39 = vld [vmem:[#allocation104_spill] sm:$0xff] }
 0x556   : > { %10236 = vmatmul.msk.f32.gmra.mxu0 %vm3066_vm2, %v18849_v31  ;;  %v14511_v31 = vpop.f32.mrf.mxu1  ;;  %v14525_v40 = vpop.f32.mrf.mxu2 }
 0x557   : > { %10182 = vmatmul.msk.f32.gmra.mxu3 %vm3066_vm2, %v3056_v41  ;;  %v18854_v41 = vld [vmem:[#allocation44_spill] sm:$0xff] }
 0x558   : > { %v3059_v30 = vadd.f32 %v18854_v41, %v2874_v19  ;;  %4302 = vmatmul.f32.gmra.mxu1 %v10401_v3  ;;  %4490 = vmatmul.f32.gmra.mxu2 %v10406_v48 }
 0x55a   : > { %v14506_v22 = vpop.f32.mrf.mxu3 }
 0x55b   : > { %18851 = vst [vmem:[#allocation79_spill] sm:$0xff] %v14506_v22  ;;  %v14509_v24 = vpop.f32.mrf.mxu0 }
 0x55c   : > { %18853 = vst [vmem:[#allocation27_spill] sm:$0xff] %v14509_v24  ;;  %v18859_v24 = vld [vmem:[#allocation103_spill] sm:$0xff] }
 0x55d   : > { %v2877_v19 = vadd.f32 %v18859_v24, %v2692_v58  ;;  %v10410_v24 = vld [vmem:[%s18599_s3 + $0x1348] sm:$0xff] }
 0x55e   : > { %10237 = vmatmul.msk.f32.gmra.mxu0 %vm3066_vm2, %v18855_v37  ;;  %v14532_v37 = vpop.f32.mrf.mxu1 }
 0x55f   : > { %10183 = vmatmul.msk.f32.gmra.mxu3 %vm3066_vm2, %v3059_v30  ;;  %v3062_v3 = vadd.f32 %v18861_v39, %v2877_v19  ;;  %v18862_v30 = vld [vmem:[#allocation36_spill] sm:$0xff] }
 0x560   : > { %4305 = vmatmul.f32.gmra.mxu1 %v10405_v62  ;;  %4493 = vmatmul.f32.gmra.mxu2 %v10410_v24  ;;  %v10243_v19 = vld [vmem:[%s18599_s3 + $0xe10] sm:$0xff]  ;;  %v10409_v62 = vld [vmem:[%s18599_s3 + $0x1340] sm:$0xff] }
 0x562   : > { %v14527_v22 = vpop.f32.mrf.mxu3 }
 0x563   : > { %18858 = vst [vmem:[#allocation78_spill] sm:$0xff] %v14527_v22  ;;  %v14530_v41 = vpop.f32.mrf.mxu0  ;;  %v14548_v22 = vpop.f32.mrf.mxu2 }
 0x564   : > { %18860 = vst [vmem:[#allocation28_spill] sm:$0xff] %v14530_v41 }
 0x566   : > { %10238 = vmatmul.msk.f32.gmra.mxu0 %vm3066_vm2, %v18862_v30  ;;  %v14553_v39 = vpop.f32.mrf.mxu1  ;;  %v10414_v30 = vld [vmem:[%s18599_s3 + $0x1368] sm:$0xff] }
 0x567   : > { %10184 = vmatmul.msk.f32.gmra.mxu3 %vm3066_vm2, %v3062_v3  ;;  %v18865_v3 = vld [vmem:[#allocation37_spill] sm:$0xff] }
 0x568   : > { %4308 = vmatmul.f32.gmra.mxu1 %v10409_v62  ;;  %4496 = vmatmul.f32.gmra.mxu2 %v10414_v30  ;;  %v10418_v30 = vld [vmem:[%s18599_s3 + $0x1388] sm:$0xff] }
 0x56a   : > { %v14544_v58 = vpop.f32.mrf.mxu3 }
 0x56b   : > { %18863 = vst [vmem:[#allocation80_spill] sm:$0xff] %v14544_v58  ;;  %v14546_v48 = vpop.f32.mrf.mxu0  ;;  %v14575_v62 = vpop.f32.mrf.mxu2 }
 0x56c   : > { %18864 = vst [vmem:[#allocation82_spill] sm:$0xff] %v14546_v48  ;;  %v10247_v48 = vld [vmem:[%s18599_s3 + $0xe30] sm:$0xff] }
 0x56e   : > { %10239 = vmatmul.msk.f32.gmra.mxu0 %vm3066_vm2, %v18865_v3  ;;  %v14570_v41 = vpop.f32.mrf.mxu1  ;;  %v18868_v3 = vld [vmem:[#allocation38_spill] sm:$0xff] }
 0x56f   : > { %4552 = vmatmul.f32.vlgmr.msrb.gmra.mxu3 %v10243_v19  ;;  %v10413_v19 = vld [vmem:[%s18599_s3 + $0x1360] sm:$0xff] }
 0x570   : > { %4311 = vmatmul.f32.gmra.mxu1 %v10413_v19  ;;  %4499 = vmatmul.f32.gmra.mxu2 %v10418_v30  ;;  %v10422_v19 = vld [vmem:[%s18599_s3 + $0x13a8] sm:$0xff] }
 0x572   : > { %v14563_v24 = vpop.f32.mrf.mxu3 }
 0x573   : > { %18866 = vst [vmem:[#allocation29_spill] sm:$0xff] %v14563_v24  ;;  %v14565_v58 = vpop.f32.mrf.mxu0  ;;  %v14601_v30 = vpop.f32.mrf.mxu2 }
 0x574   : > { %18867 = vst [vmem:[#allocation81_spill] sm:$0xff] %v14565_v58 }
 0x576   : > { %10240 = vmatmul.msk.f32.gmra.mxu0 %vm3066_vm2, %v18868_v3  ;;  %v14592_v3 = vpop.f32.mrf.mxu1 }
 0x577   : > { %4555 = vmatmul.f32.gmra.mxu3 %v10247_v48  ;;  %18871 = vst [vmem:[#allocation83_spill] sm:$0xff] %v14592_v3  ;;  %v10417_v48 = vld [vmem:[%s18599_s3 + $0x1380] sm:$0xff] }
 0x578   : > { %4314 = vmatmul.f32.gmra.mxu1 %v10417_v48  ;;  %4502 = vmatmul.f32.gmra.mxu2 %v10422_v19  ;;  %v10421_v48 = vld [vmem:[%s18599_s3 + $0x13a0] sm:$0xff]  ;;  %v10426_v19 = vld [vmem:[%s18599_s3 + $0x13c8] sm:$0xff] }
 0x57a   : > { %v14582_v24 = vpop.f32.mrf.mxu3 }
 0x57b   : > { %18869 = vst [vmem:[#allocation84_spill] sm:$0xff] %v14582_v24  ;;  %v14584_v58 = vpop.f32.mrf.mxu0 }
 0x57c   : > { %18870 = vst [vmem:[#allocation30_spill] sm:$0xff] %v14584_v58 }
 0x57e   : > { %10466 = vmatmul.msk.f32.vlgmr.msrb.gmra.mxu0 %vm1016_vm1, %v10244_v10  ;;  %v10255_v10 = vld [vmem:[%s18599_s3 + $0xe70] sm:$0xff] }
 0x57f   : > { %4558 = vmatmul.f32.gmra.mxu3 %v10251_v45  ;;  %v14613_v45 = vpop.f32.mrf.mxu1 }
 0x580   : > { %18874 = vst [vmem:[#allocation32_spill] sm:$0xff] %v14613_v45  ;;  %4317 = vmatmul.f32.gmra.mxu1 %v10421_v48  ;;  %4505 = vmatmul.f32.gmra.mxu2 %v10426_v19  ;;  %v10425_v48 = vld [vmem:[%s18599_s3 + $0x13c0] sm:$0xff]  ;;  %v10430_v19 = vld [vmem:[%s18599_s3 + $0x13e8] sm:$0xff] }
 0x582   : > { %v14603_v24 = vpop.f32.mrf.mxu3 }
 0x583   : > { %18872 = vst [vmem:[#allocation31_spill] sm:$0xff] %v14603_v24  ;;  %v14605_v58 = vpop.f32.mrf.mxu0 }
 0x584   : > { %18873 = vst [vmem:[#allocation86_spill] sm:$0xff] %v14605_v58  ;;  %v14622_v58 = vpop.f32.mrf.mxu2 }
 0x586   : > { %10467 = vmatmul.msk.f32.gmra.mxu0 %vm1016_vm1, %v10248_v44  ;;  %v10259_v44 = vld [vmem:[%s18599_s3 + $0xe90] sm:$0xff] }
 0x587   : > { %4561 = vmatmul.f32.gmra.mxu3 %v10255_v10  ;;  %v14634_v10 = vpop.f32.mrf.mxu1 }
 0x588   : > { %18877 = vst [vmem:[#allocation34_spill] sm:$0xff] %v14634_v10  ;;  %4320 = vmatmul.f32.gmra.mxu1 %v10425_v48  ;;  %4508 = vmatmul.f32.gmra.mxu2 %v10430_v19  ;;  %v10429_v48 = vld [vmem:[%s18599_s3 + $0x13e0] sm:$0xff]  ;;  %v10434_v19 = vld [vmem:[%s18599_s3 + $0x1408] sm:$0xff] }
 0x58a   : > { %v14624_v24 = vpop.f32.mrf.mxu3 }
 0x58b   : > { %18875 = vst [vmem:[#allocation85_spill] sm:$0xff] %v14624_v24  ;;  %v14626_v11 = vpop.f32.mrf.mxu0 }
 0x58c   : > { %18876 = vst [vmem:[#allocation33_spill] sm:$0xff] %v14626_v11  ;;  %v14650_v28 = vpop.f32.mrf.mxu2 }
 0x58e   : > { %10468 = vmatmul.msk.f32.gmra.mxu0 %vm1016_vm1, %v10252_v2  ;;  %v10263_v2 = vld [vmem:[%s18599_s3 + $0xeb0] sm:$0xff] }
 0x58f   : > { %4564 = vmatmul.f32.gmra.mxu3 %v10259_v44  ;;  %v14655_v44 = vpop.f32.mrf.mxu1 }
 0x590   : > { %18880 = vst [vmem:[#allocation44_spill] sm:$0xff] %v14655_v44  ;;  %4323 = vmatmul.f32.gmra.mxu1 %v10429_v48  ;;  %4511 = vmatmul.f32.gmra.mxu2 %v10434_v19  ;;  %v10438_v19 = vld [vmem:[%s18599_s3 + $0x1428] sm:$0xff]  ;;  %v10280_v44 = vld [vmem:[%s18599_s3 + $0xf38] sm:$0xff] }
 0x592   : > { %v14643_v24 = vpop.f32.mrf.mxu3 }
 0x593   : > { %18878 = vst [vmem:[#allocation88_spill] sm:$0xff] %v14643_v24  ;;  %v14645_v11 = vpop.f32.mrf.mxu0 }
 0x594   : > { %18879 = vst [vmem:[#allocation8_spill] sm:$0xff] %v14645_v11  ;;  %v14679_v48 = vpop.f32.mrf.mxu2 }
 0x596   : > { %10469 = vmatmul.msk.f32.gmra.mxu0 %vm1016_vm1, %v10256_v42 }
 0x597   : > { %4567 = vmatmul.f32.gmra.mxu3 %v10263_v2  ;;  %v14674_v42 = vpop.f32.mrf.mxu1  ;;  %v10433_v2 = vld [vmem:[%s18599_s3 + $0x1400] sm:$0xff] }
 0x598   : > { %18883 = vst [vmem:[#allocation90_spill] sm:$0xff] %v14674_v42  ;;  %4326 = vmatmul.f32.gmra.mxu1 %v10433_v2  ;;  %4514 = vmatmul.f32.gmra.mxu2 %v10438_v19  ;;  %v10442_v2 = vld [vmem:[%s18599_s3 + $0x1448] sm:$0xff] }
 0x59a   : > { %v14664_v24 = vpop.f32.mrf.mxu3 }
 0x59b   : > { %18881 = vst [vmem:[#allocation35_spill] sm:$0xff] %v14664_v24  ;;  %v14666_v11 = vpop.f32.mrf.mxu0 }
 0x59c   : > { %18882 = vst [vmem:[#allocation87_spill] sm:$0xff] %v14666_v11  ;;  %v14704_v19 = vpop.f32.mrf.mxu2 }
 0x59d   : > { %18887 = vst [vmem:[#allocation37_spill] sm:$0xff] %v14704_v19 }
 0x59e   : > { %10470 = vmatmul.msk.f32.gmra.mxu0 %vm1016_vm1, %v10260_v52 }
 0x59f   : > { %4570 = vmatmul.f32.gmra.mxu3 %v10267_v35  ;;  %v14695_v52 = vpop.f32.mrf.mxu1  ;;  %v10437_v35 = vld [vmem:[%s18599_s3 + $0x1420] sm:$0xff] }
 0x5a0   : > { %18886 = vst [vmem:[#allocation36_spill] sm:$0xff] %v14695_v52  ;;  %4329 = vmatmul.f32.gmra.mxu1 %v10437_v35  ;;  %4517 = vmatmul.f32.gmra.mxu2 %v10442_v2  ;;  %v10441_v35 = vld [vmem:[%s18599_s3 + $0x1440] sm:$0xff]  ;;  %v10446_v2 = vld [vmem:[%s18599_s3 + $0x1468] sm:$0xff] }
 0x5a2   : > { %v14685_v24 = vpop.f32.mrf.mxu3 }
 0x5a3   : > { %18884 = vst [vmem:[#allocation103_spill] sm:$0xff] %v14685_v24  ;;  %v14687_v11 = vpop.f32.mrf.mxu0 }
 0x5a4   : > { %18885 = vst [vmem:[#allocation104_spill] sm:$0xff] %v14687_v11 }
 0x5a6   : > { %10471 = vmatmul.msk.f32.gmra.mxu0 %vm1016_vm1, %v10264_v54  ;;  %v10275_v54 = vld [vmem:[%s18599_s3 + $0xf10] sm:$0xff] }
 0x5a7   : > { %4573 = vmatmul.f32.gmra.mxu3 %v10271_v25  ;;  %v14716_v25 = vpop.f32.mrf.mxu1 }
 0x5a8   : > { %18890 = vst [vmem:[#allocation110_spill] sm:$0xff] %v14716_v25  ;;  %4332 = vmatmul.f32.gmra.mxu1 %v10441_v35  ;;  %4520 = vmatmul.f32.gmra.mxu2 %v10446_v2  ;;  %v10272_v25 = vld [vmem:[%s18599_s3 + $0xef8] sm:$0xff]  ;;  %v10445_v35 = vld [vmem:[%s18599_s3 + $0x1460] sm:$0xff]  ;;  %v10450_v2 = vld [vmem:[%s18599_s3 + $0x1488] sm:$0xff] }
 0x5aa   : > { %v14706_v24 = vpop.f32.mrf.mxu3 }
 0x5ab   : > { %18888 = vst [vmem:[#allocation38_spill] sm:$0xff] %v14706_v24  ;;  %v14708_v11 = vpop.f32.mrf.mxu0  ;;  %v14725_v24 = vpop.f32.mrf.mxu2 }
 0x5ac   : > { %18889 = vst [vmem:[#allocation109_spill] sm:$0xff] %v14708_v11 }
 0x5ad   : > { %18891 = vst [vmem:[#allocation111_spill] sm:$0xff] %v14725_v24  ;;  %v10308_v24 = vld [vmem:[%s18599_s3 + $0x1018] sm:$0xff] }
 0x5ae   : > { %10472 = vmatmul.msk.f32.gmra.mxu0 %vm1016_vm1, %v10268_v4  ;;  %v10279_v4 = vld [vmem:[%s18599_s3 + $0xf30] sm:$0xff] }
 0x5af   : > { %4576 = vmatmul.f32.gmra.mxu3 %v10275_v54  ;;  %v14737_v54 = vpop.f32.mrf.mxu1 }
 0x5b0   : > { %18894 = vst [vmem:[#allocation114_spill] sm:$0xff] %v14737_v54  ;;  %4335 = vmatmul.f32.gmra.mxu1 %v10445_v35  ;;  %4523 = vmatmul.f32.gmra.mxu2 %v10450_v2  ;;  %v10276_v54 = vld [vmem:[%s18599_s3 + $0xf18] sm:$0xff]  ;;  %v4907_v35 = vld [vmem:[%s18646_s2 + $0x28] sm:$0xff]  ;;  %v10449_v2 = vld [vmem:[%s18599_s3 + $0x1480] sm:$0xff] }
 0x5b1   : > { %5090 = vmatpush.msrb.mxu1 %v4907_v35  ;;  %v10287_v35 = vld [vmem:[%s18599_s3 + $0xf70] sm:$0xff] }
 0x5b2   : > { %v14727_v11 = vpop.f32.mrf.mxu3 }
 0x5b3   : > { %18892 = vst [vmem:[#allocation112_spill] sm:$0xff] %v14727_v11  ;;  %v14729_v52 = vpop.f32.mrf.mxu0  ;;  %v14753_v42 = vpop.f32.mrf.mxu2 }
 0x5b4   : > { %18893 = vst [vmem:[#allocation113_spill] sm:$0xff] %v14729_v52 }
 0x5b5   : > { %18897 = vst [vmem:[#allocation117_spill] sm:$0xff] %v14753_v42  ;;  %v10300_v42 = vld [vmem:[%s18599_s3 + $0xfd8] sm:$0xff] }
 0x5b6   : > { %10473 = vmatmul.msk.f32.gmra.mxu0 %vm1016_vm1, %v10272_v25  ;;  %v10283_v25 = vld [vmem:[%s18599_s3 + $0xf50] sm:$0xff] }
 0x5b7   : > { %4579 = vmatmul.f32.gmra.mxu3 %v10279_v4  ;;  %v14758_v4 = vpop.f32.mrf.mxu1 }
 0x5b8   : > { %18898 = vst [vmem:[#allocation118_spill] sm:$0xff] %v14758_v4  ;;  %4338 = vmatmul.f32.gmra.mxu1 %v10449_v2 }
 0x5ba   : > { %v14746_v11 = vpop.f32.mrf.mxu3 }
 0x5bb   : > { %18895 = vst [vmem:[#allocation115_spill] sm:$0xff] %v14746_v11  ;;  %v14748_v52 = vpop.f32.mrf.mxu0  ;;  %v10454_v11 = vld [vmem:[%s18599_s3 + $0x14a8] sm:$0xff]  ;;  %v14785_v2 = vpop.f32.mrf.mxu2 }
 0x5bc   : > { %18896 = vst [vmem:[#allocation116_spill] sm:$0xff] %v14748_v52  ;;  %4526 = vmatmul.f32.gmra.mxu2 %v10454_v11  ;;  %v10458_v11 = vld [vmem:[%s18599_s3 + $0x14c8] sm:$0xff] }
 0x5bd   : > { %18902 = vst [vmem:[#allocation122_spill] sm:$0xff] %v14785_v2  ;;  %v10291_v2 = vld [vmem:[%s18599_s3 + $0xf90] sm:$0xff] }
 0x5be   : > { %10474 = vmatmul.msk.f32.gmra.mxu0 %vm1016_vm1, %v10276_v54 }
 0x5bf   : > { %4582 = vmatmul.f32.gmra.mxu3 %v10283_v25  ;;  %v14780_v54 = vpop.f32.mrf.mxu1  ;;  %v10453_v25 = vld [vmem:[%s18599_s3 + $0x14a0] sm:$0xff] }
 0x5c0   : > { %18901 = vst [vmem:[#allocation121_spill] sm:$0xff] %v14780_v54  ;;  %4341 = vmatmul.f32.gmra.mxu1 %v10453_v25  ;;  %v10284_v54 = vld [vmem:[%s18599_s3 + $0xf58] sm:$0xff]  ;;  %v10462_v25 = vld [vmem:[%s18599_s3 + $0x14e8] sm:$0xff] }
 0x5c2   : > { %v14770_v52 = vpop.f32.mrf.mxu3 }
 0x5c3   : > { %18899 = vst [vmem:[#allocation119_spill] sm:$0xff] %v14770_v52  ;;  %v14772_v4 = vpop.f32.mrf.mxu0 }
 0x5c4   : > { %18900 = vst [vmem:[#allocation120_spill] sm:$0xff] %v14772_v4  ;;  %4529 = vmatmul.f32.gmra.mxu2 %v10458_v11  ;;  %v14810_v11 = vpop.f32.mrf.mxu2 }
 0x5c5   : > { %18906 = vst [vmem:[#allocation126_spill] sm:$0xff] %v14810_v11 }
 0x5c6   : > { %10475 = vmatmul.msk.f32.gmra.mxu0 %vm1016_vm1, %v10280_v44 }
 0x5c7   : > { %4585 = vmatmul.f32.gmra.mxu3 %v10287_v35  ;;  %v14801_v44 = vpop.f32.mrf.mxu1  ;;  %v10457_v35 = vld [vmem:[%s18599_s3 + $0x14c0] sm:$0xff] }
 0x5c8   : > { %18905 = vst [vmem:[#allocation125_spill] sm:$0xff] %v14801_v44  ;;  %4344 = vmatmul.f32.gmra.mxu1 %v10457_v35  ;;  %v10288_v44 = vld [vmem:[%s18599_s3 + $0xf78] sm:$0xff]  ;;  %v10461_v35 = vld [vmem:[%s18599_s3 + $0x14e0] sm:$0xff] }
 0x5ca   : > { %v14791_v52 = vpop.f32.mrf.mxu3 }
 0x5cb   : > { %18903 = vst [vmem:[#allocation123_spill] sm:$0xff] %v14791_v52  ;;  %v14793_v4 = vpop.f32.mrf.mxu0 }
 0x5cc   : > { %18904 = vst [vmem:[#allocation124_spill] sm:$0xff] %v14793_v4  ;;  %4532 = vmatmul.f32.gmra.mxu2 %v10462_v25 }
 0x5ce   : > { %10476 = vmatmul.msk.f32.gmra.mxu0 %vm1016_vm1, %v10284_v54  ;;  %v10295_v54 = vld [vmem:[%s18599_s3 + $0xfb0] sm:$0xff] }
 0x5cf   : > { %4588 = vmatmul.f32.gmra.mxu3 %v10291_v2  ;;  %v14822_v2 = vpop.f32.mrf.mxu1 }
 0x5d0   : > { %18909 = vst [vmem:[#allocation129_spill] sm:$0xff] %v14822_v2  ;;  %4347 = vmatmul.f32.gmra.mxu1 %v10461_v35  ;;  %v10299_v2 = vld [vmem:[%s18599_s3 + $0xfd0] sm:$0xff] }
 0x5d1   : > { %v11300_v35 = vld [vmem:[%s11460_s0 + $0x1b0] sm:$0xff] }
 0x5d2   : > { %v14812_v52 = vpop.f32.mrf.mxu3 }
 0x5d3   : > { %18907 = vst [vmem:[#allocation127_spill] sm:$0xff] %v14812_v52  ;;  %v14814_v4 = vpop.f32.mrf.mxu0 }
 0x5d4   : > { %18908 = vst [vmem:[#allocation128_spill] sm:$0xff] %v14814_v4  ;;  %v10292_v4 = vld [vmem:[%s18599_s3 + $0xf98] sm:$0xff] }
 0x5d6   : > { %10477 = vmatmul.msk.f32.gmra.mxu0 %vm1016_vm1, %v10288_v44  ;;  %v4906_v44 = vld [vmem:[%s18646_s2 + $0x20] sm:$0xff] }
 0x5d7   : > { %4591 = vmatmul.f32.gmra.mxu3 %v10295_v54  ;;  %v14838_v11 = vpop.f32.mrf.mxu1  ;;  %5091 = vmatpush.msrb.mxu1 %v4906_v44  ;;  %v11299_v54 = vld [vmem:[%s11460_s0 + $0x1b8] sm:$0x1] }
 0x5d8   : > { %18912 = vst [vmem:[#allocation132_spill] sm:$0xff] %v14838_v11  ;;  %v10296_v44 = vld [vmem:[%s18599_s3 + $0xfb8] sm:$0xff] }
 0x5d9   : > { %10802 = vmatpush.msk.msra.mxu1 %vm1185_vm0, %v11299_v54  ;;  %v11302_v54 = vld [vmem:[%s11460_s0 + $0x1a0] sm:$0xff] }
 0x5da   : > { %v14828_v25 = vpop.f32.mrf.mxu3 }
 0x5db   : > { %18910 = vst [vmem:[#allocation130_spill] sm:$0xff] %v14828_v25  ;;  %v14830_v52 = vpop.f32.mrf.mxu0  ;;  %6274 = vmatpush.msra.mxu1 %v11300_v35  ;;  %v11303_v35 = vld [vmem:[%s11460_s0 + $0x198] sm:$0xff] }
 0x5dc   : > { %18911 = vst [vmem:[#allocation131_spill] sm:$0xff] %v14830_v52  ;;  %v11301_v52 = vld [vmem:[%s11460_s0 + $0x1a8] sm:$0xff] }
 0x5dd   : > { %6275 = vmatpush.msra.mxu1 %v11301_v52  ;;  %v11304_v52 = vld [vmem:[%s11460_s0 + $0x190] sm:$0xff] }
 0x5de   : > { %10478 = vmatmul.msk.f32.gmra.mxu0 %vm1016_vm1, %v10292_v4  ;;  %v10303_v4 = vld [vmem:[%s18599_s3 + $0xff0] sm:$0xff] }
 0x5df   : > { %4594 = vmatmul.f32.gmra.mxu3 %v10299_v2  ;;  %6276 = vmatpush.msra.mxu1 %v11302_v54  ;;  %v14859_v2 = vpop.f32.mrf.mxu1  ;;  %v14872_v54 = vpop.f32.mrf.mxu2 }
 0x5e0   : > { %18915 = vst [vmem:[#allocation135_spill] sm:$0xff] %v14859_v2 }
 0x5e1   : > { %6277 = vmatpush.msra.mxu1 %v11303_v35  ;;  %18918 = vst [vmem:[#allocation138_spill] sm:$0xff] %v14872_v54  ;;  %v11306_v35 = vld [vmem:[%s11460_s0 + $0x180] sm:$0xff] }
 0x5e2   : > { %v14847_v25 = vpop.f32.mrf.mxu3 }
 0x5e3   : > { %18913 = vst [vmem:[#allocation133_spill] sm:$0xff] %v14847_v25  ;;  %v14850_v11 = vpop.f32.mrf.mxu0  ;;  %6278 = vmatpush.msra.mxu1 %v11304_v52 }
 0x5e4   : > { %18914 = vst [vmem:[#allocation134_spill] sm:$0xff] %v14850_v11  ;;  %v11305_v11 = vld [vmem:[%s11460_s0 + $0x188] sm:$0xff]  ;;  %s19211_s0 = sld [smem:[#allocation193_spill]] }
 0x5e5   : > { %6279 = vmatpush.msra.mxu1 %v11305_v11 }
 0x5e6   : > { %10479 = vmatmul.msk.f32.gmra.mxu0 %vm1016_vm1, %v10296_v44  ;;  %v10307_v44 = vld [vmem:[%s18599_s3 + $0x1010] sm:$0xff] }
 0x5e7   : > { %4597 = vmatmul.f32.gmra.mxu3 %v10303_v4  ;;  %6280 = vmatpush.msra.mxu1 %v11306_v35  ;;  %v14879_v4 = vpop.f32.mrf.mxu1  ;;  %v14889_v2 = vpop.f32.mrf.mxu2 }
 0x5e8   : > { %18919 = vst [vmem:[#allocation139_spill] sm:$0xff] %v14879_v4 }
 0x5e9   : > { %18921 = vst [vmem:[#allocation141_spill] sm:$0xff] %v14889_v2  ;;  %v10315_v2 = vld [vmem:[%s18599_s3 + $0x1050] sm:$0xff] }
 0x5ea   : > { %v14864_v25 = vpop.f32.mrf.mxu3 }
 0x5eb   : > { %18916 = vst [vmem:[#allocation136_spill] sm:$0xff] %v14864_v25  ;;  %v14867_v10 = vpop.f32.mrf.mxu0  ;;  %v10304_v25 = vld [vmem:[%s18599_s3 + $0xff8] sm:$0xff] }
 0x5ec   : > { %18917 = vst [vmem:[#allocation137_spill] sm:$0xff] %v14867_v10  ;;  %v10311_v10 = vld [vmem:[%s18599_s3 + $0x1030] sm:$0xff] }
 0x5ee   : > { %10480 = vmatmul.msk.f32.gmra.mxu0 %vm1016_vm1, %v10300_v42  ;;  %v18922_v42 = vld [vmem:[#allocation105_spill] sm:$0xff] }
 0x5ef   : > { %4600 = vmatmul.f32.gmra.mxu3 %v10307_v44  ;;  %v18923_v44 = vld [vmem:[#allocation106_spill] sm:$0xff]  ;;  %v14894_v4 = vpop.f32.mrf.mxu1 }
 0x5f0   : > { %v4369_v35 = vadd.f32 %v18923_v44, %v18922_v42  ;;  %18924 = vst [vmem:[#allocation105_spill] sm:$0xff] %v14894_v4 }
 0x5f2   : > { %v4553_v11 = vpop.f32.mrf.mxu3 }
 0x5f3   : > { %v14881_v52 = vpop.f32.mrf.mxu0  ;;  %v4554_v54 = vadd.f32 %v4553_v11, %v4369_v35  ;;  %v14906_v11 = vpop.f32.mrf.mxu2 }
 0x5f4   : > { %18920 = vst [vmem:[#allocation140_spill] sm:$0xff] %v14881_v52 }
 0x5f6   : > { %10481 = vmatmul.msk.f32.gmra.mxu0 %vm1016_vm1, %v10304_v25  ;;  %v18926_v25 = vld [vmem:[#allocation108_spill] sm:$0xff] }
 0x5f7   : > { %4603 = vmatmul.f32.gmra.mxu3 %v10311_v10  ;;  %v18925_v10 = vld [vmem:[#allocation107_spill] sm:$0xff] }
 0x5f8   : > { %v4372_v42 = vadd.f32 %v18926_v25, %v18925_v10 }
 0x5fa   : > { %v4556_v52 = vpop.f32.mrf.mxu3 }
 0x5fb   : > { %v4738_v45 = vpop.f32.mrf.mxu0  ;;  %v4557_v44 = vadd.f32 %v4556_v52, %v4372_v42  ;;  %v14920_v52 = vpop.f32.mrf.mxu2 }
 0x5fc   : > { %v4739_v3 = vadd.f32 %v4738_v45, %v4554_v54  ;;  %v10312_v45 = vld [vmem:[%s18599_s3 + $0x1038] sm:$0xff]  ;;  %v14911_v54 = vpop.f32.mrf.mxu1 }
 0x5fd   : > { %18927 = vst [vmem:[#allocation106_spill] sm:$0xff] %v14911_v54 }
 0x5fe   : > { %10482 = vmatmul.msk.f32.gmra.mxu0 %vm1016_vm1, %v10308_v24  ;;  %10522 = vmatmul.msk.f32.vlgmr.msrb.gmra.mxu1 %vm3066_vm2, %v4739_v3  ;;  %v10319_v24 = vld [vmem:[%s18599_s3 + $0x1070] sm:$0xff]  ;;  %v18928_v3 = vld [vmem:[#allocation51_spill] sm:$0xff] }
 0x5ff   : > { %4606 = vmatmul.f32.gmra.mxu3 %v10315_v2  ;;  %v4375_v2 = vadd.f32 %v18928_v3, %v14057_v53  ;;  %v4378_v53 = vadd.f32 %v14092_v50, %v14078_v26  ;;  %v10320_v3 = vld [vmem:[%s18599_s3 + $0x1078] sm:$0xff]  ;;  %v4381_v50 = vadd.f32 %v14115_v17, %v14099_v56  ;;  %v4384_v56 = vadd.f32 %v14139_v16, %v14120_v59 }
 0x600   : > { %v4387_v59 = vadd.f32 %v14165_v55, %v14141_v32  ;;  %v4390_v32 = vadd.f32 %v14195_v23, %v14160_v18  ;;  %v4393_v18 = vadd.f32 %v14218_v61, %v14181_v6  ;;  %v4396_v61 = vadd.f32 %v14242_v60, %v14202_v15 }
 0x601   : > { %v4399_v15 = vadd.f32 %v14268_v7, %v14223_v57  ;;  %v4402_v57 = vadd.f32 %v14298_v33, %v14244_v27  ;;  %v10578_v27 = vld [vmem:[%s18599_s3 + $0x1500] sm:$0xff]  ;;  %v4405_v33 = vadd.f32 %v14321_v36, %v14263_v8  ;;  %v4408_v36 = vadd.f32 %v14345_v47, %v14284_v12 }
 0x602   : > { %v4559_v35 = vpop.f32.mrf.mxu3  ;;  %5726 = vmatmul.f32.vlgmr.msrb.gmra.mxu2 %v10578_v27  ;;  %v10582_v8 = vld [vmem:[%s18599_s3 + $0x1520] sm:$0xff]  ;;  %v10367_v27 = vld [vmem:[%s18599_s3 + $0x11f0] sm:$0xff] }
 0x603   : > { %v4741_v4 = vpop.f32.mrf.mxu0  ;;  %v4560_v10 = vadd.f32 %v4559_v35, %v4375_v2  ;;  %v14937_v2 = vpop.f32.mrf.mxu2  ;;  %v10586_v12 = vld [vmem:[%s18599_s3 + $0x1540] sm:$0xff] }
 0x604   : > { %v4742_v19 = vadd.f32 %v4741_v4, %v4557_v44  ;;  %v10316_v4 = vld [vmem:[%s18599_s3 + $0x1058] sm:$0xff]  ;;  %v14928_v54 = vpop.f32.mrf.mxu1 }
 0x606   : > { %10483 = vmatmul.msk.f32.gmra.mxu0 %vm1016_vm1, %v10312_v45  ;;  %10523 = vmatmul.msk.f32.gmra.mxu1 %vm3066_vm2, %v4742_v19  ;;  %v10323_v45 = vld [vmem:[%s18599_s3 + $0x1090] sm:$0xff] }
 0x607   : > { %4609 = vmatmul.f32.gmra.mxu3 %v10319_v24 }
 0x60a   : > { %v4562_v25 = vpop.f32.mrf.mxu3  ;;  %5729 = vmatmul.f32.gmra.mxu2 %v10582_v8 }
 0x60b   : > { %v4744_v42 = vpop.f32.mrf.mxu0  ;;  %v4563_v19 = vadd.f32 %v4562_v25, %v4378_v53 }
 0x60c   : > { %v4745_v44 = vadd.f32 %v4744_v42, %v4560_v10  ;;  %v10327_v42 = vld [vmem:[%s18599_s3 + $0x10b0] sm:$0xff]  ;;  %v14944_v26 = vpop.f32.mrf.mxu1 }
 0x60e   : > { %10484 = vmatmul.msk.f32.gmra.mxu0 %vm1016_vm1, %v10316_v4  ;;  %10524 = vmatmul.msk.f32.gmra.mxu1 %vm3066_vm2, %v4745_v44 }
 0x60f   : > { %4612 = vmatmul.f32.gmra.mxu3 %v10323_v45  ;;  %v10324_v45 = vld [vmem:[%s18599_s3 + $0x1098] sm:$0xff] }
 0x612   : > { %v4565_v35 = vpop.f32.mrf.mxu3  ;;  %5732 = vmatmul.f32.gmra.mxu2 %v10586_v12 }
 0x613   : > { %v4747_v24 = vpop.f32.mrf.mxu0  ;;  %v4566_v25 = vadd.f32 %v4565_v35, %v4381_v50 }
 0x614   : > { %v4748_v10 = vadd.f32 %v4747_v24, %v4563_v19  ;;  %v10331_v19 = vld [vmem:[%s18599_s3 + $0x10d0] sm:$0xff]  ;;  %v14954_v24 = vpop.f32.mrf.mxu2  ;;  %v14960_v17 = vpop.f32.mrf.mxu1 }
 0x616   : > { %10485 = vmatmul.msk.f32.gmra.mxu0 %vm1016_vm1, %v10320_v3  ;;  %10525 = vmatmul.msk.f32.gmra.mxu1 %vm3066_vm2, %v4748_v10 }
 0x617   : > { %4615 = vmatmul.f32.gmra.mxu3 %v10327_v42  ;;  %v10328_v42 = vld [vmem:[%s18599_s3 + $0x10b8] sm:$0xff] }
 0x61a   : > { %v4568_v4 = vpop.f32.mrf.mxu3 }
 0x61b   : > { %v4750_v44 = vpop.f32.mrf.mxu0  ;;  %v4569_v35 = vadd.f32 %v4568_v4, %v4384_v56 }
 0x61c   : > { %v4751_v53 = vadd.f32 %v4750_v44, %v4566_v25  ;;  %v10335_v25 = vld [vmem:[%s18599_s3 + $0x10f0] sm:$0xff]  ;;  %v14972_v16 = vpop.f32.mrf.mxu2 }
 0x61e   : > { %10486 = vmatmul.msk.f32.gmra.mxu0 %vm1016_vm1, %v10324_v45  ;;  %10526 = vmatmul.msk.f32.gmra.mxu1 %vm3066_vm2, %v4751_v53  ;;  %v10332_v53 = vld [vmem:[%s18599_s3 + $0x10d8] sm:$0xff] }
 0x61f   : > { %4618 = vmatmul.f32.gmra.mxu3 %v10331_v19  ;;  %v14977_v19 = vpop.f32.mrf.mxu1 }
 0x622   : > { %v4571_v3 = vpop.f32.mrf.mxu3 }
 0x623   : > { %v4753_v10 = vpop.f32.mrf.mxu0  ;;  %v4572_v4 = vadd.f32 %v4571_v3, %v4387_v59  ;;  %v10343_v59 = vld [vmem:[%s18599_s3 + $0x1130] sm:$0xff] }
 0x624   : > { %v4754_v50 = vadd.f32 %v4753_v10, %v4569_v35  ;;  %v10339_v35 = vld [vmem:[%s18599_s3 + $0x1110] sm:$0xff]  ;;  %v14986_v55 = vpop.f32.mrf.mxu2 }
 0x626   : > { %10487 = vmatmul.msk.f32.gmra.mxu0 %vm1016_vm1, %v10328_v42  ;;  %10527 = vmatmul.msk.f32.gmra.mxu1 %vm3066_vm2, %v4754_v50  ;;  %v10336_v50 = vld [vmem:[%s18599_s3 + $0x10f8] sm:$0xff] }
 0x627   : > { %4621 = vmatmul.f32.gmra.mxu3 %v10335_v25 }
 0x62a   : > { %v4574_v44 = vpop.f32.mrf.mxu3 }
 0x62b   : > { %v4756_v45 = vpop.f32.mrf.mxu0  ;;  %v4575_v3 = vadd.f32 %v4574_v44, %v4390_v32  ;;  %v10347_v32 = vld [vmem:[%s18599_s3 + $0x1150] sm:$0xff] }
 0x62c   : > { %v4757_v56 = vadd.f32 %v4756_v45, %v4572_v4  ;;  %v14994_v4 = vpop.f32.mrf.mxu1 }
 0x62e   : > { %10488 = vmatmul.msk.f32.gmra.mxu0 %vm1016_vm1, %v10332_v53  ;;  %10528 = vmatmul.msk.f32.gmra.mxu1 %vm3066_vm2, %v4757_v56  ;;  %v10340_v53 = vld [vmem:[%s18599_s3 + $0x1118] sm:$0xff]  ;;  %v15003_v56 = vpop.f32.mrf.mxu2 }
 0x62f   : > { %4624 = vmatmul.f32.gmra.mxu3 %v10339_v35 }
 0x632   : > { %v4577_v10 = vpop.f32.mrf.mxu3 }
 0x633   : > { %v4759_v42 = vpop.f32.mrf.mxu0  ;;  %v4578_v23 = vadd.f32 %v4577_v10, %v4393_v18 }
 0x634   : > { %v4760_v25 = vadd.f32 %v4759_v42, %v4575_v3  ;;  %v15010_v6 = vpop.f32.mrf.mxu1 }
 0x636   : > { %10489 = vmatmul.msk.f32.gmra.mxu0 %vm1016_vm1, %v10336_v50  ;;  %10529 = vmatmul.msk.f32.gmra.mxu1 %vm3066_vm2, %v4760_v25  ;;  %v10344_v50 = vld [vmem:[%s18599_s3 + $0x1138] sm:$0xff]  ;;  %v15020_v18 = vpop.f32.mrf.mxu2 }
 0x637   : > { %4627 = vmatmul.f32.gmra.mxu3 %v10343_v59  ;;  %v10351_v59 = vld [vmem:[%s18599_s3 + $0x1170] sm:$0xff] }
 0x63a   : > { %v4580_v44 = vpop.f32.mrf.mxu3 }
 0x63b   : > { %v4762_v45 = vpop.f32.mrf.mxu0  ;;  %v4581_v3 = vadd.f32 %v4580_v44, %v4396_v61 }
 0x63c   : > { %v4763_v35 = vadd.f32 %v4762_v45, %v4578_v23  ;;  %v15026_v60 = vpop.f32.mrf.mxu1 }
 0x63e   : > { %10490 = vmatmul.msk.f32.gmra.mxu0 %vm1016_vm1, %v10340_v53  ;;  %10530 = vmatmul.msk.f32.gmra.mxu1 %vm3066_vm2, %v4763_v35  ;;  %v10348_v53 = vld [vmem:[%s18599_s3 + $0x1158] sm:$0xff]  ;;  %v15038_v7 = vpop.f32.mrf.mxu2 }
 0x63f   : > { %4630 = vmatmul.f32.gmra.mxu3 %v10347_v32  ;;  %v10355_v32 = vld [vmem:[%s18599_s3 + $0x1190] sm:$0xff] }
 0x642   : > { %v4583_v10 = vpop.f32.mrf.mxu3 }
 0x643   : > { %v4765_v42 = vpop.f32.mrf.mxu0  ;;  %v4584_v23 = vadd.f32 %v4583_v10, %v4399_v15 }
 0x644   : > { %v4766_v25 = vadd.f32 %v4765_v42, %v4581_v3  ;;  %v10352_v42 = vld [vmem:[%s18599_s3 + $0x1178] sm:$0xff] }
 0x646   : > { %10491 = vmatmul.msk.f32.gmra.mxu0 %vm1016_vm1, %v10344_v50  ;;  %10531 = vmatmul.msk.f32.gmra.mxu1 %vm3066_vm2, %v4766_v25  ;;  %v15043_v50 = vpop.f32.mrf.mxu1  ;;  %v15055_v15 = vpop.f32.mrf.mxu2 }
 0x647   : > { %4633 = vmatmul.f32.gmra.mxu3 %v10351_v59  ;;  %v10359_v59 = vld [vmem:[%s18599_s3 + $0x11b0] sm:$0xff] }
 0x64a   : > { %v4586_v44 = vpop.f32.mrf.mxu3 }
 0x64b   : > { %v4768_v45 = vpop.f32.mrf.mxu0  ;;  %v4587_v61 = vadd.f32 %v4586_v44, %v4402_v57 }
 0x64c   : > { %v4769_v35 = vadd.f32 %v4768_v45, %v4584_v23 }
 0x64e   : > { %10492 = vmatmul.msk.f32.gmra.mxu0 %vm1016_vm1, %v10348_v53  ;;  %10532 = vmatmul.msk.f32.gmra.mxu1 %vm3066_vm2, %v4769_v35  ;;  %v10356_v53 = vld [vmem:[%s18599_s3 + $0x1198] sm:$0xff]  ;;  %v15063_v57 = vpop.f32.mrf.mxu1 }
 0x64f   : > { %4636 = vmatmul.f32.gmra.mxu3 %v10355_v32  ;;  %v10363_v32 = vld [vmem:[%s18599_s3 + $0x11d0] sm:$0xff] }
 0x652   : > { %v4589_v3 = vpop.f32.mrf.mxu3 }
 0x653   : > { %v4771_v10 = vpop.f32.mrf.mxu0  ;;  %v4590_v23 = vadd.f32 %v4589_v3, %v4405_v33  ;;  %v4411_v33 = vadd.f32 %v14371_v20, %v14305_v46  ;;  %v10590_v46 = vld [vmem:[%s18599_s3 + $0x1560] sm:$0xff]  ;;  %v4414_v20 = vadd.f32 %v14401_v0, %v14326_v21  ;;  %v4417_v0 = vadd.f32 %v14424_v34, %v14347_v5 }
 0x654   : > { %v4772_v25 = vadd.f32 %v4771_v10, %v4587_v61  ;;  %5735 = vmatmul.f32.gmra.mxu2 %v10590_v46  ;;  %v10594_v21 = vld [vmem:[%s18599_s3 + $0x1580] sm:$0xff]  ;;  %v4420_v34 = vadd.f32 %v14448_v63, %v14366_v13  ;;  %v4423_v63 = vadd.f32 %v14472_v38, %v14387_v43  ;;  %v4426_v38 = vadd.f32 %v14504_v14, %v14408_v1 }
 0x655   : > { %v10598_v5 = vld [vmem:[%s18599_s3 + $0x15a0] sm:$0xff]  ;;  %v4429_v14 = vadd.f32 %v14525_v40, %v14429_v29  ;;  %v4432_v40 = vadd.f32 %v14548_v22, %v14450_v49  ;;  %v4435_v22 = vadd.f32 %v14575_v62, %v14469_v9  ;;  %v4438_v62 = vadd.f32 %v14601_v30, %v14490_v51 }
 0x656   : > { %10493 = vmatmul.msk.f32.gmra.mxu0 %vm1016_vm1, %v10352_v42  ;;  %10533 = vmatmul.msk.f32.gmra.mxu1 %vm3066_vm2, %v4772_v25  ;;  %v10360_v42 = vld [vmem:[%s18599_s3 + $0x11b8] sm:$0xff]  ;;  %v15075_v25 = vpop.f32.mrf.mxu2  ;;  %v15085_v47 = vpop.f32.mrf.mxu1  ;;  %v10602_v13 = vld [vmem:[%s18599_s3 + $0x15c0] sm:$0xff]  ;;  %v4441_v30 = vadd.f32 %v14622_v58, %v14511_v31  ;;  %v4444_v58 = vadd.f32 %v14650_v28, %v14532_v37  ;;  %v4447_v37 = vadd.f32 %v14679_v48, %v14553_v39 }
 0x657   : > { %4639 = vmatmul.f32.gmra.mxu3 %v10359_v59  ;;  %v10606_v43 = vld [vmem:[%s18599_s3 + $0x15e0] sm:$0xff]  ;;  %v18934_v48 = vld [vmem:[#allocation37_spill] sm:$0xff] }
 0x658   : > { %v10610_v1 = vld [vmem:[%s18599_s3 + $0x1600] sm:$0xff] }
 0x659   : > { %v10614_v29 = vld [vmem:[%s18599_s3 + $0x1620] sm:$0xff] }
 0x65a   : > { %v4592_v44 = vpop.f32.mrf.mxu3  ;;  %v10618_v49 = vld [vmem:[%s18599_s3 + $0x1640] sm:$0xff] }
 0x65b   : > { %v4774_v45 = vpop.f32.mrf.mxu0  ;;  %v4593_v61 = vadd.f32 %v4592_v44, %v4408_v36  ;;  %v10622_v9 = vld [vmem:[%s18599_s3 + $0x1660] sm:$0xff] }
 0x65c   : > { %v4775_v35 = vadd.f32 %v4774_v45, %v4590_v23  ;;  %5738 = vmatmul.f32.gmra.mxu2 %v10594_v21  ;;  %v10626_v51 = vld [vmem:[%s18599_s3 + $0x1680] sm:$0xff] }
 0x65d   : > { %v10630_v31 = vld [vmem:[%s18599_s3 + $0x16a0] sm:$0xff] }
 0x65e   : > { %10494 = vmatmul.msk.f32.gmra.mxu0 %vm1016_vm1, %v10356_v53  ;;  %10534 = vmatmul.msk.f32.gmra.mxu1 %vm3066_vm2, %v4775_v35  ;;  %v10364_v53 = vld [vmem:[%s18599_s3 + $0x11d8] sm:$0xff]  ;;  %v15095_v8 = vpop.f32.mrf.mxu2  ;;  %v15104_v36 = vpop.f32.mrf.mxu1  ;;  %v10634_v28 = vld [vmem:[%s18599_s3 + $0x16c0] sm:$0xff] }
 0x65f   : > { %4642 = vmatmul.f32.gmra.mxu3 %v10363_v32  ;;  %v10371_v32 = vld [vmem:[%s18599_s3 + $0x1210] sm:$0xff]  ;;  %v10638_v39 = vld [vmem:[%s18599_s3 + $0x16e0] sm:$0xff] }
 0x662   : > { %v4595_v3 = vpop.f32.mrf.mxu3 }
 0x663   : > { %v4777_v10 = vpop.f32.mrf.mxu0  ;;  %v4596_v23 = vadd.f32 %v4595_v3, %v4411_v33 }
 0x664   : > { %v4778_v59 = vadd.f32 %v4777_v10, %v4593_v61  ;;  %5741 = vmatmul.f32.gmra.mxu2 %v10598_v5 }
 0x666   : > { %10495 = vmatmul.msk.f32.gmra.mxu0 %vm1016_vm1, %v10360_v42  ;;  %10535 = vmatmul.msk.f32.gmra.mxu1 %vm3066_vm2, %v4778_v59  ;;  %v10368_v42 = vld [vmem:[%s18599_s3 + $0x11f8] sm:$0xff]  ;;  %v15119_v12 = vpop.f32.mrf.mxu2 }
 0x667   : > { %4645 = vmatmul.f32.gmra.mxu3 %v10367_v27  ;;  %v10375_v27 = vld [vmem:[%s18599_s3 + $0x1230] sm:$0xff] }
 0x66a   : > { %v4598_v44 = vpop.f32.mrf.mxu3 }
 0x66b   : > { %v4780_v45 = vpop.f32.mrf.mxu0  ;;  %v4599_v61 = vadd.f32 %v4598_v44, %v4414_v20 }
 0x66c   : > { %v4781_v35 = vadd.f32 %v4780_v45, %v4596_v23  ;;  %5744 = vmatmul.f32.gmra.mxu2 %v10602_v13 }
 0x66e   : > { %10496 = vmatmul.msk.f32.gmra.mxu0 %vm1016_vm1, %v10364_v53  ;;  %10536 = vmatmul.msk.f32.gmra.mxu1 %vm3066_vm2, %v4781_v35  ;;  %v10372_v53 = vld [vmem:[%s18599_s3 + $0x1218] sm:$0xff]  ;;  %v15136_v46 = vpop.f32.mrf.mxu2 }
 0x66f   : > { %4648 = vmatmul.f32.gmra.mxu3 %v10371_v32  ;;  %v10379_v32 = vld [vmem:[%s18599_s3 + $0x1250] sm:$0xff] }
 0x672   : > { %v4601_v3 = vpop.f32.mrf.mxu3 }
 0x673   : > { %v4783_v10 = vpop.f32.mrf.mxu0  ;;  %v4602_v33 = vadd.f32 %v4601_v3, %v4417_v0 }
 0x674   : > { %v4784_v59 = vadd.f32 %v4783_v10, %v4599_v61  ;;  %5747 = vmatmul.f32.gmra.mxu2 %v10606_v43 }
 0x676   : > { %10497 = vmatmul.msk.f32.gmra.mxu0 %vm1016_vm1, %v10368_v42  ;;  %10537 = vmatmul.msk.f32.gmra.mxu1 %vm3066_vm2, %v4784_v59  ;;  %v10376_v42 = vld [vmem:[%s18599_s3 + $0x1238] sm:$0xff] }
 0x677   : > { %4651 = vmatmul.f32.gmra.mxu3 %v10375_v27  ;;  %v10383_v27 = vld [vmem:[%s18599_s3 + $0x1270] sm:$0xff] }
 0x67a   : > { %v4604_v23 = vpop.f32.mrf.mxu3 }
 0x67b   : > { %v4786_v44 = vpop.f32.mrf.mxu0  ;;  %v15121_v45 = vpop.f32.mrf.mxu1  ;;  %v4605_v20 = vadd.f32 %v4604_v23, %v4420_v34 }
 0x67c   : > { %v4787_v35 = vadd.f32 %v4786_v44, %v4602_v33  ;;  %v10380_v44 = vld [vmem:[%s18599_s3 + $0x1258] sm:$0xff]  ;;  %5750 = vmatmul.f32.gmra.mxu2 %v10610_v1 }
 0x67e   : > { %10498 = vmatmul.msk.f32.gmra.mxu0 %vm1016_vm1, %v10372_v53  ;;  %10538 = vmatmul.msk.f32.gmra.mxu1 %vm3066_vm2, %v4787_v35  ;;  %v15158_v53 = vpop.f32.mrf.mxu2 }
 0x67f   : > { %4654 = vmatmul.f32.gmra.mxu3 %v10379_v32  ;;  %v10387_v32 = vld [vmem:[%s18599_s3 + $0x1290] sm:$0xff] }
 0x682   : > { %v4607_v61 = vpop.f32.mrf.mxu3 }
 0x683   : > { %v4789_v3 = vpop.f32.mrf.mxu0  ;;  %v15138_v10 = vpop.f32.mrf.mxu1  ;;  %v4608_v21 = vadd.f32 %v4607_v61, %v4423_v63 }
 0x684   : > { %v4790_v59 = vadd.f32 %v4789_v3, %v4605_v20  ;;  %v10384_v3 = vld [vmem:[%s18599_s3 + $0x1278] sm:$0xff]  ;;  %5753 = vmatmul.f32.gmra.mxu2 %v10614_v29 }
 0x686   : > { %10499 = vmatmul.msk.f32.gmra.mxu0 %vm1016_vm1, %v10376_v42  ;;  %10539 = vmatmul.msk.f32.gmra.mxu1 %vm3066_vm2, %v4790_v59  ;;  %v10391_v59 = vld [vmem:[%s18599_s3 + $0x12b0] sm:$0xff] }
 0x687   : > { %4657 = vmatmul.f32.gmra.mxu3 %v10383_v27  ;;  %v15178_v27 = vpop.f32.mrf.mxu2 }
 0x68a   : > { %v4610_v0 = vpop.f32.mrf.mxu3 }
 0x68b   : > { %v4792_v33 = vpop.f32.mrf.mxu0  ;;  %v15153_v23 = vpop.f32.mrf.mxu1  ;;  %v4611_v5 = vadd.f32 %v4610_v0, %v4426_v38 }
 0x68c   : > { %v4793_v35 = vadd.f32 %v4792_v33, %v4608_v21  ;;  %v10388_v33 = vld [vmem:[%s18599_s3 + $0x1298] sm:$0xff]  ;;  %5756 = vmatmul.f32.gmra.mxu2 %v10618_v49 }
 0x68e   : > { %10500 = vmatmul.msk.f32.gmra.mxu0 %vm1016_vm1, %v10380_v44  ;;  %10540 = vmatmul.msk.f32.gmra.mxu1 %vm3066_vm2, %v4793_v35  ;;  %v10395_v35 = vld [vmem:[%s18599_s3 + $0x12d0] sm:$0xff] }
 0x68f   : > { %4660 = vmatmul.f32.gmra.mxu3 %v10387_v32  ;;  %v15202_v32 = vpop.f32.mrf.mxu2 }
 0x692   : > { %v4613_v34 = vpop.f32.mrf.mxu3 }
 0x693   : > { %v4795_v20 = vpop.f32.mrf.mxu0  ;;  %v15170_v61 = vpop.f32.mrf.mxu1  ;;  %v4614_v13 = vadd.f32 %v4613_v34, %v4429_v14 }
 0x694   : > { %v4796_v42 = vadd.f32 %v4795_v20, %v4611_v5  ;;  %v10392_v20 = vld [vmem:[%s18599_s3 + $0x12b8] sm:$0xff]  ;;  %5759 = vmatmul.f32.gmra.mxu2 %v10622_v9 }
 0x696   : > { %10501 = vmatmul.msk.f32.gmra.mxu0 %vm1016_vm1, %v10384_v3  ;;  %10541 = vmatmul.msk.f32.gmra.mxu1 %vm3066_vm2, %v4796_v42  ;;  %v10399_v42 = vld [vmem:[%s18599_s3 + $0x12f0] sm:$0xff] }
 0x697   : > { %4663 = vmatmul.f32.gmra.mxu3 %v10391_v59  ;;  %v15219_v59 = vpop.f32.mrf.mxu2 }
 0x69a   : > { %v4616_v63 = vpop.f32.mrf.mxu3 }
 0x69b   : > { %v4798_v21 = vpop.f32.mrf.mxu0  ;;  %v15187_v0 = vpop.f32.mrf.mxu1  ;;  %v4617_v43 = vadd.f32 %v4616_v63, %v4432_v40 }
 0x69c   : > { %v4799_v44 = vadd.f32 %v4798_v21, %v4614_v13  ;;  %v10396_v21 = vld [vmem:[%s18599_s3 + $0x12d8] sm:$0xff]  ;;  %5762 = vmatmul.f32.gmra.mxu2 %v10626_v51 }
 0x69e   : > { %10502 = vmatmul.msk.f32.gmra.mxu0 %vm1016_vm1, %v10388_v33  ;;  %10542 = vmatmul.msk.f32.gmra.mxu1 %vm3066_vm2, %v4799_v44  ;;  %v10403_v44 = vld [vmem:[%s18599_s3 + $0x1310] sm:$0xff] }
 0x69f   : > { %4666 = vmatmul.f32.gmra.mxu3 %v10395_v35 }
 0x6a2   : > { %v4619_v38 = vpop.f32.mrf.mxu3 }
 0x6a3   : > { %v4801_v5 = vpop.f32.mrf.mxu0  ;;  %v15204_v34 = vpop.f32.mrf.mxu1  ;;  %v4620_v1 = vadd.f32 %v4619_v38, %v4435_v22  ;;  %v10400_v38 = vld [vmem:[%s18599_s3 + $0x12f8] sm:$0xff] }
 0x6a4   : > { %v4802_v3 = vadd.f32 %v4801_v5, %v4617_v43  ;;  %v15241_v5 = vpop.f32.mrf.mxu2  ;;  %5765 = vmatmul.f32.gmra.mxu2 %v10630_v31 }
 0x6a6   : > { %10503 = vmatmul.msk.f32.gmra.mxu0 %vm1016_vm1, %v10392_v20  ;;  %10543 = vmatmul.msk.f32.gmra.mxu1 %vm3066_vm2, %v4802_v3  ;;  %v10407_v3 = vld [vmem:[%s18599_s3 + $0x1330] sm:$0xff] }
 0x6a7   : > { %4669 = vmatmul.f32.gmra.mxu3 %v10399_v42 }
 0x6aa   : > { %v4622_v14 = vpop.f32.mrf.mxu3 }
 0x6ab   : > { %v4804_v13 = vpop.f32.mrf.mxu0  ;;  %v15221_v63 = vpop.f32.mrf.mxu1  ;;  %v4623_v35 = vadd.f32 %v4622_v14, %v4438_v62  ;;  %v10404_v14 = vld [vmem:[%s18599_s3 + $0x1318] sm:$0xff] }
 0x6ac   : > { %18929 = vst [vmem:[#allocation107_spill] sm:$0xff] %v15221_v63  ;;  %v4805_v33 = vadd.f32 %v4804_v13, %v4620_v1  ;;  %5768 = vmatmul.f32.gmra.mxu2 %v10634_v28  ;;  %v18937_v28 = vld [vmem:[#allocation111_spill] sm:$0xff] }
 0x6ae   : > { %10504 = vmatmul.msk.f32.gmra.mxu0 %vm1016_vm1, %v10396_v21  ;;  %10544 = vmatmul.msk.f32.gmra.mxu1 %vm3066_vm2, %v4805_v33  ;;  %v10411_v21 = vld [vmem:[%s18599_s3 + $0x1350] sm:$0xff]  ;;  %v15261_v33 = vpop.f32.mrf.mxu2 }
 0x6af   : > { %4672 = vmatmul.f32.gmra.mxu3 %v10403_v44 }
 0x6b2   : > { %v4625_v29 = vpop.f32.mrf.mxu3 }
 0x6b3   : > { %v4807_v40 = vpop.f32.mrf.mxu0  ;;  %v15236_v43 = vpop.f32.mrf.mxu1  ;;  %v4626_v42 = vadd.f32 %v4625_v29, %v4441_v30  ;;  %v10408_v29 = vld [vmem:[%s18599_s3 + $0x1338] sm:$0xff] }
 0x6b4   : > { %18930 = vst [vmem:[#allocation108_spill] sm:$0xff] %v15236_v43  ;;  %v4808_v20 = vadd.f32 %v4807_v40, %v4623_v35  ;;  %5771 = vmatmul.f32.gmra.mxu2 %v10638_v39  ;;  %v10704_v43 = vld [vmem:[%s18599_s3 + $0x18f0] sm:$0xff] }
 0x6b6   : > { %10505 = vmatmul.msk.f32.gmra.mxu0 %vm1016_vm1, %v10400_v38  ;;  %10545 = vmatmul.msk.f32.gmra.mxu1 %vm3066_vm2, %v4808_v20  ;;  %v10415_v38 = vld [vmem:[%s18599_s3 + $0x1370] sm:$0xff]  ;;  %v15285_v20 = vpop.f32.mrf.mxu2 }
 0x6b7   : > { %4675 = vmatmul.f32.gmra.mxu3 %v10407_v3 }
 0x6ba   : > { %v4628_v49 = vpop.f32.mrf.mxu3 }
 0x6bb   : > { %v4810_v22 = vpop.f32.mrf.mxu0  ;;  %v15253_v1 = vpop.f32.mrf.mxu1  ;;  %v4629_v44 = vadd.f32 %v4628_v49, %v4444_v58  ;;  %v10412_v49 = vld [vmem:[%s18599_s3 + $0x1358] sm:$0xff] }
 0x6bc   : > { %18931 = vst [vmem:[#allocation51_spill] sm:$0xff] %v15253_v1  ;;  %v4811_v13 = vadd.f32 %v4810_v22, %v4626_v42  ;;  %v10696_v1 = vld [vmem:[%s18599_s3 + $0x18b0] sm:$0xff] }
 0x6be   : > { %10506 = vmatmul.msk.f32.gmra.mxu0 %vm1016_vm1, %v10404_v14  ;;  %10546 = vmatmul.msk.f32.gmra.mxu1 %vm3066_vm2, %v4811_v13  ;;  %v10419_v14 = vld [vmem:[%s18599_s3 + $0x1390] sm:$0xff]  ;;  %v4450_v13 = vadd.f32 %v18934_v48, %v14570_v41  ;;  %v10642_v41 = vld [vmem:[%s18599_s3 + $0x1700] sm:$0xff] }
 0x6bf   : > { %4678 = vmatmul.f32.gmra.mxu3 %v10411_v21  ;;  %v15302_v21 = vpop.f32.mrf.mxu2  ;;  %5774 = vmatmul.f32.gmra.mxu2 %v10642_v41  ;;  %v10427_v48 = vld [vmem:[%s18599_s3 + $0x13d0] sm:$0xff] }
 0x6c2   : > { %v4631_v9 = vpop.f32.mrf.mxu3 }
 0x6c3   : > { %v4813_v62 = vpop.f32.mrf.mxu0  ;;  %v15270_v35 = vpop.f32.mrf.mxu1  ;;  %v4632_v3 = vadd.f32 %v4631_v9, %v4447_v37 }
 0x6c4   : > { %18932 = vst [vmem:[#allocation142_spill] sm:$0xff] %v15270_v35  ;;  %v4814_v40 = vadd.f32 %v4813_v62, %v4629_v44  ;;  %v10416_v62 = vld [vmem:[%s18599_s3 + $0x1378] sm:$0xff] }
 0x6c6   : > { %10507 = vmatmul.msk.f32.gmra.mxu0 %vm1016_vm1, %v10408_v29  ;;  %10547 = vmatmul.msk.f32.gmra.mxu1 %vm3066_vm2, %v4814_v40  ;;  %v10423_v40 = vld [vmem:[%s18599_s3 + $0x13b0] sm:$0xff] }
 0x6c7   : > { %4681 = vmatmul.f32.gmra.mxu3 %v10415_v38  ;;  %v18936_v38 = vld [vmem:[#allocation83_spill] sm:$0xff] }
 0x6c8   : > { %v4453_v37 = vadd.f32 %v18937_v28, %v18936_v38  ;;  %v10424_v28 = vld [vmem:[%s18599_s3 + $0x13b8] sm:$0xff] }
 0x6ca   : > { %v4634_v51 = vpop.f32.mrf.mxu3 }
 0x6cb   : > { %v4816_v30 = vpop.f32.mrf.mxu0  ;;  %v15287_v42 = vpop.f32.mrf.mxu1  ;;  %v4635_v31 = vadd.f32 %v4634_v51, %v4450_v13  ;;  %v10646_v13 = vld [vmem:[%s18599_s3 + $0x1720] sm:$0xff] }
 0x6cc   : > { %18933 = vst [vmem:[#allocation143_spill] sm:$0xff] %v15287_v42  ;;  %v4817_v22 = vadd.f32 %v4816_v30, %v4632_v3  ;;  %v15319_v30 = vpop.f32.mrf.mxu2  ;;  %5777 = vmatmul.f32.gmra.mxu2 %v10646_v13  ;;  %v10688_v42 = vld [vmem:[%s18599_s3 + $0x1870] sm:$0xff] }
 0x6ce   : > { %10508 = vmatmul.msk.f32.gmra.mxu0 %vm1016_vm1, %v10412_v49  ;;  %10548 = vmatmul.msk.f32.gmra.mxu1 %vm3066_vm2, %v4817_v22 }
 0x6cf   : > { %4684 = vmatmul.f32.gmra.mxu3 %v10419_v14  ;;  %v10420_v14 = vld [vmem:[%s18599_s3 + $0x1398] sm:$0xff] }
 0x6d2   : > { %v4637_v58 = vpop.f32.mrf.mxu3 }
 0x6d3   : > { %v4819_v44 = vpop.f32.mrf.mxu0  ;;  %v15304_v9 = vpop.f32.mrf.mxu1  ;;  %v4638_v3 = vadd.f32 %v4637_v58, %v4453_v37  ;;  %v18940_v58 = vld [vmem:[#allocation117_spill] sm:$0xff] }
 0x6d4   : > { %18935 = vst [vmem:[#allocation37_spill] sm:$0xff] %v15304_v9  ;;  %v4820_v29 = vadd.f32 %v4819_v44, %v4635_v31  ;;  %v18939_v31 = vld [vmem:[#allocation32_spill] sm:$0xff]  ;;  %v10617_v9 = vld [vmem:[%s18599_s3 + $0x1638] sm:$0xff] }
 0x6d5   : > { %v4456_v44 = vadd.f32 %v18940_v58, %v18939_v31 }
 0x6d6   : > { %10509 = vmatmul.msk.f32.gmra.mxu0 %vm1016_vm1, %v10416_v62  ;;  %10549 = vmatmul.msk.f32.gmra.mxu1 %vm3066_vm2, %v4820_v29 }
 0x6d7   : > { %4687 = vmatmul.f32.gmra.mxu3 %v10423_v40  ;;  %v15336_v40 = vpop.f32.mrf.mxu2 }
 0x6da   : > { %v4640_v51 = vpop.f32.mrf.mxu3 }
 0x6db   : > { %v4822_v49 = vpop.f32.mrf.mxu0  ;;  %v15321_v22 = vpop.f32.mrf.mxu1  ;;  %v4641_v62 = vadd.f32 %v4640_v51, %v4456_v44  ;;  %v10650_v51 = vld [vmem:[%s18599_s3 + $0x1740] sm:$0xff] }
 0x6dc   : > { %18938 = vst [vmem:[#allocation83_spill] sm:$0xff] %v15321_v22  ;;  %v4823_v39 = vadd.f32 %v4822_v49, %v4638_v3  ;;  %v10431_v3 = vld [vmem:[%s18599_s3 + $0x13f0] sm:$0xff]  ;;  %5780 = vmatmul.f32.gmra.mxu2 %v10650_v51  ;;  %v18942_v49 = vld [vmem:[#allocation34_spill] sm:$0xff] }
 0x6dd   : > { %v10613_v22 = vld [vmem:[%s18599_s3 + $0x1618] sm:$0xff] }
 0x6de   : > { %10510 = vmatmul.msk.f32.gmra.mxu0 %vm1016_vm1, %v10420_v14  ;;  %10550 = vmatmul.msk.f32.gmra.mxu1 %vm3066_vm2, %v4823_v39  ;;  %v18943_v14 = vld [vmem:[#allocation122_spill] sm:$0xff] }
 0x6df   : > { %4690 = vmatmul.f32.gmra.mxu3 %v10427_v48  ;;  %v4459_v39 = vadd.f32 %v18943_v14, %v18942_v49  ;;  %v15353_v31 = vpop.f32.mrf.mxu2 }
 0x6e2   : > { %v4643_v29 = vpop.f32.mrf.mxu3 }
 0x6e3   : > { %v4825_v41 = vpop.f32.mrf.mxu0  ;;  %v15338_v38 = vpop.f32.mrf.mxu1  ;;  %v4644_v48 = vadd.f32 %v4643_v29, %v4459_v39  ;;  %v10654_v29 = vld [vmem:[%s18599_s3 + $0x1760] sm:$0xff] }
 0x6e4   : > { %18941 = vst [vmem:[#allocation111_spill] sm:$0xff] %v15338_v38  ;;  %v4826_v37 = vadd.f32 %v4825_v41, %v4641_v62  ;;  %v10428_v62 = vld [vmem:[%s18599_s3 + $0x13d8] sm:$0xff]  ;;  %5783 = vmatmul.f32.gmra.mxu2 %v10654_v29 }
 0x6e5   : > { %v18948_v29 = vld [vmem:[#allocation90_spill] sm:$0xff] }
 0x6e6   : > { %10511 = vmatmul.msk.f32.gmra.mxu0 %vm1016_vm1, %v10424_v28  ;;  %10551 = vmatmul.msk.f32.gmra.mxu1 %vm3066_vm2, %v4826_v37  ;;  %v10435_v28 = vld [vmem:[%s18599_s3 + $0x1410] sm:$0xff] }
 0x6e7   : > { %4693 = vmatmul.f32.gmra.mxu3 %v10431_v3  ;;  %v18945_v37 = vld [vmem:[#allocation44_spill] sm:$0xff]  ;;  %v18946_v3 = vld [vmem:[#allocation126_spill] sm:$0xff]  ;;  %v15370_v39 = vpop.f32.mrf.mxu2 }
 0x6e8   : > { %v4462_v51 = vadd.f32 %v18946_v3, %v18945_v37  ;;  %v18949_v37 = vld [vmem:[#allocation138_spill] sm:$0xff] }
 0x6e9   : > { %v4465_v3 = vadd.f32 %v18949_v37, %v18948_v29  ;;  %v18952_v29 = vld [vmem:[#allocation141_spill] sm:$0xff] }
 0x6ea   : > { %v4646_v13 = vpop.f32.mrf.mxu3 }
 0x6eb   : > { %v4828_v58 = vpop.f32.mrf.mxu0  ;;  %v15355_v44 = vpop.f32.mrf.mxu1  ;;  %v4647_v49 = vadd.f32 %v4646_v13, %v4462_v51  ;;  %v10658_v13 = vld [vmem:[%s18599_s3 + $0x1780] sm:$0xff] }
 0x6ec   : > { %18944 = vst [vmem:[#allocation32_spill] sm:$0xff] %v15355_v44  ;;  %v4829_v41 = vadd.f32 %v4828_v58, %v4644_v48  ;;  %5786 = vmatmul.f32.gmra.mxu2 %v10658_v13  ;;  %v18951_v13 = vld [vmem:[#allocation36_spill] sm:$0xff] }
 0x6ed   : > { %v4468_v37 = vadd.f32 %v18952_v29, %v18951_v13 }
 0x6ee   : > { %10512 = vmatmul.msk.f32.gmra.mxu0 %vm1016_vm1, %v10428_v62  ;;  %10552 = vmatmul.msk.f32.gmra.mxu1 %vm3066_vm2, %v4829_v41  ;;  %v10432_v62 = vld [vmem:[%s18599_s3 + $0x13f8] sm:$0xff] }
 0x6ef   : > { %4696 = vmatmul.f32.gmra.mxu3 %v10435_v28  ;;  %v10439_v28 = vld [vmem:[%s18599_s3 + $0x1430] sm:$0xff] }
 0x6f2   : > { %v4649_v14 = vpop.f32.mrf.mxu3 }
 0x6f3   : > { %v4831_v48 = vpop.f32.mrf.mxu0  ;;  %v15372_v58 = vpop.f32.mrf.mxu1  ;;  %v4650_v51 = vadd.f32 %v4649_v14, %v4465_v3  ;;  %v10662_v14 = vld [vmem:[%s18599_s3 + $0x17a0] sm:$0xff] }
 0x6f4   : > { %18947 = vst [vmem:[#allocation117_spill] sm:$0xff] %v15372_v58  ;;  %v4832_v41 = vadd.f32 %v4831_v48, %v4647_v49  ;;  %v15387_v49 = vpop.f32.mrf.mxu2  ;;  %5789 = vmatmul.f32.gmra.mxu2 %v10662_v14  ;;  %v18954_v14 = vld [vmem:[#allocation110_spill] sm:$0xff] }
 0x6f5   : > { %v4471_v13 = vadd.f32 %v14906_v11, %v18954_v14  ;;  %v10670_v11 = vld [vmem:[%s18599_s3 + $0x17e0] sm:$0xff] }
 0x6f6   : > { %10513 = vmatmul.msk.f32.gmra.mxu0 %vm1016_vm1, %v10432_v62  ;;  %10553 = vmatmul.msk.f32.gmra.mxu1 %vm3066_vm2, %v4832_v41  ;;  %v10436_v62 = vld [vmem:[%s18599_s3 + $0x1418] sm:$0xff] }
 0x6f7   : > { %4699 = vmatmul.f32.gmra.mxu3 %v10439_v28  ;;  %v10443_v28 = vld [vmem:[%s18599_s3 + $0x1450] sm:$0xff] }
 0x6fa   : > { %v4652_v58 = vpop.f32.mrf.mxu3 }
 0x6fb   : > { %v4834_v48 = vpop.f32.mrf.mxu0  ;;  %v15389_v44 = vpop.f32.mrf.mxu1  ;;  %v4653_v3 = vadd.f32 %v4652_v58, %v4468_v37  ;;  %v10666_v58 = vld [vmem:[%s18599_s3 + $0x17c0] sm:$0xff] }
 0x6fc   : > { %18950 = vst [vmem:[#allocation34_spill] sm:$0xff] %v15389_v44  ;;  %v4835_v41 = vadd.f32 %v4834_v48, %v4650_v51  ;;  %v15404_v51 = vpop.f32.mrf.mxu2  ;;  %5792 = vmatmul.f32.gmra.mxu2 %v10666_v58 }
 0x6fe   : > { %10514 = vmatmul.msk.f32.gmra.mxu0 %vm1016_vm1, %v10436_v62  ;;  %10554 = vmatmul.msk.f32.gmra.mxu1 %vm3066_vm2, %v4835_v41  ;;  %v10440_v62 = vld [vmem:[%s18599_s3 + $0x1438] sm:$0xff] }
 0x6ff   : > { %4702 = vmatmul.f32.gmra.mxu3 %v10443_v28  ;;  %v10447_v28 = vld [vmem:[%s18599_s3 + $0x1470] sm:$0xff] }
 0x702   : > { %v4655_v44 = vpop.f32.mrf.mxu3 }
 0x703   : > { %v4837_v48 = vpop.f32.mrf.mxu0  ;;  %v15406_v38 = vpop.f32.mrf.mxu1  ;;  %v4656_v29 = vadd.f32 %v4655_v44, %v4471_v13  ;;  %v18956_v44 = vld [vmem:[#allocation114_spill] sm:$0xff] }
 0x704   : > { %18953 = vst [vmem:[#allocation122_spill] sm:$0xff] %v15406_v38  ;;  %v4838_v41 = vadd.f32 %v4837_v48, %v4653_v3  ;;  %v15421_v3 = vpop.f32.mrf.mxu2  ;;  %5795 = vmatmul.f32.gmra.mxu2 %v10670_v11  ;;  %v4474_v58 = vadd.f32 %v14920_v52, %v18956_v44  ;;  %v10674_v52 = vld [vmem:[%s18599_s3 + $0x1800] sm:$0xff] }
 0x706   : > { %10515 = vmatmul.msk.f32.gmra.mxu0 %vm1016_vm1, %v10440_v62  ;;  %10555 = vmatmul.msk.f32.gmra.mxu1 %vm3066_vm2, %v4838_v41  ;;  %v10444_v62 = vld [vmem:[%s18599_s3 + $0x1458] sm:$0xff] }
 0x707   : > { %4705 = vmatmul.f32.gmra.mxu3 %v10447_v28  ;;  %v10451_v28 = vld [vmem:[%s18599_s3 + $0x1490] sm:$0xff] }
 0x70a   : > { %v4658_v37 = vpop.f32.mrf.mxu3 }
 0x70b   : > { %v4840_v48 = vpop.f32.mrf.mxu0  ;;  %v15423_v38 = vpop.f32.mrf.mxu1  ;;  %v4659_v14 = vadd.f32 %v4658_v37, %v4474_v58  ;;  %v18958_v37 = vld [vmem:[#allocation118_spill] sm:$0xff] }
 0x70c   : > { %18955 = vst [vmem:[#allocation44_spill] sm:$0xff] %v15423_v38  ;;  %v4841_v41 = vadd.f32 %v4840_v48, %v4656_v29  ;;  %v15438_v29 = vpop.f32.mrf.mxu2  ;;  %5798 = vmatmul.f32.gmra.mxu2 %v10674_v52  ;;  %v4477_v11 = vadd.f32 %v14937_v2, %v18958_v37  ;;  %v10678_v2 = vld [vmem:[%s18599_s3 + $0x1820] sm:$0xff] }
 0x70e   : > { %10516 = vmatmul.msk.f32.gmra.mxu0 %vm1016_vm1, %v10444_v62  ;;  %10556 = vmatmul.msk.f32.gmra.mxu1 %vm3066_vm2, %v4841_v41  ;;  %v10448_v62 = vld [vmem:[%s18599_s3 + $0x1478] sm:$0xff] }
 0x70f   : > { %4708 = vmatmul.f32.gmra.mxu3 %v10451_v28  ;;  %v10455_v28 = vld [vmem:[%s18599_s3 + $0x14b0] sm:$0xff] }
 0x712   : > { %v4661_v13 = vpop.f32.mrf.mxu3 }
 0x713   : > { %v4843_v48 = vpop.f32.mrf.mxu0  ;;  %v15440_v38 = vpop.f32.mrf.mxu1  ;;  %v4662_v44 = vadd.f32 %v4661_v13, %v4477_v11  ;;  %v18960_v13 = vld [vmem:[#allocation121_spill] sm:$0xff] }
 0x714   : > { %18957 = vst [vmem:[#allocation126_spill] sm:$0xff] %v15440_v38  ;;  %v4844_v41 = vadd.f32 %v4843_v48, %v4659_v14  ;;  %v15455_v14 = vpop.f32.mrf.mxu2  ;;  %5801 = vmatmul.f32.gmra.mxu2 %v10678_v2  ;;  %v4480_v52 = vadd.f32 %v14954_v24, %v18960_v13  ;;  %v10682_v24 = vld [vmem:[%s18599_s3 + $0x1840] sm:$0xff] }
 0x716   : > { %10517 = vmatmul.msk.f32.gmra.mxu0 %vm1016_vm1, %v10448_v62  ;;  %10557 = vmatmul.msk.f32.gmra.mxu1 %vm3066_vm2, %v4844_v41  ;;  %v10452_v62 = vld [vmem:[%s18599_s3 + $0x1498] sm:$0xff] }
 0x717   : > { %4711 = vmatmul.f32.gmra.mxu3 %v10455_v28  ;;  %v10459_v28 = vld [vmem:[%s18599_s3 + $0x14d0] sm:$0xff] }
 0x71a   : > { %v4664_v58 = vpop.f32.mrf.mxu3 }
 0x71b   : > { %v4846_v48 = vpop.f32.mrf.mxu0  ;;  %v15457_v38 = vpop.f32.mrf.mxu1  ;;  %v4665_v37 = vadd.f32 %v4664_v58, %v4480_v52  ;;  %v18962_v58 = vld [vmem:[#allocation125_spill] sm:$0xff] }
 0x71c   : > { %18959 = vst [vmem:[#allocation90_spill] sm:$0xff] %v15457_v38  ;;  %v4847_v41 = vadd.f32 %v4846_v48, %v4662_v44  ;;  %v15472_v44 = vpop.f32.mrf.mxu2  ;;  %5804 = vmatmul.f32.gmra.mxu2 %v10682_v24  ;;  %v4483_v2 = vadd.f32 %v14972_v16, %v18962_v58  ;;  %v10686_v16 = vld [vmem:[%s18599_s3 + $0x1860] sm:$0xff] }
 0x71e   : > { %10518 = vmatmul.msk.f32.gmra.mxu0 %vm1016_vm1, %v10452_v62  ;;  %10558 = vmatmul.msk.f32.gmra.mxu1 %vm3066_vm2, %v4847_v41  ;;  %v10456_v62 = vld [vmem:[%s18599_s3 + $0x14b8] sm:$0xff] }
 0x71f   : > { %4714 = vmatmul.f32.gmra.mxu3 %v10459_v28  ;;  %v10463_v28 = vld [vmem:[%s18599_s3 + $0x14f0] sm:$0xff] }
 0x722   : > { %v4667_v11 = vpop.f32.mrf.mxu3 }
 0x723   : > { %v4849_v48 = vpop.f32.mrf.mxu0  ;;  %v15474_v38 = vpop.f32.mrf.mxu1  ;;  %v4668_v13 = vadd.f32 %v4667_v11, %v4483_v2  ;;  %v18964_v11 = vld [vmem:[#allocation129_spill] sm:$0xff] }
 0x724   : > { %18961 = vst [vmem:[#allocation138_spill] sm:$0xff] %v15474_v38  ;;  %v4850_v41 = vadd.f32 %v4849_v48, %v4665_v37  ;;  %v15489_v37 = vpop.f32.mrf.mxu2  ;;  %5807 = vmatmul.f32.gmra.mxu2 %v10686_v16  ;;  %v4486_v24 = vadd.f32 %v14986_v55, %v18964_v11  ;;  %v10690_v55 = vld [vmem:[%s18599_s3 + $0x1880] sm:$0xff] }
 0x726   : > { %10519 = vmatmul.msk.f32.gmra.mxu0 %vm1016_vm1, %v10456_v62  ;;  %10559 = vmatmul.msk.f32.gmra.mxu1 %vm3066_vm2, %v4850_v41  ;;  %v10460_v62 = vld [vmem:[%s18599_s3 + $0x14d8] sm:$0xff] }
 0x727   : > { %4717 = vmatmul.f32.gmra.mxu3 %v10463_v28  ;;  %v10579_v28 = vld [vmem:[%s18599_s3 + $0x1508] sm:$0xff] }
 0x72a   : > { %v4670_v52 = vpop.f32.mrf.mxu3 }
 0x72b   : > { %v4852_v48 = vpop.f32.mrf.mxu0  ;;  %v15491_v38 = vpop.f32.mrf.mxu1  ;;  %v4671_v58 = vadd.f32 %v4670_v52, %v4486_v24  ;;  %v18966_v52 = vld [vmem:[#allocation132_spill] sm:$0xff] }
 0x72c   : > { %18963 = vst [vmem:[#allocation36_spill] sm:$0xff] %v15491_v38  ;;  %v4853_v41 = vadd.f32 %v4852_v48, %v4668_v13  ;;  %v15506_v13 = vpop.f32.mrf.mxu2  ;;  %5810 = vmatmul.f32.gmra.mxu2 %v10690_v55  ;;  %v4489_v16 = vadd.f32 %v15003_v56, %v18966_v52  ;;  %v10694_v56 = vld [vmem:[%s18599_s3 + $0x18a0] sm:$0xff] }
 0x72e   : > { %10520 = vmatmul.msk.f32.gmra.mxu0 %vm1016_vm1, %v10460_v62  ;;  %10560 = vmatmul.msk.f32.gmra.mxu1 %vm3066_vm2, %v4853_v41  ;;  %v10464_v62 = vld [vmem:[%s18599_s3 + $0x14f8] sm:$0xff] }
 0x72f   : > { %5911 = vmatmul.f32.vlgmr.msra.gmra.mxu3 %v10579_v28  ;;  %v10583_v28 = vld [vmem:[%s18599_s3 + $0x1528] sm:$0xff] }
 0x732   : > { %v4673_v2 = vpop.f32.mrf.mxu3 }
 0x733   : > { %v4855_v48 = vpop.f32.mrf.mxu0  ;;  %v15508_v38 = vpop.f32.mrf.mxu1  ;;  %v4674_v11 = vadd.f32 %v4673_v2, %v4489_v16  ;;  %v18968_v2 = vld [vmem:[#allocation135_spill] sm:$0xff] }
 0x734   : > { %18965 = vst [vmem:[#allocation141_spill] sm:$0xff] %v15508_v38  ;;  %v4856_v41 = vadd.f32 %v4855_v48, %v4671_v58  ;;  %v15523_v58 = vpop.f32.mrf.mxu2  ;;  %5813 = vmatmul.f32.gmra.mxu2 %v10694_v56  ;;  %v4492_v55 = vadd.f32 %v15020_v18, %v18968_v2  ;;  %v10698_v18 = vld [vmem:[%s18599_s3 + $0x18c0] sm:$0xff] }
 0x736   : > { %10521 = vmatmul.msk.f32.gmra.mxu0 %vm1016_vm1, %v10464_v62  ;;  %10561 = vmatmul.msk.f32.gmra.mxu1 %vm3066_vm2, %v4856_v41  ;;  %v10580_v62 = vld [vmem:[%s18599_s3 + $0x1510] sm:$0xff] }
 0x737   : > { %5914 = vmatmul.f32.gmra.mxu3 %v10583_v28  ;;  %v10587_v28 = vld [vmem:[%s18599_s3 + $0x1548] sm:$0xff] }
 0x73a   : > { %v4676_v24 = vpop.f32.mrf.mxu3 }
 0x73b   : > { %v4858_v48 = vpop.f32.mrf.mxu0  ;;  %v15525_v38 = vpop.f32.mrf.mxu1  ;;  %v4677_v52 = vadd.f32 %v4676_v24, %v4492_v55  ;;  %v18970_v24 = vld [vmem:[#allocation139_spill] sm:$0xff] }
 0x73c   : > { %18967 = vst [vmem:[#allocation110_spill] sm:$0xff] %v15525_v38  ;;  %v4859_v41 = vadd.f32 %v4858_v48, %v4674_v11  ;;  %v15539_v38 = vpop.f32.mrf.mxu2  ;;  %5816 = vmatmul.f32.gmra.mxu2 %v10698_v18  ;;  %v4495_v56 = vadd.f32 %v15038_v7, %v18970_v24  ;;  %v10702_v7 = vld [vmem:[%s18599_s3 + $0x18e0] sm:$0xff] }
 0x73e   : > { %10562 = vmatmul.msk.f32.gmra.mxu1 %vm3066_vm2, %v4859_v41  ;;  %6096 = vmatmul.f32.vlgmr.msra.gmra.mxu0 %v10580_v62  ;;  %v10584_v62 = vld [vmem:[%s18599_s3 + $0x1530] sm:$0xff] }
 0x73f   : > { %5917 = vmatmul.f32.gmra.mxu3 %v10587_v28  ;;  %v10591_v28 = vld [vmem:[%s18599_s3 + $0x1568] sm:$0xff] }
 0x742   : > { %v4679_v16 = vpop.f32.mrf.mxu3 }
 0x743   : > { %v4861_v11 = vpop.f32.mrf.mxu0  ;;  %v15541_v48 = vpop.f32.mrf.mxu1  ;;  %v4680_v2 = vadd.f32 %v4679_v16, %v4495_v56  ;;  %v18972_v16 = vld [vmem:[#allocation105_spill] sm:$0xff] }
 0x744   : > { %18969 = vst [vmem:[#allocation114_spill] sm:$0xff] %v15541_v48  ;;  %v4862_v41 = vadd.f32 %v4861_v11, %v4677_v52  ;;  %v15555_v48 = vpop.f32.mrf.mxu2  ;;  %5819 = vmatmul.f32.gmra.mxu2 %v10702_v7  ;;  %v4498_v18 = vadd.f32 %v15055_v15, %v18972_v16  ;;  %v10706_v15 = vld [vmem:[%s18599_s3 + $0x1900] sm:$0xff] }
 0x746   : > { %10563 = vmatmul.msk.f32.gmra.mxu1 %vm3066_vm2, %v4862_v41  ;;  %6099 = vmatmul.f32.gmra.mxu0 %v10584_v62  ;;  %v10588_v62 = vld [vmem:[%s18599_s3 + $0x1550] sm:$0xff] }
 0x747   : > { %5920 = vmatmul.f32.gmra.mxu3 %v10591_v28  ;;  %v10595_v28 = vld [vmem:[%s18599_s3 + $0x1588] sm:$0xff] }
 0x74a   : > { %v4682_v55 = vpop.f32.mrf.mxu3 }
 0x74b   : > { %v4864_v52 = vpop.f32.mrf.mxu0  ;;  %v15557_v11 = vpop.f32.mrf.mxu1  ;;  %v4683_v24 = vadd.f32 %v4682_v55, %v4498_v18  ;;  %v18974_v55 = vld [vmem:[#allocation106_spill] sm:$0xff] }
 0x74c   : > { %18971 = vst [vmem:[#allocation118_spill] sm:$0xff] %v15557_v11  ;;  %v4865_v41 = vadd.f32 %v4864_v52, %v4680_v2  ;;  %v15571_v11 = vpop.f32.mrf.mxu2  ;;  %5822 = vmatmul.f32.gmra.mxu2 %v10706_v15  ;;  %v4501_v7 = vadd.f32 %v15075_v25, %v18974_v55  ;;  %v10710_v25 = vld [vmem:[%s18599_s3 + $0x1920] sm:$0xff] }
 0x74e   : > { %10564 = vmatmul.msk.f32.gmra.mxu1 %vm3066_vm2, %v4865_v41  ;;  %6102 = vmatmul.f32.gmra.mxu0 %v10588_v62  ;;  %v10592_v62 = vld [vmem:[%s18599_s3 + $0x1570] sm:$0xff] }
 0x74f   : > { %5923 = vmatmul.f32.gmra.mxu3 %v10595_v28  ;;  %v10599_v28 = vld [vmem:[%s18599_s3 + $0x15a8] sm:$0xff] }
 0x752   : > { %v4685_v56 = vpop.f32.mrf.mxu3 }
 0x753   : > { %v4867_v2 = vpop.f32.mrf.mxu0  ;;  %v15573_v52 = vpop.f32.mrf.mxu1  ;;  %v4686_v16 = vadd.f32 %v4685_v56, %v4501_v7  ;;  %v4504_v56 = vadd.f32 %v15095_v8, %v14928_v54  ;;  %v10714_v54 = vld [vmem:[%s18599_s3 + $0x1940] sm:$0xff]  ;;  %v4507_v8 = vadd.f32 %v15119_v12, %v14944_v26  ;;  %v4510_v12 = vadd.f32 %v15136_v46, %v14960_v17 }
 0x754   : > { %18973 = vst [vmem:[#allocation121_spill] sm:$0xff] %v15573_v52  ;;  %v4868_v41 = vadd.f32 %v4867_v2, %v4683_v24  ;;  %v15587_v52 = vpop.f32.mrf.mxu2  ;;  %5825 = vmatmul.f32.gmra.mxu2 %v10710_v25  ;;  %v10718_v26 = vld [vmem:[%s18599_s3 + $0x1960] sm:$0xff]  ;;  %v4513_v46 = vadd.f32 %v15158_v53, %v14977_v19  ;;  %v4516_v53 = vadd.f32 %v15178_v27, %v14994_v4 }
 0x755   : > { %v10722_v17 = vld [vmem:[%s18599_s3 + $0x1980] sm:$0xff]  ;;  %v4519_v27 = vadd.f32 %v15202_v32, %v15010_v6  ;;  %v4522_v32 = vadd.f32 %v15219_v59, %v15026_v60  ;;  %v4525_v59 = vadd.f32 %v15241_v5, %v15043_v50  ;;  %v4528_v5 = vadd.f32 %v15261_v33, %v15063_v57 }
 0x756   : > { %10565 = vmatmul.msk.f32.gmra.mxu1 %vm3066_vm2, %v4868_v41  ;;  %6105 = vmatmul.f32.gmra.mxu0 %v10592_v62  ;;  %v10596_v62 = vld [vmem:[%s18599_s3 + $0x1590] sm:$0xff]  ;;  %v10726_v19 = vld [vmem:[%s18599_s3 + $0x19a0] sm:$0xff]  ;;  %v4531_v33 = vadd.f32 %v15285_v20, %v15085_v47  ;;  %v4534_v20 = vadd.f32 %v15302_v21, %v15104_v36 }
 0x757   : > { %5926 = vmatmul.f32.gmra.mxu3 %v10599_v28  ;;  %v10603_v28 = vld [vmem:[%s18599_s3 + $0x15c8] sm:$0xff]  ;;  %v10730_v4 = vld [vmem:[%s18599_s3 + $0x19c0] sm:$0xff] }
 0x758   : > { %v10734_v6 = vld [vmem:[%s18599_s3 + $0x19e0] sm:$0xff] }
 0x759   : > { %v10738_v60 = vld [vmem:[%s18599_s3 + $0x1a00] sm:$0xff] }
 0x75a   : > { %v4688_v18 = vpop.f32.mrf.mxu3  ;;  %v10742_v50 = vld [vmem:[%s18599_s3 + $0x1a20] sm:$0xff] }
 0x75b   : > { %v4870_v24 = vpop.f32.mrf.mxu0  ;;  %v15589_v2 = vpop.f32.mrf.mxu1  ;;  %v4689_v15 = vadd.f32 %v4688_v18, %v4504_v56  ;;  %v10746_v57 = vld [vmem:[%s18599_s3 + $0x1a40] sm:$0xff] }
 0x75c   : > { %18975 = vst [vmem:[#allocation125_spill] sm:$0xff] %v15589_v2  ;;  %v4871_v41 = vadd.f32 %v4870_v24, %v4686_v16  ;;  %v15603_v7 = vpop.f32.mrf.mxu2  ;;  %5828 = vmatmul.f32.gmra.mxu2 %v10714_v54  ;;  %v10750_v47 = vld [vmem:[%s18599_s3 + $0x1a60] sm:$0xff] }
 0x75d   : > { %v10754_v36 = vld [vmem:[%s18599_s3 + $0x1a80] sm:$0xff] }
 0x75e   : > { %10566 = vmatmul.msk.f32.gmra.mxu1 %vm3066_vm2, %v4871_v41  ;;  %6108 = vmatmul.f32.gmra.mxu0 %v10596_v62  ;;  %v10600_v62 = vld [vmem:[%s18599_s3 + $0x15b0] sm:$0xff] }
 0x75f   : > { %5929 = vmatmul.f32.gmra.mxu3 %v10603_v28  ;;  %v10607_v28 = vld [vmem:[%s18599_s3 + $0x15e8] sm:$0xff] }
 0x762   : > { %v4691_v55 = vpop.f32.mrf.mxu3 }
 0x763   : > { %v4873_v16 = vpop.f32.mrf.mxu0  ;;  %v15605_v24 = vpop.f32.mrf.mxu1  ;;  %v4692_v18 = vadd.f32 %v4691_v55, %v4507_v8 }
 0x764   : > { %18976 = vst [vmem:[#allocation129_spill] sm:$0xff] %v15605_v24  ;;  %v4874_v41 = vadd.f32 %v4873_v16, %v4689_v15  ;;  %v15619_v56 = vpop.f32.mrf.mxu2  ;;  %5831 = vmatmul.f32.gmra.mxu2 %v10718_v26  ;;  %v10664_v24 = vld [vmem:[%s18599_s3 + $0x17b0] sm:$0xff] }
 0x766   : > { %10567 = vmatmul.msk.f32.gmra.mxu1 %vm3066_vm2, %v4874_v41  ;;  %6111 = vmatmul.f32.gmra.mxu0 %v10600_v62  ;;  %v10604_v62 = vld [vmem:[%s18599_s3 + $0x15d0] sm:$0xff] }
 0x767   : > { %5932 = vmatmul.f32.gmra.mxu3 %v10607_v28  ;;  %v10611_v28 = vld [vmem:[%s18599_s3 + $0x1608] sm:$0xff] }
 0x76a   : > { %v4694_v25 = vpop.f32.mrf.mxu3 }
 0x76b   : > { %v4876_v15 = vpop.f32.mrf.mxu0  ;;  %v15621_v16 = vpop.f32.mrf.mxu1  ;;  %v4695_v55 = vadd.f32 %v4694_v25, %v4510_v12 }
 0x76c   : > { %18977 = vst [vmem:[#allocation132_spill] sm:$0xff] %v15621_v16  ;;  %v4877_v41 = vadd.f32 %v4876_v15, %v4692_v18  ;;  %v15635_v8 = vpop.f32.mrf.mxu2  ;;  %5834 = vmatmul.f32.gmra.mxu2 %v10722_v17 }
 0x76e   : > { %10568 = vmatmul.msk.f32.gmra.mxu1 %vm3066_vm2, %v4877_v41  ;;  %6114 = vmatmul.f32.gmra.mxu0 %v10604_v62  ;;  %v10608_v62 = vld [vmem:[%s18599_s3 + $0x15f0] sm:$0xff] }
 0x76f   : > { %5935 = vmatmul.f32.gmra.mxu3 %v10611_v28  ;;  %v10615_v28 = vld [vmem:[%s18599_s3 + $0x1628] sm:$0xff] }
 0x772   : > { %v4697_v54 = vpop.f32.mrf.mxu3 }
 0x773   : > { %v4879_v18 = vpop.f32.mrf.mxu0  ;;  %v15637_v15 = vpop.f32.mrf.mxu1  ;;  %v4698_v25 = vadd.f32 %v4697_v54, %v4513_v46 }
 0x774   : > { %18978 = vst [vmem:[#allocation135_spill] sm:$0xff] %v15637_v15  ;;  %v4880_v41 = vadd.f32 %v4879_v18, %v4695_v55  ;;  %v15651_v12 = vpop.f32.mrf.mxu2  ;;  %5837 = vmatmul.f32.gmra.mxu2 %v10726_v19  ;;  %v10597_v15 = vld [vmem:[%s18599_s3 + $0x1598] sm:$0xff] }
 0x776   : > { %10569 = vmatmul.msk.f32.gmra.mxu1 %vm3066_vm2, %v4880_v41  ;;  %6117 = vmatmul.f32.gmra.mxu0 %v10608_v62  ;;  %v10612_v62 = vld [vmem:[%s18599_s3 + $0x1610] sm:$0xff] }
 0x777   : > { %5938 = vmatmul.f32.gmra.mxu3 %v10615_v28  ;;  %v10619_v28 = vld [vmem:[%s18599_s3 + $0x1648] sm:$0xff] }
 0x77a   : > { %v4700_v26 = vpop.f32.mrf.mxu3 }
 0x77b   : > { %v4882_v55 = vpop.f32.mrf.mxu0  ;;  %v15653_v18 = vpop.f32.mrf.mxu1  ;;  %v4701_v54 = vadd.f32 %v4700_v26, %v4516_v53 }
 0x77c   : > { %18979 = vst [vmem:[#allocation139_spill] sm:$0xff] %v15653_v18  ;;  %v4883_v41 = vadd.f32 %v4882_v55, %v4698_v25  ;;  %v15667_v46 = vpop.f32.mrf.mxu2  ;;  %5840 = vmatmul.f32.gmra.mxu2 %v10730_v4 }
 0x77e   : > { %10570 = vmatmul.msk.f32.gmra.mxu1 %vm3066_vm2, %v4883_v41  ;;  %6120 = vmatmul.f32.gmra.mxu0 %v10612_v62  ;;  %v10616_v62 = vld [vmem:[%s18599_s3 + $0x1630] sm:$0xff] }
 0x77f   : > { %5941 = vmatmul.f32.gmra.mxu3 %v10619_v28  ;;  %v10623_v28 = vld [vmem:[%s18599_s3 + $0x1668] sm:$0xff] }
 0x782   : > { %v4703_v17 = vpop.f32.mrf.mxu3 }
 0x783   : > { %v4885_v25 = vpop.f32.mrf.mxu0  ;;  %v15669_v55 = vpop.f32.mrf.mxu1  ;;  %v4704_v26 = vadd.f32 %v4703_v17, %v4519_v27 }
 0x784   : > { %18980 = vst [vmem:[#allocation105_spill] sm:$0xff] %v15669_v55  ;;  %v4886_v41 = vadd.f32 %v4885_v25, %v4701_v54  ;;  %v15683_v53 = vpop.f32.mrf.mxu2  ;;  %5843 = vmatmul.f32.gmra.mxu2 %v10734_v6  ;;  %v10593_v55 = vld [vmem:[%s18599_s3 + $0x1578] sm:$0xff] }
 0x786   : > { %10571 = vmatmul.msk.f32.gmra.mxu1 %vm3066_vm2, %v4886_v41  ;;  %6123 = vmatmul.f32.gmra.mxu0 %v10616_v62  ;;  %v10620_v62 = vld [vmem:[%s18599_s3 + $0x1650] sm:$0xff] }
 0x787   : > { %5944 = vmatmul.f32.gmra.mxu3 %v10623_v28  ;;  %v10627_v28 = vld [vmem:[%s18599_s3 + $0x1688] sm:$0xff] }
 0x78a   : > { %v4706_v19 = vpop.f32.mrf.mxu3 }
 0x78b   : > { %v4888_v54 = vpop.f32.mrf.mxu0  ;;  %v15685_v25 = vpop.f32.mrf.mxu1  ;;  %v4707_v17 = vadd.f32 %v4706_v19, %v4522_v32 }
 0x78c   : > { %18981 = vst [vmem:[#allocation106_spill] sm:$0xff] %v15685_v25  ;;  %v4889_v41 = vadd.f32 %v4888_v54, %v4704_v26  ;;  %v15699_v27 = vpop.f32.mrf.mxu2  ;;  %5846 = vmatmul.f32.gmra.mxu2 %v10738_v60  ;;  %v10656_v25 = vld [vmem:[%s18599_s3 + $0x1770] sm:$0xff] }
 0x78d   : > { %18982 = vst [vmem:[#allocation144_spill] sm:$0xff] %v15699_v27  ;;  %v10708_v27 = vld [vmem:[%s18599_s3 + $0x1910] sm:$0xff] }
 0x78e   : > { %10572 = vmatmul.msk.f32.gmra.mxu1 %vm3066_vm2, %v4889_v41  ;;  %6126 = vmatmul.f32.gmra.mxu0 %v10620_v62  ;;  %v10624_v62 = vld [vmem:[%s18599_s3 + $0x1670] sm:$0xff] }
 0x78f   : > { %5947 = vmatmul.f32.gmra.mxu3 %v10627_v28  ;;  %v10631_v28 = vld [vmem:[%s18599_s3 + $0x16a8] sm:$0xff] }
 0x792   : > { %v4709_v4 = vpop.f32.mrf.mxu3 }
 0x793   : > { %v4891_v26 = vpop.f32.mrf.mxu0  ;;  %v15701_v54 = vpop.f32.mrf.mxu1  ;;  %v4710_v19 = vadd.f32 %v4709_v4, %v4525_v59 }
 0x794   : > { %18983 = vst [vmem:[#allocation145_spill] sm:$0xff] %v15701_v54  ;;  %v4892_v41 = vadd.f32 %v4891_v26, %v4707_v17  ;;  %v15715_v32 = vpop.f32.mrf.mxu2  ;;  %5849 = vmatmul.f32.gmra.mxu2 %v10742_v50 }
 0x795   : > { %18984 = vst [vmem:[#allocation146_spill] sm:$0xff] %v15715_v32  ;;  %v10641_v32 = vld [vmem:[%s18599_s3 + $0x16f8] sm:$0xff] }
 0x796   : > { %10573 = vmatmul.msk.f32.gmra.mxu1 %vm3066_vm2, %v4892_v41  ;;  %6129 = vmatmul.f32.gmra.mxu0 %v10624_v62  ;;  %v10628_v62 = vld [vmem:[%s18599_s3 + $0x1690] sm:$0xff] }
 0x797   : > { %5950 = vmatmul.f32.gmra.mxu3 %v10631_v28  ;;  %v10635_v28 = vld [vmem:[%s18599_s3 + $0x16c8] sm:$0xff] }
 0x79a   : > { %v4712_v6 = vpop.f32.mrf.mxu3 }
 0x79b   : > { %v4894_v17 = vpop.f32.mrf.mxu0  ;;  %v15717_v26 = vpop.f32.mrf.mxu1  ;;  %v4713_v4 = vadd.f32 %v4712_v6, %v4528_v5 }
 0x79c   : > { %18985 = vst [vmem:[#allocation147_spill] sm:$0xff] %v15717_v26  ;;  %v4895_v41 = vadd.f32 %v4894_v17, %v4710_v19  ;;  %v15731_v59 = vpop.f32.mrf.mxu2  ;;  %v10632_v26 = vld [vmem:[%s18599_s3 + $0x16b0] sm:$0xff]  ;;  %5852 = vmatmul.f32.gmra.mxu2 %v10746_v57 }
 0x79d   : > { %18986 = vst [vmem:[#allocation148_spill] sm:$0xff] %v15731_v59  ;;  %v10707_v59 = vld [vmem:[%s18599_s3 + $0x1908] sm:$0xff] }
 0x79e   : > { %10574 = vmatmul.msk.f32.gmra.mxu1 %vm3066_vm2, %v4895_v41  ;;  %6132 = vmatmul.f32.gmra.mxu0 %v10628_v62  ;;  %v10639_v62 = vld [vmem:[%s18599_s3 + $0x16e8] sm:$0xff] }
 0x79f   : > { %5953 = vmatmul.f32.gmra.mxu3 %v10635_v28 }
 0x7a2   : > { %v4715_v60 = vpop.f32.mrf.mxu3 }
 0x7a3   : > { %v4897_v19 = vpop.f32.mrf.mxu0  ;;  %v15733_v17 = vpop.f32.mrf.mxu1  ;;  %v4716_v6 = vadd.f32 %v4715_v60, %v4531_v33 }
 0x7a4   : > { %18987 = vst [vmem:[#allocation149_spill] sm:$0xff] %v15733_v17  ;;  %v4898_v54 = vadd.f32 %v4897_v19, %v4713_v4  ;;  %v15747_v28 = vpop.f32.mrf.mxu2  ;;  %v10636_v4 = vld [vmem:[%s18599_s3 + $0x16d0] sm:$0xff]  ;;  %5855 = vmatmul.f32.gmra.mxu2 %v10750_v47  ;;  %v10581_v47 = vld [vmem:[%s18599_s3 + $0x1518] sm:$0xff] }
 0x7a5   : > { %18988 = vst [vmem:[#allocation150_spill] sm:$0xff] %v15747_v28 }
 0x7a6   : > { %10575 = vmatmul.msk.f32.gmra.mxu1 %vm3066_vm2, %v4898_v54  ;;  %6135 = vmatmul.f32.gmra.mxu0 %v10632_v26  ;;  %v10643_v54 = vld [vmem:[%s18599_s3 + $0x1708] sm:$0xff] }
 0x7a7   : > { %5956 = vmatmul.f32.gmra.mxu3 %v10639_v62 }
 0x7aa   : > { %v4718_v41 = vpop.f32.mrf.mxu3 }
 0x7ab   : > { %v4900_v50 = vpop.f32.mrf.mxu0  ;;  %v15749_v5 = vpop.f32.mrf.mxu1  ;;  %v4719_v26 = vadd.f32 %v4718_v41, %v4534_v20  ;;  %v10651_v20 = vld [vmem:[%s18599_s3 + $0x1748] sm:$0xff] }
 0x7ac   : > { %18989 = vst [vmem:[#allocation151_spill] sm:$0xff] %v15749_v5  ;;  %v4901_v19 = vadd.f32 %v4900_v50, %v4716_v6  ;;  %v15765_v62 = vpop.f32.mrf.mxu2  ;;  %v10640_v6 = vld [vmem:[%s18599_s3 + $0x16f0] sm:$0xff]  ;;  %5858 = vmatmul.f32.gmra.mxu2 %v10754_v36  ;;  %v10585_v36 = vld [vmem:[%s18599_s3 + $0x1538] sm:$0xff] }
 0x7ad   : > { %18990 = vst [vmem:[#allocation152_spill] sm:$0xff] %v15765_v62  ;;  %v10625_v62 = vld [vmem:[%s18599_s3 + $0x1678] sm:$0xff] }
 0x7ae   : > { %10576 = vmatmul.msk.f32.gmra.mxu1 %vm3066_vm2, %v4901_v19  ;;  %6138 = vmatmul.f32.gmra.mxu0 %v10636_v4  ;;  %v10647_v4 = vld [vmem:[%s18599_s3 + $0x1728] sm:$0xff] }
 0x7af   : > { %5959 = vmatmul.f32.gmra.mxu3 %v10643_v54  ;;  %v10644_v54 = vld [vmem:[%s18599_s3 + $0x1710] sm:$0xff] }
 0x7b2   : > { %v15763_v60 = vpop.f32.mrf.mxu3 }
 0x7b3   : > { %v4903_v57 = vpop.f32.mrf.mxu0  ;;  %v15767_v33 = vpop.f32.mrf.mxu1 }
 0x7b4   : > { %18991 = vst [vmem:[#allocation153_spill] sm:$0xff] %v15767_v33  ;;  %v4904_v50 = vadd.f32 %v4903_v57, %v4719_v26  ;;  %v15779_v21 = vpop.f32.mrf.mxu2  ;;  %v10758_v26 = vld [vmem:[%s18599_s3 + $0x1aa0] sm:$0xff]  ;;  %v10589_v33 = vld [vmem:[%s18599_s3 + $0x1558] sm:$0xff] }
 0x7b5   : > { %18992 = vst [vmem:[#allocation154_spill] sm:$0xff] %v15779_v21  ;;  %5861 = vmatmul.f32.gmra.mxu2 %v10758_v26  ;;  %v10684_v21 = vld [vmem:[%s18599_s3 + $0x1850] sm:$0xff] }
 0x7b6   : > { %10577 = vmatmul.msk.f32.gmra.mxu1 %vm3066_vm2, %v4904_v50  ;;  %6141 = vmatmul.f32.gmra.mxu0 %v10640_v6 }
 0x7b7   : > { %5962 = vmatmul.f32.gmra.mxu3 %v10647_v4  ;;  %v10648_v4 = vld [vmem:[%s18599_s3 + $0x1730] sm:$0xff] }
 0x7ba   : > { %v15781_v41 = vpop.f32.mrf.mxu3 }
 0x7bb   : > { %v15783_v19 = vpop.f32.mrf.mxu1  ;;  %v15798_v57 = vpop.f32.mrf.mxu0 }
 0x7bc   : > { %18993 = vst [vmem:[#allocation155_spill] sm:$0xff] %v15783_v19  ;;  %v15800_v6 = vpop.f32.mrf.mxu2  ;;  %v10652_v19 = vld [vmem:[%s18599_s3 + $0x1750] sm:$0xff] }
 0x7bd   : > { %18994 = vst [vmem:[#allocation156_spill] sm:$0xff] %v15800_v6  ;;  %v10680_v6 = vld [vmem:[%s18599_s3 + $0x1830] sm:$0xff] }
 0x7be   : > { %6144 = vmatmul.f32.gmra.mxu0 %v10644_v54  ;;  %10803 = vmatmul.msk.f32.vlgmr.msra.gmra.mxu1 %vm1016_vm1, %v10581_v47  ;;  %v10655_v54 = vld [vmem:[%s18599_s3 + $0x1768] sm:$0xff]  ;;  %v10762_v47 = vld [vmem:[%s18599_s3 + $0x1ac0] sm:$0xff] }
 0x7bf   : > { %5965 = vmatmul.f32.gmra.mxu3 %v10651_v20  ;;  %5864 = vmatmul.f32.gmra.mxu2 %v10762_v47 }
 0x7c2   : > { %v15816_v20 = vpop.f32.mrf.mxu3 }
 0x7c3   : > { %v15802_v50 = vpop.f32.mrf.mxu1  ;;  %v15829_v5 = vpop.f32.mrf.mxu0 }
 0x7c4   : > { %18995 = vst [vmem:[#allocation157_spill] sm:$0xff] %v15802_v50  ;;  %v15819_v26 = vpop.f32.mrf.mxu2 }
 0x7c5   : > { %18996 = vst [vmem:[#allocation158_spill] sm:$0xff] %v15819_v26 }
 0x7c6   : > { %6147 = vmatmul.f32.gmra.mxu0 %v10648_v4  ;;  %10804 = vmatmul.msk.f32.gmra.mxu1 %vm1016_vm1, %v10585_v36  ;;  %v10659_v4 = vld [vmem:[%s18599_s3 + $0x1788] sm:$0xff]  ;;  %v10766_v36 = vld [vmem:[%s18599_s3 + $0x1ae0] sm:$0xff] }
 0x7c7   : > { %5968 = vmatmul.f32.gmra.mxu3 %v10655_v54  ;;  %5867 = vmatmul.f32.gmra.mxu2 %v10766_v36 }
 0x7ca   : > { %v15838_v54 = vpop.f32.mrf.mxu3 }
 0x7cb   : > { %v15821_v50 = vpop.f32.mrf.mxu1 }
 0x7cc   : > { %18997 = vst [vmem:[#allocation159_spill] sm:$0xff] %v15821_v50  ;;  %v15840_v47 = vpop.f32.mrf.mxu2  ;;  %v10660_v50 = vld [vmem:[%s18599_s3 + $0x1790] sm:$0xff] }
 0x7cd   : > { %18998 = vst [vmem:[#allocation160_spill] sm:$0xff] %v15840_v47  ;;  %v10609_v47 = vld [vmem:[%s18599_s3 + $0x15f8] sm:$0xff] }
 0x7ce   : > { %6150 = vmatmul.f32.gmra.mxu0 %v10652_v19  ;;  %10805 = vmatmul.msk.f32.gmra.mxu1 %vm1016_vm1, %v10589_v33  ;;  %v10663_v33 = vld [vmem:[%s18599_s3 + $0x17a8] sm:$0xff]  ;;  %v10770_v19 = vld [vmem:[%s18599_s3 + $0x1b00] sm:$0xff] }
 0x7cf   : > { %5971 = vmatmul.f32.gmra.mxu3 %v10659_v4  ;;  %v15856_v4 = vpop.f32.mrf.mxu0  ;;  %5870 = vmatmul.f32.gmra.mxu2 %v10770_v19 }
 0x7d2   : > { %v15859_v36 = vpop.f32.mrf.mxu3 }
 0x7d3   : > { %v15842_v17 = vpop.f32.mrf.mxu1 }
 0x7d4   : > { %18999 = vst [vmem:[#allocation161_spill] sm:$0xff] %v15842_v17  ;;  %v15861_v18 = vpop.f32.mrf.mxu2 }
 0x7d5   : > { %19000 = vst [vmem:[#allocation162_spill] sm:$0xff] %v15861_v18  ;;  %v10605_v18 = vld [vmem:[%s18599_s3 + $0x15d8] sm:$0xff] }
 0x7d6   : > { %6153 = vmatmul.f32.gmra.mxu0 %v10656_v25  ;;  %10806 = vmatmul.msk.f32.gmra.mxu1 %vm1016_vm1, %v10593_v55  ;;  %v10667_v55 = vld [vmem:[%s18599_s3 + $0x17c8] sm:$0xff]  ;;  %v10774_v25 = vld [vmem:[%s18599_s3 + $0x1b20] sm:$0xff] }
 0x7d7   : > { %5974 = vmatmul.f32.gmra.mxu3 %v10663_v33  ;;  %5873 = vmatmul.f32.gmra.mxu2 %v10774_v25  ;;  %v15878_v33 = vpop.f32.mrf.mxu0 }
 0x7db   : > { %v15863_v17 = vpop.f32.mrf.mxu1 }
 0x7dc   : > { %19001 = vst [vmem:[#allocation163_spill] sm:$0xff] %v15863_v17  ;;  %v15880_v19 = vpop.f32.mrf.mxu2  ;;  %v15882_v17 = vpop.f32.mrf.mxu3 }
 0x7dd   : > { %19002 = vst [vmem:[#allocation164_spill] sm:$0xff] %v15880_v19  ;;  %v10668_v19 = vld [vmem:[%s18599_s3 + $0x17d0] sm:$0xff] }
 0x7de   : > { %6156 = vmatmul.f32.gmra.mxu0 %v10660_v50  ;;  %10807 = vmatmul.msk.f32.gmra.mxu1 %vm1016_vm1, %v10597_v15  ;;  %v10601_v50 = vld [vmem:[%s18599_s3 + $0x15b8] sm:$0xff]  ;;  %v10671_v15 = vld [vmem:[%s18599_s3 + $0x17e8] sm:$0xff] }
 0x7df   : > { %5977 = vmatmul.f32.gmra.mxu3 %v10667_v55  ;;  %v10778_v55 = vld [vmem:[%s18599_s3 + $0x1b40] sm:$0xff]  ;;  %v15899_v25 = vpop.f32.mrf.mxu0 }
 0x7e0   : > { %5876 = vmatmul.f32.gmra.mxu2 %v10778_v55 }
 0x7e3   : > { %v15884_v16 = vpop.f32.mrf.mxu1 }
 0x7e4   : > { %19003 = vst [vmem:[#allocation165_spill] sm:$0xff] %v15884_v16  ;;  %v15901_v16 = vpop.f32.mrf.mxu2 }
 0x7e5   : > { %19004 = vst [vmem:[#allocation166_spill] sm:$0xff] %v15901_v16  ;;  %v10672_v16 = vld [vmem:[%s18599_s3 + $0x17f0] sm:$0xff] }
 0x7e6   : > { %6159 = vmatmul.f32.gmra.mxu0 %v10664_v24  ;;  %10808 = vmatmul.msk.f32.gmra.mxu1 %vm1016_vm1, %v10601_v50  ;;  %v10675_v24 = vld [vmem:[%s18599_s3 + $0x1808] sm:$0xff]  ;;  %v10782_v50 = vld [vmem:[%s18599_s3 + $0x1b60] sm:$0xff] }
 0x7e7   : > { %5980 = vmatmul.f32.gmra.mxu3 %v10671_v15  ;;  %v15917_v15 = vpop.f32.mrf.mxu3  ;;  %v15930_v26 = vpop.f32.mrf.mxu0 }
 0x7e8   : > { %5879 = vmatmul.f32.gmra.mxu2 %v10782_v50 }
 0x7eb   : > { %v15903_v2 = vpop.f32.mrf.mxu1 }
 0x7ec   : > { %19005 = vst [vmem:[#allocation167_spill] sm:$0xff] %v15903_v2  ;;  %v15920_v55 = vpop.f32.mrf.mxu2 }
 0x7ed   : > { %19006 = vst [vmem:[#allocation168_spill] sm:$0xff] %v15920_v55  ;;  %v10676_v55 = vld [vmem:[%s18599_s3 + $0x1810] sm:$0xff] }
 0x7ee   : > { %6162 = vmatmul.f32.gmra.mxu0 %v10668_v19  ;;  %10809 = vmatmul.msk.f32.gmra.mxu1 %vm1016_vm1, %v10605_v18  ;;  %v10679_v18 = vld [vmem:[%s18599_s3 + $0x1828] sm:$0xff]  ;;  %v10786_v19 = vld [vmem:[%s18599_s3 + $0x1b80] sm:$0xff] }
 0x7ef   : > { %5983 = vmatmul.f32.gmra.mxu3 %v10675_v24  ;;  %v15939_v24 = vpop.f32.mrf.mxu3 }
 0x7f0   : > { %5882 = vmatmul.f32.gmra.mxu2 %v10786_v19 }
 0x7f3   : > { %v15922_v2 = vpop.f32.mrf.mxu1 }
 0x7f4   : > { %19007 = vst [vmem:[#allocation169_spill] sm:$0xff] %v15922_v2  ;;  %v15941_v50 = vpop.f32.mrf.mxu2 }
 0x7f5   : > { %19008 = vst [vmem:[#allocation170_spill] sm:$0xff] %v15941_v50 }
 0x7f6   : > { %6165 = vmatmul.f32.gmra.mxu0 %v10672_v16  ;;  %10810 = vmatmul.msk.f32.gmra.mxu1 %vm1016_vm1, %v10609_v47  ;;  %v10683_v16 = vld [vmem:[%s18599_s3 + $0x1848] sm:$0xff]  ;;  %v10790_v47 = vld [vmem:[%s18599_s3 + $0x1ba0] sm:$0xff] }
 0x7f7   : > { %5986 = vmatmul.f32.gmra.mxu3 %v10679_v18  ;;  %v15957_v18 = vpop.f32.mrf.mxu0  ;;  %v15960_v19 = vpop.f32.mrf.mxu3 }
 0x7f8   : > { %5885 = vmatmul.f32.gmra.mxu2 %v10790_v47 }
 0x7fb   : > { %v15943_v2 = vpop.f32.mrf.mxu1 }
 0x7fc   : > { %19009 = vst [vmem:[#allocation171_spill] sm:$0xff] %v15943_v2  ;;  %v15962_v2 = vpop.f32.mrf.mxu2 }
 0x7fd   : > { %19010 = vst [vmem:[#allocation172_spill] sm:$0xff] %v15962_v2 }
 0x7fe   : > { %6168 = vmatmul.f32.gmra.mxu0 %v10676_v55  ;;  %10811 = vmatmul.msk.f32.gmra.mxu1 %vm1016_vm1, %v10613_v22  ;;  %v10687_v22 = vld [vmem:[%s18599_s3 + $0x1868] sm:$0xff]  ;;  %v10794_v55 = vld [vmem:[%s18599_s3 + $0x1bc0] sm:$0xff] }
 0x7ff   : > { %5989 = vmatmul.f32.gmra.mxu3 %v10683_v16  ;;  %v15979_v16 = vpop.f32.mrf.mxu0 }
 0x800   : > { %5888 = vmatmul.f32.gmra.mxu2 %v10794_v55 }
 0x803   : > { %v15964_v50 = vpop.f32.mrf.mxu1 }
 0x804   : > { %19011 = vst [vmem:[#allocation173_spill] sm:$0xff] %v15964_v50  ;;  %v15981_v47 = vpop.f32.mrf.mxu2  ;;  %v15983_v50 = vpop.f32.mrf.mxu3 }
 0x805   : > { %19012 = vst [vmem:[#allocation174_spill] sm:$0xff] %v15981_v47 }
 0x806   : > { %6171 = vmatmul.f32.gmra.mxu0 %v10680_v6  ;;  %10812 = vmatmul.msk.f32.gmra.mxu1 %vm1016_vm1, %v10617_v9  ;;  %v10621_v6 = vld [vmem:[%s18599_s3 + $0x1658] sm:$0xff]  ;;  %v10691_v9 = vld [vmem:[%s18599_s3 + $0x1888] sm:$0xff] }
 0x807   : > { %5992 = vmatmul.f32.gmra.mxu3 %v10687_v22  ;;  %v10798_v22 = vld [vmem:[%s18599_s3 + $0x1be0] sm:$0xff]  ;;  %v16000_v55 = vpop.f32.mrf.mxu0 }
 0x808   : > { %5891 = vmatmul.f32.gmra.mxu2 %v10798_v22 }
 0x80b   : > { %v15985_v2 = vpop.f32.mrf.mxu1 }
 0x80c   : > { %19013 = vst [vmem:[#allocation175_spill] sm:$0xff] %v15985_v2  ;;  %v16002_v2 = vpop.f32.mrf.mxu2 }
 0x80d   : > { %19014 = vst [vmem:[#allocation176_spill] sm:$0xff] %v16002_v2  ;;  %v10692_v2 = vld [vmem:[%s18599_s3 + $0x1890] sm:$0xff] }
 0x80e   : > { %6174 = vmatmul.f32.gmra.mxu0 %v10684_v21  ;;  %10813 = vmatmul.msk.f32.gmra.mxu1 %vm1016_vm1, %v10621_v6  ;;  %v10695_v21 = vld [vmem:[%s18599_s3 + $0x18a8] sm:$0xff]  ;;  %v16015_v6 = vpop.f32.mrf.mxu3 }
 0x80f   : > { %5995 = vmatmul.f32.gmra.mxu3 %v10691_v9  ;;  %v10800_v9 = vld [vmem:[%s18599_s3 + $0x1bf0] sm:$0xff]  ;;  %v16034_v35 = vpop.f32.mrf.mxu0 }
 0x810   : > { %6261 = vmatmul.f32.vlgmr.msra.gmra.mxu2 %v10800_v9  ;;  %v6450_v9 = vld [vmem:[%s18646_s2 + $0x30] sm:$0xff] }
 0x813   : > { %v16004_v47 = vpop.f32.mrf.mxu1 }
 0x814   : > { %19015 = vst [vmem:[#allocation177_spill] sm:$0xff] %v16004_v47  ;;  %v16021_v22 = vpop.f32.mrf.mxu2 }
 0x815   : > { %19016 = vst [vmem:[#allocation178_spill] sm:$0xff] %v16021_v22 }
 0x816   : > { %6177 = vmatmul.f32.gmra.mxu0 %v10688_v42  ;;  %10814 = vmatmul.msk.f32.gmra.mxu1 %vm1016_vm1, %v10625_v62  ;;  %v10629_v42 = vld [vmem:[%s18599_s3 + $0x1698] sm:$0xff] }
 0x817   : > { %5998 = vmatmul.f32.gmra.mxu3 %v10695_v21  ;;  %v6451_v62 = vld [vmem:[%s18646_s2 + $0x38] sm:$0xff]  ;;  %v10699_v21 = vld [vmem:[%s18599_s3 + $0x18c8] sm:$0xff]  ;;  %s11315_s2 = smov 64  }
 0x818   : > { %6634 = vmatpush.msrb.mxu2 %v6451_v62  ;;  %v10633_v62 = vld [vmem:[%s18599_s3 + $0x16b8] sm:$0xff] }
 0x81a   : > { %6635 = vmatpush.msrb.mxu2 %v6450_v9 }
 0x81b   : > { %v16023_v47 = vpop.f32.mrf.mxu1 }
 0x81c   : > { %19017 = vst [vmem:[#allocation179_spill] sm:$0xff] %v16023_v47  ;;  %v16043_v47 = vpop.f32.mrf.mxu3  ;;  %v16045_v22 = vpop.f32.mrf.mxu2 }
 0x81d   : > { %19018 = vst [vmem:[#allocation180_spill] sm:$0xff] %v16045_v22  ;;  %v10637_v22 = vld [vmem:[%s18599_s3 + $0x16d8] sm:$0xff] }
 0x81e   : > { %6180 = vmatmul.f32.gmra.mxu0 %v10692_v2  ;;  %10815 = vmatmul.msk.f32.gmra.mxu1 %vm1016_vm1, %v10629_v42  ;;  %v10703_v2 = vld [vmem:[%s18599_s3 + $0x18e8] sm:$0xff]  ;;  %v16058_v42 = vpop.f32.mrf.mxu0 }
 0x81f   : > { %6001 = vmatmul.f32.gmra.mxu3 %v10699_v21 }
 0x823   : > { %v16047_v28 = vpop.f32.mrf.mxu1 }
 0x824   : > { %19019 = vst [vmem:[#allocation181_spill] sm:$0xff] %v16047_v28  ;;  %v16061_v21 = vpop.f32.mrf.mxu3  ;;  %v10700_v28 = vld [vmem:[%s18599_s3 + $0x18d0] sm:$0xff] }
 0x826   : > { %6183 = vmatmul.f32.gmra.mxu0 %v10696_v1  ;;  %10816 = vmatmul.msk.f32.gmra.mxu1 %vm1016_vm1, %v10633_v62  ;;  %v16074_v1 = vpop.f32.mrf.mxu2  ;;  %v16077_v62 = vpop.f32.mrf.mxu0 }
 0x827   : > { %6004 = vmatmul.f32.gmra.mxu3 %v10703_v2  ;;  %19021 = vst [vmem:[#allocation183_spill] sm:$0xff] %v16074_v1 }
 0x82b   : > { %v16063_v9 = vpop.f32.mrf.mxu1 }
 0x82c   : > { %19020 = vst [vmem:[#allocation182_spill] sm:$0xff] %v16063_v9  ;;  %v16079_v2 = vpop.f32.mrf.mxu3 }
 0x82e   : > { %6186 = vmatmul.f32.gmra.mxu0 %v10700_v28  ;;  %10817 = vmatmul.msk.f32.gmra.mxu1 %vm1016_vm1, %v10637_v22  ;;  %v10711_v28 = vld [vmem:[%s18599_s3 + $0x1928] sm:$0xff]  ;;  %v5913_v22 = vadd.f32 %v15763_v60, %v15319_v30  ;;  %v16098_v1 = vpop.f32.mrf.mxu0  ;;  %v5916_v30 = vadd.f32 %v15781_v41, %v15336_v40  ;;  %v5919_v41 = vadd.f32 %v15816_v20, %v15353_v31 }
 0x82f   : > { %6007 = vmatmul.f32.gmra.mxu3 %v10707_v59  ;;  %v16093_v59 = vpop.f32.mrf.mxu2  ;;  %v10719_v40 = vld [vmem:[%s18599_s3 + $0x1968] sm:$0xff]  ;;  %v5922_v31 = vadd.f32 %v15838_v54, %v15370_v39  ;;  %v5925_v39 = vadd.f32 %v15859_v36, %v15387_v49 }
 0x830   : > { %19023 = vst [vmem:[#allocation185_spill] sm:$0xff] %v16093_v59  ;;  %v10731_v49 = vld [vmem:[%s18599_s3 + $0x19c8] sm:$0xff] }
 0x833   : > { %v16081_v9 = vpop.f32.mrf.mxu1 }
 0x834   : > { %19022 = vst [vmem:[#allocation184_spill] sm:$0xff] %v16081_v9  ;;  %v6098_v9 = vadd.f32 %v15798_v57, %v5913_v22  ;;  %v16109_v59 = vpop.f32.mrf.mxu3  ;;  %v6101_v57 = vadd.f32 %v15829_v5, %v5916_v30 }
 0x836   : > { %6189 = vmatmul.f32.gmra.mxu0 %v10704_v43  ;;  %10818 = vmatmul.msk.f32.gmra.mxu1 %vm1016_vm1, %v10641_v32  ;;  %v10645_v43 = vld [vmem:[%s18599_s3 + $0x1718] sm:$0xff]  ;;  %v16124_v22 = vpop.f32.mrf.mxu0 }
 0x837   : > { %6010 = vmatmul.f32.gmra.mxu3 %v10711_v28  ;;  %v10715_v28 = vld [vmem:[%s18599_s3 + $0x1948] sm:$0xff]  ;;  %v16115_v60 = vpop.f32.mrf.mxu2 }
 0x83b   : > { %v6282_v63 = vpop.f32.mrf.mxu1 }
 0x83c   : > { %v6283_v32 = vadd.f32 %v6282_v63, %v6098_v9  ;;  %v10712_v9 = vld [vmem:[%s18599_s3 + $0x1930] sm:$0xff]  ;;  %v16130_v5 = vpop.f32.mrf.mxu3 }
 0x83e   : > { %6192 = vmatmul.f32.gmra.mxu0 %v10708_v27  ;;  %10819 = vmatmul.msk.f32.gmra.mxu1 %vm1016_vm1, %v10645_v43  ;;  %v10649_v27 = vld [vmem:[%s18599_s3 + $0x1738] sm:$0xff] }
 0x83f   : > { %6013 = vmatmul.f32.gmra.mxu3 %v10715_v28  ;;  %10859 = vmatmul.msk.f32.vlgmr.msrb.gmra.mxu2 %vm3066_vm2, %v6283_v32  ;;  %v6104_v32 = vadd.f32 %v15856_v4, %v5919_v41  ;;  %v16136_v28 = vpop.f32.mrf.mxu2  ;;  %v6107_v4 = vadd.f32 %v15878_v33, %v5922_v31  ;;  %v10720_v41 = vld [vmem:[%s18599_s3 + $0x1970] sm:$0xff]  ;;  %v6110_v33 = vadd.f32 %v15899_v25, %v5925_v39  ;;  %v10665_v39 = vld [vmem:[%s18599_s3 + $0x17b8] sm:$0xff] }
 0x840   : > { %v10724_v31 = vld [vmem:[%s18599_s3 + $0x1990] sm:$0xff]  ;;  %v5928_v25 = vadd.f32 %v15882_v17, %v15404_v51  ;;  %v5931_v51 = vadd.f32 %v15917_v15, %v15421_v3  ;;  %v10739_v3 = vld [vmem:[%s18599_s3 + $0x1a08] sm:$0xff] }
 0x843   : > { %v6285_v63 = vpop.f32.mrf.mxu1 }
 0x844   : > { %v6286_v43 = vadd.f32 %v6285_v63, %v6101_v57  ;;  %v10716_v57 = vld [vmem:[%s18599_s3 + $0x1950] sm:$0xff]  ;;  %v10653_v63 = vld [vmem:[%s18599_s3 + $0x1758] sm:$0xff]  ;;  %v16153_v20 = vpop.f32.mrf.mxu3 }
 0x846   : > { %6195 = vmatmul.f32.gmra.mxu0 %v10712_v9  ;;  %10820 = vmatmul.msk.f32.gmra.mxu1 %vm1016_vm1, %v10649_v27  ;;  %v10723_v27 = vld [vmem:[%s18599_s3 + $0x1988] sm:$0xff] }
 0x847   : > { %6016 = vmatmul.f32.gmra.mxu3 %v10719_v40  ;;  %10860 = vmatmul.msk.f32.gmra.mxu2 %vm3066_vm2, %v6286_v43  ;;  %v16147_v43 = vpop.f32.mrf.mxu0 }
 0x84b   : > { %v6288_v30 = vpop.f32.mrf.mxu1 }
 0x84c   : > { %v6289_v9 = vadd.f32 %v6288_v30, %v6104_v32  ;;  %v10657_v32 = vld [vmem:[%s18599_s3 + $0x1778] sm:$0xff] }
 0x84e   : > { %6198 = vmatmul.f32.gmra.mxu0 %v10716_v57  ;;  %10821 = vmatmul.msk.f32.gmra.mxu1 %vm1016_vm1, %v10653_v63  ;;  %v10727_v57 = vld [vmem:[%s18599_s3 + $0x19a8] sm:$0xff]  ;;  %v16165_v63 = vpop.f32.mrf.mxu2 }
 0x84f   : > { %6019 = vmatmul.f32.gmra.mxu3 %v10723_v27  ;;  %10861 = vmatmul.msk.f32.gmra.mxu2 %vm3066_vm2, %v6289_v9  ;;  %v16171_v54 = vpop.f32.mrf.mxu0  ;;  %v16174_v9 = vpop.f32.mrf.mxu3 }
 0x853   : > { %v6291_v40 = vpop.f32.mrf.mxu1 }
 0x854   : > { %v6292_v30 = vadd.f32 %v6291_v40, %v6107_v4  ;;  %v10661_v4 = vld [vmem:[%s18599_s3 + $0x1798] sm:$0xff] }
 0x856   : > { %6201 = vmatmul.f32.gmra.mxu0 %v10720_v41  ;;  %10822 = vmatmul.msk.f32.gmra.mxu1 %vm1016_vm1, %v10657_v32  ;;  %v16186_v36 = vpop.f32.mrf.mxu2  ;;  %v6113_v41 = vadd.f32 %v15930_v26, %v5928_v25  ;;  %v6116_v26 = vadd.f32 %v15957_v18, %v5931_v51  ;;  %v5934_v18 = vadd.f32 %v15939_v24, %v15438_v29 }
 0x857   : > { %6022 = vmatmul.f32.gmra.mxu3 %v10727_v57  ;;  %10862 = vmatmul.msk.f32.gmra.mxu2 %vm3066_vm2, %v6292_v30  ;;  %v16192_v32 = vpop.f32.mrf.mxu0  ;;  %v10728_v57 = vld [vmem:[%s18599_s3 + $0x19b0] sm:$0xff]  ;;  %v5937_v29 = vadd.f32 %v15960_v19, %v15455_v14  ;;  %v5940_v14 = vadd.f32 %v15983_v50, %v15472_v44  ;;  %v10751_v44 = vld [vmem:[%s18599_s3 + $0x1a68] sm:$0xff]  ;;  %v5943_v50 = vadd.f32 %v16015_v6, %v15489_v37 }
 0x858   : > { %v5946_v37 = vadd.f32 %v16043_v47, %v15506_v13  ;;  %v10759_v13 = vld [vmem:[%s18599_s3 + $0x1aa8] sm:$0xff] }
 0x85b   : > { %v6294_v27 = vpop.f32.mrf.mxu1 }
 0x85c   : > { %v6295_v40 = vadd.f32 %v6294_v27, %v6110_v33  ;;  %v10735_v27 = vld [vmem:[%s18599_s3 + $0x19e8] sm:$0xff] }
 0x85e   : > { %6204 = vmatmul.f32.gmra.mxu0 %v10724_v31  ;;  %10823 = vmatmul.msk.f32.gmra.mxu1 %vm1016_vm1, %v10661_v4  ;;  %v16203_v31 = vpop.f32.mrf.mxu3  ;;  %v16209_v17 = vpop.f32.mrf.mxu2 }
 0x85f   : > { %6025 = vmatmul.f32.gmra.mxu3 %v10731_v49  ;;  %10863 = vmatmul.msk.f32.gmra.mxu2 %vm3066_vm2, %v6295_v40  ;;  %v10732_v40 = vld [vmem:[%s18599_s3 + $0x19d0] sm:$0xff]  ;;  %v10669_v49 = vld [vmem:[%s18599_s3 + $0x17d8] sm:$0xff]  ;;  %v16218_v25 = vpop.f32.mrf.mxu0 }
 0x863   : > { %v6297_v30 = vpop.f32.mrf.mxu1 }
 0x864   : > { %v6298_v33 = vadd.f32 %v6297_v30, %v6113_v41  ;;  %v6119_v30 = vadd.f32 %v15979_v16, %v5934_v18  ;;  %v6122_v16 = vadd.f32 %v16000_v55, %v5937_v29  ;;  %v10747_v18 = vld [vmem:[%s18599_s3 + $0x1a48] sm:$0xff]  ;;  %v6125_v55 = vadd.f32 %v16034_v35, %v5940_v14 }
 0x865   : > { %v6128_v29 = vadd.f32 %v16058_v42, %v5943_v50  ;;  %v6131_v42 = vadd.f32 %v16077_v62, %v5946_v37  ;;  %v5949_v62 = vadd.f32 %v16061_v21, %v15523_v58  ;;  %v5952_v58 = vadd.f32 %v16079_v2, %v15539_v38 }
 0x866   : > { %6207 = vmatmul.f32.gmra.mxu0 %v10728_v57  ;;  %10824 = vmatmul.msk.f32.gmra.mxu1 %vm1016_vm1, %v10665_v39  ;;  %v16224_v15 = vpop.f32.mrf.mxu3  ;;  %v16230_v57 = vpop.f32.mrf.mxu2  ;;  %v5955_v38 = vadd.f32 %v16109_v59, %v15555_v48  ;;  %v10771_v48 = vld [vmem:[%s18599_s3 + $0x1b08] sm:$0xff] }
 0x867   : > { %6028 = vmatmul.f32.gmra.mxu3 %v10735_v27  ;;  %10864 = vmatmul.msk.f32.gmra.mxu2 %vm3066_vm2, %v6298_v33  ;;  %v10736_v33 = vld [vmem:[%s18599_s3 + $0x19f0] sm:$0xff]  ;;  %v10673_v27 = vld [vmem:[%s18599_s3 + $0x17f8] sm:$0xff] }
 0x86b   : > { %v6300_v4 = vpop.f32.mrf.mxu1 }
 0x86c   : > { %v6301_v41 = vadd.f32 %v6300_v4, %v6116_v26  ;;  %v10743_v26 = vld [vmem:[%s18599_s3 + $0x1a28] sm:$0xff]  ;;  %v16241_v4 = vpop.f32.mrf.mxu0 }
 0x86e   : > { %6210 = vmatmul.f32.gmra.mxu0 %v10732_v40  ;;  %10825 = vmatmul.msk.f32.gmra.mxu1 %vm1016_vm1, %v10669_v49  ;;  %v16247_v24 = vpop.f32.mrf.mxu3  ;;  %v10740_v49 = vld [vmem:[%s18599_s3 + $0x1a10] sm:$0xff] }
 0x86f   : > { %6031 = vmatmul.f32.gmra.mxu3 %v10739_v3  ;;  %10865 = vmatmul.msk.f32.gmra.mxu2 %vm3066_vm2, %v6301_v41  ;;  %v10677_v41 = vld [vmem:[%s18599_s3 + $0x1818] sm:$0xff] }
 0x873   : > { %v6303_v39 = vpop.f32.mrf.mxu1 }
 0x874   : > { %v6304_v51 = vadd.f32 %v6303_v39, %v6119_v30  ;;  %v16259_v30 = vpop.f32.mrf.mxu2  ;;  %v16265_v19 = vpop.f32.mrf.mxu0 }
 0x876   : > { %6213 = vmatmul.f32.gmra.mxu0 %v10736_v33  ;;  %10826 = vmatmul.msk.f32.gmra.mxu1 %vm1016_vm1, %v10673_v27  ;;  %v16268_v39 = vpop.f32.mrf.mxu3  ;;  %v10744_v27 = vld [vmem:[%s18599_s3 + $0x1a30] sm:$0xff] }
 0x877   : > { %6034 = vmatmul.f32.gmra.mxu3 %v10743_v26  ;;  %10866 = vmatmul.msk.f32.gmra.mxu2 %vm3066_vm2, %v6304_v51  ;;  %v10681_v51 = vld [vmem:[%s18599_s3 + $0x1838] sm:$0xff] }
 0x87b   : > { %v6306_v40 = vpop.f32.mrf.mxu1 }
 0x87c   : > { %v6307_v3 = vadd.f32 %v6306_v40, %v6122_v16  ;;  %v16280_v35 = vpop.f32.mrf.mxu2  ;;  %v16286_v16 = vpop.f32.mrf.mxu0 }
 0x87e   : > { %6216 = vmatmul.f32.gmra.mxu0 %v10740_v49  ;;  %10827 = vmatmul.msk.f32.gmra.mxu1 %vm1016_vm1, %v10677_v41  ;;  %v10748_v49 = vld [vmem:[%s18599_s3 + $0x1a50] sm:$0xff]  ;;  %v10685_v41 = vld [vmem:[%s18599_s3 + $0x1858] sm:$0xff]  ;;  %v16297_v14 = vpop.f32.mrf.mxu3 }
 0x87f   : > { %6037 = vmatmul.f32.gmra.mxu3 %v10747_v18  ;;  %10867 = vmatmul.msk.f32.gmra.mxu2 %vm3066_vm2, %v6307_v3  ;;  %v10755_v18 = vld [vmem:[%s18599_s3 + $0x1a88] sm:$0xff] }
 0x883   : > { %v6309_v33 = vpop.f32.mrf.mxu1 }
 0x884   : > { %v6310_v26 = vadd.f32 %v6309_v33, %v6125_v55  ;;  %v16303_v6 = vpop.f32.mrf.mxu2  ;;  %v10752_v33 = vld [vmem:[%s18599_s3 + $0x1a70] sm:$0xff] }
 0x886   : > { %6219 = vmatmul.f32.gmra.mxu0 %v10744_v27  ;;  %10828 = vmatmul.msk.f32.gmra.mxu1 %vm1016_vm1, %v10681_v51  ;;  %v10689_v27 = vld [vmem:[%s18599_s3 + $0x1878] sm:$0xff]  ;;  %v16312_v51 = vpop.f32.mrf.mxu0  ;;  %v16318_v47 = vpop.f32.mrf.mxu3 }
 0x887   : > { %6040 = vmatmul.f32.gmra.mxu3 %v10751_v44  ;;  %10868 = vmatmul.msk.f32.gmra.mxu2 %vm3066_vm2, %v6310_v26  ;;  %v6134_v44 = vadd.f32 %v16098_v1, %v5949_v62  ;;  %v6137_v1 = vadd.f32 %v16124_v22, %v5952_v58  ;;  %v6140_v22 = vadd.f32 %v16147_v43, %v5955_v38  ;;  %v10768_v58 = vld [vmem:[%s18599_s3 + $0x1af0] sm:$0xff]  ;;  %v10709_v38 = vld [vmem:[%s18599_s3 + $0x1918] sm:$0xff] }
 0x888   : > { %v5958_v43 = vadd.f32 %v16130_v5, %v15571_v11  ;;  %v5961_v11 = vadd.f32 %v16153_v20, %v15587_v52  ;;  %v10779_v52 = vld [vmem:[%s18599_s3 + $0x1b48] sm:$0xff]  ;;  %v19024_v20 = vld [vmem:[#allocation89_spill] sm:$0xff] }
 0x88b   : > { %v6312_v40 = vpop.f32.mrf.mxu1 }
 0x88c   : > { %v6313_v3 = vadd.f32 %v6312_v40, %v6128_v29  ;;  %v16324_v50 = vpop.f32.mrf.mxu2  ;;  %v10756_v40 = vld [vmem:[%s18599_s3 + $0x1a90] sm:$0xff] }
 0x88e   : > { %6222 = vmatmul.f32.gmra.mxu0 %v10748_v49  ;;  %10829 = vmatmul.msk.f32.gmra.mxu1 %vm1016_vm1, %v10685_v41  ;;  %v10693_v49 = vld [vmem:[%s18599_s3 + $0x1898] sm:$0xff]  ;;  %v16341_v21 = vpop.f32.mrf.mxu3 }
 0x88f   : > { %6043 = vmatmul.f32.gmra.mxu3 %v10755_v18  ;;  %10869 = vmatmul.msk.f32.gmra.mxu2 %vm3066_vm2, %v6313_v3  ;;  %v10763_v3 = vld [vmem:[%s18599_s3 + $0x1ac8] sm:$0xff]  ;;  %v16335_v18 = vpop.f32.mrf.mxu0 }
 0x893   : > { %v6315_v55 = vpop.f32.mrf.mxu1 }
 0x894   : > { %v6316_v26 = vadd.f32 %v6315_v55, %v6131_v42  ;;  %v10760_v42 = vld [vmem:[%s18599_s3 + $0x1ab0] sm:$0xff]  ;;  %v10697_v55 = vld [vmem:[%s18599_s3 + $0x18b8] sm:$0xff] }
 0x896   : > { %6225 = vmatmul.f32.gmra.mxu0 %v10752_v33  ;;  %10830 = vmatmul.msk.f32.gmra.mxu1 %vm1016_vm1, %v10689_v27  ;;  %v10767_v27 = vld [vmem:[%s18599_s3 + $0x1ae8] sm:$0xff] }
 0x897   : > { %6046 = vmatmul.f32.gmra.mxu3 %v10759_v13  ;;  %10870 = vmatmul.msk.f32.gmra.mxu2 %vm3066_vm2, %v6316_v26  ;;  %v16353_v26 = vpop.f32.mrf.mxu2  ;;  %v16359_v2 = vpop.f32.mrf.mxu0 }
 0x898   : > { %v16362_v13 = vpop.f32.mrf.mxu3 }
 0x89b   : > { %v6318_v29 = vpop.f32.mrf.mxu1 }
 0x89c   : > { %v6319_v41 = vadd.f32 %v6318_v29, %v6134_v44  ;;  %v10764_v44 = vld [vmem:[%s18599_s3 + $0x1ad0] sm:$0xff]  ;;  %v10701_v29 = vld [vmem:[%s18599_s3 + $0x18d8] sm:$0xff] }
 0x89e   : > { %6228 = vmatmul.f32.gmra.mxu0 %v10756_v40  ;;  %10831 = vmatmul.msk.f32.gmra.mxu1 %vm1016_vm1, %v10693_v49  ;;  %v6143_v49 = vadd.f32 %v16171_v54, %v5958_v43  ;;  %v6146_v54 = vadd.f32 %v16192_v32, %v5961_v11  ;;  %v19025_v32 = vld [vmem:[#allocation92_spill] sm:$0xff] }
 0x89f   : > { %6049 = vmatmul.f32.gmra.mxu3 %v10763_v3  ;;  %10871 = vmatmul.msk.f32.gmra.mxu2 %vm3066_vm2, %v6319_v41  ;;  %v16374_v59 = vpop.f32.mrf.mxu2  ;;  %v16380_v41 = vpop.f32.mrf.mxu0 }
 0x8a3   : > { %v6321_v37 = vpop.f32.mrf.mxu1 }
 0x8a4   : > { %v6322_v33 = vadd.f32 %v6321_v37, %v6137_v1  ;;  %v10705_v1 = vld [vmem:[%s18599_s3 + $0x18f8] sm:$0xff] }
 0x8a6   : > { %6231 = vmatmul.f32.gmra.mxu0 %v10760_v42  ;;  %10832 = vmatmul.msk.f32.gmra.mxu1 %vm1016_vm1, %v10697_v55  ;;  %v10775_v42 = vld [vmem:[%s18599_s3 + $0x1b28] sm:$0xff]  ;;  %v16391_v55 = vpop.f32.mrf.mxu3 }
 0x8a7   : > { %6052 = vmatmul.f32.gmra.mxu3 %v10767_v27  ;;  %10872 = vmatmul.msk.f32.gmra.mxu2 %vm3066_vm2, %v6322_v33  ;;  %v16397_v5 = vpop.f32.mrf.mxu2  ;;  %v10772_v27 = vld [vmem:[%s18599_s3 + $0x1b10] sm:$0xff] }
 0x8ab   : > { %v6324_v62 = vpop.f32.mrf.mxu1 }
 0x8ac   : > { %v6325_v40 = vadd.f32 %v6324_v62, %v6140_v22  ;;  %v16406_v22 = vpop.f32.mrf.mxu0 }
 0x8ae   : > { %6234 = vmatmul.f32.gmra.mxu0 %v10764_v44  ;;  %10833 = vmatmul.msk.f32.gmra.mxu1 %vm1016_vm1, %v10701_v29  ;;  %v3606_v44 = vadd.f32 %v19025_v32, %v19024_v20  ;;  %v16414_v29 = vpop.f32.mrf.mxu3  ;;  %v10780_v32 = vld [vmem:[%s18599_s3 + $0x1b50] sm:$0xff] }
 0x8af   : > { %6055 = vmatmul.f32.gmra.mxu3 %v10771_v48  ;;  %10873 = vmatmul.msk.f32.gmra.mxu2 %vm3066_vm2, %v6325_v40  ;;  %v5964_v40 = vadd.f32 %v16174_v9, %v15603_v7  ;;  %v10783_v7 = vld [vmem:[%s18599_s3 + $0x1b68] sm:$0xff] }
 0x8b0   : > { %v5261_v48 = vadd.f32 %v15121_v45, %v3606_v44  ;;  %v19026_v9 = vld [vmem:[#allocation91_spill] sm:$0xff]  ;;  %v10717_v44 = vld [vmem:[%s18599_s3 + $0x1958] sm:$0xff] }
 0x8b1   : > { %v6149_v43 = vadd.f32 %v16218_v25, %v5964_v40  ;;  %v19027_v25 = vld [vmem:[#allocation94_spill] sm:$0xff] }
 0x8b2   : > { %v3609_v11 = vadd.f32 %v19027_v25, %v19026_v9  ;;  %v10784_v9 = vld [vmem:[%s18599_s3 + $0x1b70] sm:$0xff]  ;;  %v19031_v25 = vld [vmem:[#allocation98_spill] sm:$0xff] }
 0x8b3   : > { %v6327_v3 = vpop.f32.mrf.mxu1 }
 0x8b4   : > { %v6328_v37 = vadd.f32 %v6327_v3, %v6143_v49  ;;  %v16432_v45 = vpop.f32.mrf.mxu0 }
 0x8b6   : > { %6237 = vmatmul.f32.gmra.mxu0 %v10768_v58  ;;  %10834 = vmatmul.msk.f32.gmra.mxu1 %vm1016_vm1, %v10705_v1  ;;  %v10776_v1 = vld [vmem:[%s18599_s3 + $0x1b30] sm:$0xff] }
 0x8b7   : > { %6058 = vmatmul.f32.gmra.mxu3 %v10775_v42  ;;  %10874 = vmatmul.msk.f32.gmra.mxu2 %vm3066_vm2, %v6328_v37  ;;  %v10713_v37 = vld [vmem:[%s18599_s3 + $0x1938] sm:$0xff] }
 0x8bb   : > { %v6330_v33 = vpop.f32.mrf.mxu1 }
 0x8bc   : > { %v6331_v62 = vadd.f32 %v6330_v33, %v6146_v54  ;;  %v5967_v54 = vadd.f32 %v16203_v31, %v15619_v56  ;;  %v5262_v33 = vadd.f32 %v15138_v10, %v3609_v11  ;;  %v10787_v10 = vld [vmem:[%s18599_s3 + $0x1b88] sm:$0xff]  ;;  %v19028_v56 = vld [vmem:[#allocation93_spill] sm:$0xff] }
 0x8bd   : > { %v19029_v31 = vld [vmem:[#allocation96_spill] sm:$0xff] }
 0x8be   : > { %6240 = vmatmul.f32.gmra.mxu0 %v10772_v27  ;;  %10835 = vmatmul.msk.f32.gmra.mxu1 %vm1016_vm1, %v10709_v38  ;;  %v16441_v27 = vpop.f32.mrf.mxu3  ;;  %v6152_v38 = vadd.f32 %v16241_v4, %v5967_v54  ;;  %v3612_v4 = vadd.f32 %v19029_v31, %v19028_v56  ;;  %v5973_v54 = vadd.f32 %v16247_v24, %v15651_v12  ;;  %v19032_v24 = vld [vmem:[#allocation97_spill] sm:$0xff] }
 0x8bf   : > { %6061 = vmatmul.f32.gmra.mxu3 %v10779_v52  ;;  %10875 = vmatmul.msk.f32.gmra.mxu2 %vm3066_vm2, %v6331_v62 }
 0x8c2   : > { %v6637_v49 = vpop.f32.mrf.mxu2 }
 0x8c3   : > { %v16421_v3 = vadd.f32 %v6637_v49, %v5261_v48  ;;  %v6333_v58 = vpop.f32.mrf.mxu1  ;;  %v5970_v48 = vadd.f32 %v16224_v15, %v15635_v8  ;;  %v5263_v49 = vadd.f32 %v15153_v23, %v3612_v4  ;;  %v10721_v8 = vld [vmem:[%s18599_s3 + $0x1978] sm:$0xff]  ;;  %v10791_v23 = vld [vmem:[%s18599_s3 + $0x1ba8] sm:$0xff]  ;;  %v5976_v4 = vadd.f32 %v16268_v39, %v15667_v46 }
 0x8c4   : > { %v6334_v42 = vadd.f32 %v6333_v58, %v6149_v43  ;;  %v16461_v43 = vpop.f32.mrf.mxu0  ;;  %v19034_v46 = vld [vmem:[#allocation99_spill] sm:$0xff] }
 0x8c5   : > { %v6155_v58 = vadd.f32 %v16265_v19, %v5970_v48  ;;  %v19030_v19 = vld [vmem:[#allocation95_spill] sm:$0xff] }
 0x8c6   : > { %6243 = vmatmul.f32.gmra.mxu0 %v10776_v1  ;;  %10836 = vmatmul.msk.f32.gmra.mxu1 %vm1016_vm1, %v10713_v37  ;;  %v16465_v37 = vpop.f32.mrf.mxu3  ;;  %v3615_v11 = vadd.f32 %v19031_v25, %v19030_v19  ;;  %v19035_v39 = vld [vmem:[#allocation39_spill] sm:$0xff]  ;;  %v5979_v25 = vadd.f32 %v16297_v14, %v15683_v53  ;;  %v19037_v53 = vld [vmem:[#allocation40_spill] sm:$0xff] }
 0x8c7   : > { %6064 = vmatmul.f32.gmra.mxu3 %v10783_v7  ;;  %10876 = vmatmul.msk.f32.gmra.mxu2 %vm3066_vm2, %v6334_v42 }
 0x8ca   : > { %v6640_v62 = vpop.f32.mrf.mxu2 }
 0x8cb   : > { %v16444_v52 = vadd.f32 %v6640_v62, %v5262_v33  ;;  %v6336_v20 = vpop.f32.mrf.mxu1  ;;  %v5264_v33 = vadd.f32 %v15170_v61, %v3615_v11  ;;  %v10795_v61 = vld [vmem:[%s18599_s3 + $0x1bc8] sm:$0xff] }
 0x8cc   : > { %v6337_v40 = vadd.f32 %v6336_v20, %v6152_v38  ;;  %v6158_v38 = vadd.f32 %v16286_v16, %v5973_v54  ;;  %v16486_v62 = vpop.f32.mrf.mxu0  ;;  %v19033_v16 = vld [vmem:[#allocation100_spill] sm:$0xff]  ;;  %v6164_v54 = vadd.f32 %v16335_v18, %v5979_v25 }
 0x8cd   : > { %v3618_v31 = vadd.f32 %v19033_v16, %v19032_v24  ;;  %v19038_v18 = vld [vmem:[#allocation144_spill] sm:$0xff]  ;;  %v19039_v24 = vld [vmem:[#allocation107_spill] sm:$0xff] }
 0x8ce   : > { %6246 = vmatmul.f32.gmra.mxu0 %v10780_v32  ;;  %10837 = vmatmul.msk.f32.gmra.mxu1 %vm1016_vm1, %v10717_v44  ;;  %v16499_v12 = vpop.f32.mrf.mxu3 }
 0x8cf   : > { %6067 = vmatmul.f32.gmra.mxu3 %v10787_v10  ;;  %10877 = vmatmul.msk.f32.gmra.mxu2 %vm3066_vm2, %v6337_v40  ;;  %v10788_v40 = vld [vmem:[%s18599_s3 + $0x1b90] sm:$0xff]  ;;  %v10725_v10 = vld [vmem:[%s18599_s3 + $0x1998] sm:$0xff]  ;;  %v5265_v48 = vadd.f32 %v15187_v0, %v3618_v31  ;;  %v10799_v0 = vld [vmem:[%s18599_s3 + $0x1be8] sm:$0xff] }
 0x8d2   : > { %v6643_v1 = vpop.f32.mrf.mxu2 }
 0x8d3   : > { %v16467_v42 = vadd.f32 %v6643_v1, %v5263_v49  ;;  %v6339_v7 = vpop.f32.mrf.mxu1  ;;  %v6161_v49 = vadd.f32 %v16312_v51, %v5976_v4  ;;  %v3621_v51 = vadd.f32 %v19035_v39, %v19034_v46 }
 0x8d4   : > { %v6340_v15 = vadd.f32 %v6339_v7, %v6155_v58 }
 0x8d5   : > { %v5266_v11 = vadd.f32 %v15204_v34, %v3621_v51  ;;  %v19036_v34 = vld [vmem:[#allocation3_spill] sm:$0xff] }
 0x8d6   : > { %6249 = vmatmul.f32.gmra.mxu0 %v10784_v9  ;;  %10838 = vmatmul.msk.f32.gmra.mxu1 %vm1016_vm1, %v10721_v8  ;;  %v10792_v9 = vld [vmem:[%s18599_s3 + $0x1bb0] sm:$0xff]  ;;  %v10729_v8 = vld [vmem:[%s18599_s3 + $0x19b8] sm:$0xff]  ;;  %v16525_v19 = vpop.f32.mrf.mxu3  ;;  %v3624_v14 = vadd.f32 %v19037_v53, %v19036_v34 }
 0x8d7   : > { %6070 = vmatmul.f32.gmra.mxu3 %v10791_v23  ;;  %10878 = vmatmul.msk.f32.gmra.mxu2 %vm3066_vm2, %v6340_v15  ;;  %v16517_v15 = vpop.f32.mrf.mxu0 }
 0x8d8   : > { %v5267_v16 = vadd.f32 %v19039_v24, %v3624_v14 }
 0x8da   : > { %v6646_v20 = vpop.f32.mrf.mxu2 }
 0x8db   : > { %v16488_v32 = vadd.f32 %v6646_v20, %v5264_v33  ;;  %v6342_v44 = vpop.f32.mrf.mxu1 }
 0x8dc   : > { %v6343_v56 = vadd.f32 %v6342_v44, %v6158_v38  ;;  %v10796_v44 = vld [vmem:[%s18599_s3 + $0x1bd0] sm:$0xff] }
 0x8de   : > { %6252 = vmatmul.f32.gmra.mxu0 %v10788_v40  ;;  %10839 = vmatmul.msk.f32.gmra.mxu1 %vm1016_vm1, %v10725_v10  ;;  %v10733_v40 = vld [vmem:[%s18599_s3 + $0x19d8] sm:$0xff] }
 0x8df   : > { %6073 = vmatmul.f32.gmra.mxu3 %v10795_v61  ;;  %10879 = vmatmul.msk.f32.gmra.mxu2 %vm3066_vm2, %v6343_v56  ;;  %v16540_v56 = vpop.f32.mrf.mxu0  ;;  %v5982_v61 = vadd.f32 %v16318_v47, %v19038_v18  ;;  %v19042_v47 = vld [vmem:[#allocation146_spill] sm:$0xff] }
 0x8e1   : > { %v6167_v31 = vadd.f32 %v16359_v2, %v5982_v61  ;;  %v19043_v2 = vld [vmem:[#allocation108_spill] sm:$0xff] }
 0x8e2   : > { %v6649_v58 = vpop.f32.mrf.mxu2 }
 0x8e3   : > { %v16509_v1 = vadd.f32 %v6649_v58, %v5265_v48  ;;  %v6345_v7 = vpop.f32.mrf.mxu1  ;;  %v10737_v58 = vld [vmem:[%s18599_s3 + $0x19f8] sm:$0xff] }
 0x8e4   : > { %v6346_v23 = vadd.f32 %v6345_v7, %v6161_v49 }
 0x8e6   : > { %6255 = vmatmul.f32.gmra.mxu0 %v10792_v9  ;;  %10840 = vmatmul.msk.f32.gmra.mxu1 %vm1016_vm1, %v10729_v8  ;;  %v19040_v9 = vld [vmem:[#allocation4_spill] sm:$0xff]  ;;  %v19041_v8 = vld [vmem:[#allocation41_spill] sm:$0xff] }
 0x8e7   : > { %6076 = vmatmul.f32.gmra.mxu3 %v10799_v0  ;;  %10880 = vmatmul.msk.f32.gmra.mxu2 %vm3066_vm2, %v6346_v23  ;;  %v3627_v23 = vadd.f32 %v19041_v8, %v19040_v9  ;;  %v5985_v0 = vadd.f32 %v16341_v21, %v19042_v47  ;;  %v19046_v21 = vld [vmem:[#allocation148_spill] sm:$0xff]  ;;  %v16575_v53 = vpop.f32.mrf.mxu0  ;;  %v19051_v9 = vld [vmem:[#allocation142_spill] sm:$0xff] }
 0x8e9   : > { %v5268_v46 = vadd.f32 %v19043_v2, %v3627_v23  ;;  %v6170_v39 = vadd.f32 %v16380_v41, %v5985_v0  ;;  %v19047_v41 = vld [vmem:[#allocation51_spill] sm:$0xff] }
 0x8ea   : > { %v6652_v33 = vpop.f32.mrf.mxu2 }
 0x8eb   : > { %v16532_v38 = vadd.f32 %v6652_v33, %v5266_v11  ;;  %v6348_v20 = vpop.f32.mrf.mxu1 }
 0x8ec   : > { %v6349_v10 = vadd.f32 %v6348_v20, %v6164_v54  ;;  %v10741_v54 = vld [vmem:[%s18599_s3 + $0x1a18] sm:$0xff] }
 0x8ed   : > { %v19044_v20 = vld [vmem:[#allocation5_spill] sm:$0xff] }
 0x8ee   : > { %6258 = vmatmul.f32.gmra.mxu0 %v10796_v44  ;;  %10841 = vmatmul.msk.f32.gmra.mxu1 %vm1016_vm1, %v10733_v40  ;;  %v19045_v44 = vld [vmem:[#allocation42_spill] sm:$0xff] }
 0x8ef   : > { %10881 = vmatmul.msk.f32.gmra.mxu2 %vm3066_vm2, %v6349_v10  ;;  %v3630_v40 = vadd.f32 %v19045_v44, %v19044_v20  ;;  %v5988_v10 = vadd.f32 %v16362_v13, %v19046_v21  ;;  %v19048_v13 = vld [vmem:[#allocation6_spill] sm:$0xff]  ;;  %v16593_v0 = vpop.f32.mrf.mxu0  ;;  %v19055_v44 = vld [vmem:[#allocation143_spill] sm:$0xff] }
 0x8f1   : > { %v5269_v34 = vadd.f32 %v19047_v41, %v3630_v40  ;;  %v6173_v14 = vadd.f32 %v16406_v22, %v5988_v10 }
 0x8f2   : > { %v6655_v4 = vpop.f32.mrf.mxu2 }
 0x8f3   : > { %v16550_v48 = vadd.f32 %v6655_v4, %v5267_v16  ;;  %v6351_v49 = vpop.f32.mrf.mxu1  ;;  %v10745_v16 = vld [vmem:[%s18599_s3 + $0x1a38] sm:$0xff]  ;;  %v16583_v4 = vpop.f32.mrf.mxu3 }
 0x8f4   : > { %v6352_v7 = vadd.f32 %v6351_v49, %v6167_v31  ;;  %v19049_v49 = vld [vmem:[#allocation43_spill] sm:$0xff] }
 0x8f6   : > { %10842 = vmatmul.msk.f32.gmra.mxu1 %vm1016_vm1, %v10737_v58  ;;  %v3633_v58 = vadd.f32 %v19049_v49, %v19048_v13  ;;  %v19058_v13 = vld [vmem:[#allocation154_spill] sm:$0xff]  ;;  %v19059_v49 = vld [vmem:[#allocation37_spill] sm:$0xff] }
 0x8f7   : > { %10882 = vmatmul.msk.f32.gmra.mxu2 %vm3066_vm2, %v6352_v7  ;;  %v19050_v7 = vld [vmem:[#allocation150_spill] sm:$0xff] }
 0x8f8   : > { %v5991_v22 = vadd.f32 %v16391_v55, %v19050_v7  ;;  %v5270_v8 = vadd.f32 %v19051_v9, %v3633_v58 }
 0x8fa   : > { %v6658_v51 = vpop.f32.mrf.mxu2  ;;  %v6176_v23 = vadd.f32 %v16432_v45, %v5991_v22  ;;  %v19054_v45 = vld [vmem:[#allocation152_spill] sm:$0xff] }
 0x8fb   : > { %v16563_v25 = vadd.f32 %v6658_v51, %v5268_v46  ;;  %v6354_v11 = vpop.f32.mrf.mxu1  ;;  %v5994_v20 = vadd.f32 %v16414_v29, %v19054_v45 }
 0x8fc   : > { %v6355_v33 = vadd.f32 %v6354_v11, %v6170_v39  ;;  %v10749_v39 = vld [vmem:[%s18599_s3 + $0x1a58] sm:$0xff]  ;;  %v19052_v11 = vld [vmem:[#allocation7_spill] sm:$0xff] }
 0x8fd   : > { %v6179_v21 = vadd.f32 %v16461_v43, %v5994_v20  ;;  %v5997_v43 = vadd.f32 %v16441_v27, %v19058_v13 }
 0x8fe   : > { %10843 = vmatmul.msk.f32.gmra.mxu1 %vm1016_vm1, %v10741_v54  ;;  %v19053_v54 = vld [vmem:[#allocation102_spill] sm:$0xff] }
 0x8ff   : > { %10883 = vmatmul.msk.f32.gmra.mxu2 %vm3066_vm2, %v6355_v33  ;;  %v3636_v55 = vadd.f32 %v19053_v54, %v19052_v11  ;;  %v16603_v33 = vpop.f32.mrf.mxu3  ;;  %v6182_v22 = vadd.f32 %v16486_v62, %v5997_v43  ;;  %v19062_v54 = vld [vmem:[#allocation156_spill] sm:$0xff] }
 0x900   : > { %v6000_v62 = vadd.f32 %v16465_v37, %v19062_v54 }
 0x901   : > { %v5271_v40 = vadd.f32 %v19055_v44, %v3636_v55  ;;  %v19063_v55 = vld [vmem:[#allocation83_spill] sm:$0xff] }
 0x902   : > { %v6661_v18 = vpop.f32.mrf.mxu2  ;;  %v6185_v20 = vadd.f32 %v16517_v15, %v6000_v62  ;;  %v19072_v62 = vld [vmem:[#allocation32_spill] sm:$0xff] }
 0x903   : > { %v16578_v61 = vadd.f32 %v6661_v18, %v5269_v34  ;;  %v6357_v24 = vpop.f32.mrf.mxu1 }
 0x904   : > { %v6358_v31 = vadd.f32 %v6357_v24, %v6173_v14  ;;  %v10753_v14 = vld [vmem:[%s18599_s3 + $0x1a78] sm:$0xff]  ;;  %v16615_v24 = vpop.f32.mrf.mxu0 }
 0x906   : > { %10844 = vmatmul.msk.f32.gmra.mxu1 %vm1016_vm1, %v10745_v16  ;;  %v19056_v16 = vld [vmem:[#allocation101_spill] sm:$0xff] }
 0x907   : > { %10884 = vmatmul.msk.f32.gmra.mxu2 %vm3066_vm2, %v6358_v31  ;;  %v19057_v31 = vld [vmem:[#allocation45_spill] sm:$0xff]  ;;  %v16624_v7 = vpop.f32.mrf.mxu3 }
 0x908   : > { %v3639_v29 = vadd.f32 %v19057_v31, %v19056_v16  ;;  %v19065_v16 = vld [vmem:[#allocation48_spill] sm:$0xff]  ;;  %v19066_v31 = vld [vmem:[#allocation158_spill] sm:$0xff] }
 0x909   : > { %v6003_v15 = vadd.f32 %v16499_v12, %v19066_v31  ;;  %v19068_v12 = vld [vmem:[#allocation11_spill] sm:$0xff]  ;;  %v19074_v31 = vld [vmem:[#allocation64_spill] sm:$0xff] }
 0x90a   : > { %v6664_v47 = vpop.f32.mrf.mxu2  ;;  %v5272_v58 = vadd.f32 %v19059_v49, %v3639_v29  ;;  %v19067_v29 = vld [vmem:[#allocation111_spill] sm:$0xff] }
 0x90b   : > { %v16595_v2 = vadd.f32 %v6664_v47, %v5270_v8  ;;  %v6360_v46 = vpop.f32.mrf.mxu1  ;;  %v10757_v47 = vld [vmem:[%s18599_s3 + $0x1a98] sm:$0xff]  ;;  %v6188_v49 = vadd.f32 %v16540_v56, %v6003_v15  ;;  %v16672_v56 = vld [vmem:[%s19070_s30] ss:$0 sm:$0xff] }
 0x90c   : > { %v6361_v51 = vadd.f32 %v6360_v46, %v6176_v23  ;;  %v16635_v11 = vpop.f32.mrf.mxu0 }
 0x90e   : > { %10845 = vmatmul.msk.f32.gmra.mxu1 %vm1016_vm1, %v10749_v39  ;;  %v19060_v39 = vld [vmem:[#allocation9_spill] sm:$0xff] }
 0x90f   : > { %10885 = vmatmul.msk.f32.gmra.mxu2 %vm3066_vm2, %v6361_v51  ;;  %v19061_v51 = vld [vmem:[#allocation46_spill] sm:$0xff] }
 0x910   : > { %v3642_v27 = vadd.f32 %v19061_v51, %v19060_v39  ;;  %v19069_v39 = vld [vmem:[#allocation47_spill] sm:$0xff] }
 0x911   : > { %v3648_v51 = vadd.f32 %v19069_v39, %v19068_v12  ;;  %v6866_v39 = vadd.f32 %v16672_v56, %v16444_v52  ;;  %v19079_v52 = vld [vmem:[#allocation164_spill] sm:$0xff] }
 0x912   : > { %v6667_v10 = vpop.f32.mrf.mxu2  ;;  %v5273_v45 = vadd.f32 %v19063_v55, %v3642_v27  ;;  %v19071_v27 = vld [vmem:[#allocation160_spill] sm:$0xff] }
 0x913   : > { %v16610_v41 = vadd.f32 %v6667_v10, %v5271_v40  ;;  %v6363_v34 = vpop.f32.mrf.mxu1  ;;  %v16642_v40 = vpop.f32.mrf.mxu3  ;;  %v6006_v54 = vadd.f32 %v16525_v19, %v19071_v27  ;;  %v5275_v55 = vadd.f32 %v19072_v62, %v3648_v51  ;;  %v19073_v19 = vld [vmem:[#allocation12_spill] sm:$0xff] }
 0x914   : > { %v6364_v18 = vadd.f32 %v6363_v34, %v6179_v21  ;;  %v10761_v34 = vld [vmem:[%s18599_s3 + $0x1ab8] sm:$0xff]  ;;  %v16656_v43 = vpop.f32.mrf.mxu0 }
 0x916   : > { %10846 = vmatmul.msk.f32.gmra.mxu1 %vm1016_vm1, %v10753_v14 }
 0x917   : > { %10886 = vmatmul.msk.f32.gmra.mxu2 %vm3066_vm2, %v6364_v18  ;;  %v19064_v18 = vld [vmem:[#allocation10_spill] sm:$0xff] }
 0x918   : > { %v3645_v37 = vadd.f32 %v19065_v16, %v19064_v18  ;;  %v10769_v18 = vld [vmem:[%s18599_s3 + $0x1af8] sm:$0xff] }
 0x91a   : > { %v6670_v9 = vpop.f32.mrf.mxu2  ;;  %v5274_v13 = vadd.f32 %v19067_v29, %v3645_v37 }
 0x91b   : > { %v16627_v8 = vadd.f32 %v6670_v9, %v5272_v58  ;;  %v6366_v23 = vpop.f32.mrf.mxu1 }
 0x91c   : > { %v6367_v46 = vadd.f32 %v6366_v23, %v6182_v22  ;;  %v10765_v23 = vld [vmem:[%s18599_s3 + $0x1ad8] sm:$0xff] }
 0x91e   : > { %10847 = vmatmul.msk.f32.gmra.mxu1 %vm1016_vm1, %v10757_v47 }
 0x91f   : > { %10887 = vmatmul.msk.f32.gmra.mxu2 %vm3066_vm2, %v6367_v46  ;;  %v16664_v46 = vpop.f32.mrf.mxu3 }
 0x922   : > { %v6673_v44 = vpop.f32.mrf.mxu2 }
 0x923   : > { %v16644_v21 = vadd.f32 %v6673_v44, %v5273_v45  ;;  %v6369_v10 = vpop.f32.mrf.mxu1  ;;  %v6191_v45 = vadd.f32 %v16575_v53, %v6006_v54  ;;  %v6865_v44 = vadd.f32 %v16672_v56, %v16421_v3  ;;  %v3651_v53 = vadd.f32 %v19074_v31, %v19073_v19  ;;  %v10773_v54 = vld [vmem:[%s18599_s3 + $0x1b18] sm:$0xff] }
 0x924   : > { %v6370_v14 = vadd.f32 %v6369_v10, %v6185_v20  ;;  %v16681_v10 = vpop.f32.mrf.mxu0 }
 0x925   : > { %v6921_v15 = vmax.f32 %v6865_v44, 0.0  ;;  %v6922_v44 = vmax.f32 %v6866_v39, 0.0 }
 0x926   : > { %10848 = vmatmul.msk.f32.gmra.mxu1 %vm1016_vm1, %v10761_v34 }
 0x927   : > { %10888 = vmatmul.msk.f32.gmra.mxu2 %vm3066_vm2, %v6370_v14  ;;  %v16690_v29 = vpop.f32.mrf.mxu3 }
 0x92a   : > { %v6676_v58 = vpop.f32.mrf.mxu2 }
 0x92b   : > { %v16659_v22 = vadd.f32 %v6676_v58, %v5274_v13  ;;  %v6372_v9 = vpop.f32.mrf.mxu1  ;;  %v19075_v13 = vld [vmem:[#allocation162_spill] sm:$0xff]  ;;  %v19076_v58 = vld [vmem:[#allocation117_spill] sm:$0xff] }
 0x92c   : > { %v6373_v47 = vadd.f32 %v6372_v9, %v6188_v49  ;;  %v6009_v49 = vadd.f32 %v16583_v4, %v19075_v13  ;;  %v5276_v9 = vadd.f32 %v19076_v58, %v3651_v53 }
 0x92e   : > { %10849 = vmatmul.msk.f32.gmra.mxu1 %vm1016_vm1, %v10765_v23 }
 0x92f   : > { %10889 = vmatmul.msk.f32.gmra.mxu2 %vm3066_vm2, %v6373_v47  ;;  %v6194_v47 = vadd.f32 %v16593_v0, %v6009_v49  ;;  %v10777_v49 = vld [vmem:[%s18599_s3 + $0x1b38] sm:$0xff] }
 0x932   : > { %v6679_v20 = vpop.f32.mrf.mxu2 }
 0x933   : > { %v6819_v34 = vadd.f32 %v6679_v20, %v5275_v55  ;;  %v6375_v14 = vpop.f32.mrf.mxu1  ;;  %v16704_v55 = vpop.f32.mrf.mxu0  ;;  %v19078_v20 = vld [vmem:[#allocation13_spill] sm:$0xff] }
 0x934   : > { %v6376_v16 = vadd.f32 %v6375_v14, %v6191_v45  ;;  %v19077_v45 = vld [vmem:[#allocation50_spill] sm:$0xff]  ;;  %v6012_v14 = vadd.f32 %v16603_v33, %v19079_v52 }
 0x935   : > { %v6879_v37 = vadd.f32 %v16672_v56, %v6819_v34  ;;  %v3654_v0 = vadd.f32 %v19078_v20, %v19077_v45 }
 0x936   : > { %10850 = vmatmul.msk.f32.gmra.mxu1 %vm1016_vm1, %v10769_v18  ;;  %v19080_v18 = vld [vmem:[#allocation34_spill] sm:$0xff]  ;;  %v6197_v31 = vadd.f32 %v16615_v24, %v6012_v14 }
 0x937   : > { %v6935_v3 = vmax.f32 %v6879_v37, 0.0  ;;  %10890 = vmatmul.msk.f32.gmra.mxu2 %vm3066_vm2, %v6376_v16  ;;  %v5277_v16 = vadd.f32 %v19080_v18, %v3654_v0  ;;  %v16714_v37 = vpop.f32.mrf.mxu3  ;;  %v6868_v0 = vadd.f32 %v16672_v56, %v16488_v32  ;;  %v10781_v14 = vld [vmem:[%s18599_s3 + $0x1b58] sm:$0xff]  ;;  %v19087_v32 = vld [vmem:[#allocation168_spill] sm:$0xff] }
 0x939   : > { %v16696_v23 = vmax.f32 %v6921_v15, %v6935_v3  ;;  %v6867_v15 = vadd.f32 %v16672_v56, %v16467_v42  ;;  %v19083_v42 = vld [vmem:[#allocation166_spill] sm:$0xff] }
 0x93a   : > { %v6682_v12 = vpop.f32.mrf.mxu2 }
 0x93b   : > { %v6820_v51 = vadd.f32 %v6682_v12, %v5276_v9  ;;  %v6378_v27 = vpop.f32.mrf.mxu1  ;;  %v19081_v9 = vld [vmem:[#allocation65_spill] sm:$0xff]  ;;  %v6923_v39 = vmax.f32 %v6867_v15, 0.0  ;;  %v16728_v24 = vpop.f32.mrf.mxu0 }
 0x93c   : > { %v6379_v62 = vadd.f32 %v6378_v27, %v6194_v47  ;;  %v19082_v47 = vld [vmem:[#allocation53_spill] sm:$0xff]  ;;  %v6015_v27 = vadd.f32 %v16624_v7, %v19083_v42 }
 0x93d   : > { %v6880_v4 = vadd.f32 %v16672_v56, %v6820_v51  ;;  %v3657_v12 = vadd.f32 %v19082_v47, %v19081_v9  ;;  %v10785_v42 = vld [vmem:[%s18599_s3 + $0x1b78] sm:$0xff] }
 0x93e   : > { %10851 = vmatmul.msk.f32.gmra.mxu1 %vm1016_vm1, %v10773_v54  ;;  %v19084_v54 = vld [vmem:[#allocation122_spill] sm:$0xff]  ;;  %v6200_v45 = vadd.f32 %v16635_v11, %v6015_v27 }
 0x93f   : > { %v6936_v34 = vmax.f32 %v6880_v4, 0.0  ;;  %10891 = vmatmul.msk.f32.gmra.mxu2 %vm3066_vm2, %v6379_v62  ;;  %v5278_v62 = vadd.f32 %v19084_v54, %v3657_v12  ;;  %v6869_v12 = vadd.f32 %v16672_v56, %v16509_v1  ;;  %v19091_v1 = vld [vmem:[#allocation170_spill] sm:$0xff] }
 0x941   : > { %v16716_v19 = vmax.f32 %v6922_v44, %v6936_v34  ;;  %v16739_v44 = vpop.f32.mrf.mxu3 }
 0x942   : > { %v6685_v53 = vpop.f32.mrf.mxu2 }
 0x943   : > { %v6821_v3 = vadd.f32 %v6685_v53, %v5277_v16  ;;  %v6381_v13 = vpop.f32.mrf.mxu1  ;;  %v19085_v16 = vld [vmem:[#allocation49_spill] sm:$0xff]  ;;  %v6924_v53 = vmax.f32 %v6868_v0, 0.0 }
 0x944   : > { %v6382_v58 = vadd.f32 %v6381_v13, %v6197_v31  ;;  %v19086_v31 = vld [vmem:[#allocation52_spill] sm:$0xff] }
 0x945   : > { %v6881_v33 = vadd.f32 %v16672_v56, %v6821_v3  ;;  %v3660_v11 = vadd.f32 %v19086_v31, %v19085_v16  ;;  %v6018_v3 = vadd.f32 %v16642_v40, %v19087_v32  ;;  %v19088_v13 = vld [vmem:[#allocation44_spill] sm:$0xff]  ;;  %v6870_v31 = vadd.f32 %v16672_v56, %v16532_v38  ;;  %v10789_v32 = vld [vmem:[%s18599_s3 + $0x1b98] sm:$0xff] }
 0x946   : > { %10852 = vmatmul.msk.f32.gmra.mxu1 %vm1016_vm1, %v10777_v49 }
 0x947   : > { %v6937_v51 = vmax.f32 %v6881_v33, 0.0  ;;  %10892 = vmatmul.msk.f32.gmra.mxu2 %vm3066_vm2, %v6382_v58  ;;  %v5279_v49 = vadd.f32 %v19088_v13, %v3660_v11  ;;  %v16752_v58 = vpop.f32.mrf.mxu0  ;;  %v6203_v9 = vadd.f32 %v16656_v43, %v6018_v3  ;;  %v19093_v13 = vld [vmem:[#allocation55_spill] sm:$0xff] }
 0x949   : > { %v16734_v4 = vmax.f32 %v6923_v39, %v6937_v51  ;;  %v16762_v40 = vpop.f32.mrf.mxu3 }
 0x94a   : > { %v6688_v20 = vpop.f32.mrf.mxu2 }
 0x94b   : > { %v6822_v34 = vadd.f32 %v6688_v20, %v5278_v62  ;;  %v6384_v52 = vpop.f32.mrf.mxu1  ;;  %v19089_v62 = vld [vmem:[#allocation14_spill] sm:$0xff]  ;;  %v6925_v20 = vmax.f32 %v6869_v12, 0.0  ;;  %v19095_v12 = vld [vmem:[#allocation172_spill] sm:$0xff] }
 0x94c   : > { %v6385_v18 = vadd.f32 %v6384_v52, %v6200_v45  ;;  %v19090_v45 = vld [vmem:[#allocation15_spill] sm:$0xff]  ;;  %v19092_v52 = vld [vmem:[#allocation126_spill] sm:$0xff] }
 0x94d   : > { %v6882_v7 = vadd.f32 %v16672_v56, %v6822_v34  ;;  %v3663_v43 = vadd.f32 %v19090_v45, %v19089_v62  ;;  %v6021_v34 = vadd.f32 %v16664_v46, %v19091_v1  ;;  %v6871_v45 = vadd.f32 %v16672_v56, %v16550_v48  ;;  %v19099_v48 = vld [vmem:[#allocation174_spill] sm:$0xff] }
 0x94e   : > { %10853 = vmatmul.msk.f32.gmra.mxu1 %vm1016_vm1, %v10781_v14 }
 0x94f   : > { %v6938_v15 = vmax.f32 %v6882_v7, 0.0  ;;  %10893 = vmatmul.msk.f32.gmra.mxu2 %vm3066_vm2, %v6385_v18  ;;  %v5280_v14 = vadd.f32 %v19092_v52, %v3663_v43  ;;  %v6206_v7 = vadd.f32 %v16681_v10, %v6021_v34  ;;  %v16777_v11 = vpop.f32.mrf.mxu0  ;;  %v19097_v52 = vld [vmem:[#allocation54_spill] sm:$0xff] }
 0x951   : > { %v16754_v33 = vmax.f32 %v6924_v53, %v6938_v15 }
 0x952   : > { %v6691_v47 = vpop.f32.mrf.mxu2 }
 0x953   : > { %v6823_v39 = vadd.f32 %v6691_v47, %v5279_v49  ;;  %v6387_v51 = vpop.f32.mrf.mxu1  ;;  %v19094_v49 = vld [vmem:[#allocation57_spill] sm:$0xff]  ;;  %v16786_v47 = vpop.f32.mrf.mxu3 }
 0x954   : > { %v6388_v27 = vadd.f32 %v6387_v51, %v6203_v9  ;;  %v3666_v10 = vadd.f32 %v19094_v49, %v19093_v13  ;;  %v6926_v9 = vmax.f32 %v6870_v31, 0.0  ;;  %v19096_v51 = vld [vmem:[#allocation90_spill] sm:$0xff]  ;;  %v6027_v31 = vadd.f32 %v16714_v37, %v19099_v48 }
 0x955   : > { %v6883_v54 = vadd.f32 %v16672_v56, %v6823_v39  ;;  %v6024_v39 = vadd.f32 %v16690_v29, %v19095_v12  ;;  %v6872_v49 = vadd.f32 %v16672_v56, %v16563_v25  ;;  %v19103_v25 = vld [vmem:[#allocation176_spill] sm:$0xff] }
 0x956   : > { %10854 = vmatmul.msk.f32.gmra.mxu1 %vm1016_vm1, %v10785_v42  ;;  %v5281_v42 = vadd.f32 %v19096_v51, %v3666_v10  ;;  %v19102_v51 = vld [vmem:[#allocation17_spill] sm:$0xff] }
 0x957   : > { %v6939_v0 = vmax.f32 %v6883_v54, 0.0  ;;  %10894 = vmatmul.msk.f32.gmra.mxu2 %vm3066_vm2, %v6388_v27  ;;  %v6209_v54 = vadd.f32 %v16704_v55, %v6024_v39  ;;  %v6220_v34 = vpop.f32.mrf.mxu0  ;;  %v6927_v55 = vmax.f32 %v6871_v45, 0.0  ;;  %v19101_v39 = vld [vmem:[#allocation16_spill] sm:$0xff]  ;;  %v6030_v45 = vadd.f32 %v16739_v44, %v19103_v25 }
 0x959   : > { %v16772_v18 = vmax.f32 %v6925_v20, %v6939_v0  ;;  %v10793_v0 = vld [vmem:[%s18599_s3 + $0x1bb8] sm:$0xff] }
 0x95a   : > { %v6694_v16 = vpop.f32.mrf.mxu2 }
 0x95b   : > { %v6824_v53 = vadd.f32 %v6694_v16, %v5280_v14  ;;  %v6390_v15 = vpop.f32.mrf.mxu1  ;;  %v19098_v14 = vld [vmem:[#allocation56_spill] sm:$0xff] }
 0x95c   : > { %v6391_v3 = vadd.f32 %v6390_v15, %v6206_v7  ;;  %v3669_v7 = vadd.f32 %v19098_v14, %v19097_v52  ;;  %v6873_v52 = vadd.f32 %v16672_v56, %v16578_v61  ;;  %v19107_v61 = vld [vmem:[#allocation178_spill] sm:$0xff] }
 0x95d   : > { %v6884_v46 = vadd.f32 %v16672_v56, %v6824_v53  ;;  %v19100_v53 = vld [vmem:[#allocation138_spill] sm:$0xff] }
 0x95e   : > { %10855 = vmatmul.msk.f32.gmra.mxu1 %vm1016_vm1, %v10789_v32  ;;  %v5282_v15 = vadd.f32 %v19100_v53, %v3669_v7  ;;  %v16808_v32 = vpop.f32.mrf.mxu3  ;;  %v19106_v53 = vld [vmem:[#allocation61_spill] sm:$0xff] }
 0x95f   : > { %v6940_v38 = vmax.f32 %v6884_v46, 0.0  ;;  %10895 = vmatmul.msk.f32.gmra.mxu2 %vm3066_vm2, %v6391_v3  ;;  %v6212_v46 = vadd.f32 %v16728_v24, %v6027_v31  ;;  %v6223_v24 = vpop.f32.mrf.mxu0  ;;  %v19105_v31 = vld [vmem:[#allocation59_spill] sm:$0xff] }
 0x961   : > { %v16792_v27 = vmax.f32 %v6926_v9, %v6940_v38  ;;  %v10797_v38 = vld [vmem:[%s18599_s3 + $0x1bd8] sm:$0xff] }
 0x962   : > { %v6697_v62 = vpop.f32.mrf.mxu2 }
 0x963   : > { %v6825_v43 = vadd.f32 %v6697_v62, %v5281_v42  ;;  %v6393_v20 = vpop.f32.mrf.mxu1  ;;  %v3672_v42 = vadd.f32 %v19102_v51, %v19101_v39  ;;  %v6874_v39 = vadd.f32 %v16672_v56, %v16595_v2 }
 0x964   : > { %v6394_v1 = vadd.f32 %v6393_v20, %v6209_v54  ;;  %v6928_v54 = vmax.f32 %v6872_v49, 0.0  ;;  %v19108_v49 = vld [vmem:[#allocation141_spill] sm:$0xff] }
 0x965   : > { %v6885_v29 = vadd.f32 %v16672_v56, %v6825_v43  ;;  %v19104_v43 = vld [vmem:[#allocation36_spill] sm:$0xff] }
 0x966   : > { %10856 = vmatmul.msk.f32.gmra.mxu1 %vm1016_vm1, %v10793_v0  ;;  %v5283_v20 = vadd.f32 %v19104_v43, %v3672_v42  ;;  %v6041_v14 = vpop.f32.mrf.mxu3  ;;  %v19110_v43 = vld [vmem:[#allocation60_spill] sm:$0xff] }
 0x967   : > { %v6941_v16 = vmax.f32 %v6885_v29, 0.0  ;;  %10896 = vmatmul.msk.f32.gmra.mxu2 %vm3066_vm2, %v6394_v1  ;;  %v6215_v1 = vadd.f32 %v16752_v58, %v6030_v45  ;;  %v6929_v58 = vmax.f32 %v6873_v52, 0.0  ;;  %v19109_v45 = vld [vmem:[#allocation58_spill] sm:$0xff] }
 0x968   : > { %v19112_v52 = vld [vmem:[#allocation110_spill] sm:$0xff] }
 0x969   : > { %v16810_v3 = vmax.f32 %v6927_v55, %v6941_v16  ;;  %v10801_v16 = vld [vmem:[%s18599_s3 + $0x1bf8] sm:$0xff] }
 0x96a   : > { %v6700_v13 = vpop.f32.mrf.mxu2 }
 0x96b   : > { %v6826_v10 = vadd.f32 %v6700_v13, %v5282_v15  ;;  %v6396_v9 = vpop.f32.mrf.mxu1  ;;  %v3675_v15 = vadd.f32 %v19106_v53, %v19105_v31  ;;  %v6033_v13 = vadd.f32 %v16762_v40, %v19107_v61  ;;  %v3678_v40 = vadd.f32 %v19110_v43, %v19109_v45  ;;  %v19114_v61 = vld [vmem:[#allocation19_spill] sm:$0xff] }
 0x96c   : > { %v6397_v12 = vadd.f32 %v6396_v9, %v6212_v46  ;;  %v6226_v9 = vpop.f32.mrf.mxu0 }
 0x96d   : > { %v6886_v37 = vadd.f32 %v16672_v56, %v6826_v10  ;;  %v5284_v10 = vadd.f32 %v19108_v49, %v3675_v15 }
 0x96e   : > { %10857 = vmatmul.msk.f32.gmra.mxu1 %vm1016_vm1, %v10797_v38 }
 0x96f   : > { %v6942_v62 = vmax.f32 %v6886_v37, 0.0  ;;  %10897 = vmatmul.msk.f32.gmra.mxu2 %vm3066_vm2, %v6397_v12  ;;  %v6218_v12 = vadd.f32 %v16777_v11, %v6033_v13 }
 0x971   : > { %v16826_v0 = vmax.f32 %v6928_v54, %v6942_v62  ;;  %v6044_v62 = vpop.f32.mrf.mxu3 }
 0x972   : > { %v6703_v29 = vpop.f32.mrf.mxu2 }
 0x973   : > { %v6827_v7 = vadd.f32 %v6703_v29, %v5283_v20  ;;  %v6399_v55 = vpop.f32.mrf.mxu1  ;;  %v6930_v20 = vmax.f32 %v6874_v39, 0.0  ;;  %v19111_v29 = vld [vmem:[#allocation180_spill] sm:$0xff] }
 0x974   : > { %v6400_v48 = vadd.f32 %v6399_v55, %v6215_v1  ;;  %v6036_v11 = vadd.f32 %v16786_v47, %v19111_v29  ;;  %v19118_v29 = vld [vmem:[#allocation67_spill] sm:$0xff] }
 0x975   : > { %v6887_v44 = vadd.f32 %v16672_v56, %v6827_v7  ;;  %v5285_v7 = vadd.f32 %v19112_v52, %v3678_v40 }
 0x976   : > { %10858 = vmatmul.msk.f32.gmra.mxu1 %vm1016_vm1, %v10801_v16  ;;  %v6221_v2 = vadd.f32 %v6220_v34, %v6036_v11 }
 0x977   : > { %v6943_v46 = vmax.f32 %v6887_v44, 0.0  ;;  %10898 = vmatmul.msk.f32.gmra.mxu2 %vm3066_vm2, %v6400_v48  ;;  %v6875_v48 = vadd.f32 %v16672_v56, %v16610_v41  ;;  %v6229_v44 = vpop.f32.mrf.mxu0 }
 0x979   : > { %v16842_v38 = vmax.f32 %v6929_v58, %v6943_v46  ;;  %v19113_v46 = vld [vmem:[#allocation18_spill] sm:$0xff]  ;;  %v6931_v49 = vmax.f32 %v6875_v48, 0.0  ;;  %v6047_v47 = vpop.f32.mrf.mxu3 }
 0x97a   : > { %v6706_v37 = vpop.f32.mrf.mxu2  ;;  %v3681_v13 = vadd.f32 %v19114_v61, %v19113_v46 }
 0x97b   : > { %v6828_v51 = vadd.f32 %v6706_v37, %v5284_v10  ;;  %v6402_v42 = vpop.f32.mrf.mxu1  ;;  %v19116_v37 = vld [vmem:[#allocation114_spill] sm:$0xff] }
 0x97c   : > { %v6403_v54 = vadd.f32 %v6402_v42, %v6218_v12  ;;  %v19115_v12 = vld [vmem:[#allocation183_spill] sm:$0xff]  ;;  %v5286_v39 = vadd.f32 %v19116_v37, %v3681_v13 }
 0x97d   : > { %v6888_v25 = vadd.f32 %v16672_v56, %v6828_v51  ;;  %v6039_v34 = vadd.f32 %v16808_v32, %v19115_v12 }
 0x97f   : > { %v6944_v1 = vmax.f32 %v6888_v25, 0.0  ;;  %10899 = vmatmul.msk.f32.gmra.mxu2 %vm3066_vm2, %v6403_v54  ;;  %v6224_v51 = vadd.f32 %v6223_v24, %v6039_v34  ;;  %v6876_v54 = vadd.f32 %v16672_v56, %v16627_v8  ;;  %v6232_v40 = vpop.f32.mrf.mxu0  ;;  %v19120_v24 = vld [vmem:[#allocation118_spill] sm:$0xff] }
 0x981   : > { %v16854_v55 = vmax.f32 %v6930_v20, %v6944_v1  ;;  %v19117_v1 = vld [vmem:[#allocation63_spill] sm:$0xff]  ;;  %v6932_v52 = vmax.f32 %v6876_v54, 0.0  ;;  %v6050_v48 = vpop.f32.mrf.mxu3 }
 0x982   : > { %v6709_v16 = vpop.f32.mrf.mxu2  ;;  %v3684_v11 = vadd.f32 %v19118_v29, %v19117_v1 }
 0x983   : > { %v6829_v31 = vadd.f32 %v6709_v16, %v5285_v7  ;;  %v6405_v53 = vpop.f32.mrf.mxu1  ;;  %v19119_v7 = vld [vmem:[#allocation185_spill] sm:$0xff] }
 0x984   : > { %v6406_v15 = vadd.f32 %v6405_v53, %v6221_v2  ;;  %v6042_v2 = vadd.f32 %v6041_v14, %v19119_v7  ;;  %v5287_v16 = vadd.f32 %v19120_v24, %v3684_v11  ;;  %v19124_v11 = vld [vmem:[#allocation20_spill] sm:$0xff] }
 0x985   : > { %v6889_v58 = vadd.f32 %v16672_v56, %v6829_v31 }
 0x986   : > { %v6227_v8 = vadd.f32 %v6226_v9, %v6042_v2  ;;  %v19123_v9 = vld [vmem:[#allocation121_spill] sm:$0xff] }
 0x987   : > { %v6945_v10 = vmax.f32 %v6889_v58, 0.0  ;;  %10900 = vmatmul.msk.f32.gmra.mxu2 %vm3066_vm2, %v6406_v15  ;;  %v6877_v15 = vadd.f32 %v16672_v56, %v16644_v21  ;;  %v6235_v14 = vpop.f32.mrf.mxu0 }
 0x989   : > { %v16865_v41 = vmax.f32 %v6931_v49, %v6945_v10  ;;  %v19121_v49 = vld [vmem:[#allocation62_spill] sm:$0xff]  ;;  %v6933_v34 = vmax.f32 %v6877_v15, 0.0 }
 0x98a   : > { %v6712_v42 = vpop.f32.mrf.mxu2  ;;  %v19122_v10 = vld [vmem:[#allocation66_spill] sm:$0xff] }
 0x98b   : > { %v6830_v25 = vadd.f32 %v6712_v42, %v5286_v39  ;;  %v6408_v45 = vpop.f32.mrf.mxu1  ;;  %v3687_v12 = vadd.f32 %v19122_v10, %v19121_v49  ;;  %v6045_v39 = vadd.f32 %v6044_v62, %v16115_v60  ;;  %v6048_v62 = vadd.f32 %v6047_v47, %v16136_v28  ;;  %v19129_v28 = vld [vmem:[#allocation129_spill] sm:$0xff] }
 0x98c   : > { %v6409_v43 = vadd.f32 %v6408_v45, %v6224_v51  ;;  %v6878_v45 = vadd.f32 %v16672_v56, %v16659_v22  ;;  %v6051_v10 = vadd.f32 %v6050_v48, %v16165_v63 }
 0x98d   : > { %v6890_v20 = vadd.f32 %v16672_v56, %v6830_v25  ;;  %v5288_v51 = vadd.f32 %v19123_v9, %v3687_v12  ;;  %v6230_v21 = vadd.f32 %v6229_v44, %v6045_v39  ;;  %v6053_v25 = vpop.f32.mrf.mxu3  ;;  %v19126_v44 = vld [vmem:[#allocation125_spill] sm:$0xff]  ;;  %v6233_v22 = vadd.f32 %v6232_v40, %v6048_v62 }
 0x98e   : > { %v6934_v7 = vmax.f32 %v6878_v45, 0.0  ;;  %v6236_v12 = vadd.f32 %v6235_v14, %v6051_v10 }
 0x98f   : > { %v6946_v32 = vmax.f32 %v6890_v20, 0.0  ;;  %10901 = vmatmul.msk.f32.gmra.mxu2 %vm3066_vm2, %v6409_v43  ;;  %v6238_v24 = vpop.f32.mrf.mxu0 }
 0x991   : > { %v16875_v31 = vmax.f32 %v6932_v52, %v6946_v32  ;;  %v19125_v52 = vld [vmem:[#allocation68_spill] sm:$0xff] }
 0x992   : > { %v6715_v53 = vpop.f32.mrf.mxu2  ;;  %v3690_v32 = vadd.f32 %v19125_v52, %v19124_v11 }
 0x993   : > { %v6831_v58 = vadd.f32 %v6715_v53, %v5287_v16  ;;  %v6411_v46 = vpop.f32.mrf.mxu1 }
 0x994   : > { %v6412_v61 = vadd.f32 %v6411_v46, %v6227_v8  ;;  %v5289_v2 = vadd.f32 %v19126_v44, %v3690_v32  ;;  %v19133_v32 = vld [vmem:[#allocation69_spill] sm:$0xff]  ;;  %v19135_v44 = vld [vmem:[#allocation135_spill] sm:$0xff] }
 0x995   : > { %v6891_v13 = vadd.f32 %v16672_v56, %v6831_v58  ;;  %v6056_v46 = vpop.f32.mrf.mxu3 }
 0x996   : > { %v6057_v62 = vadd.f32 %v6056_v46, %v16209_v17 }
 0x997   : > { %v6947_v37 = vmax.f32 %v6891_v13, 0.0  ;;  %10902 = vmatmul.msk.f32.gmra.mxu2 %vm3066_vm2, %v6412_v61  ;;  %v19127_v61 = vld [vmem:[#allocation21_spill] sm:$0xff]  ;;  %v19128_v13 = vld [vmem:[#allocation22_spill] sm:$0xff] }
 0x998   : > { %v3693_v49 = vadd.f32 %v19128_v13, %v19127_v61 }
 0x999   : > { %v16885_v42 = vmax.f32 %v6933_v34, %v6947_v37  ;;  %v6241_v37 = vpop.f32.mrf.mxu0 }
 0x99a   : > { %v6718_v54 = vpop.f32.mrf.mxu2  ;;  %v5290_v47 = vadd.f32 %v19129_v28, %v3693_v49 }
 0x99b   : > { %v6832_v43 = vadd.f32 %v6718_v54, %v5288_v51  ;;  %v6414_v20 = vpop.f32.mrf.mxu1  ;;  %v19130_v51 = vld [vmem:[#allocation70_spill] sm:$0xff] }
 0x99c   : > { %v6415_v1 = vadd.f32 %v6414_v20, %v6230_v21  ;;  %v19131_v21 = vld [vmem:[#allocation72_spill] sm:$0xff] }
 0x99d   : > { %v6892_v29 = vadd.f32 %v16672_v56, %v6832_v43  ;;  %v3696_v54 = vadd.f32 %v19131_v21, %v19130_v51  ;;  %v6059_v45 = vpop.f32.mrf.mxu3  ;;  %v6054_v43 = vadd.f32 %v6053_v25, %v16186_v36  ;;  %v19132_v20 = vld [vmem:[#allocation132_spill] sm:$0xff]  ;;  %v6242_v36 = vadd.f32 %v6241_v37, %v6057_v62 }
 0x99e   : > { %v6060_v61 = vadd.f32 %v6059_v45, %v16230_v57 }
 0x99f   : > { %v6948_v60 = vmax.f32 %v6892_v29, 0.0  ;;  %10903 = vmatmul.msk.f32.gmra.mxu2 %vm3066_vm2, %v6415_v1  ;;  %v5291_v1 = vadd.f32 %v19132_v20, %v3696_v54  ;;  %v6239_v63 = vadd.f32 %v6238_v24, %v6054_v43 }
 0x9a1   : > { %v16895_v16 = vmax.f32 %v6934_v7, %v6948_v60  ;;  %v6244_v52 = vpop.f32.mrf.mxu0  ;;  %v19134_v7 = vld [vmem:[#allocation71_spill] sm:$0xff] }
 0x9a2   : > { %v6721_v8 = vpop.f32.mrf.mxu2  ;;  %v3699_v60 = vadd.f32 %v19134_v7, %v19133_v32  ;;  %v6245_v13 = vadd.f32 %v6244_v52, %v6060_v61 }
 0x9a3   : > { %v16897_v53 = vadd.f32 %v6721_v8, %v5289_v2  ;;  %v6417_v15 = vpop.f32.mrf.mxu1 }
 0x9a4   : > { %v6418_v58 = vadd.f32 %v6417_v15, %v6233_v22  ;;  %v5292_v2 = vadd.f32 %v19135_v44, %v3699_v60 }
 0x9a5   : > { %v6062_v22 = vpop.f32.mrf.mxu3 }
 0x9a6   : > { %v6063_v46 = vadd.f32 %v6062_v22, %v16259_v30 }
 0x9a7   : > { %10904 = vmatmul.msk.f32.gmra.mxu2 %vm3066_vm2, %v6418_v58 }
 0x9a9   : > { %v6247_v58 = vpop.f32.mrf.mxu0 }
 0x9aa   : > { %v6724_v34 = vpop.f32.mrf.mxu2 }
 0x9ab   : > { %v16904_v39 = vadd.f32 %v6724_v34, %v5290_v47  ;;  %v6420_v40 = vpop.f32.mrf.mxu1 }
 0x9ac   : > { %v6421_v9 = vadd.f32 %v6420_v40, %v6236_v12  ;;  %v6248_v12 = vadd.f32 %v6247_v58, %v6063_v46  ;;  %v19137_v46 = vld [vmem:[#allocation33_spill] sm:$0xff] }
 0x9ad   : > { %v6065_v10 = vpop.f32.mrf.mxu3 }
 0x9ae   : > { %v6066_v57 = vadd.f32 %v6065_v10, %v16280_v35 }
 0x9af   : > { %10905 = vmatmul.msk.f32.gmra.mxu2 %vm3066_vm2, %v6421_v9 }
 0x9b1   : > { %v6250_v47 = vpop.f32.mrf.mxu0 }
 0x9b2   : > { %v6727_v48 = vpop.f32.mrf.mxu2  ;;  %v6251_v51 = vadd.f32 %v6250_v47, %v6066_v57  ;;  %v19139_v57 = vld [vmem:[#allocation85_spill] sm:$0xff] }
 0x9b3   : > { %v16911_v29 = vadd.f32 %v6727_v48, %v5291_v1  ;;  %v6423_v14 = vpop.f32.mrf.mxu1 }
 0x9b4   : > { %v6424_v11 = vadd.f32 %v6423_v14, %v6239_v63 }
 0x9b5   : > { %v6068_v9 = vpop.f32.mrf.mxu3 }
 0x9b6   : > { %v6069_v30 = vadd.f32 %v6068_v9, %v16303_v6 }
 0x9b7   : > { %10906 = vmatmul.msk.f32.gmra.mxu2 %vm3066_vm2, %v6424_v11 }
 0x9b9   : > { %v6253_v54 = vpop.f32.mrf.mxu0 }
 0x9ba   : > { %v6730_v25 = vpop.f32.mrf.mxu2  ;;  %v6254_v1 = vadd.f32 %v6253_v54, %v6069_v30 }
 0x9bb   : > { %v16918_v8 = vadd.f32 %v6730_v25, %v5292_v2  ;;  %v6426_v24 = vpop.f32.mrf.mxu1 }
 0x9bc   : > { %v6427_v15 = vadd.f32 %v6426_v24, %v6242_v36 }
 0x9bd   : > { %v6071_v20 = vpop.f32.mrf.mxu3 }
 0x9be   : > { %v6072_v35 = vadd.f32 %v6071_v20, %v16324_v50  ;;  %v19141_v20 = vld [vmem:[#allocation161_spill] sm:$0xff] }
 0x9bf   : > { %10907 = vmatmul.msk.f32.gmra.mxu2 %vm3066_vm2, %v6427_v15 }
 0x9c1   : > { %v6256_v11 = vpop.f32.mrf.mxu0 }
 0x9c2   : > { %v16922_v49 = vpop.f32.mrf.mxu2  ;;  %v6257_v32 = vadd.f32 %v6256_v11, %v6072_v35 }
 0x9c3   : > { %v6429_v28 = vpop.f32.mrf.mxu1 }
 0x9c4   : > { %v6430_v17 = vadd.f32 %v6429_v28, %v6245_v13 }
 0x9c5   : > { %v6074_v52 = vpop.f32.mrf.mxu3 }
 0x9c6   : > { %v6075_v6 = vadd.f32 %v6074_v52, %v16353_v26  ;;  %v19142_v52 = vld [vmem:[#allocation88_spill] sm:$0xff] }
 0x9c7   : > { %10908 = vmatmul.msk.f32.gmra.mxu2 %vm3066_vm2, %v6430_v17  ;;  %v19136_v17 = vld [vmem:[#allocation31_spill] sm:$0xff] }
 0x9c8   : > { %v3732_v47 = vadd.f32 %v19137_v46, %v19136_v17 }
 0x9c9   : > { %v6259_v44 = vpop.f32.mrf.mxu0 }
 0x9ca   : > { %v16926_v34 = vpop.f32.mrf.mxu2  ;;  %v6260_v2 = vadd.f32 %v6259_v44, %v6075_v6  ;;  %v19144_v6 = vld [vmem:[#allocation163_spill] sm:$0xff] }
 0x9cb   : > { %v6432_v37 = vpop.f32.mrf.mxu1 }
 0x9cc   : > { %v6433_v40 = vadd.f32 %v6432_v37, %v6248_v12 }
 0x9cd   : > { %v6077_v36 = vpop.f32.mrf.mxu3 }
 0x9ce   : > { %v6078_v15 = vadd.f32 %v6077_v36, %v16374_v59  ;;  %v19138_v59 = vld [vmem:[#allocation159_spill] sm:$0xff] }
 0x9cf   : > { %10909 = vmatmul.msk.f32.gmra.mxu2 %vm3066_vm2, %v6433_v40  ;;  %v5303_v12 = vadd.f32 %v19138_v59, %v3732_v47  ;;  %v6893_v40 = vadd.f32 %v16672_v56, %v16897_v53  ;;  %v19147_v47 = vld [vmem:[#allocation165_spill] sm:$0xff] }
 0x9d0   : > { %v6263_v58 = vadd.f32 %v16397_v5, %v6078_v15 }
 0x9d2   : > { %v16930_v21 = vpop.f32.mrf.mxu2 }
 0x9d3   : > { %v6435_v45 = vpop.f32.mrf.mxu1 }
 0x9d4   : > { %v6436_v43 = vadd.f32 %v6435_v45, %v6251_v51  ;;  %v19140_v51 = vld [vmem:[#allocation8_spill] sm:$0xff]  ;;  %v6949_v45 = vmax.f32 %v6893_v40, 0.0  ;;  %v19148_v40 = vld [vmem:[#allocation23_spill] sm:$0xff] }
 0x9d5   : > { %v3735_v54 = vadd.f32 %v19140_v51, %v19139_v57  ;;  %v19150_v51 = vld [vmem:[#allocation139_spill] sm:$0xff] }
 0x9d7   : > { %10910 = vmatmul.msk.f32.gmra.mxu2 %vm3066_vm2, %v6436_v43  ;;  %v5304_v30 = vadd.f32 %v19141_v20, %v3735_v54  ;;  %v19152_v20 = vld [vmem:[#allocation109_spill] sm:$0xff] }
 0x9da   : > { %v16934_v63 = vpop.f32.mrf.mxu2 }
 0x9db   : > { %v6438_v48 = vpop.f32.mrf.mxu1 }
 0x9dc   : > { %v6439_v14 = vadd.f32 %v6438_v48, %v6254_v1 }
 0x9df   : > { %10911 = vmatmul.msk.f32.gmra.mxu2 %vm3066_vm2, %v6439_v14  ;;  %v6894_v14 = vadd.f32 %v16672_v56, %v16904_v39 }
 0x9e2   : > { %v16938_v7 = vpop.f32.mrf.mxu2 }
 0x9e3   : > { %v6441_v60 = vpop.f32.mrf.mxu1 }
 0x9e4   : > { %v6442_v62 = vadd.f32 %v6441_v60, %v6257_v32  ;;  %v19143_v32 = vld [vmem:[#allocation87_spill] sm:$0xff] }
 0x9e5   : > { %v3738_v60 = vadd.f32 %v19143_v32, %v19142_v52 }
 0x9e7   : > { %10912 = vmatmul.msk.f32.gmra.mxu2 %vm3066_vm2, %v6442_v62  ;;  %v6950_v62 = vmax.f32 %v6894_v14, 0.0 }
 0x9ea   : > { %v16942_v22 = vpop.f32.mrf.mxu2 }
 0x9eb   : > { %v6444_v25 = vpop.f32.mrf.mxu1 }
 0x9ec   : > { %v6445_v24 = vadd.f32 %v6444_v25, %v6260_v2  ;;  %v5305_v2 = vadd.f32 %v19144_v6, %v3738_v60  ;;  %v19155_v60 = vld [vmem:[#allocation76_spill] sm:$0xff] }
 0x9ef   : > { %10913 = vmatmul.msk.f32.gmra.mxu2 %vm3066_vm2, %v6445_v24  ;;  %v6895_v24 = vadd.f32 %v16672_v56, %v16911_v29  ;;  %v6896_v29 = vadd.f32 %v16672_v56, %v16918_v8  ;;  %v19154_v8 = vld [vmem:[#allocation74_spill] sm:$0xff] }
 0x9f1   : > { %v6951_v17 = vmax.f32 %v6895_v24, 0.0  ;;  %v19157_v24 = vld [vmem:[#allocation38_spill] sm:$0xff] }
 0x9f2   : > { %v16946_v50 = vpop.f32.mrf.mxu2 }
 0x9f3   : > { %v6447_v61 = vpop.f32.mrf.mxu1 }
 0x9f4   : > { %v6448_v13 = vadd.f32 %v6447_v61, %v6263_v58  ;;  %v19145_v58 = vld [vmem:[#allocation35_spill] sm:$0xff]  ;;  %v19146_v61 = vld [vmem:[#allocation104_spill] sm:$0xff] }
 0x9f7   : > { %10914 = vmatmul.msk.f32.gmra.mxu2 %vm3066_vm2, %v6448_v13  ;;  %v3741_v13 = vadd.f32 %v19146_v61, %v19145_v58 }
 0x9f9   : > { %v5306_v59 = vadd.f32 %v19147_v47, %v3741_v13  ;;  %v19159_v13 = vld [vmem:[#allocation169_spill] sm:$0xff] }
 0x9fa   : > { %v16950_v10 = vpop.f32.mrf.mxu2 }
 0xa02   : > { %v16952_v26 = vpop.f32.mrf.mxu2 }
 0xa0a   : > { %v16954_v28 = vpop.f32.mrf.mxu2 }
 0xa12   : > { %v6763_v37 = vpop.f32.mrf.mxu2 }
 0xa13   : > { %v6847_v5 = vadd.f32 %v6763_v37, %v5303_v12 }
 0xa15   : > { %v6907_v9 = vadd.f32 %v16672_v56, %v6847_v5  ;;  %v19149_v5 = vld [vmem:[#allocation24_spill] sm:$0xff] }
 0xa17   : > { %v6963_v43 = vmax.f32 %v6907_v9, 0.0  ;;  %v3702_v9 = vadd.f32 %v19149_v5, %v19148_v40 }
 0xa19   : > { %v6991_v1 = vmax.f32 %v6949_v45, %v6963_v43  ;;  %v5293_v54 = vadd.f32 %v19150_v51, %v3702_v9  ;;  %v19151_v43 = vld [vmem:[#allocation103_spill] sm:$0xff]  ;;  %v19162_v9 = vld [vmem:[#allocation106_spill] sm:$0xff]  ;;  %v19163_v51 = vld [vmem:[#allocation112_spill] sm:$0xff] }
 0xa1a   : > { %v6766_v48 = vpop.f32.mrf.mxu2 }
 0xa1b   : > { %v16968_v11 = vmax.f32 %v16696_v23, %v6991_v1  ;;  %v6848_v35 = vadd.f32 %v6766_v48, %v5304_v30  ;;  %v3744_v30 = vadd.f32 %v19152_v20, %v19151_v43  ;;  %v6952_v1 = vmax.f32 %v6896_v29, 0.0 }
 0xa1c   : > { %v6837_v48 = vadd.f32 %v16922_v49, %v5293_v54  ;;  %v19158_v49 = vld [vmem:[#allocation113_spill] sm:$0xff] }
 0xa1d   : > { %v6908_v53 = vadd.f32 %v16672_v56, %v6848_v35  ;;  %v19153_v35 = vld [vmem:[#allocation167_spill] sm:$0xff] }
 0xa1f   : > { %v6964_v44 = vmax.f32 %v6908_v53, 0.0  ;;  %v5307_v53 = vadd.f32 %v19153_v35, %v3744_v30  ;;  %v19165_v30 = vld [vmem:[#allocation171_spill] sm:$0xff]  ;;  %v19166_v35 = vld [vmem:[#allocation25_spill] sm:$0xff] }
 0xa21   : > { %v6992_v36 = vmax.f32 %v6950_v62, %v6964_v44  ;;  %v6897_v62 = vadd.f32 %v16672_v56, %v6837_v48 }
 0xa22   : > { %v6769_v25 = vpop.f32.mrf.mxu2 }
 0xa23   : > { %v16977_v39 = vmax.f32 %v16716_v19, %v6992_v36  ;;  %v6849_v23 = vadd.f32 %v6769_v25, %v5305_v2  ;;  %v19156_v2 = vld [vmem:[#allocation105_spill] sm:$0xff] }
 0xa25   : > { %v6909_v15 = vadd.f32 %v16672_v56, %v6849_v23  ;;  %v3747_v23 = vadd.f32 %v19158_v49, %v19157_v24  ;;  %v19171_v49 = vld [vmem:[#allocation173_spill] sm:$0xff] }
 0xa27   : > { %v6965_v46 = vmax.f32 %v6909_v15, 0.0  ;;  %v6953_v15 = vmax.f32 %v6897_v62, 0.0 }
 0xa29   : > { %v6993_v12 = vmax.f32 %v6951_v17, %v6965_v46  ;;  %v5308_v17 = vadd.f32 %v19159_v13, %v3747_v23  ;;  %v19173_v13 = vld [vmem:[#allocation27_spill] sm:$0xff] }
 0xa2a   : > { %v6772_v37 = vpop.f32.mrf.mxu2 }
 0xa2b   : > { %v16988_v19 = vmax.f32 %v16734_v4, %v6993_v12  ;;  %v6850_v57 = vadd.f32 %v6772_v37, %v5306_v59  ;;  %v3705_v4 = vadd.f32 %v19155_v60, %v19154_v8  ;;  %v19160_v59 = vld [vmem:[#allocation73_spill] sm:$0xff]  ;;  %v19161_v12 = vld [vmem:[#allocation75_spill] sm:$0xff] }
 0xa2c   : > { %v19168_v60 = vld [vmem:[#allocation145_spill] sm:$0xff] }
 0xa2d   : > { %v6910_v45 = vadd.f32 %v16672_v56, %v6850_v57  ;;  %v5294_v36 = vadd.f32 %v19156_v2, %v3705_v4 }
 0xa2f   : > { %v6966_v14 = vmax.f32 %v6910_v45, 0.0  ;;  %v6838_v58 = vadd.f32 %v16926_v34, %v5294_v36  ;;  %v19164_v34 = vld [vmem:[#allocation116_spill] sm:$0xff] }
 0xa30   : > { %v3750_v54 = vadd.f32 %v19164_v34, %v19163_v51  ;;  %v19177_v51 = vld [vmem:[#allocation175_spill] sm:$0xff] }
 0xa31   : > { %v6994_v52 = vmax.f32 %v6952_v1, %v6966_v14  ;;  %v6898_v37 = vadd.f32 %v16672_v56, %v6838_v58 }
 0xa32   : > { %v6775_v32 = vpop.f32.mrf.mxu2  ;;  %v5309_v1 = vadd.f32 %v19165_v30, %v3750_v54 }
 0xa33   : > { %v17000_v44 = vmax.f32 %v16754_v33, %v6994_v52  ;;  %v6851_v6 = vadd.f32 %v6775_v32, %v5307_v53  ;;  %v3708_v33 = vadd.f32 %v19161_v12, %v19160_v59  ;;  %v6954_v45 = vmax.f32 %v6898_v37, 0.0  ;;  %v19167_v53 = vld [vmem:[#allocation77_spill] sm:$0xff]  ;;  %v19174_v59 = vld [vmem:[#allocation147_spill] sm:$0xff] }
 0xa34   : > { %v19175_v37 = vld [vmem:[#allocation119_spill] sm:$0xff] }
 0xa35   : > { %v6911_v25 = vadd.f32 %v16672_v56, %v6851_v6  ;;  %v5295_v29 = vadd.f32 %v19162_v9, %v3708_v33  ;;  %v19169_v6 = vld [vmem:[#allocation115_spill] sm:$0xff] }
 0xa37   : > { %v6967_v61 = vmax.f32 %v6911_v25, 0.0  ;;  %v6839_v43 = vadd.f32 %v16930_v21, %v5295_v29  ;;  %v19170_v21 = vld [vmem:[#allocation120_spill] sm:$0xff] }
 0xa38   : > { %v3753_v2 = vadd.f32 %v19170_v21, %v19169_v6 }
 0xa39   : > { %v6995_v46 = vmax.f32 %v6953_v15, %v6967_v61  ;;  %v6899_v52 = vadd.f32 %v16672_v56, %v6839_v43  ;;  %v19172_v61 = vld [vmem:[#allocation26_spill] sm:$0xff]  ;;  %v19178_v43 = vld [vmem:[#allocation79_spill] sm:$0xff] }
 0xa3a   : > { %v6778_v47 = vpop.f32.mrf.mxu2  ;;  %v5310_v23 = vadd.f32 %v19171_v49, %v3753_v2 }
 0xa3b   : > { %v17012_v40 = vmax.f32 %v16772_v18, %v6995_v46  ;;  %v6852_v5 = vadd.f32 %v6778_v47, %v5308_v17  ;;  %v3711_v18 = vadd.f32 %v19167_v53, %v19166_v35  ;;  %v6955_v36 = vmax.f32 %v6899_v52, 0.0 }
 0xa3d   : > { %v6912_v57 = vadd.f32 %v16672_v56, %v6852_v5  ;;  %v5296_v4 = vadd.f32 %v19168_v60, %v3711_v18  ;;  %v19181_v18 = vld [vmem:[#allocation123_spill] sm:$0xff] }
 0xa3f   : > { %v6968_v20 = vmax.f32 %v6912_v57, 0.0  ;;  %v6840_v25 = vadd.f32 %v16934_v63, %v5296_v4  ;;  %v19176_v63 = vld [vmem:[#allocation124_spill] sm:$0xff] }
 0xa40   : > { %v3756_v5 = vadd.f32 %v19176_v63, %v19175_v37 }
 0xa41   : > { %v6996_v48 = vmax.f32 %v6954_v45, %v6968_v20  ;;  %v6900_v17 = vadd.f32 %v16672_v56, %v6840_v25  ;;  %v19179_v20 = vld [vmem:[#allocation28_spill] sm:$0xff]  ;;  %v19185_v25 = vld [vmem:[#allocation82_spill] sm:$0xff] }
 0xa42   : > { %v6781_v14 = vpop.f32.mrf.mxu2  ;;  %v5311_v34 = vadd.f32 %v19177_v51, %v3756_v5  ;;  %v7116_v5 = vld [vmem:[%s19187_s6 + $0x28] sm:$0xff] }
 0xa43   : > { %v17024_v32 = vmax.f32 %v16792_v27, %v6996_v48  ;;  %v6853_v8 = vadd.f32 %v6781_v14, %v5309_v1  ;;  %v3714_v27 = vadd.f32 %v19173_v13, %v19172_v61  ;;  %v6956_v9 = vmax.f32 %v6900_v17, 0.0  ;;  %v19180_v14 = vld [vmem:[#allocation149_spill] sm:$0xff]  ;;  %v19188_v13 = vld [vmem:[#allocation127_spill] sm:$0xff] }
 0xa45   : > { %v6913_v62 = vadd.f32 %v16672_v56, %v6853_v8  ;;  %v5297_v12 = vadd.f32 %v19174_v59, %v3714_v27  ;;  %v19189_v27 = vld [vmem:[#allocation131_spill] sm:$0xff] }
 0xa46   : > { %v3762_v17 = vadd.f32 %v19189_v27, %v19188_v13 }
 0xa47   : > { %v6969_v24 = vmax.f32 %v6913_v62, 0.0  ;;  %v6841_v29 = vadd.f32 %v16938_v7, %v5297_v12  ;;  %v19182_v7 = vld [vmem:[#allocation128_spill] sm:$0xff]  ;;  %v19183_v62 = vld [vmem:[#allocation177_spill] sm:$0xff] }
 0xa48   : > { %v3759_v52 = vadd.f32 %v19182_v7, %v19181_v18  ;;  %v19196_v7 = vld [vmem:[#allocation181_spill] sm:$0xff] }
 0xa49   : > { %v6997_v15 = vmax.f32 %v6955_v36, %v6969_v24  ;;  %v6901_v30 = vadd.f32 %v16672_v56, %v6841_v29  ;;  %v19184_v36 = vld [vmem:[#allocation78_spill] sm:$0xff]  ;;  %v19191_v29 = vld [vmem:[#allocation80_spill] sm:$0xff] }
 0xa4a   : > { %v6784_v58 = vpop.f32.mrf.mxu2  ;;  %v5312_v6 = vadd.f32 %v19183_v62, %v3759_v52 }
 0xa4b   : > { %v17036_v46 = vmax.f32 %v16810_v3, %v6997_v15  ;;  %v6854_v47 = vadd.f32 %v6784_v58, %v5310_v23  ;;  %v3717_v3 = vadd.f32 %v19179_v20, %v19178_v43  ;;  %v6957_v8 = vmax.f32 %v6901_v30, 0.0  ;;  %v19186_v15 = vld [vmem:[#allocation151_spill] sm:$0xff]  ;;  %v19193_v43 = vld [vmem:[#allocation153_spill] sm:$0xff]  ;;  %v19194_v30 = vld [vmem:[#allocation130_spill] sm:$0xff] }
 0xa4d   : > { %v6914_v33 = vadd.f32 %v16672_v56, %v6854_v47  ;;  %v5298_v35 = vadd.f32 %v19180_v14, %v3717_v3 }
 0xa4f   : > { %v6970_v57 = vmax.f32 %v6914_v33, 0.0  ;;  %v6842_v60 = vadd.f32 %v16942_v22, %v5298_v35  ;;  %v7118_v22 = vld [vmem:[%s19187_s6 + $0x38] sm:$0xff]  ;;  %v19190_v33 = vld [vmem:[#allocation179_spill] sm:$0xff] }
 0xa50   : > { %7144 = vmatpush.msrb.mxu1 %v7118_v22  ;;  %v5313_v37 = vadd.f32 %v19190_v33, %v3762_v17  ;;  %v19202_v22 = vld [vmem:[#allocation182_spill] sm:$0xff] }
 0xa51   : > { %v6998_v54 = vmax.f32 %v6956_v9, %v6970_v57  ;;  %v6902_v24 = vadd.f32 %v16672_v56, %v6842_v60  ;;  %v19192_v57 = vld [vmem:[#allocation81_spill] sm:$0xff] }
 0xa52   : > { %v6787_v45 = vpop.f32.mrf.mxu2  ;;  %v3723_v51 = vadd.f32 %v19192_v57, %v19191_v29  ;;  %v19197_v60 = vld [vmem:[#allocation29_spill] sm:$0xff] }
 0xa53   : > { %v17048_v1 = vmax.f32 %v16826_v0, %v6998_v54  ;;  %v6855_v48 = vadd.f32 %v6787_v45, %v5311_v34  ;;  %v3720_v0 = vadd.f32 %v19185_v25, %v19184_v36  ;;  %v6958_v47 = vmax.f32 %v6902_v24, 0.0  ;;  %v7115_v45 = vld [vmem:[%s19187_s6 + $0x20] sm:$0xff]  ;;  %v19200_v24 = vld [vmem:[#allocation133_spill] sm:$0xff] }
 0xa54   : > { %v5300_v20 = vadd.f32 %v19193_v43, %v3723_v51  ;;  %v19199_v36 = vld [vmem:[#allocation155_spill] sm:$0xff] }
 0xa55   : > { %v6915_v53 = vadd.f32 %v16672_v56, %v6855_v48  ;;  %v5299_v58 = vadd.f32 %v19186_v15, %v3720_v0  ;;  %v19195_v48 = vld [vmem:[#allocation134_spill] sm:$0xff] }
 0xa56   : > { %v3765_v14 = vadd.f32 %v19195_v48, %v19194_v30 }
 0xa57   : > { %v6971_v4 = vmax.f32 %v6915_v53, 0.0  ;;  %v6843_v59 = vadd.f32 %v16946_v50, %v5299_v58  ;;  %v6844_v53 = vadd.f32 %v16950_v10, %v5300_v20  ;;  %v19201_v10 = vld [vmem:[#allocation137_spill] sm:$0xff] }
 0xa59   : > { %v6999_v21 = vmax.f32 %v6957_v8, %v6971_v4  ;;  %v6903_v50 = vadd.f32 %v16672_v56, %v6843_v59  ;;  %v19198_v4 = vld [vmem:[#allocation30_spill] sm:$0xff] }
 0xa5a   : > { %v6790_v2 = vpop.f32.mrf.mxu2  ;;  %v3726_v62 = vadd.f32 %v19198_v4, %v19197_v60  ;;  %v19204_v59 = vld [vmem:[#allocation86_spill] sm:$0xff]  ;;  %v10936_v4 = vld [vmem:[%s19209_s26 + $0x48] sm:$0xff] }
 0xa5b   : > { %v17060_v49 = vmax.f32 %v16842_v38, %v6999_v21  ;;  %v6856_v23 = vadd.f32 %v6790_v2, %v5312_v6  ;;  %v7117_v38 = vld [vmem:[%s19187_s6 + $0x30] sm:$0xff]  ;;  %v6959_v35 = vmax.f32 %v6903_v50, 0.0  ;;  %v6904_v6 = vadd.f32 %v16672_v56, %v6844_v53  ;;  %v10935_v60 = vld [vmem:[%s19209_s26 + $0x40] sm:$0xff] }
 0xa5c   : > { %7145 = vmatpush.msrb.mxu1 %v7117_v38  ;;  %v5301_v25 = vadd.f32 %v19199_v36, %v3726_v62  ;;  %v10937_v62 = vld [vmem:[%s19209_s26 + $0x50] sm:$0xff]  ;;  %v10960_v36 = vld [vmem:[%s19209_s26 + $0x88] sm:$0xff] }
 0xa5d   : > { %v6916_v61 = vadd.f32 %v16672_v56, %v6856_v23  ;;  %v3768_v23 = vadd.f32 %v19201_v10, %v19200_v24  ;;  %v6960_v15 = vmax.f32 %v6904_v6, 0.0  ;;  %v10938_v6 = vld [vmem:[%s19209_s26 + $0x58] sm:$0x1]  ;;  %v10983_v10 = vld [vmem:[%s19209_s26 + $0xc0] sm:$0xff] }
 0xa5e   : > { %7146 = vmatpush.msrb.mxu1 %v7116_v5  ;;  %v6845_v58 = vadd.f32 %v16952_v26, %v5301_v25  ;;  %v19207_v26 = vld [vmem:[#allocation140_spill] sm:$0xff]  ;;  %v7068_v24 = vld [vmem:[%s19187_s6 + $0x18] sm:$0xff] }
 0xa5f   : > { %v6972_v12 = vmax.f32 %v6916_v61, 0.0  ;;  %v5315_v13 = vadd.f32 %v19202_v22, %v3768_v23  ;;  %v10961_v25 = vld [vmem:[%s19209_s26 + $0x90] sm:$0xff]  ;;  %7185 = vmatpush.msra.mxu2 %v7068_v24  ;;  %v7441_v24 = vld [vmem:[%s19187_s6 + $0x98] sm:$0xff] }
 0xa60   : > { %7147 = vmatpush.msrb.mxu1 %v7115_v45  ;;  %v7067_v23 = vld [vmem:[%s19187_s6 + $0x10] sm:$0xff] }
 0xa61   : > { %v7000_v63 = vmax.f32 %v6958_v47, %v6972_v12  ;;  %v19203_v47 = vld [vmem:[#allocation84_spill] sm:$0xff]  ;;  %v6905_v12 = vadd.f32 %v16672_v56, %v6845_v58  ;;  %7186 = vmatpush.msra.mxu2 %v7067_v23  ;;  %v7065_v58 = vld [vmem:[%s19187_s6] sm:$0xff] }
 0xa62   : > { %v6793_v9 = vpop.f32.mrf.mxu2  ;;  %v10985_v22 = vld [vmem:[%s19209_s26 + $0xd0] sm:$0xff]  ;;  %v11020_v23 = vld [vmem:[%s19209_s26 + $0x128] sm:$0xff] }
 0xa63   : > { %v17081_v34 = vmax.f32 %v16854_v55, %v7000_v63  ;;  %v6857_v54 = vadd.f32 %v6793_v9, %v5313_v37  ;;  %v5314_v55 = vadd.f32 %v19196_v7, %v3765_v14  ;;  %v19205_v37 = vld [vmem:[#allocation157_spill] sm:$0xff]  ;;  %v19206_v9 = vld [vmem:[#allocation136_spill] sm:$0xff]  ;;  %v6961_v57 = vmax.f32 %v6905_v12, 0.0 }
 0xa64   : > { %v3771_v29 = vadd.f32 %v19207_v26, %v19206_v9  ;;  %v10921_v7 = vld [vmem:[%s19209_s26 + $0x30] sm:$0xff] }
 0xa65   : > { %v6917_v3 = vadd.f32 %v16672_v56, %v6857_v54  ;;  %v19208_v54 = vld [vmem:[#allocation184_spill] sm:$0xff] }
 0xa66   : > { %v5316_v45 = vadd.f32 %v19208_v54, %v3771_v29  ;;  %v11009_v26 = vld [vmem:[%s19209_s26 + $0x110] sm:$0xff] }
 0xa67   : > { %v6973_v18 = vmax.f32 %v6917_v3, 0.0 }
 0xa69   : > { %v7001_v52 = vmax.f32 %v6959_v35, %v6973_v18 }
 0xa6a   : > { %v6796_v8 = vpop.f32.mrf.mxu2 }
 0xa6b   : > { %v17096_v21 = vmax.f32 %v16865_v41, %v7001_v52  ;;  %v6858_v2 = vadd.f32 %v6796_v8, %v5314_v55  ;;  %v3729_v41 = vadd.f32 %v19204_v59, %v19203_v47  ;;  %v7021_v55 = vld [vmem:[%s19209_s26 + $0x10] sm:$0xff]  ;;  %v10922_v52 = vld [vmem:[%s19209_s26 + $0x38] sm:$0x1]  ;;  %v11007_v47 = vld [vmem:[%s19209_s26 + $0x100] sm:$0xff] }
 0xa6c   : > { %v7022_v8 = vld [vmem:[%s19209_s26 + $0x18] sm:$0x1]  ;;  %v7250_v59 = vld [vmem:[%s19187_s6 + $0x50] sm:$0xff] }
 0xa6d   : > { %v6918_v0 = vadd.f32 %v16672_v56, %v6858_v2  ;;  %v5302_v63 = vadd.f32 %v19205_v37, %v3729_v41  ;;  %v10959_v2 = vld [vmem:[%s19209_s26 + $0x80] sm:$0xff] }
 0xa6e   : > { %v7248_v37 = vld [vmem:[%s19187_s6 + $0x40] sm:$0xff] }
 0xa6f   : > { %v6974_v61 = vmax.f32 %v6918_v0, 0.0  ;;  %v6846_v51 = vadd.f32 %v16954_v28, %v5302_v63  ;;  %v7020_v28 = vld [vmem:[%s19209_s26 + $0x8] sm:$0xff]  ;;  %v10962_v0 = vld [vmem:[%s19209_s26 + $0x98] sm:$0x1] }
 0xa70   : > { %v11008_v63 = vld [vmem:[%s19209_s26 + $0x108] sm:$0xff] }
 0xa71   : > { %v7002_v27 = vmax.f32 %v6960_v15, %v6974_v61  ;;  %v6906_v3 = vadd.f32 %v16672_v56, %v6846_v51  ;;  %v7066_v15 = vld [vmem:[%s19187_s6 + $0x8] sm:$0xff]  ;;  %v11010_v51 = vld [vmem:[%s19209_s26 + $0x118] sm:$0x1] }
 0xa72   : > { %v6799_v17 = vpop.f32.mrf.mxu2  ;;  %7187 = vmatpush.msra.mxu2 %v7066_v15  ;;  %v10984_v61 = vld [vmem:[%s19209_s26 + $0xc8] sm:$0xff] }
 0xa73   : > { %v17108_v38 = vmax.f32 %v16875_v31, %v7002_v27  ;;  %v6859_v33 = vadd.f32 %v6799_v17, %v5315_v13  ;;  %v6962_v14 = vmax.f32 %v6906_v3, 0.0  ;;  %v10986_v13 = vld [vmem:[%s19209_s26 + $0xd8] sm:$0x1]  ;;  %v10949_v3 = vld [vmem:[%s19209_s26 + $0x70] sm:$0xff] }
 0xa74   : > { %7188 = vmatpush.msra.mxu2 %v7065_v58  ;;  %v7251_v17 = vld [vmem:[%s19187_s6 + $0x58] sm:$0xff]  ;;  %v11055_v58 = vld [vmem:[%s19209_s26 + $0x180] sm:$0xff] }
 0xa75   : > { %v6919_v5 = vadd.f32 %v16672_v56, %v6859_v33  ;;  %v7249_v33 = vld [vmem:[%s19187_s6 + $0x48] sm:$0xff] }
 0xa77   : > { %v6975_v50 = vmax.f32 %v6919_v5, 0.0 }
 0xa79   : > { %v7003_v43 = vmax.f32 %v6961_v57, %v6975_v50  ;;  %v10947_v50 = vld [vmem:[%s19209_s26 + $0x60] sm:$0xff] }
 0xa7a   : > { %v6802_v20 = vpop.f32.mrf.mxu2 }
 0xa7b   : > { %v17118_v31 = vmax.f32 %v16885_v42, %v7003_v43  ;;  %v6860_v30 = vadd.f32 %v6802_v20, %v5316_v45  ;;  %v7019_v42 = vld [vmem:[%s19209_s26] sm:$0xff]  ;;  %v10948_v43 = vld [vmem:[%s19209_s26 + $0x68] sm:$0xff] }
 0xa7c   : > { %v11031_v45 = vld [vmem:[%s19209_s26 + $0x140] sm:$0xff] }
 0xa7d   : > { %v6920_v48 = vadd.f32 %v16672_v56, %v6860_v30  ;;  %v10919_v56 = vld [vmem:[%s19209_s26 + $0x20] sm:$0xff] }
 0xa7f   : > { %v6976_v35 = vmax.f32 %v6920_v48, 0.0  ;;  %v10950_v48 = vld [vmem:[%s19209_s26 + $0x78] sm:$0x1] }
 0xa81   : > { %v7004_v53 = vmax.f32 %v6962_v14, %v6976_v35  ;;  %v10971_v35 = vld [vmem:[%s19209_s26 + $0xa0] sm:$0xff] }
 0xa83   : > { %v17122_v18 = vmax.f32 %v16895_v16, %v7004_v53  ;;  %v10920_v16 = vld [vmem:[%s19209_s26 + $0x28] sm:$0xff] }
 0xa85   : > { %7038 = vmatpush.msrb.mxu3 %v17122_v18  ;;  %7088 = vmatpush.msrb.mxu0 %v17122_v18 }
 0xa86   : > { %7316 = vmatpush.msra.mxu1 %v17122_v18 }
 0xa87   : > { %7039 = vmatpush.msrb.mxu3 %v17118_v31  ;;  %7089 = vmatpush.msrb.mxu0 %v17118_v31 }
 0xa88   : > { %7317 = vmatpush.msra.mxu1 %v17118_v31 }
 0xa89   : > { %7040 = vmatpush.msrb.mxu3 %v17108_v38  ;;  %7090 = vmatpush.msrb.mxu0 %v17108_v38 }
 0xa8a   : > { %7318 = vmatpush.msra.mxu1 %v17108_v38 }
 0xa8b   : > { %7041 = vmatpush.msrb.mxu3 %v17096_v21  ;;  %7091 = vmatpush.msrb.mxu0 %v17096_v21 }
 0xa8c   : > { %7319 = vmatpush.msra.mxu1 %v17096_v21 }
 0xa8d   : > { %7042 = vmatpush.msrb.mxu3 %v17081_v34  ;;  %7092 = vmatpush.msrb.mxu0 %v17081_v34 }
 0xa8e   : > { %7320 = vmatpush.msra.mxu1 %v17081_v34 }
 0xa8f   : > { %7043 = vmatpush.msrb.mxu3 %v17060_v49  ;;  %7093 = vmatpush.msrb.mxu0 %v17060_v49 }
 0xa90   : > { %7321 = vmatpush.msra.mxu1 %v17060_v49 }
 0xa91   : > { %7044 = vmatpush.msrb.mxu3 %v17048_v1  ;;  %7094 = vmatpush.msrb.mxu0 %v17048_v1 }
 0xa92   : > { %7322 = vmatpush.msra.mxu1 %v17048_v1 }
 0xa93   : > { %7045 = vmatpush.msrb.mxu3 %v17036_v46  ;;  %7095 = vmatpush.msrb.mxu0 %v17036_v46 }
 0xa94   : > { %7323 = vmatpush.msra.mxu1 %v17036_v46 }
 0xa95   : > { %7046 = vmatpush.msrb.mxu3 %v17024_v32  ;;  %7096 = vmatpush.msrb.mxu0 %v17024_v32 }
 0xa96   : > { %7324 = vmatpush.msra.mxu1 %v17024_v32 }
 0xa97   : > { %7047 = vmatpush.msrb.mxu3 %v17012_v40  ;;  %7097 = vmatpush.msrb.mxu0 %v17012_v40 }
 0xa98   : > { %7325 = vmatpush.msra.mxu1 %v17012_v40 }
 0xa99   : > { %7048 = vmatpush.msrb.mxu3 %v17000_v44  ;;  %7098 = vmatpush.msrb.mxu0 %v17000_v44 }
 0xa9a   : > { %7326 = vmatpush.msra.mxu1 %v17000_v44 }
 0xa9b   : > { %7049 = vmatpush.msrb.mxu3 %v16988_v19  ;;  %7099 = vmatpush.msrb.mxu0 %v16988_v19 }
 0xa9c   : > { %7327 = vmatpush.msra.mxu1 %v16988_v19 }
 0xa9d   : > { %7050 = vmatpush.msrb.mxu3 %v16977_v39  ;;  %7100 = vmatpush.msrb.mxu0 %v16977_v39 }
 0xa9e   : > { %7328 = vmatpush.msra.mxu1 %v16977_v39 }
 0xa9f   : > { %7051 = vmatpush.msrb.mxu3 %v16968_v11  ;;  %7101 = vmatpush.msrb.mxu0 %v16968_v11 }
 0xaa0   : > { %7329 = vmatpush.msra.mxu1 %v16968_v11  ;;  %10923 = vmatmul.msk.f32.vlgmr.msrb.gmra.mxu0 %vm7023_vm3, %v10919_v56  ;;  %v10972_v56 = vld [vmem:[%s19209_s26 + $0xa8] sm:$0xff] }
 0xaa1   : > { %7221 = vmatpush.msra.mxu3 %v17122_v18  ;;  %7276 = vmatpush.msra.mxu0 %v7251_v17 }
 0xaa2   : > { %10915 = vmatmul.msk.f32.vlgmr.msrb.gmra.mxu3 %vm7023_vm3, %v7019_v42  ;;  %v10973_v42 = vld [vmem:[%s19209_s26 + $0xb0] sm:$0xff] }
 0xaa3   : > { %7222 = vmatpush.msra.mxu3 %v17118_v31  ;;  %7277 = vmatpush.msra.mxu0 %v7250_v59 }
 0xaa5   : > { %7223 = vmatpush.msra.mxu3 %v17108_v38  ;;  %7278 = vmatpush.msra.mxu0 %v7249_v33  ;;  %v11057_v33 = vld [vmem:[%s19209_s26 + $0x190] sm:$0xff] }
 0xaa7   : > { %7224 = vmatpush.msra.mxu3 %v17096_v21  ;;  %7279 = vmatpush.msra.mxu0 %v7248_v37 }
 0xaa8   : > { %10924 = vmatmul.msk.f32.gmra.mxu0 %vm7023_vm3, %v10920_v16  ;;  %v10974_v16 = vld [vmem:[%s19209_s26 + $0xb8] sm:$0x1] }
 0xaa9   : > { %7225 = vmatpush.msra.mxu3 %v17081_v34  ;;  %7466 = vmatpush.msrb.mxu0 %v7441_v24 }
 0xaaa   : > { %10916 = vmatmul.msk.f32.gmra.mxu3 %vm7023_vm3, %v7020_v28  ;;  %v10995_v28 = vld [vmem:[%s19209_s26 + $0xe0] sm:$0xff] }
 0xaab   : > { %7226 = vmatpush.msra.mxu3 %v17060_v49 }
 0xaad   : > { %7227 = vmatpush.msra.mxu3 %v17048_v1 }
 0xaaf   : > { %7228 = vmatpush.msra.mxu3 %v17036_v46 }
 0xab0   : > { %10925 = vmatmul.msk.f32.gmra.mxu0 %vm7023_vm3, %v10921_v7  ;;  %v10996_v7 = vld [vmem:[%s19209_s26 + $0xe8] sm:$0xff] }
 0xab1   : > { %7229 = vmatpush.msra.mxu3 %v17024_v32 }
 0xab2   : > { %10917 = vmatmul.msk.f32.gmra.mxu3 %vm7023_vm3, %v7021_v55  ;;  %v10997_v55 = vld [vmem:[%s19209_s26 + $0xf0] sm:$0xff] }
 0xab3   : > { %7230 = vmatpush.msra.mxu3 %v17012_v40 }
 0xab5   : > { %7231 = vmatpush.msra.mxu3 %v17000_v44 }
 0xab7   : > { %7232 = vmatpush.msra.mxu3 %v16988_v19 }
 0xab8   : > { %10926 = vmatmul.msk.f32.gmra.mxu0 %vm7023_vm3, %v10922_v52  ;;  %v11032_v52 = vld [vmem:[%s19209_s26 + $0x148] sm:$0xff] }
 0xab9   : > { %7233 = vmatpush.msra.mxu3 %v16977_v39 }
 0xaba   : > { %10918 = vmatmul.msk.f32.gmra.mxu3 %vm7023_vm3, %v7022_v8  ;;  %v10998_v8 = vld [vmem:[%s19209_s26 + $0xf8] sm:$0x1] }
 0xabb   : > { %7234 = vmatpush.msra.mxu3 %v16968_v11 }
 0xabd   : > { %7411 = vmatpush.msrb.mxu3 %v17122_v18 }
 0xabf   : > { %7412 = vmatpush.msrb.mxu3 %v17118_v31 }
 0xac1   : > { %7413 = vmatpush.msrb.mxu3 %v17108_v38 }
 0xac2   : > { %10939 = vmatmul.msk.f32.vlgmr.msra.gmra.mxu3 %vm7023_vm3, %v10935_v60  ;;  %v11033_v60 = vld [vmem:[%s19209_s26 + $0x150] sm:$0xff] }
 0xac3   : > { %7414 = vmatpush.msrb.mxu3 %v17096_v21 }
 0xac5   : > { %7415 = vmatpush.msrb.mxu3 %v17081_v34 }
 0xac7   : > { %7416 = vmatpush.msrb.mxu3 %v17060_v49 }
 0xac9   : > { %7417 = vmatpush.msrb.mxu3 %v17048_v1 }
 0xaca   : > { %10940 = vmatmul.msk.f32.gmra.mxu3 %vm7023_vm3, %v10936_v4  ;;  %v7346_v4 = vld [vmem:[%s19187_s6 + $0x78] sm:$0xff] }
 0xacb   : > { %7418 = vmatpush.msrb.mxu3 %v17036_v46  ;;  %7371 = vmatpush.msrb.mxu2 %v7346_v4 }
 0xacd   : > { %7419 = vmatpush.msrb.mxu3 %v17024_v32 }
 0xacf   : > { %7420 = vmatpush.msrb.mxu3 %v17012_v40 }
 0xad1   : > { %7421 = vmatpush.msrb.mxu3 %v17000_v44 }
 0xad2   : > { %10941 = vmatmul.msk.f32.gmra.mxu3 %vm7023_vm3, %v10937_v62  ;;  %v7345_v62 = vld [vmem:[%s19187_s6 + $0x70] sm:$0xff] }
 0xad3   : > { %7422 = vmatpush.msrb.mxu3 %v16988_v19  ;;  %7372 = vmatpush.msrb.mxu2 %v7345_v62 }
 0xad5   : > { %7423 = vmatpush.msrb.mxu3 %v16977_v39 }
 0xad7   : > { %7424 = vmatpush.msrb.mxu3 %v16968_v11 }
 0xad9   : > { %7601 = vmatpush.msra.mxu3 %v17122_v18 }
 0xada   : > { %10942 = vmatmul.msk.f32.gmra.mxu3 %vm7023_vm3, %v10938_v6  ;;  %v11019_v6 = vld [vmem:[%s19209_s26 + $0x120] sm:$0xff] }
 0xadb   : > { %7602 = vmatpush.msra.mxu3 %v17118_v31 }
 0xadd   : > { %7603 = vmatpush.msra.mxu3 %v17108_v38 }
 0xadf   : > { %7604 = vmatpush.msra.mxu3 %v17096_v21 }
 0xae1   : > { %7605 = vmatpush.msra.mxu3 %v17081_v34 }
 0xae2   : > { %10963 = vmatmul.msk.f32.vlgmr.msrb.gmra.mxu3 %vm7023_vm3, %v10959_v2 }
 0xae3   : > { %7606 = vmatpush.msra.mxu3 %v17060_v49 }
 0xae5   : > { %7607 = vmatpush.msra.mxu3 %v17048_v1 }
 0xae7   : > { %7608 = vmatpush.msra.mxu3 %v17036_v46 }
 0xae9   : > { %7609 = vmatpush.msra.mxu3 %v17024_v32 }
 0xaea   : > { %10964 = vmatmul.msk.f32.gmra.mxu3 %vm7023_vm3, %v10960_v36  ;;  %v11034_v36 = vld [vmem:[%s19209_s26 + $0x158] sm:$0x1] }
 0xaeb   : > { %7610 = vmatpush.msra.mxu3 %v17012_v40 }
 0xaed   : > { %7611 = vmatpush.msra.mxu3 %v17000_v44 }
 0xaef   : > { %7612 = vmatpush.msra.mxu3 %v16988_v19 }
 0xaf1   : > { %7613 = vmatpush.msra.mxu3 %v16977_v39 }
 0xaf2   : > { %10965 = vmatmul.msk.f32.gmra.mxu3 %vm7023_vm3, %v10961_v25  ;;  %v7344_v25 = vld [vmem:[%s19187_s6 + $0x68] sm:$0xff] }
 0xaf3   : > { %7614 = vmatpush.msra.mxu3 %v16968_v11  ;;  %7373 = vmatpush.msrb.mxu2 %v7344_v25  ;;  %v7915_v25 = vld [vmem:[%s19187_s6 + $0x130] sm:$0xff] }
 0xaf5   : > { %7791 = vmatpush.msrb.mxu3 %v17122_v18 }
 0xaf7   : > { %7792 = vmatpush.msrb.mxu3 %v17118_v31 }
 0xaf9   : > { %7793 = vmatpush.msrb.mxu3 %v17108_v38 }
 0xafa   : > { %10966 = vmatmul.msk.f32.gmra.mxu3 %vm7023_vm3, %v10962_v0  ;;  %v7343_v0 = vld [vmem:[%s19187_s6 + $0x60] sm:$0xff] }
 0xafb   : > { %7794 = vmatpush.msrb.mxu3 %v17096_v21  ;;  %7374 = vmatpush.msrb.mxu2 %v7343_v0  ;;  %v7914_v0 = vld [vmem:[%s19187_s6 + $0x128] sm:$0xff] }
 0xafd   : > { %7795 = vmatpush.msrb.mxu3 %v17081_v34 }
 0xaff   : > { %7796 = vmatpush.msrb.mxu3 %v17060_v49 }
 0xb01   : > { %7797 = vmatpush.msrb.mxu3 %v17048_v1 }
 0xb02   : > { %10987 = vmatmul.msk.f32.vlgmr.msra.gmra.mxu3 %vm7023_vm3, %v10983_v10  ;;  %v7440_v10 = vld [vmem:[%s19187_s6 + $0x90] sm:$0xff] }
 0xb03   : > { %7798 = vmatpush.msrb.mxu3 %v17036_v46  ;;  %7467 = vmatpush.msrb.mxu0 %v7440_v10 }
 0xb05   : > { %7799 = vmatpush.msrb.mxu3 %v17024_v32 }
 0xb07   : > { %7800 = vmatpush.msrb.mxu3 %v17012_v40 }
 0xb09   : > { %7801 = vmatpush.msrb.mxu3 %v17000_v44 }
 0xb0a   : > { %10988 = vmatmul.msk.f32.gmra.mxu3 %vm7023_vm3, %v10984_v61  ;;  %v7439_v61 = vld [vmem:[%s19187_s6 + $0x88] sm:$0xff] }
 0xb0b   : > { %7802 = vmatpush.msrb.mxu3 %v16988_v19  ;;  %7468 = vmatpush.msrb.mxu0 %v7439_v61 }
 0xb0d   : > { %7803 = vmatpush.msrb.mxu3 %v16977_v39 }
 0xb0f   : > { %7804 = vmatpush.msrb.mxu3 %v16968_v11 }
 0xb11   : > { %7981 = vmatpush.msra.mxu3 %v17122_v18 }
 0xb12   : > { %10989 = vmatmul.msk.f32.gmra.mxu3 %vm7023_vm3, %v10985_v22  ;;  %v7438_v22 = vld [vmem:[%s19187_s6 + $0x80] sm:$0xff] }
 0xb13   : > { %7982 = vmatpush.msra.mxu3 %v17118_v31  ;;  %7469 = vmatpush.msrb.mxu0 %v7438_v22  ;;  %v8011_v22 = vld [vmem:[%s19187_s6 + $0x158] sm:$0xff] }
 0xb15   : > { %7983 = vmatpush.msra.mxu3 %v17108_v38 }
 0xb17   : > { %7984 = vmatpush.msra.mxu3 %v17096_v21 }
 0xb19   : > { %7985 = vmatpush.msra.mxu3 %v17081_v34 }
 0xb1a   : > { %10990 = vmatmul.msk.f32.gmra.mxu3 %vm7023_vm3, %v10986_v13 }
 0xb1b   : > { %7986 = vmatpush.msra.mxu3 %v17060_v49 }
 0xb1d   : > { %7987 = vmatpush.msra.mxu3 %v17048_v1  ;;  %v7103_v27 = vpop.f32.mrf.mxu0 }
 0xb1e   : > { %10927 = vmatmul.msk.f32.vlgmr.msrb.gmra.mxu1 %vm7119_vm4, %v7103_v27  ;;  %v11021_v27 = vld [vmem:[%s19209_s26 + $0x130] sm:$0xff] }
 0xb1f   : > { %7988 = vmatpush.msra.mxu3 %v17036_v46  ;;  %7506 = vmatpush.msrb.mxu1 %v17122_v18 }
 0xb21   : > { %7989 = vmatpush.msra.mxu3 %v17024_v32  ;;  %7507 = vmatpush.msrb.mxu1 %v17118_v31 }
 0xb22   : > { %11011 = vmatmul.msk.f32.vlgmr.msrb.gmra.mxu3 %vm7023_vm3, %v11007_v47  ;;  %v11056_v47 = vld [vmem:[%s19209_s26 + $0x188] sm:$0xff] }
 0xb23   : > { %7990 = vmatpush.msra.mxu3 %v17012_v40  ;;  %7508 = vmatpush.msrb.mxu1 %v17108_v38 }
 0xb25   : > { %7991 = vmatpush.msra.mxu3 %v17000_v44  ;;  %7509 = vmatpush.msrb.mxu1 %v17096_v21  ;;  %v7106_v41 = vpop.f32.mrf.mxu0  ;;  %v7053_v12 = vpop.f32.mrf.mxu3 }
 0xb26   : > { %10928 = vmatmul.msk.f32.gmra.mxu1 %vm7119_vm4, %v7106_v41  ;;  %10931 = vmatmul.msk.f32.vlgmr.msra.gmra.mxu2 %vm7119_vm4, %v7053_v12  ;;  %v11022_v41 = vld [vmem:[%s19209_s26 + $0x138] sm:$0x1] }
 0xb27   : > { %7992 = vmatpush.msra.mxu3 %v16988_v19  ;;  %7510 = vmatpush.msrb.mxu1 %v17081_v34 }
 0xb29   : > { %7993 = vmatpush.msra.mxu3 %v16977_v39  ;;  %7511 = vmatpush.msrb.mxu1 %v17060_v49 }
 0xb2a   : > { %11012 = vmatmul.msk.f32.gmra.mxu3 %vm7023_vm3, %v11008_v63  ;;  %v7536_v63 = vld [vmem:[%s19187_s6 + $0xb8] sm:$0xff] }
 0xb2b   : > { %7994 = vmatpush.msra.mxu3 %v16968_v11  ;;  %7512 = vmatpush.msrb.mxu1 %v17048_v1 }
 0xb2c   : > { %7561 = vmatpush.msra.mxu2 %v7536_v63 }
 0xb2d   : > { %8171 = vmatpush.msrb.mxu3 %v17122_v18  ;;  %7513 = vmatpush.msrb.mxu1 %v17036_v46  ;;  %v7109_v5 = vpop.f32.mrf.mxu0  ;;  %v7056_v9 = vpop.f32.mrf.mxu3 }
 0xb2e   : > { %10929 = vmatmul.msk.f32.gmra.mxu1 %vm7119_vm4, %v7109_v5  ;;  %10932 = vmatmul.msk.f32.gmra.mxu2 %vm7119_vm4, %v7056_v9  ;;  %v7535_v5 = vld [vmem:[%s19187_s6 + $0xb0] sm:$0xff]  ;;  %v7534_v9 = vld [vmem:[%s19187_s6 + $0xa8] sm:$0xff] }
 0xb2f   : > { %8172 = vmatpush.msrb.mxu3 %v17118_v31  ;;  %7514 = vmatpush.msrb.mxu1 %v17024_v32 }
 0xb30   : > { %7562 = vmatpush.msra.mxu2 %v7535_v5  ;;  %v11093_v5 = vld [vmem:[%s19209_s26 + $0x1f0] sm:$0xff] }
 0xb31   : > { %8173 = vmatpush.msrb.mxu3 %v17108_v38  ;;  %7515 = vmatpush.msrb.mxu1 %v17012_v40 }
 0xb32   : > { %11013 = vmatmul.msk.f32.gmra.mxu3 %vm7023_vm3, %v11009_v26  ;;  %v11043_v26 = vld [vmem:[%s19209_s26 + $0x160] sm:$0xff]  ;;  %7563 = vmatpush.msra.mxu2 %v7534_v9 }
 0xb33   : > { %8174 = vmatpush.msrb.mxu3 %v17096_v21  ;;  %7516 = vmatpush.msrb.mxu1 %v17000_v44 }
 0xb35   : > { %8175 = vmatpush.msrb.mxu3 %v17081_v34  ;;  %7517 = vmatpush.msrb.mxu1 %v16988_v19  ;;  %v7112_v29 = vpop.f32.mrf.mxu0  ;;  %v7059_v57 = vpop.f32.mrf.mxu3 }
 0xb36   : > { %10930 = vmatmul.msk.f32.gmra.mxu1 %vm7119_vm4, %v7112_v29  ;;  %10933 = vmatmul.msk.f32.gmra.mxu2 %vm7119_vm4, %v7059_v57  ;;  %v11058_v57 = vld [vmem:[%s19209_s26 + $0x198] sm:$0x1] }
 0xb37   : > { %8176 = vmatpush.msrb.mxu3 %v17060_v49  ;;  %7518 = vmatpush.msrb.mxu1 %v16977_v39 }
 0xb39   : > { %8177 = vmatpush.msrb.mxu3 %v17048_v1  ;;  %7519 = vmatpush.msrb.mxu1 %v16968_v11 }
 0xb3a   : > { %11014 = vmatmul.msk.f32.gmra.mxu3 %vm7023_vm3, %v11010_v51  ;;  %v7533_v51 = vld [vmem:[%s19187_s6 + $0xa0] sm:$0xff] }
 0xb3b   : > { %8178 = vmatpush.msrb.mxu3 %v17036_v46  ;;  %7564 = vmatpush.msra.mxu2 %v7533_v51  ;;  %v8106_v51 = vld [vmem:[%s19187_s6 + $0x178] sm:$0xff] }
 0xb3d   : > { %8179 = vmatpush.msrb.mxu3 %v17024_v32  ;;  %v7062_v54 = vpop.f32.mrf.mxu3 }
 0xb3e   : > { %10951 = vmatmul.msk.f32.vlgmr.msra.gmra.mxu1 %vm7023_vm3, %v10947_v50  ;;  %10934 = vmatmul.msk.f32.gmra.mxu2 %vm7119_vm4, %v7062_v54  ;;  %v7631_v54 = vld [vmem:[%s19187_s6 + $0xd8] sm:$0xff] }
 0xb3f   : > { %8180 = vmatpush.msrb.mxu3 %v17012_v40  ;;  %7696 = vmatpush.msra.mxu1 %v17122_v18 }
 0xb41   : > { %8181 = vmatpush.msrb.mxu3 %v17000_v44  ;;  %7697 = vmatpush.msra.mxu1 %v17118_v31 }
 0xb42   : > { %11035 = vmatmul.msk.f32.vlgmr.msra.gmra.mxu3 %vm7023_vm3, %v11031_v45  ;;  %v7630_v45 = vld [vmem:[%s19187_s6 + $0xd0] sm:$0xff] }
 0xb43   : > { %8182 = vmatpush.msrb.mxu3 %v16988_v19  ;;  %7698 = vmatpush.msra.mxu1 %v17108_v38 }
 0xb45   : > { %8183 = vmatpush.msrb.mxu3 %v16977_v39  ;;  %7699 = vmatpush.msra.mxu1 %v17096_v21  ;;  %v7236_v20 = vpop.f32.mrf.mxu3 }
 0xb46   : > { %10952 = vmatmul.msk.f32.gmra.mxu1 %vm7023_vm3, %v10948_v43  ;;  %10943 = vmatmul.msk.f32.vlgmr.msra.gmra.mxu0 %vm7119_vm4, %v7236_v20  ;;  %v11079_v20 = vld [vmem:[%s19209_s26 + $0x1c0] sm:$0xff] }
 0xb47   : > { %8184 = vmatpush.msrb.mxu3 %v16968_v11  ;;  %7700 = vmatpush.msra.mxu1 %v17081_v34 }
 0xb48   : > { %7656 = vmatpush.msra.mxu0 %v7631_v54  ;;  %v8104_v54 = vld [vmem:[%s19187_s6 + $0x168] sm:$0xff] }
 0xb49   : > { %8361 = vmatpush.msra.mxu3 %v17122_v18  ;;  %7701 = vmatpush.msra.mxu1 %v17060_v49 }
 0xb4a   : > { %11036 = vmatmul.msk.f32.gmra.mxu3 %vm7023_vm3, %v11032_v52  ;;  %7657 = vmatpush.msra.mxu0 %v7630_v45 }
 0xb4b   : > { %8362 = vmatpush.msra.mxu3 %v17118_v31  ;;  %7702 = vmatpush.msra.mxu1 %v17048_v1 }
 0xb4d   : > { %8363 = vmatpush.msra.mxu3 %v17108_v38  ;;  %7703 = vmatpush.msra.mxu1 %v17036_v46  ;;  %v7239_v30 = vpop.f32.mrf.mxu3 }
 0xb4e   : > { %10953 = vmatmul.msk.f32.gmra.mxu1 %vm7023_vm3, %v10949_v3  ;;  %10944 = vmatmul.msk.f32.gmra.mxu0 %vm7119_vm4, %v7239_v30 }
 0xb4f   : > { %8364 = vmatpush.msra.mxu3 %v17096_v21  ;;  %7704 = vmatpush.msra.mxu1 %v17024_v32 }
 0xb51   : > { %8365 = vmatpush.msra.mxu3 %v17081_v34  ;;  %7705 = vmatpush.msra.mxu1 %v17012_v40 }
 0xb52   : > { %11037 = vmatmul.msk.f32.gmra.mxu3 %vm7023_vm3, %v11033_v60  ;;  %v11069_v60 = vld [vmem:[%s19209_s26 + $0x1b0] sm:$0xff] }
 0xb53   : > { %8366 = vmatpush.msra.mxu3 %v17060_v49  ;;  %7706 = vmatpush.msra.mxu1 %v17000_v44 }
 0xb55   : > { %8367 = vmatpush.msra.mxu3 %v17048_v1  ;;  %7707 = vmatpush.msra.mxu1 %v16988_v19  ;;  %v7242_v14 = vpop.f32.mrf.mxu3 }
 0xb56   : > { %10954 = vmatmul.msk.f32.gmra.mxu1 %vm7023_vm3, %v10950_v48  ;;  %10945 = vmatmul.msk.f32.gmra.mxu0 %vm7119_vm4, %v7242_v14  ;;  %v11080_v48 = vld [vmem:[%s19209_s26 + $0x1c8] sm:$0xff] }
 0xb57   : > { %8368 = vmatpush.msra.mxu3 %v17036_v46  ;;  %7708 = vmatpush.msra.mxu1 %v16977_v39 }
 0xb59   : > { %8369 = vmatpush.msra.mxu3 %v17024_v32  ;;  %7709 = vmatpush.msra.mxu1 %v16968_v11 }
 0xb5a   : > { %11038 = vmatmul.msk.f32.gmra.mxu3 %vm7023_vm3, %v11034_v36  ;;  %v7916_v36 = vld [vmem:[%s19187_s6 + $0x138] sm:$0xff] }
 0xb5b   : > { %8370 = vmatpush.msra.mxu3 %v17012_v40 }
 0xb5d   : > { %8371 = vmatpush.msra.mxu3 %v17000_v44  ;;  %v7245_v53 = vpop.f32.mrf.mxu3 }
 0xb5e   : > { %10975 = vmatmul.msk.f32.vlgmr.msrb.gmra.mxu1 %vm7023_vm3, %v10971_v35  ;;  %10946 = vmatmul.msk.f32.gmra.mxu0 %vm7119_vm4, %v7245_v53  ;;  %v11067_v35 = vld [vmem:[%s19209_s26 + $0x1a0] sm:$0xff] }
 0xb5f   : > { %8372 = vmatpush.msra.mxu3 %v16988_v19  ;;  %7886 = vmatpush.msrb.mxu1 %v17122_v18  ;;  %v7723_v53 = vld [vmem:[%s19187_s6 + $0xe0] sm:$0xff] }
 0xb61   : > { %8373 = vmatpush.msra.mxu3 %v16977_v39  ;;  %7887 = vmatpush.msrb.mxu1 %v17118_v31 }
 0xb62   : > { %11059 = vmatmul.msk.f32.vlgmr.msrb.gmra.mxu3 %vm7023_vm3, %v11055_v58  ;;  %v7913_v58 = vld [vmem:[%s19187_s6 + $0x120] sm:$0xff] }
 0xb63   : > { %8374 = vmatpush.msra.mxu3 %v16968_v11  ;;  %7888 = vmatpush.msrb.mxu1 %v17108_v38 }
 0xb65   : > { %7889 = vmatpush.msrb.mxu1 %v17096_v21  ;;  %v7426_v13 = vpop.f32.mrf.mxu3 }
 0xb66   : > { %10976 = vmatmul.msk.f32.gmra.mxu1 %vm7023_vm3, %v10972_v56  ;;  %10967 = vmatmul.msk.f32.vlgmr.msrb.gmra.mxu0 %vm7119_vm4, %v7426_v13  ;;  %v7821_v56 = vld [vmem:[%s19187_s6 + $0x118] sm:$0xff]  ;;  %v8010_v13 = vld [vmem:[%s19187_s6 + $0x150] sm:$0xff] }
 0xb67   : > { %7890 = vmatpush.msrb.mxu1 %v17081_v34 }
 0xb69   : > { %7891 = vmatpush.msrb.mxu1 %v17060_v49 }
 0xb6a   : > { %11060 = vmatmul.msk.f32.gmra.mxu3 %vm7023_vm3, %v11056_v47  ;;  %v11092_v47 = vld [vmem:[%s19209_s26 + $0x1e8] sm:$0xff] }
 0xb6b   : > { %7892 = vmatpush.msrb.mxu1 %v17048_v1 }
 0xb6d   : > { %7893 = vmatpush.msrb.mxu1 %v17036_v46  ;;  %v7429_v59 = vpop.f32.mrf.mxu3 }
 0xb6e   : > { %10977 = vmatmul.msk.f32.gmra.mxu1 %vm7023_vm3, %v10973_v42  ;;  %10968 = vmatmul.msk.f32.gmra.mxu0 %vm7119_vm4, %v7429_v59  ;;  %v7820_v42 = vld [vmem:[%s19187_s6 + $0x110] sm:$0xff]  ;;  %v8009_v59 = vld [vmem:[%s19187_s6 + $0x148] sm:$0xff] }
 0xb6f   : > { %7894 = vmatpush.msrb.mxu1 %v17024_v32 }
 0xb71   : > { %7895 = vmatpush.msrb.mxu1 %v17012_v40 }
 0xb72   : > { %11061 = vmatmul.msk.f32.gmra.mxu3 %vm7023_vm3, %v11057_v33  ;;  %v8008_v33 = vld [vmem:[%s19187_s6 + $0x140] sm:$0xff] }
 0xb73   : > { %7896 = vmatpush.msrb.mxu1 %v17000_v44 }
 0xb75   : > { %7897 = vmatpush.msrb.mxu1 %v16988_v19  ;;  %v7432_v37 = vpop.f32.mrf.mxu3 }
 0xb76   : > { %10978 = vmatmul.msk.f32.gmra.mxu1 %vm7023_vm3, %v10974_v16  ;;  %10969 = vmatmul.msk.f32.gmra.mxu0 %vm7119_vm4, %v7432_v37 }
 0xb77   : > { %7898 = vmatpush.msrb.mxu1 %v16977_v39 }
 0xb79   : > { %7899 = vmatpush.msrb.mxu1 %v16968_v11 }
 0xb7a   : > { %11062 = vmatmul.msk.f32.gmra.mxu3 %vm7023_vm3, %v11058_v57  ;;  %v11094_v57 = vld [vmem:[%s19209_s26 + $0x1f8] sm:$0x1] }
 0xb7d   : > { %v7435_v50 = vpop.f32.mrf.mxu3 }
 0xb7e   : > { %10999 = vmatmul.msk.f32.vlgmr.msra.gmra.mxu1 %vm7023_vm3, %v10995_v28  ;;  %10970 = vmatmul.msk.f32.gmra.mxu0 %vm7119_vm4, %v7435_v50  ;;  %v11068_v28 = vld [vmem:[%s19209_s26 + $0x1a8] sm:$0xff]  ;;  %v8105_v50 = vld [vmem:[%s19187_s6 + $0x170] sm:$0xff] }
 0xb7f   : > { %8076 = vmatpush.msra.mxu1 %v17122_v18 }
 0xb81   : > { %8077 = vmatpush.msra.mxu1 %v17118_v31 }
 0xb82   : > { %11083 = vmatmul.msk.f32.vlgmr.msra.gmra.mxu3 %vm7023_vm3, %v11079_v20 }
 0xb83   : > { %8078 = vmatpush.msra.mxu1 %v17108_v38 }
 0xb85   : > { %8079 = vmatpush.msra.mxu1 %v17096_v21  ;;  %v7616_v3 = vpop.f32.mrf.mxu3 }
 0xb86   : > { %11000 = vmatmul.msk.f32.gmra.mxu1 %vm7023_vm3, %v10996_v7  ;;  %v7819_v7 = vld [vmem:[%s19187_s6 + $0x108] sm:$0xff] }
 0xb87   : > { %8080 = vmatpush.msra.mxu1 %v17081_v34 }
 0xb89   : > { %8081 = vmatpush.msra.mxu1 %v17060_v49 }
 0xb8a   : > { %11084 = vmatmul.msk.f32.gmra.mxu3 %vm7023_vm3, %v11080_v48 }
 0xb8b   : > { %8082 = vmatpush.msra.mxu1 %v17048_v1 }
 0xb8d   : > { %8083 = vmatpush.msra.mxu1 %v17036_v46 }
 0xb8e   : > { %11001 = vmatmul.msk.f32.gmra.mxu1 %vm7023_vm3, %v10997_v55  ;;  %v7818_v55 = vld [vmem:[%s19187_s6 + $0x100] sm:$0xff] }
 0xb8f   : > { %8084 = vmatpush.msra.mxu1 %v17024_v32 }
 0xb91   : > { %8085 = vmatpush.msra.mxu1 %v17012_v40 }
 0xb93   : > { %8086 = vmatpush.msra.mxu1 %v17000_v44 }
 0xb95   : > { %8087 = vmatpush.msra.mxu1 %v16988_v19 }
 0xb96   : > { %11002 = vmatmul.msk.f32.gmra.mxu1 %vm7023_vm3, %v10998_v8 }
 0xb97   : > { %8088 = vmatpush.msra.mxu1 %v16977_v39 }
 0xb99   : > { %8089 = vmatpush.msra.mxu1 %v16968_v11 }
 0xb9b   : > { %v17521_v2 = vpop.f32.mrf.mxu1 }
 0xb9e   : > { %11023 = vmatmul.msk.f32.vlgmr.msrb.gmra.mxu1 %vm7023_vm3, %v11019_v6  ;;  %v11070_v6 = vld [vmem:[%s19209_s26 + $0x1b8] sm:$0x1] }
 0xb9f   : > { %8266 = vmatpush.msrb.mxu1 %v17122_v18 }
 0xba1   : > { %8267 = vmatpush.msrb.mxu1 %v17118_v31 }
 0xba3   : > { %8268 = vmatpush.msrb.mxu1 %v17108_v38  ;;  %v17546_v15 = vpop.f32.mrf.mxu1 }
 0xba5   : > { %8269 = vmatpush.msrb.mxu1 %v17096_v21 }
 0xba6   : > { %11024 = vmatmul.msk.f32.gmra.mxu1 %vm7023_vm3, %v11020_v23  ;;  %v11091_v23 = vld [vmem:[%s19209_s26 + $0x1e0] sm:$0xff] }
 0xba7   : > { %8270 = vmatpush.msrb.mxu1 %v17081_v34 }
 0xba9   : > { %8271 = vmatpush.msrb.mxu1 %v17060_v49 }
 0xbab   : > { %8272 = vmatpush.msrb.mxu1 %v17048_v1  ;;  %v17567_v17 = vpop.f32.mrf.mxu1 }
 0xbad   : > { %8273 = vmatpush.msrb.mxu1 %v17036_v46 }
 0xbae   : > { %11025 = vmatmul.msk.f32.gmra.mxu1 %vm7023_vm3, %v11021_v27 }
 0xbaf   : > { %8274 = vmatpush.msrb.mxu1 %v17024_v32 }
 0xbb1   : > { %8275 = vmatpush.msrb.mxu1 %v17012_v40 }
 0xbb3   : > { %8276 = vmatpush.msrb.mxu1 %v17000_v44  ;;  %v17582_v12 = vpop.f32.mrf.mxu1 }
 0xbb5   : > { %8277 = vmatpush.msrb.mxu1 %v16988_v19 }
 0xbb6   : > { %11026 = vmatmul.msk.f32.gmra.mxu1 %vm7023_vm3, %v11022_v41 }
 0xbb7   : > { %8278 = vmatpush.msrb.mxu1 %v16977_v39 }
 0xbb9   : > { %8279 = vmatpush.msrb.mxu1 %v16968_v11 }
 0xbbb   : > { %v7331_v29 = vpop.f32.mrf.mxu1 }
 0xbbc   : > { %10955 = vmatmul.msk.f32.vlgmr.msrb.gmra.mxu2 %vm7119_vm4, %v7331_v29 }
 0xbbe   : > { %11047 = vmatmul.msk.f32.vlgmr.msra.gmra.mxu1 %vm7023_vm3, %v11043_v26 }
 0xbbf   : > { %8456 = vmatpush.msra.mxu1 %v17122_v18  ;;  %v11044_v18 = vld [vmem:[%s19209_s26 + $0x168] sm:$0xff] }
 0xbc1   : > { %8457 = vmatpush.msra.mxu1 %v17118_v31  ;;  %v7629_v31 = vld [vmem:[%s19187_s6 + $0xc8] sm:$0xff] }
 0xbc2   : > { %7658 = vmatpush.msra.mxu0 %v7629_v31  ;;  %v8103_v31 = vld [vmem:[%s19187_s6 + $0x160] sm:$0xff] }
 0xbc3   : > { %8458 = vmatpush.msra.mxu1 %v17108_v38  ;;  %v7334_v43 = vpop.f32.mrf.mxu1  ;;  %v7628_v38 = vld [vmem:[%s19187_s6 + $0xc0] sm:$0xff]  ;;  %v17755_v41 = vpop.f32.mrf.mxu0 }
 0xbc4   : > { %10956 = vmatmul.msk.f32.gmra.mxu2 %vm7119_vm4, %v7334_v43  ;;  %7659 = vmatpush.msra.mxu0 %v7628_v38  ;;  %v7190_v43 = vpop.f32.mrf.mxu2 }
 0xbc5   : > { %8459 = vmatpush.msra.mxu1 %v17096_v21  ;;  %10991 = vmatmul.msk.f32.vlgmr.msra.gmra.mxu0 %vm7119_vm4, %v7616_v3  ;;  %v11045_v21 = vld [vmem:[%s19209_s26 + $0x170] sm:$0xff]  ;;  %v8201_v3 = vld [vmem:[%s19187_s6 + $0x198] sm:$0xff] }
 0xbc6   : > { %11048 = vmatmul.msk.f32.gmra.mxu1 %vm7023_vm3, %v11044_v18  ;;  %7846 = vmatpush.msrb.mxu0 %v7821_v56  ;;  %v8295_v56 = vld [vmem:[%s19187_s6 + $0x1b0] sm:$0xff] }
 0xbc7   : > { %8460 = vmatpush.msra.mxu1 %v17081_v34  ;;  %v11046_v34 = vld [vmem:[%s19209_s26 + $0x178] sm:$0x1] }
 0xbc8   : > { %7847 = vmatpush.msrb.mxu0 %v7820_v42  ;;  %v8294_v42 = vld [vmem:[%s19187_s6 + $0x1a8] sm:$0xff] }
 0xbc9   : > { %8461 = vmatpush.msra.mxu1 %v17060_v49 }
 0xbca   : > { %7848 = vmatpush.msrb.mxu0 %v7819_v7  ;;  %v7191_v7 = vadd.f32 %v7190_v43, %v17521_v2  ;;  %v8390_v2 = vld [vmem:[%s19187_s6 + $0x1d0] sm:$0xff] }
 0xbcb   : > { %8462 = vmatpush.msra.mxu1 %v17048_v1  ;;  %v7337_v30 = vpop.f32.mrf.mxu1  ;;  %v7619_v1 = vpop.f32.mrf.mxu3 }
 0xbcc   : > { %10957 = vmatmul.msk.f32.gmra.mxu2 %vm7119_vm4, %v7337_v30  ;;  %7849 = vmatpush.msrb.mxu0 %v7818_v55  ;;  %v17766_v26 = vpop.f32.mrf.mxu0  ;;  %v8200_v30 = vld [vmem:[%s19187_s6 + $0x190] sm:$0xff]  ;;  %v7193_v48 = vpop.f32.mrf.mxu2  ;;  %v7293_v55 = vadd.f32 %v17755_v41, %v7191_v7 }
 0xbcd   : > { %8463 = vmatpush.msra.mxu1 %v17036_v46  ;;  %10992 = vmatmul.msk.f32.gmra.mxu0 %vm7119_vm4, %v7619_v1  ;;  %v11081_v46 = vld [vmem:[%s19209_s26 + $0x1d0] sm:$0xff] }
 0xbce   : > { %11049 = vmatmul.msk.f32.gmra.mxu1 %vm7023_vm3, %v11045_v21  ;;  %11085 = vmatmul.msk.f32.gmra.mxu3 %vm7023_vm3, %v11081_v46 }
 0xbcf   : > { %8464 = vmatpush.msra.mxu1 %v17024_v32  ;;  %v7726_v32 = vld [vmem:[%s19187_s6 + $0xf8] sm:$0xff]  ;;  %8036 = vmatpush.msra.mxu0 %v8011_v22 }
 0xbd0   : > { %7751 = vmatpush.msrb.mxu2 %v7726_v32 }
 0xbd1   : > { %8465 = vmatpush.msra.mxu1 %v17012_v40  ;;  %v7724_v40 = vld [vmem:[%s19187_s6 + $0xe8] sm:$0xff]  ;;  %8037 = vmatpush.msra.mxu0 %v8010_v13 }
 0xbd3   : > { %8466 = vmatpush.msra.mxu1 %v17000_v44  ;;  %v7340_v49 = vpop.f32.mrf.mxu1  ;;  %v7725_v44 = vld [vmem:[%s19187_s6 + $0xf0] sm:$0xff]  ;;  %v7622_v14 = vpop.f32.mrf.mxu3  ;;  %8038 = vmatpush.msra.mxu0 %v8009_v59 }
 0xbd4   : > { %10958 = vmatmul.msk.f32.gmra.mxu2 %vm7119_vm4, %v7340_v49  ;;  %v17784_v18 = vpop.f32.mrf.mxu0  ;;  %v8199_v49 = vld [vmem:[%s19187_s6 + $0x188] sm:$0xff] }
 0xbd5   : > { %8467 = vmatpush.msra.mxu1 %v16988_v19  ;;  %7752 = vmatpush.msrb.mxu2 %v7725_v44 }
 0xbd6   : > { %11050 = vmatmul.msk.f32.gmra.mxu1 %vm7023_vm3, %v11046_v34  ;;  %10993 = vmatmul.msk.f32.gmra.mxu0 %vm7119_vm4, %v7622_v14  ;;  %v8198_v34 = vld [vmem:[%s19187_s6 + $0x180] sm:$0xff] }
 0xbd7   : > { %8468 = vmatpush.msra.mxu1 %v16977_v39  ;;  %7753 = vmatpush.msrb.mxu2 %v7724_v40  ;;  %v11082_v39 = vld [vmem:[%s19209_s26 + $0x1d8] sm:$0x1]  ;;  %v7196_v40 = vpop.f32.mrf.mxu2 }
 0xbd8   : > { %11086 = vmatmul.msk.f32.gmra.mxu3 %vm7023_vm3, %v11082_v39  ;;  %8039 = vmatpush.msra.mxu0 %v8008_v33  ;;  %v7197_v22 = vadd.f32 %v7196_v40, %v17567_v17 }
 0xbd9   : > { %8469 = vmatpush.msra.mxu1 %v16968_v11  ;;  %7754 = vmatpush.msrb.mxu2 %v7723_v53 }
 0xbda   : > { %v7295_v13 = vadd.f32 %v17784_v18, %v7197_v22 }
 0xbdb   : > { %v7521_v19 = vpop.f32.mrf.mxu1  ;;  %v7625_v11 = vpop.f32.mrf.mxu3 }
 0xbdc   : > { %10979 = vmatmul.msk.f32.vlgmr.msra.gmra.mxu2 %vm7119_vm4, %v7521_v19  ;;  %v17798_v1 = vpop.f32.mrf.mxu0 }
 0xbdd   : > { %7941 = vmatpush.msra.mxu2 %v7916_v36  ;;  %v7194_v36 = vadd.f32 %v7193_v48, %v17546_v15 }
 0xbde   : > { %11071 = vmatmul.msk.f32.vlgmr.msrb.gmra.mxu1 %vm7023_vm3, %v11067_v35  ;;  %10994 = vmatmul.msk.f32.gmra.mxu0 %vm7119_vm4, %v7625_v11  ;;  %v8296_v35 = vld [vmem:[%s19187_s6 + $0x1b8] sm:$0xff] }
 0xbdf   : > { %7942 = vmatpush.msra.mxu2 %v7915_v25  ;;  %v7199_v39 = vpop.f32.mrf.mxu2  ;;  %v8389_v25 = vld [vmem:[%s19187_s6 + $0x1c8] sm:$0xff] }
 0xbe0   : > { %v7200_v33 = vadd.f32 %v7199_v39, %v17582_v12  ;;  %v8484_v12 = vld [vmem:[%s19187_s6 + $0x1e8] sm:$0xff] }
 0xbe1   : > { %7943 = vmatpush.msra.mxu2 %v7914_v0  ;;  %v7294_v0 = vadd.f32 %v17766_v26, %v7194_v36 }
 0xbe2   : > { %v7296_v17 = vadd.f32 %v17798_v1, %v7200_v33 }
 0xbe3   : > { %v7524_v16 = vpop.f32.mrf.mxu1  ;;  %v7806_v52 = vpop.f32.mrf.mxu3  ;;  %7944 = vmatpush.msra.mxu2 %v7913_v58 }
 0xbe4   : > { %10980 = vmatmul.msk.f32.gmra.mxu2 %vm7119_vm4, %v7524_v16  ;;  %v17808_v44 = vpop.f32.mrf.mxu0 }
 0xbe6   : > { %11072 = vmatmul.msk.f32.gmra.mxu1 %vm7023_vm3, %v11068_v28  ;;  %11015 = vmatmul.msk.f32.vlgmr.msrb.gmra.mxu0 %vm7119_vm4, %v7806_v52  ;;  %v8293_v28 = vld [vmem:[%s19187_s6 + $0x1a0] sm:$0xff] }
 0xbe7   : > { %8226 = vmatpush.msrb.mxu0 %v8201_v3 }
 0xbe9   : > { %8227 = vmatpush.msrb.mxu0 %v8200_v30 }
 0xbeb   : > { %v7527_v8 = vpop.f32.mrf.mxu1  ;;  %v7809_v4 = vpop.f32.mrf.mxu3  ;;  %8228 = vmatpush.msrb.mxu0 %v8199_v49 }
 0xbec   : > { %10981 = vmatmul.msk.f32.gmra.mxu2 %vm7119_vm4, %v7527_v8  ;;  %v17815_v53 = vpop.f32.mrf.mxu0 }
 0xbed   : > { %8229 = vmatpush.msrb.mxu0 %v8198_v34 }
 0xbee   : > { %11073 = vmatmul.msk.f32.gmra.mxu1 %vm7023_vm3, %v11069_v60  ;;  %11016 = vmatmul.msk.f32.gmra.mxu0 %vm7119_vm4, %v7809_v4 }
 0xbf3   : > { %v7530_v62 = vpop.f32.mrf.mxu1  ;;  %v7812_v24 = vpop.f32.mrf.mxu3 }
 0xbf4   : > { %10982 = vmatmul.msk.f32.gmra.mxu2 %vm7119_vm4, %v7530_v62  ;;  %v17832_v4 = vpop.f32.mrf.mxu0  ;;  %v8391_v62 = vld [vmem:[%s19187_s6 + $0x1d8] sm:$0xff] }
 0xbf6   : > { %11074 = vmatmul.msk.f32.gmra.mxu1 %vm7023_vm3, %v11070_v6  ;;  %11017 = vmatmul.msk.f32.gmra.mxu0 %vm7119_vm4, %v7812_v24  ;;  %v8388_v24 = vld [vmem:[%s19187_s6 + $0x1c0] sm:$0xff] }
 0xbfb   : > { %v7711_v10 = vpop.f32.mrf.mxu1  ;;  %v7815_v61 = vpop.f32.mrf.mxu3 }
 0xbfc   : > { %11003 = vmatmul.msk.f32.vlgmr.msrb.gmra.mxu2 %vm7119_vm4, %v7711_v10  ;;  %v17853_v15 = vpop.f32.mrf.mxu0 }
 0xbfd   : > { %8131 = vmatpush.msrb.mxu2 %v8106_v51  ;;  %v8483_v51 = vld [vmem:[%s19187_s6 + $0x1e0] sm:$0xff] }
 0xbfe   : > { %11095 = vmatmul.msk.f32.vlgmr.msra.gmra.mxu1 %vm7023_vm3, %v11091_v23  ;;  %11018 = vmatmul.msk.f32.gmra.mxu0 %vm7119_vm4, %v7815_v61 }
 0xbff   : > { %8132 = vmatpush.msrb.mxu2 %v8105_v50 }
 0xc01   : > { %8133 = vmatpush.msrb.mxu2 %v8104_v54 }
 0xc03   : > { %v7714_v27 = vpop.f32.mrf.mxu1  ;;  %v7996_v37 = vpop.f32.mrf.mxu3  ;;  %8134 = vmatpush.msrb.mxu2 %v8103_v31 }
 0xc04   : > { %11004 = vmatmul.msk.f32.gmra.mxu2 %vm7119_vm4, %v7714_v27 }
 0xc06   : > { %11096 = vmatmul.msk.f32.gmra.mxu1 %vm7023_vm3, %v11092_v47  ;;  %11039 = vmatmul.msk.f32.vlgmr.msra.gmra.mxu0 %vm7119_vm4, %v7996_v37  ;;  %v8486_v37 = vld [vmem:[%s19187_s6 + $0x1f8] sm:$0xff] }
 0xc07   : > { %8416 = vmatpush.msra.mxu0 %v8391_v62 }
 0xc09   : > { %8417 = vmatpush.msra.mxu0 %v8390_v2 }
 0xc0b   : > { %v7717_v63 = vpop.f32.mrf.mxu1  ;;  %v7999_v9 = vpop.f32.mrf.mxu3  ;;  %8418 = vmatpush.msra.mxu0 %v8389_v25 }
 0xc0c   : > { %11005 = vmatmul.msk.f32.gmra.mxu2 %vm7119_vm4, %v7717_v63 }
 0xc0d   : > { %8419 = vmatpush.msra.mxu0 %v8388_v24 }
 0xc0e   : > { %11097 = vmatmul.msk.f32.gmra.mxu1 %vm7023_vm3, %v11093_v5  ;;  %11040 = vmatmul.msk.f32.gmra.mxu0 %vm7119_vm4, %v7999_v9 }
 0xc13   : > { %v7720_v29 = vpop.f32.mrf.mxu1  ;;  %v8002_v45 = vpop.f32.mrf.mxu3 }
 0xc14   : > { %11006 = vmatmul.msk.f32.gmra.mxu2 %vm7119_vm4, %v7720_v29  ;;  %v8485_v29 = vld [vmem:[%s19187_s6 + $0x1f0] sm:$0xff] }
 0xc16   : > { %11098 = vmatmul.msk.f32.gmra.mxu1 %vm7023_vm3, %v11094_v57  ;;  %11041 = vmatmul.msk.f32.gmra.mxu0 %vm7119_vm4, %v8002_v45 }
 0xc1b   : > { %v7901_v20 = vpop.f32.mrf.mxu1  ;;  %v8005_v38 = vpop.f32.mrf.mxu3 }
 0xc1c   : > { %11027 = vmatmul.msk.f32.vlgmr.msra.gmra.mxu2 %vm7119_vm4, %v7901_v20 }
 0xc1d   : > { %8321 = vmatpush.msra.mxu2 %v8296_v35 }
 0xc1e   : > { %11042 = vmatmul.msk.f32.gmra.mxu0 %vm7119_vm4, %v8005_v38 }
 0xc1f   : > { %8322 = vmatpush.msra.mxu2 %v8295_v56 }
 0xc21   : > { %8323 = vmatpush.msra.mxu2 %v8294_v42 }
 0xc23   : > { %v7904_v21 = vpop.f32.mrf.mxu1  ;;  %v8186_v46 = vpop.f32.mrf.mxu3  ;;  %8324 = vmatpush.msra.mxu2 %v8293_v28 }
 0xc24   : > { %11028 = vmatmul.msk.f32.gmra.mxu2 %vm7119_vm4, %v7904_v21 }
 0xc26   : > { %11063 = vmatmul.msk.f32.vlgmr.msrb.gmra.mxu0 %vm7119_vm4, %v8186_v46 }
 0xc2b   : > { %v7907_v32 = vpop.f32.mrf.mxu1  ;;  %v8189_v14 = vpop.f32.mrf.mxu3 }
 0xc2c   : > { %11029 = vmatmul.msk.f32.gmra.mxu2 %vm7119_vm4, %v7907_v32 }
 0xc2e   : > { %11064 = vmatmul.msk.f32.gmra.mxu0 %vm7119_vm4, %v8189_v14 }
 0xc33   : > { %v7910_v19 = vpop.f32.mrf.mxu1  ;;  %v8192_v11 = vpop.f32.mrf.mxu3 }
 0xc34   : > { %11030 = vmatmul.msk.f32.gmra.mxu2 %vm7119_vm4, %v7910_v19 }
 0xc36   : > { %11065 = vmatmul.msk.f32.gmra.mxu0 %vm7119_vm4, %v8192_v11 }
 0xc3b   : > { %v8091_v16 = vpop.f32.mrf.mxu1  ;;  %v8195_v8 = vpop.f32.mrf.mxu3 }
 0xc3c   : > { %11051 = vmatmul.msk.f32.vlgmr.msrb.gmra.mxu2 %vm7119_vm4, %v8091_v16 }
 0xc3d   : > { %8511 = vmatpush.msrb.mxu2 %v8486_v37 }
 0xc3e   : > { %11066 = vmatmul.msk.f32.gmra.mxu0 %vm7119_vm4, %v8195_v8 }
 0xc3f   : > { %v7376_v52 = vpop.f32.mrf.mxu2  ;;  %8512 = vmatpush.msrb.mxu2 %v8485_v29 }
 0xc40   : > { %v17830_v60 = vadd.f32 %v7376_v52, %v7293_v55 }
 0xc41   : > { %8513 = vmatpush.msrb.mxu2 %v8484_v12 }
 0xc42   : > { %v17864_v63 = vpop.f32.mrf.mxu0 }
 0xc43   : > { %v8094_v6 = vpop.f32.mrf.mxu1  ;;  %v8376_v23 = vpop.f32.mrf.mxu3  ;;  %8514 = vmatpush.msrb.mxu2 %v8483_v51 }
 0xc44   : > { %11052 = vmatmul.msk.f32.gmra.mxu2 %vm7119_vm4, %v8094_v6 }
 0xc46   : > { %11087 = vmatmul.msk.f32.vlgmr.msra.gmra.mxu0 %vm7119_vm4, %v8376_v23 }
 0xc47   : > { %v7379_v10 = vpop.f32.mrf.mxu2 }
 0xc48   : > { %v17850_v58 = vadd.f32 %v7379_v10, %v7294_v0 }
 0xc4a   : > { %v7664_v50 = vpop.f32.mrf.mxu0  ;;  %v7484_v55 = vadd.f32 %v17815_v53, %v17850_v58 }
 0xc4b   : > { %v8097_v61 = vpop.f32.mrf.mxu1  ;;  %v8379_v47 = vpop.f32.mrf.mxu3 }
 0xc4c   : > { %11053 = vmatmul.msk.f32.gmra.mxu2 %vm7119_vm4, %v8097_v61 }
 0xc4e   : > { %11088 = vmatmul.msk.f32.gmra.mxu0 %vm7119_vm4, %v8379_v47 }
 0xc4f   : > { %v7382_v27 = vpop.f32.mrf.mxu2 }
 0xc50   : > { %v7390_v59 = vadd.f32 %v7382_v27, %v7295_v13 }
 0xc52   : > { %v7485_v6 = vadd.f32 %v17832_v4, %v7390_v59 }
 0xc53   : > { %v8100_v41 = vpop.f32.mrf.mxu1  ;;  %v8382_v9 = vpop.f32.mrf.mxu3 }
 0xc54   : > { %11054 = vmatmul.msk.f32.gmra.mxu2 %vm7119_vm4, %v8100_v41  ;;  %v7667_v20 = vpop.f32.mrf.mxu0 }
 0xc56   : > { %11089 = vmatmul.msk.f32.gmra.mxu0 %vm7119_vm4, %v8382_v9 }
 0xc57   : > { %v7385_v5 = vpop.f32.mrf.mxu2 }
 0xc58   : > { %v17867_v26 = vadd.f32 %v7385_v5, %v7296_v17 }
 0xc5b   : > { %v8281_v57 = vpop.f32.mrf.mxu1  ;;  %v8385_v45 = vpop.f32.mrf.mxu3 }
 0xc5c   : > { %11075 = vmatmul.msk.f32.vlgmr.msra.gmra.mxu2 %vm7119_vm4, %v8281_v57  ;;  %v7670_v30 = vpop.f32.mrf.mxu0 }
 0xc5e   : > { %11090 = vmatmul.msk.f32.gmra.mxu0 %vm7119_vm4, %v8385_v45  ;;  %v7486_v45 = vadd.f32 %v17853_v15, %v17867_v26 }
 0xc5f   : > { %v17880_v54 = vpop.f32.mrf.mxu2 }
 0xc63   : > { %v8284_v43 = vpop.f32.mrf.mxu1 }
 0xc64   : > { %11076 = vmatmul.msk.f32.gmra.mxu2 %vm7119_vm4, %v8284_v43  ;;  %v7851_v1 = vpop.f32.mrf.mxu0  ;;  %v7483_v43 = vadd.f32 %v17808_v44, %v17830_v60 }
 0xc67   : > { %v7569_v18 = vpop.f32.mrf.mxu2 }
 0xc68   : > { %v7579_v52 = vadd.f32 %v7569_v18, %v7484_v55 }
 0xc6a   : > { %v7674_v2 = vadd.f32 %v7664_v50, %v7579_v52 }
 0xc6b   : > { %v8287_v31 = vpop.f32.mrf.mxu1 }
 0xc6c   : > { %11077 = vmatmul.msk.f32.gmra.mxu2 %vm7119_vm4, %v8287_v31  ;;  %v7854_v32 = vpop.f32.mrf.mxu0 }
 0xc6f   : > { %v7572_v38 = vpop.f32.mrf.mxu2 }
 0xc70   : > { %v7580_v25 = vadd.f32 %v7572_v38, %v7485_v6 }
 0xc72   : > { %v7675_v10 = vadd.f32 %v7667_v20, %v7580_v25  ;;  %v7578_v20 = vadd.f32 %v17880_v54, %v7483_v43 }
 0xc73   : > { %v8290_v3 = vpop.f32.mrf.mxu1 }
 0xc74   : > { %11078 = vmatmul.msk.f32.gmra.mxu2 %vm7119_vm4, %v8290_v3  ;;  %v7857_v19 = vpop.f32.mrf.mxu0 }
 0xc77   : > { %v7575_v21 = vpop.f32.mrf.mxu2 }
 0xc78   : > { %v7581_v18 = vadd.f32 %v7575_v21, %v7486_v45 }
 0xc7a   : > { %v7676_v31 = vadd.f32 %v7670_v30, %v7581_v18 }
 0xc7b   : > { %v8471_v48 = vpop.f32.mrf.mxu1 }
 0xc7c   : > { %11099 = vmatmul.msk.f32.vlgmr.msrb.gmra.mxu2 %vm7119_vm4, %v8471_v48  ;;  %v7860_v11 = vpop.f32.mrf.mxu0  ;;  %v7673_v48 = vadd.f32 %v17864_v63, %v7578_v20 }
 0xc7f   : > { %v7756_v49 = vpop.f32.mrf.mxu2 }
 0xc83   : > { %v8474_v34 = vpop.f32.mrf.mxu1 }
 0xc84   : > { %11100 = vmatmul.msk.f32.gmra.mxu2 %vm7119_vm4, %v8474_v34  ;;  %v8041_v42 = vpop.f32.mrf.mxu0 }
 0xc87   : > { %v7759_v46 = vpop.f32.mrf.mxu2 }
 0xc88   : > { %v7769_v36 = vadd.f32 %v7759_v46, %v7674_v2  ;;  %v7768_v46 = vadd.f32 %v7756_v49, %v7673_v48 }
 0xc8a   : > { %v7864_v24 = vadd.f32 %v7854_v32, %v7769_v36 }
 0xc8b   : > { %v8477_v40 = vpop.f32.mrf.mxu1 }
 0xc8c   : > { %11101 = vmatmul.msk.f32.gmra.mxu2 %vm7119_vm4, %v8477_v40  ;;  %v8044_v7 = vpop.f32.mrf.mxu0  ;;  %v7863_v40 = vadd.f32 %v7851_v1, %v7768_v46 }
 0xc8f   : > { %v7762_v14 = vpop.f32.mrf.mxu2 }
 0xc90   : > { %v7770_v22 = vadd.f32 %v7762_v14, %v7675_v10 }
 0xc92   : > { %v7865_v47 = vadd.f32 %v7857_v19, %v7770_v22 }
 0xc93   : > { %v8480_v35 = vpop.f32.mrf.mxu1 }
 0xc94   : > { %11102 = vmatmul.msk.f32.gmra.mxu2 %vm7119_vm4, %v8480_v35  ;;  %v8047_v62 = vpop.f32.mrf.mxu0 }
 0xc97   : > { %v7765_v39 = vpop.f32.mrf.mxu2 }
 0xc98   : > { %v7771_v34 = vadd.f32 %v7765_v39, %v7676_v31 }
 0xc9a   : > { %v7866_v32 = vadd.f32 %v7860_v11, %v7771_v34 }
 0xc9c   : > { %v8050_v61 = vpop.f32.mrf.mxu0 }
 0xc9f   : > { %v7946_v56 = vpop.f32.mrf.mxu2 }
 0xca0   : > { %v7958_v35 = vadd.f32 %v7946_v56, %v7863_v40 }
 0xca2   : > { %v8053_v26 = vadd.f32 %v8041_v42, %v7958_v35  ;;  %v11233_v42 = vld [vmem:[%s19210_s1] ss:$0 sm:$0xff]  ;;  %v11124_v35 = vld [vmem:[%s19212_s25 + $0x10] sm:$0xff]  ;;  %s18519_s1 = scalar_lea.vmem %s18580_s24, %s19214_s28 }
 0xca4   : > { %v8231_v53 = vpop.f32.mrf.mxu0 }
 0xca7   : > { %v7949_v16 = vpop.f32.mrf.mxu2 }
 0xca8   : > { %v7959_v23 = vadd.f32 %v7949_v16, %v7864_v24 }
 0xcaa   : > { %v8054_v13 = vadd.f32 %v8044_v7, %v7959_v23 }
 0xcac   : > { %v8234_v9 = vpop.f32.mrf.mxu0 }
 0xcaf   : > { %v7952_v28 = vpop.f32.mrf.mxu2 }
 0xcb0   : > { %v7960_v33 = vadd.f32 %v7952_v28, %v7865_v47  ;;  %v8544_v47 = vld [vmem:[%s19211_s0] sm:$0xff] }
 0xcb2   : > { %v8055_v58 = vadd.f32 %v8047_v62, %v7960_v33  ;;  %v11106_v33 = vld [vmem:[%s19211_s0 + $0x10] sm:$0xff] }
 0xcb4   : > { %v8237_v59 = vpop.f32.mrf.mxu0 }
 0xcb7   : > { %v7955_v8 = vpop.f32.mrf.mxu2 }
 0xcb8   : > { %v7961_v14 = vadd.f32 %v7955_v8, %v7866_v32 }
 0xcba   : > { %v8056_v15 = vadd.f32 %v8050_v61, %v7961_v14 }
 0xcbc   : > { %v8240_v12 = vpop.f32.mrf.mxu0 }
 0xcbf   : > { %v8136_v0 = vpop.f32.mrf.mxu2 }
 0xcc0   : > { %v8148_v44 = vadd.f32 %v8136_v0, %v8053_v26  ;;  %v8682_v26 = vld [vmem:[%s19212_s25 + $0x8] sm:$0x1] }
 0xcc2   : > { %v8243_v55 = vadd.f32 %v8231_v53, %v8148_v44  ;;  %v11111_v53 = vld [vmem:[%s19211_s0 + $0x20] sm:$0xff]  ;;  %v11134_v44 = vld [vmem:[%s19212_s25 + $0x28] sm:$0x1] }
 0xcc4   : > { %v8421_v51 = vpop.f32.mrf.mxu0 }
 0xcc7   : > { %v8139_v27 = vpop.f32.mrf.mxu2 }
 0xcc8   : > { %v8149_v41 = vadd.f32 %v8139_v27, %v8054_v13 }
 0xcca   : > { %v8244_v54 = vadd.f32 %v8234_v9, %v8149_v41  ;;  %v11116_v41 = vld [vmem:[%s19211_s0 + $0x30] sm:$0xff]  ;;  %v8763_v9 = vld [vmem:[%s18565_s9 + $0x78] sm:$0xff] }
 0xccc   : > { %v8424_v3 = vpop.f32.mrf.mxu0 }
 0xccf   : > { %v8142_v37 = vpop.f32.mrf.mxu2 }
 0xcd0   : > { %v8150_v17 = vadd.f32 %v8142_v37, %v8055_v58  ;;  %v8545_v58 = vld [vmem:[%s19211_s0 + $0x8] sm:$0x1]  ;;  %v11117_v37 = vld [vmem:[%s19211_s0 + $0x38] sm:$0x1] }
 0xcd2   : > { %v8245_v60 = vadd.f32 %v8237_v59, %v8150_v17  ;;  %v11107_v17 = vld [vmem:[%s19211_s0 + $0x18] sm:$0x1]  ;;  %v8761_v59 = vld [vmem:[%s18565_s9 + $0x68] sm:$0xff] }
 0xcd4   : > { %v8427_v16 = vpop.f32.mrf.mxu0 }
 0xcd7   : > { %v8145_v5 = vpop.f32.mrf.mxu2 }
 0xcd8   : > { %v8151_v28 = vadd.f32 %v8145_v5, %v8056_v15  ;;  %v11112_v5 = vld [vmem:[%s19211_s0 + $0x28] sm:$0x1]  ;;  %v11125_v15 = vld [vmem:[%s19212_s25 + $0x18] sm:$0x1] }
 0xcda   : > { %v8246_v7 = vadd.f32 %v8240_v12, %v8151_v28  ;;  %v8759_v12 = vld [vmem:[%s18565_s9 + $0x58] sm:$0xff]  ;;  %v11133_v28 = vld [vmem:[%s19212_s25 + $0x20] sm:$0xff] }
 0xcdc   : > { %v8430_v39 = vpop.f32.mrf.mxu0 }
 0xcdf   : > { %v8326_v4 = vpop.f32.mrf.mxu2 }
 0xce0   : > { %v8338_v49 = vadd.f32 %v8326_v4, %v8243_v55  ;;  %v8762_v4 = vld [vmem:[%s18565_s9 + $0x70] sm:$0xff]  ;;  %v8719_v55 = vld [vmem:[%s18565_s9 + $0x18] sm:$0xff] }
 0xce2   : > { %v8433_v2 = vadd.f32 %v8421_v51, %v8338_v49  ;;  %v8757_v51 = vld [vmem:[%s18565_s9 + $0x48] sm:$0xff]  ;;  %v8862_v49 = vld [vmem:[%s18565_s9 + $0xb8] sm:$0xff] }
 0xce7   : > { %v8329_v29 = vpop.f32.mrf.mxu2 }
 0xce8   : > { %v8339_v52 = vadd.f32 %v8329_v29, %v8244_v54  ;;  %v8760_v29 = vld [vmem:[%s18565_s9 + $0x60] sm:$0xff]  ;;  %v8722_v54 = vld [vmem:[%s18565_s9 + $0x30] sm:$0xff] }
 0xcea   : > { %v8434_v1 = vadd.f32 %v8424_v3, %v8339_v52  ;;  %v8718_v52 = vld [vmem:[%s18565_s9 + $0x10] sm:$0xff] }
 0xcef   : > { %v8332_v57 = vpop.f32.mrf.mxu2 }
 0xcf0   : > { %v8340_v30 = vadd.f32 %v8332_v57, %v8245_v60  ;;  %v8758_v57 = vld [vmem:[%s18565_s9 + $0x50] sm:$0xff]  ;;  %v11147_v60 = vld [vmem:[%s19212_s25 + $0x40] sm:$0xff] }
 0xcf2   : > { %v8435_v11 = vadd.f32 %v8427_v16, %v8340_v30  ;;  %v8681_v16 = vld [vmem:[%s19212_s25] sm:$0xff]  ;;  %v8721_v30 = vld [vmem:[%s18565_s9 + $0x28] sm:$0xff] }
 0xcf7   : > { %v8335_v50 = vpop.f32.mrf.mxu2 }
 0xcf8   : > { %v8341_v63 = vadd.f32 %v8335_v50, %v8246_v7  ;;  %v8756_v50 = vld [vmem:[%s18565_s9 + $0x40] sm:$0xff] }
 0xcf9   : > { %v8720_v7 = vld [vmem:[%s18565_s9 + $0x20] sm:$0xff] }
 0xcfa   : > { %v8436_v62 = vadd.f32 %v8430_v39, %v8341_v63  ;;  %v8717_v63 = vld [vmem:[%s18565_s9 + $0x8] sm:$0xff]  ;;  %v8716_v39 = vld [vmem:[%s18565_s9] sm:$0xff] }
 0xcff   : > { %v8516_v38 = vpop.f32.mrf.mxu2 }
 0xd00   : > { %v8528_v25 = vadd.f32 %v8516_v38, %v8433_v2  ;;  %v8856_v2 = vld [vmem:[%s18565_s9 + $0x88] sm:$0xff] }
 0xd02   : > { %v8536_v61 = vadd.f32 %v11233_v42, %v8528_v25  ;;  %v11161_v25 = vld [vmem:[%s19212_s25 + $0x60] sm:$0xff] }
 0xd04   : > { %v8540_v27 = vmax.f32 %v8536_v61, 0.0 }
 0xd07   : > { %v8519_v19 = vpop.f32.mrf.mxu2 }
 0xd08   : > { %v8529_v6 = vadd.f32 %v8519_v19, %v8434_v1  ;;  %v8860_v1 = vld [vmem:[%s18565_s9 + $0xa8] sm:$0xff] }
 0xd0a   : > { %v8537_v10 = vadd.f32 %v11233_v42, %v8529_v6  ;;  %v11148_v6 = vld [vmem:[%s19212_s25 + $0x48] sm:$0x1] }
 0xd0c   : > { %v8541_v13 = vmax.f32 %v8537_v10, 0.0  ;;  %v11162_v10 = vld [vmem:[%s19212_s25 + $0x68] sm:$0x1] }
 0xd0f   : > { %v8522_v21 = vpop.f32.mrf.mxu2 }
 0xd10   : > { %v8530_v8 = vadd.f32 %v8522_v21, %v8435_v11  ;;  %v8723_v21 = vld [vmem:[%s18565_s9 + $0x38] sm:$0xff]  ;;  %v8861_v11 = vld [vmem:[%s18565_s9 + $0xb0] sm:$0xff] }
 0xd12   : > { %v8538_v0 = vadd.f32 %v11233_v42, %v8530_v8  ;;  %v8859_v8 = vld [vmem:[%s18565_s9 + $0xa0] sm:$0xff] }
 0xd14   : > { %v8542_v22 = vmax.f32 %v8538_v0, 0.0 }
 0xd17   : > { %v8525_v56 = vpop.f32.mrf.mxu2 }
 0xd18   : > { %v8531_v36 = vadd.f32 %v8525_v56, %v8436_v62  ;;  %v8858_v62 = vld [vmem:[%s18565_s9 + $0x98] sm:$0xff]  ;;  %v8857_v56 = vld [vmem:[%s18565_s9 + $0x90] sm:$0xff] }
 0xd1a   : > { %v8539_v24 = vadd.f32 %v11233_v42, %v8531_v36  ;;  %v8855_v42 = vld [vmem:[%s18565_s9 + $0x80] sm:$0xff] }
 0xd1c   : > { %v8543_v23 = vmax.f32 %v8539_v24, 0.0 }
 0xd1e   : > { %11103 = vmatpush.msk.msrb.mxu3 %vm1185_vm0, %v8543_v23  ;;  %11108 = vmatpush.msk.msrb.mxu0 %vm1185_vm0, %v8543_v23 }
 0xd1f   : > { %11113 = vmatpush.msk.msrb.mxu1 %vm1185_vm0, %v8543_v23  ;;  %11118 = vmatpush.msk.msra.mxu2 %vm1185_vm0, %v8543_v23  ;;  %v11140_v23 = vld [vmem:[%s19212_s25 + $0x30] sm:$0xff] }
 0xd20   : > { %8569 = vmatpush.msrb.mxu3 %v8542_v22  ;;  %8601 = vmatpush.msrb.mxu0 %v8542_v22 }
 0xd21   : > { %8635 = vmatpush.msrb.mxu1 %v8542_v22  ;;  %8669 = vmatpush.msra.mxu2 %v8542_v22  ;;  %v11175_v22 = vld [vmem:[%s19212_s25 + $0x80] sm:$0xff] }
 0xd22   : > { %8570 = vmatpush.msrb.mxu3 %v8541_v13  ;;  %8602 = vmatpush.msrb.mxu0 %v8541_v13 }
 0xd23   : > { %8636 = vmatpush.msrb.mxu1 %v8541_v13  ;;  %8670 = vmatpush.msra.mxu2 %v8541_v13  ;;  %v11141_v13 = vld [vmem:[%s19212_s25 + $0x38] sm:$0x1] }
 0xd24   : > { %8571 = vmatpush.msrb.mxu3 %v8540_v27  ;;  %8603 = vmatpush.msrb.mxu0 %v8540_v27 }
 0xd25   : > { %8637 = vmatpush.msrb.mxu1 %v8540_v27  ;;  %8671 = vmatpush.msra.mxu2 %v8540_v27 }
 0xd26   : > { %11104 = vmatmul.msk.f32.vlgmr.msrb.gmra.mxu3 %vm8546_vm5, %v8544_v47  ;;  %11119 = vmatmul.msk.f32.vlgmr.msra.gmra.mxu2 %vm8546_vm5, %v11116_v41  ;;  %v11176_v47 = vld [vmem:[%s19212_s25 + $0x88] sm:$0x1]  ;;  %v11154_v41 = vld [vmem:[%s19212_s25 + $0x50] sm:$0xff] }
 0xd27   : > { %11109 = vmatmul.msk.f32.vlgmr.msrb.gmra.mxu0 %vm8546_vm5, %v11106_v33  ;;  %11114 = vmatmul.msk.f32.vlgmr.msrb.gmra.mxu1 %vm8546_vm5, %v11111_v53  ;;  %v11155_v53 = vld [vmem:[%s19212_s25 + $0x58] sm:$0x1] }
 0xd28   : > { %8779 = vmatpush.msra.mxu1 %v8763_v9  ;;  %8808 = vmatpush.msrb.mxu2 %v8723_v21  ;;  %v8931_v9 = vld [vmem:[%s18565_s9 + $0xe8] sm:$0xff]  ;;  %v9142_v21 = vld [vmem:[%s18565_s9 + $0x198] sm:$0xff] }
 0xd2a   : > { %8780 = vmatpush.msra.mxu1 %v8762_v4  ;;  %8809 = vmatpush.msrb.mxu2 %v8722_v54  ;;  %v8930_v4 = vld [vmem:[%s18565_s9 + $0xe0] sm:$0xff]  ;;  %v9141_v54 = vld [vmem:[%s18565_s9 + $0x190] sm:$0xff] }
 0xd2c   : > { %8781 = vmatpush.msra.mxu1 %v8761_v59  ;;  %8810 = vmatpush.msrb.mxu2 %v8721_v30  ;;  %v8929_v59 = vld [vmem:[%s18565_s9 + $0xd8] sm:$0xff]  ;;  %v9140_v30 = vld [vmem:[%s18565_s9 + $0x188] sm:$0xff] }
 0xd2e   : > { %11105 = vmatmul.msk.f32.gmra.mxu3 %vm8546_vm5, %v8545_v58  ;;  %11120 = vmatmul.msk.f32.gmra.mxu2 %vm8546_vm5, %v11117_v37  ;;  %v11168_v58 = vld [vmem:[%s19212_s25 + $0x70] sm:$0xff]  ;;  %v11169_v37 = vld [vmem:[%s19212_s25 + $0x78] sm:$0x1] }
 0xd2f   : > { %11110 = vmatmul.msk.f32.gmra.mxu0 %vm8546_vm5, %v11107_v17  ;;  %11115 = vmatmul.msk.f32.gmra.mxu1 %vm8546_vm5, %v11112_v5  ;;  %v8933_v17 = vld [vmem:[%s18565_s9 + $0xf8] sm:$0xff]  ;;  %v8932_v5 = vld [vmem:[%s18565_s9 + $0xf0] sm:$0xff] }
 0xd30   : > { %8782 = vmatpush.msra.mxu1 %v8760_v29  ;;  %8811 = vmatpush.msrb.mxu2 %v8720_v7  ;;  %v9004_v29 = vld [vmem:[%s18565_s9 + $0x138] sm:$0xff] }
 0xd32   : > { %8783 = vmatpush.msra.mxu1 %v8759_v12  ;;  %8812 = vmatpush.msrb.mxu2 %v8719_v55  ;;  %v9003_v12 = vld [vmem:[%s18565_s9 + $0x130] sm:$0xff] }
 0xd34   : > { %8784 = vmatpush.msra.mxu1 %v8758_v57  ;;  %8813 = vmatpush.msrb.mxu2 %v8718_v52  ;;  %v8928_v57 = vld [vmem:[%s18565_s9 + $0xd0] sm:$0xff]  ;;  %v9139_v52 = vld [vmem:[%s18565_s9 + $0x180] sm:$0xff] }
 0xd36   : > { %8785 = vmatpush.msra.mxu1 %v8757_v51  ;;  %8814 = vmatpush.msrb.mxu2 %v8717_v63  ;;  %v9002_v51 = vld [vmem:[%s18565_s9 + $0x128] sm:$0xff]  ;;  %v9288_v63 = vld [vmem:[%s18565_s9 + $0x238] sm:$0xff] }
 0xd38   : > { %8786 = vmatpush.msra.mxu1 %v8756_v50  ;;  %8815 = vmatpush.msrb.mxu2 %v8716_v39  ;;  %v8927_v50 = vld [vmem:[%s18565_s9 + $0xc8] sm:$0xff]  ;;  %v9287_v39 = vld [vmem:[%s18565_s9 + $0x230] sm:$0xff] }
 0xd3a   : > { %8948 = vmatpush.msra.mxu2 %v8933_v17 }
 0xd3c   : > { %8949 = vmatpush.msra.mxu2 %v8932_v5 }
 0xd3e   : > { %8950 = vmatpush.msra.mxu2 %v8931_v9 }
 0xd40   : > { %8951 = vmatpush.msra.mxu2 %v8930_v4 }
 0xd42   : > { %8952 = vmatpush.msra.mxu2 %v8929_v59 }
 0xd44   : > { %8953 = vmatpush.msra.mxu2 %v8928_v57 }
 0xd46   : > { %8954 = vmatpush.msra.mxu2 %v8927_v50 }
 0xda4   : > { %v8605_v45 = vpop.f32.mrf.mxu0  ;;  %v8639_v43 = vpop.f32.mrf.mxu1 }
 0xda9   : > { %v8573_v18 = vpop.f32.mrf.mxu3  ;;  %v8673_v20 = vpop.f32.mrf.mxu2 }
 0xdaa   : > { %v8611_v38 = vmax.f32 %v8573_v18, %v8605_v45  ;;  %v8926_v45 = vld [vmem:[%s18565_s9 + $0xc0] sm:$0xff]  ;;  %v9000_v18 = vld [vmem:[%s18565_s9 + $0x118] sm:$0xff] }
 0xdab   : > { %8955 = vmatpush.msra.mxu2 %v8926_v45 }
 0xdac   : > { %v8608_v31 = vpop.f32.mrf.mxu0  ;;  %v8642_v48 = vpop.f32.mrf.mxu1  ;;  %v8645_v32 = vmax.f32 %v8611_v38, %v8639_v43  ;;  %v9001_v43 = vld [vmem:[%s18565_s9 + $0x120] sm:$0xff]  ;;  %v9074_v38 = vld [vmem:[%s18565_s9 + $0x170] sm:$0xff] }
 0xdae   : > { %v17964_v19 = vmax.f32 %v8645_v32, %v8673_v20  ;;  %v9075_v20 = vld [vmem:[%s18565_s9 + $0x178] sm:$0xff]  ;;  %v9072_v32 = vld [vmem:[%s18565_s9 + $0x160] sm:$0xff] }
 0xdb1   : > { %v8576_v3 = vpop.f32.mrf.mxu3  ;;  %v8676_v46 = vpop.f32.mrf.mxu2 }
 0xdb2   : > { %v8612_v34 = vmax.f32 %v8576_v3, %v8608_v31  ;;  %v8999_v31 = vld [vmem:[%s18565_s9 + $0x110] sm:$0xff]  ;;  %v9073_v3 = vld [vmem:[%s18565_s9 + $0x168] sm:$0xff] }
 0xdb4   : > { %v8646_v40 = vmax.f32 %v8612_v34, %v8642_v48  ;;  %v8998_v48 = vld [vmem:[%s18565_s9 + $0x108] sm:$0xff] }
 0xdb6   : > { %v17962_v14 = vmax.f32 %v8646_v40, %v8676_v46  ;;  %v8997_v46 = vld [vmem:[%s18565_s9 + $0x100] sm:$0xff]  ;;  %v9071_v40 = vld [vmem:[%s18565_s9 + $0x158] sm:$0xff] }
 0xdb8   : > { %11126 = vmatpush.msk.msra.mxu0 %vm1185_vm0, %v17962_v14  ;;  %11121 = vmatpush.msk.msra.mxu3 %vm1185_vm0, %v17962_v14 }
 0xdb9   : > { %11142 = vmatpush.msk.msrb.mxu1 %vm1185_vm0, %v17962_v14 }
 0xdba   : > { %8748 = vmatpush.msra.mxu0 %v17964_v19  ;;  %8708 = vmatpush.msra.mxu3 %v17964_v19 }
 0xdbb   : > { %11127 = vmatmul.msk.f32.vlgmr.msra.gmra.mxu0 %vm8683_vm6, %v11124_v35  ;;  %11122 = vmatmul.msk.f32.vlgmr.msra.gmra.mxu3 %vm8683_vm6, %v8681_v16  ;;  %v9145_v35 = vld [vmem:[%s18565_s9 + $0x1b0] sm:$0xff]  ;;  %v9069_v16 = vld [vmem:[%s18565_s9 + $0x148] sm:$0xff] }
 0xdbc   : > { %11135 = vmatpush.msk.msrb.mxu3 %vm1185_vm0, %v17962_v14  ;;  %8918 = vmatpush.msrb.mxu1 %v17964_v19 }
 0xdbd   : > { %8877 = vmatpush.msrb.mxu0 %v8862_v49  ;;  %v9286_v49 = vld [vmem:[%s18565_s9 + $0x228] sm:$0xff] }
 0xdbe   : > { %8847 = vmatpush.msrb.mxu3 %v17964_v19 }
 0xdbf   : > { %8878 = vmatpush.msrb.mxu0 %v8861_v11  ;;  %v9217_v11 = vld [vmem:[%s18565_s9 + $0x1f8] sm:$0xff] }
 0xdc0   : > { %11149 = vmatpush.msk.msra.mxu3 %vm1185_vm0, %v17962_v14 }
 0xdc1   : > { %8879 = vmatpush.msrb.mxu0 %v8860_v1 }
 0xdc2   : > { %8989 = vmatpush.msra.mxu3 %v17964_v19 }
 0xdc3   : > { %11128 = vmatmul.msk.f32.gmra.mxu0 %vm8683_vm6, %v11125_v15  ;;  %11123 = vmatmul.msk.f32.gmra.mxu3 %vm8683_vm6, %v8682_v26  ;;  %v9144_v15 = vld [vmem:[%s18565_s9 + $0x1a8] sm:$0xff] }
 0xdc4   : > { %8880 = vmatpush.msrb.mxu0 %v8859_v8 }
 0xdc6   : > { %8881 = vmatpush.msrb.mxu0 %v8858_v62  ;;  %v9285_v62 = vld [vmem:[%s18565_s9 + $0x220] sm:$0xff] }
 0xdc8   : > { %8882 = vmatpush.msrb.mxu0 %v8857_v56  ;;  %v9216_v56 = vld [vmem:[%s18565_s9 + $0x1f0] sm:$0xff] }
 0xdca   : > { %8883 = vmatpush.msrb.mxu0 %v8856_v2  ;;  %v9284_v2 = vld [vmem:[%s18565_s9 + $0x218] sm:$0xff] }
 0xdcb   : > { %11136 = vmatmul.msk.f32.vlgmr.msrb.gmra.mxu3 %vm8683_vm6, %v11133_v28 }
 0xdcc   : > { %11163 = vmatpush.msk.msrb.mxu3 %vm1185_vm0, %v17962_v14  ;;  %8884 = vmatpush.msrb.mxu0 %v8855_v42  ;;  %v9283_v42 = vld [vmem:[%s18565_s9 + $0x210] sm:$0xff] }
 0xdce   : > { %9131 = vmatpush.msrb.mxu3 %v17964_v19  ;;  %9019 = vmatpush.msra.mxu0 %v9004_v29 }
 0xdd0   : > { %9020 = vmatpush.msra.mxu0 %v9003_v12 }
 0xdd2   : > { %9021 = vmatpush.msra.mxu0 %v9002_v51 }
 0xdd3   : > { %11137 = vmatmul.msk.f32.gmra.mxu3 %vm8683_vm6, %v11134_v44  ;;  %v9068_v44 = vld [vmem:[%s18565_s9 + $0x140] sm:$0xff] }
 0xdd4   : > { %9022 = vmatpush.msra.mxu0 %v9001_v43 }
 0xdd6   : > { %9023 = vmatpush.msra.mxu0 %v9000_v18 }
 0xdd8   : > { %9024 = vmatpush.msra.mxu0 %v8999_v31 }
 0xdda   : > { %9025 = vmatpush.msra.mxu0 %v8998_v48 }
 0xddb   : > { %11150 = vmatmul.msk.f32.vlgmr.msra.gmra.mxu3 %vm8683_vm6, %v11147_v60  ;;  %v9143_v60 = vld [vmem:[%s18565_s9 + $0x1a0] sm:$0xff] }
 0xddc   : > { %11177 = vmatpush.msk.msra.mxu3 %vm1185_vm0, %v17962_v14  ;;  %9026 = vmatpush.msra.mxu0 %v8997_v46 }
 0xdde   : > { %9273 = vmatpush.msra.mxu3 %v17964_v19 }
 0xde3   : > { %11151 = vmatmul.msk.f32.gmra.mxu3 %vm8683_vm6, %v11148_v6  ;;  %v9215_v6 = vld [vmem:[%s18565_s9 + $0x1e8] sm:$0xff] }
 0xdeb   : > { %11164 = vmatmul.msk.f32.vlgmr.msrb.gmra.mxu3 %vm8683_vm6, %v11161_v25  ;;  %v9214_v25 = vld [vmem:[%s18565_s9 + $0x1e0] sm:$0xff] }
 0xdf3   : > { %11165 = vmatmul.msk.f32.gmra.mxu3 %vm8683_vm6, %v11162_v10 }
 0xdfb   : > { %11178 = vmatmul.msk.f32.vlgmr.msra.gmra.mxu3 %vm8683_vm6, %v11175_v22  ;;  %v9211_v22 = vld [vmem:[%s18565_s9 + $0x1c8] sm:$0xff] }
 0xe03   : > { %11179 = vmatmul.msk.f32.gmra.mxu3 %vm8683_vm6, %v11176_v47 }
 0xe38   : > { %v8750_v36 = vpop.f32.mrf.mxu0 }
 0xe39   : > { %11129 = vmatmul.msk.f32.vlgmr.msra.gmra.mxu1 %vm8764_vm7, %v8750_v36  ;;  %v9282_v36 = vld [vmem:[%s18565_s9 + $0x208] sm:$0xff] }
 0xe3a   : > { %11156 = vmatpush.msk.msra.mxu1 %vm1185_vm0, %v17962_v14 }
 0xe3c   : > { %9060 = vmatpush.msra.mxu1 %v17964_v19 }
 0xe3e   : > { %v8710_v0 = vpop.f32.mrf.mxu3 }
 0xe3f   : > { %11131 = vmatmul.msk.f32.vlgmr.msrb.gmra.mxu2 %vm8764_vm7, %v8710_v0  ;;  %v9213_v0 = vld [vmem:[%s18565_s9 + $0x1d8] sm:$0xff] }
 0xe40   : > { %v8753_v24 = vpop.f32.mrf.mxu0  ;;  %9090 = vmatpush.msrb.mxu2 %v9075_v20 }
 0xe41   : > { %11130 = vmatmul.msk.f32.gmra.mxu1 %vm8764_vm7, %v8753_v24 }
 0xe42   : > { %9091 = vmatpush.msrb.mxu2 %v9074_v38 }
 0xe44   : > { %9092 = vmatpush.msrb.mxu2 %v9073_v3 }
 0xe46   : > { %v8713_v61 = vpop.f32.mrf.mxu3  ;;  %9093 = vmatpush.msrb.mxu2 %v9072_v32 }
 0xe47   : > { %11132 = vmatmul.msk.f32.gmra.mxu2 %vm8764_vm7, %v8713_v61  ;;  %v9212_v61 = vld [vmem:[%s18565_s9 + $0x1d0] sm:$0xff] }
 0xe48   : > { %9094 = vmatpush.msrb.mxu2 %v9071_v40 }
 0xe49   : > { %11143 = vmatmul.msk.f32.vlgmr.msrb.gmra.mxu1 %vm8683_vm6, %v11140_v23  ;;  %v9281_v23 = vld [vmem:[%s18565_s9 + $0x200] sm:$0xff] }
 0xe4a   : > { %11170 = vmatpush.msk.msrb.mxu1 %vm1185_vm0, %v17962_v14  ;;  %v9146_v14 = vld [vmem:[%s18565_s9 + $0x1b8] sm:$0xff] }
 0xe4c   : > { %9202 = vmatpush.msrb.mxu1 %v17964_v19  ;;  %v9070_v19 = vld [vmem:[%s18565_s9 + $0x150] sm:$0xff] }
 0xe4d   : > { %9095 = vmatpush.msrb.mxu2 %v9070_v19 }
 0xe4e   : > { %v8849_v27 = vpop.f32.mrf.mxu3 }
 0xe4f   : > { %11138 = vmatmul.msk.f32.vlgmr.msrb.gmra.mxu0 %vm8764_vm7, %v8849_v27  ;;  %9096 = vmatpush.msrb.mxu2 %v9069_v16 }
 0xe50   : > { %9161 = vmatpush.msrb.mxu0 %v9146_v14 }
 0xe51   : > { %11144 = vmatmul.msk.f32.gmra.mxu1 %vm8683_vm6, %v11141_v13  ;;  %9097 = vmatpush.msrb.mxu2 %v9068_v44  ;;  %v9210_v13 = vld [vmem:[%s18565_s9 + $0x1c0] sm:$0xff] }
 0xe52   : > { %9162 = vmatpush.msrb.mxu0 %v9145_v35 }
 0xe54   : > { %9163 = vmatpush.msrb.mxu0 %v9144_v15 }
 0xe56   : > { %v8852_v33 = vpop.f32.mrf.mxu3  ;;  %9164 = vmatpush.msrb.mxu0 %v9143_v60 }
 0xe57   : > { %11139 = vmatmul.msk.f32.gmra.mxu0 %vm8764_vm7, %v8852_v33 }
 0xe58   : > { %9165 = vmatpush.msrb.mxu0 %v9142_v21 }
 0xe59   : > { %11157 = vmatmul.msk.f32.vlgmr.msra.gmra.mxu1 %vm8683_vm6, %v11154_v41 }
 0xe5a   : > { %9166 = vmatpush.msrb.mxu0 %v9141_v54 }
 0xe5c   : > { %9167 = vmatpush.msrb.mxu0 %v9140_v30 }
 0xe5e   : > { %v8991_v34 = vpop.f32.mrf.mxu3  ;;  %9168 = vmatpush.msrb.mxu0 %v9139_v52  ;;  %v9328_v52 = vld [vmem:[%s18567_s11] sm:$0xf] }
 0xe5f   : > { %11152 = vmatmul.msk.f32.vlgmr.msra.gmra.mxu0 %vm8764_vm7, %v8991_v34 }
 0xe60   : > { %9303 = vmatpush.msra.mxu0 %v9288_v63  ;;  %v11187_v63 = vld [vmem:[%s18567_s11 + $0x8] sm:$0xf] }
 0xe61   : > { %11158 = vmatmul.msk.f32.gmra.mxu1 %vm8683_vm6, %v11155_v53 }
 0xe62   : > { %9304 = vmatpush.msra.mxu0 %v9287_v39  ;;  %v9473_v39 = vld [vmem:[%s18568_s12 + $0x78] sm:$0xff] }
 0xe64   : > { %9305 = vmatpush.msra.mxu0 %v9286_v49  ;;  %v11190_v49 = vld [vmem:[%s18567_s11 + $0xc] sm:$0xf] }
 0xe66   : > { %v8994_v28 = vpop.f32.mrf.mxu3  ;;  %9306 = vmatpush.msra.mxu0 %v9285_v62  ;;  %v9471_v62 = vld [vmem:[%s18568_s12 + $0x68] sm:$0xff] }
 0xe67   : > { %11153 = vmatmul.msk.f32.gmra.mxu0 %vm8764_vm7, %v8994_v28 }
 0xe68   : > { %9307 = vmatpush.msra.mxu0 %v9284_v2  ;;  %v9440_v2 = vld [vmem:[%s18568_s12 + $0x30] sm:$0xff] }
 0xe69   : > { %11171 = vmatmul.msk.f32.vlgmr.msrb.gmra.mxu1 %vm8683_vm6, %v11168_v58 }
 0xe6a   : > { %9308 = vmatpush.msra.mxu0 %v9283_v42  ;;  %v9537_v42 = vld [vmem:[%s18568_s12 + $0xf8] sm:$0xff] }
 0xe6c   : > { %9309 = vmatpush.msra.mxu0 %v9282_v36  ;;  %v9536_v36 = vld [vmem:[%s18568_s12 + $0xf0] sm:$0xff] }
 0xe6e   : > { %v9133_v55 = vpop.f32.mrf.mxu3  ;;  %9310 = vmatpush.msra.mxu0 %v9281_v23  ;;  %v9502_v23 = vld [vmem:[%s18568_s12 + $0xa0] sm:$0xff] }
 0xe6f   : > { %11166 = vmatmul.msk.f32.vlgmr.msrb.gmra.mxu0 %vm8764_vm7, %v9133_v55  ;;  %v11184_v55 = vld [vmem:[%s18567_s11 + $0x4] sm:$0xf] }
 0xe71   : > { %11172 = vmatmul.msk.f32.gmra.mxu1 %vm8683_vm6, %v11169_v37 }
 0xe76   : > { %v9136_v8 = vpop.f32.mrf.mxu3 }
 0xe77   : > { %11167 = vmatmul.msk.f32.gmra.mxu0 %vm8764_vm7, %v9136_v8  ;;  %v9505_v8 = vld [vmem:[%s18568_s12 + $0xb8] sm:$0xff] }
 0xe7e   : > { %v9275_v10 = vpop.f32.mrf.mxu3 }
 0xe7f   : > { %11180 = vmatmul.msk.f32.vlgmr.msra.gmra.mxu0 %vm8764_vm7, %v9275_v10  ;;  %v9470_v10 = vld [vmem:[%s18568_s12 + $0x60] sm:$0xff] }
 0xe86   : > { %v9278_v47 = vpop.f32.mrf.mxu3 }
 0xe87   : > { %11181 = vmatmul.msk.f32.gmra.mxu0 %vm8764_vm7, %v9278_v47  ;;  %v9436_v47 = vld [vmem:[%s18568_s12 + $0x10] sm:$0xff] }
 0xeb6   : > { %v18198_v26 = vpop.f32.mrf.mxu1 }
 0xebe   : > { %v18216_v7 = vpop.f32.mrf.mxu1 }
 0xec2   : > { %v8817_v37 = vpop.f32.mrf.mxu2 }
 0xec3   : > { %v8818_v50 = vadd.f32 %v8817_v37, %v18198_v26  ;;  %v11234_v26 = vld [vmem:[%s18566_s10] ss:$0 sm:$0xff]  ;;  %v9532_v37 = vld [vmem:[%s18568_s12 + $0xd0] sm:$0xff] }
 0xec6   : > { %v8920_v1 = vpop.f32.mrf.mxu1 }
 0xec7   : > { %11145 = vmatmul.msk.f32.vlgmr.msra.gmra.mxu2 %vm8764_vm7, %v8920_v1  ;;  %v9472_v1 = vld [vmem:[%s18568_s12 + $0x70] sm:$0xff] }
 0xec8   : > { %9232 = vmatpush.msra.mxu2 %v9217_v11  ;;  %v9441_v11 = vld [vmem:[%s18568_s12 + $0x38] sm:$0xff] }
 0xec9   : > { %9453 = vmatpush.msrb.mxu0 %v9441_v11 }
 0xeca   : > { %9233 = vmatpush.msra.mxu2 %v9216_v56  ;;  %v8820_v9 = vpop.f32.mrf.mxu2  ;;  %v9504_v56 = vld [vmem:[%s18568_s12 + $0xb0] sm:$0xff] }
 0xecb   : > { %v8821_v18 = vadd.f32 %v8820_v9, %v18216_v7  ;;  %9454 = vmatpush.msrb.mxu0 %v9440_v2  ;;  %v9499_v9 = vld [vmem:[%s18568_s12 + $0x88] sm:$0xff]  ;;  %v9602_v2 = vld [vmem:[%s18572_s16 + $0x30] sm:$0xff] }
 0xecc   : > { %9234 = vmatpush.msra.mxu2 %v9215_v6  ;;  %v8886_v58 = vpop.f32.mrf.mxu0  ;;  %v9439_v6 = vld [vmem:[%s18568_s12 + $0x28] sm:$0xff] }
 0xecd   : > { %v8892_v45 = vadd.f32 %v8886_v58, %v8818_v50  ;;  %9455 = vmatpush.msrb.mxu0 %v9439_v6  ;;  %v9435_v58 = vld [vmem:[%s18568_s12 + $0x8] sm:$0xff]  ;;  %v9600_v6 = vld [vmem:[%s18572_s16 + $0x20] sm:$0xff] }
 0xece   : > { %v8923_v24 = vpop.f32.mrf.mxu1  ;;  %9235 = vmatpush.msra.mxu2 %v9214_v25  ;;  %v9503_v25 = vld [vmem:[%s18568_s12 + $0xa8] sm:$0xff] }
 0xecf   : > { %11146 = vmatmul.msk.f32.gmra.mxu2 %vm8764_vm7, %v8923_v24  ;;  %v9535_v24 = vld [vmem:[%s18568_s12 + $0xe8] sm:$0xff] }
 0xed0   : > { %9236 = vmatpush.msra.mxu2 %v9213_v0  ;;  %v9438_v0 = vld [vmem:[%s18568_s12 + $0x20] sm:$0xff] }
 0xed1   : > { %9456 = vmatpush.msrb.mxu0 %v9438_v0  ;;  %v9597_v0 = vld [vmem:[%s18572_s16 + $0x8] sm:$0xff] }
 0xed2   : > { %9237 = vmatpush.msra.mxu2 %v9212_v61  ;;  %v9437_v61 = vld [vmem:[%s18568_s12 + $0x18] sm:$0xff] }
 0xed3   : > { %9457 = vmatpush.msrb.mxu0 %v9437_v61  ;;  %v9669_v61 = vld [vmem:[%s18576_s20 + $0x28] sm:$0xff] }
 0xed4   : > { %9238 = vmatpush.msra.mxu2 %v9211_v22  ;;  %v8889_v17 = vpop.f32.mrf.mxu0  ;;  %v9534_v22 = vld [vmem:[%s18568_s12 + $0xe0] sm:$0xff] }
 0xed5   : > { %v8893_v31 = vadd.f32 %v8889_v17, %v8821_v18  ;;  %9458 = vmatpush.msrb.mxu0 %v9436_v47  ;;  %v9467_v17 = vld [vmem:[%s18568_s12 + $0x48] sm:$0xff] }
 0xed6   : > { %v9062_v27 = vpop.f32.mrf.mxu1  ;;  %9239 = vmatpush.msra.mxu2 %v9210_v13  ;;  %v9469_v13 = vld [vmem:[%s18568_s12 + $0x58] sm:$0xff] }
 0xed7   : > { %11159 = vmatmul.msk.f32.vlgmr.msrb.gmra.mxu2 %vm8764_vm7, %v9062_v27  ;;  %v9501_v27 = vld [vmem:[%s18568_s12 + $0x98] sm:$0xff]  ;;  %9459 = vmatpush.msrb.mxu0 %v9435_v58  ;;  %v9666_v58 = vld [vmem:[%s18576_s20 + $0x10] sm:$0xff] }
 0xedc   : > { %v9028_v5 = vpop.f32.mrf.mxu0 }
 0xede   : > { %v9065_v41 = vpop.f32.mrf.mxu1 }
 0xedf   : > { %11160 = vmatmul.msk.f32.gmra.mxu2 %vm8764_vm7, %v9065_v41  ;;  %v9533_v41 = vld [vmem:[%s18568_s12 + $0xd8] sm:$0xff] }
 0xee4   : > { %v9031_v59 = vpop.f32.mrf.mxu0 }
 0xee6   : > { %v9204_v33 = vpop.f32.mrf.mxu1 }
 0xee7   : > { %11173 = vmatmul.msk.f32.vlgmr.msra.gmra.mxu2 %vm8764_vm7, %v9204_v33  ;;  %v9468_v33 = vld [vmem:[%s18568_s12 + $0x50] sm:$0xff] }
 0xeec   : > { %v9170_v12 = vpop.f32.mrf.mxu0 }
 0xeee   : > { %v9207_v53 = vpop.f32.mrf.mxu1 }
 0xeef   : > { %11174 = vmatmul.msk.f32.gmra.mxu2 %vm8764_vm7, %v9207_v53  ;;  %v9500_v53 = vld [vmem:[%s18568_s12 + $0x90] sm:$0xff] }
 0xef4   : > { %v9173_v51 = vpop.f32.mrf.mxu0 }
 0xefc   : > { %v9312_v48 = vpop.f32.mrf.mxu0 }
 0xf04   : > { %v9315_v15 = vpop.f32.mrf.mxu0 }
 0xf4a   : > { %v8957_v4 = vpop.f32.mrf.mxu2 }
 0xf4b   : > { %v8963_v20 = vadd.f32 %v8957_v4, %v8892_v45  ;;  %v9434_v4 = vld [vmem:[%s18568_s12] sm:$0xff] }
 0xf4c   : > { %9460 = vmatpush.msrb.mxu0 %v9434_v4  ;;  %v9702_v4 = vld [vmem:[%s18578_s22 + $0x28] sm:$0xff] }
 0xf4d   : > { %v9034_v38 = vadd.f32 %v9028_v5, %v8963_v20  ;;  %v9466_v5 = vld [vmem:[%s18568_s12 + $0x40] sm:$0xff] }
 0xf52   : > { %v8960_v29 = vpop.f32.mrf.mxu2 }
 0xf53   : > { %v8964_v3 = vadd.f32 %v8960_v29, %v8893_v31  ;;  %v9498_v29 = vld [vmem:[%s18568_s12 + $0x80] sm:$0xff] }
 0xf55   : > { %v9035_v32 = vadd.f32 %v9031_v59, %v8964_v3  ;;  %v9531_v59 = vld [vmem:[%s18568_s12 + $0xc8] sm:$0xff] }
 0xf5a   : > { %v9099_v57 = vpop.f32.mrf.mxu2 }
 0xf5b   : > { %v9105_v34 = vadd.f32 %v9099_v57, %v9034_v38 }
 0xf5d   : > { %v9176_v40 = vadd.f32 %v9170_v12, %v9105_v34  ;;  %v9530_v12 = vld [vmem:[%s18568_s12 + $0xc0] sm:$0xff]  ;;  %v9569_v34 = vld [vmem:[%s18570_s14 + $0x30] sm:$0xff] }
 0xf62   : > { %v9102_v43 = vpop.f32.mrf.mxu2 }
 0xf63   : > { %v9106_v14 = vadd.f32 %v9102_v43, %v9035_v32  ;;  %v9567_v32 = vld [vmem:[%s18570_s14 + $0x20] sm:$0xff] }
 0xf65   : > { %v9177_v35 = vadd.f32 %v9173_v51, %v9106_v14  ;;  %v9565_v14 = vld [vmem:[%s18570_s14 + $0x10] sm:$0xff] }
 0xf6a   : > { %v9241_v46 = vpop.f32.mrf.mxu2 }
 0xf6b   : > { %v9247_v19 = vadd.f32 %v9241_v46, %v9176_v40  ;;  %v9568_v46 = vld [vmem:[%s18570_s14 + $0x28] sm:$0xff]  ;;  %v9566_v40 = vld [vmem:[%s18570_s14 + $0x18] sm:$0xff] }
 0xf6d   : > { %v9318_v28 = vadd.f32 %v9312_v48, %v9247_v19  ;;  %v9570_v48 = vld [vmem:[%s18570_s14 + $0x38] sm:$0xff]  ;;  %v9564_v19 = vld [vmem:[%s18570_s14 + $0x8] sm:$0xff] }
 0xf6e   : > { %9583 = vmatpush.msra.mxu0 %v9570_v48  ;;  %v9672_v48 = vld [vmem:[%s18577_s21] sm:$0x1] }
 0xf6f   : > { %v9324_v21 = vadd.f32 %v11234_v26, %v9318_v28  ;;  %v9633_v28 = vld [vmem:[%s18574_s18 + $0x28] sm:$0xff] }
 0xf70   : > { %9584 = vmatpush.msra.mxu0 %v9569_v34 }
 0xf71   : > { %v9326_v7 = vmax.f32 %v9324_v21, 0.0  ;;  %v9629_v21 = vld [vmem:[%s18574_s18 + $0x8] sm:$0xff] }
 0xf72   : > { %v9244_v16 = vpop.f32.mrf.mxu2  ;;  %9585 = vmatpush.msra.mxu0 %v9568_v46 }
 0xf73   : > { %v9248_v44 = vadd.f32 %v9244_v16, %v9177_v35  ;;  %v9563_v35 = vld [vmem:[%s18570_s14] sm:$0xff]  ;;  %v9635_v16 = vld [vmem:[%s18574_s18 + $0x38] sm:$0xff] }
 0xf74   : > { %9586 = vmatpush.msra.mxu0 %v9567_v32 }
 0xf75   : > { %v9319_v60 = vadd.f32 %v9315_v15, %v9248_v44  ;;  %v9634_v15 = vld [vmem:[%s18574_s18 + $0x30] sm:$0xff]  ;;  %v9631_v44 = vld [vmem:[%s18574_s18 + $0x18] sm:$0xff] }
 0xf76   : > { %9587 = vmatpush.msra.mxu0 %v9566_v40  ;;  %v9705_v40 = vld [vmem:[#allocation2] sm:$0x1] }
 0xf77   : > { %v9325_v54 = vadd.f32 %v11234_v26, %v9319_v60  ;;  %v9632_v26 = vld [vmem:[%s18574_s18 + $0x20] sm:$0xff]  ;;  %v9630_v60 = vld [vmem:[%s18574_s18 + $0x10] sm:$0xff] }
 0xf78   : > { %9588 = vmatpush.msra.mxu0 %v9565_v14 }
 0xf79   : > { %v9327_v30 = vmax.f32 %v9325_v54, 0.0  ;;  %v9628_v54 = vld [vmem:[%s18574_s18] sm:$0xff] }
 0xf7a   : > { %9589 = vmatpush.msra.mxu0 %v9564_v19 }
 0xf7b   : > { %11182 = vmatpush.msk.msra.mxu1 %vm1185_vm0, %v9327_v30  ;;  %11185 = vmatpush.msk.msrb.mxu2 %vm1185_vm0, %v9327_v30 }
 0xf7c   : > { %11188 = vmatpush.msk.msrb.mxu3 %vm1185_vm0, %v9327_v30  ;;  %9590 = vmatpush.msra.mxu0 %v9563_v35 }
 0xf7d   : > { %9350 = vmatpush.msra.mxu1 %v9326_v7  ;;  %9375 = vmatpush.msrb.mxu2 %v9326_v7 }
 0xf7e   : > { %9401 = vmatpush.msrb.mxu3 %v9326_v7  ;;  %11186 = vmatmul.msk.f32.vlgmr.msrb.gmra.mxu2 %vm8683_vm6, %v11184_v55 }
 0xf7f   : > { %11191 = vmatpush.msk.msrb.mxu1 %vm1185_vm0, %v9327_v30  ;;  %11189 = vmatmul.msk.f32.vlgmr.msrb.gmra.mxu3 %vm8683_vm6, %v11187_v63  ;;  %v9433_v30 = vld [vmem:[%s18569_s13] sm:$0x1] }
 0xf80   : > { %11183 = vmatmul.msk.f32.vlgmr.msra.gmra.mxu1 %vm8683_vm6, %v9328_v52  ;;  %9485 = vmatpush.msra.mxu2 %v9473_v39 }
 0xf81   : > { %9427 = vmatpush.msrb.mxu1 %v9326_v7  ;;  %9517 = vmatpush.msra.mxu3 %v9505_v8 }
 0xf82   : > { %9486 = vmatpush.msra.mxu2 %v9472_v1 }
 0xf83   : > { %9549 = vmatpush.msra.mxu1 %v9537_v42  ;;  %9518 = vmatpush.msra.mxu3 %v9504_v56  ;;  %v9603_v56 = vld [vmem:[%s18572_s16 + $0x38] sm:$0xff]  ;;  %v9601_v42 = vld [vmem:[%s18572_s16 + $0x28] sm:$0xff] }
 0xf84   : > { %9487 = vmatpush.msra.mxu2 %v9471_v62 }
 0xf85   : > { %9550 = vmatpush.msra.mxu1 %v9536_v36  ;;  %9519 = vmatpush.msra.mxu3 %v9503_v25  ;;  %v9599_v36 = vld [vmem:[%s18572_s16 + $0x18] sm:$0xff]  ;;  %v9598_v25 = vld [vmem:[%s18572_s16 + $0x10] sm:$0xff] }
 0xf86   : > { %9488 = vmatpush.msra.mxu2 %v9470_v10  ;;  %v9671_v10 = vld [vmem:[%s18576_s20 + $0x38] sm:$0xff] }
 0xf87   : > { %9551 = vmatpush.msra.mxu1 %v9535_v24  ;;  %9520 = vmatpush.msra.mxu3 %v9502_v23  ;;  %v9596_v24 = vld [vmem:[%s18572_s16] sm:$0xff]  ;;  %v9670_v23 = vld [vmem:[%s18576_s20 + $0x30] sm:$0xff] }
 0xf88   : > { %11192 = vmatmul.msk.f32.vlgmr.msrb.gmra.mxu1 %vm8683_vm6, %v11190_v49  ;;  %9489 = vmatpush.msra.mxu2 %v9469_v13  ;;  %v9571_v13 = vld [vmem:[%s18571_s15] sm:$0x1] }
 0xf89   : > { %9552 = vmatpush.msra.mxu1 %v9534_v22  ;;  %9521 = vmatpush.msra.mxu3 %v9501_v27 }
 0xf8a   : > { %9490 = vmatpush.msra.mxu2 %v9468_v33  ;;  %v9668_v33 = vld [vmem:[%s18576_s20 + $0x20] sm:$0xff] }
 0xf8b   : > { %9553 = vmatpush.msra.mxu1 %v9533_v41  ;;  %9522 = vmatpush.msra.mxu3 %v9500_v53  ;;  %v9667_v53 = vld [vmem:[%s18576_s20 + $0x18] sm:$0xff] }
 0xf8c   : > { %9491 = vmatpush.msra.mxu2 %v9467_v17  ;;  %v9664_v17 = vld [vmem:[%s18576_s20] sm:$0xff] }
 0xf8d   : > { %9554 = vmatpush.msra.mxu1 %v9532_v37  ;;  %9523 = vmatpush.msra.mxu3 %v9499_v9  ;;  %v9665_v37 = vld [vmem:[%s18576_s20 + $0x8] sm:$0xff]  ;;  %v9703_v9 = vld [vmem:[%s18578_s22 + $0x30] sm:$0xff] }
 0xf8e   : > { %9492 = vmatpush.msra.mxu2 %v9466_v5  ;;  %v9704_v5 = vld [vmem:[%s18578_s22 + $0x38] sm:$0xff] }
 0xf8f   : > { %9555 = vmatpush.msra.mxu1 %v9531_v59  ;;  %9524 = vmatpush.msra.mxu3 %v9498_v29  ;;  %v11316_v59 = vmov 0.0   ;;  %v9636_v29 = vld [vmem:[%s18575_s19] sm:$0x1] }
 0xf90   : > { %9616 = vmatpush.msrb.mxu2 %v9603_v56  ;;  %9729 = vst [vmem:[%s18519_s1] sm:$0x1] %v11316_v59 }
 0xf91   : > { %9556 = vmatpush.msra.mxu1 %v9530_v12  ;;  %9651 = vmatpush.msrb.mxu3 %v9635_v16 }
 0xf92   : > { %9617 = vmatpush.msrb.mxu2 %v9602_v2 }
 0xf93   : > { %9652 = vmatpush.msrb.mxu3 %v9634_v15  ;;  %9684 = vmatpush.msrb.mxu1 %v9671_v10 }
 0xf94   : > { %9618 = vmatpush.msrb.mxu2 %v9601_v42 }
 0xf95   : > { %9653 = vmatpush.msrb.mxu3 %v9633_v28  ;;  %9685 = vmatpush.msrb.mxu1 %v9670_v23 }
 0xf96   : > { %9619 = vmatpush.msrb.mxu2 %v9600_v6 }
 0xf97   : > { %9654 = vmatpush.msrb.mxu3 %v9632_v26  ;;  %9686 = vmatpush.msrb.mxu1 %v9669_v61 }
 0xf98   : > { %9620 = vmatpush.msrb.mxu2 %v9599_v36 }
 0xf99   : > { %9655 = vmatpush.msrb.mxu3 %v9631_v44  ;;  %9687 = vmatpush.msrb.mxu1 %v9668_v33 }
 0xf9a   : > { %9621 = vmatpush.msrb.mxu2 %v9598_v25 }
 0xf9b   : > { %9656 = vmatpush.msrb.mxu3 %v9630_v60  ;;  %9688 = vmatpush.msrb.mxu1 %v9667_v53 }
 0xf9c   : > { %9622 = vmatpush.msrb.mxu2 %v9597_v0 }
 0xf9d   : > { %9657 = vmatpush.msrb.mxu3 %v9629_v21  ;;  %9689 = vmatpush.msrb.mxu1 %v9666_v58 }
 0xf9e   : > { %9623 = vmatpush.msrb.mxu2 %v9596_v24 }
 0xf9f   : > { %9658 = vmatpush.msrb.mxu3 %v9628_v54  ;;  %9690 = vmatpush.msrb.mxu1 %v9665_v37 }
 0xfa1   : > { %9691 = vmatpush.msrb.mxu1 %v9664_v17 }
 0xffd   : > { %v9352_v57 = vpop.f32.mrf.mxu1 }
0x1001   : > { %v9377_v51 = vpop.f32.mrf.mxu2 }
0x1002   : > { %v9380_v50 = vmax.f32 %v9352_v57, %v9377_v51  ;;  %v9403_v45 = vpop.f32.mrf.mxu3 }
0x1004   : > { %v9406_v18 = vmax.f32 %v9380_v50, %v9403_v45  ;;  %v9604_v50 = vld [vmem:[%s18573_s17] sm:$0x1] }
0x1005   : > { %v9429_v43 = vpop.f32.mrf.mxu1 }
0x1006   : > { %v9432_v20 = vmax.f32 %v9406_v18, %v9429_v43  ;;  %v9701_v18 = vld [vmem:[%s18578_s22 + $0x20] sm:$0xff] }
0x1008   : > { %v9474_v31 = vrot.slane %v9432_v20, 1  ;;  %v9506_v38 = vrot.slane %v9432_v20, 2  ;;  %v9538_v3 = vrot.slane %v9432_v20, 3  ;;  %11193 = vmatmul.msk.f32.vlgmr.msrb.gmra.mxu0 %vm8764_vm7, %v9432_v20  ;;  %v9700_v20 = vld [vmem:[%s18578_s22 + $0x18] sm:$0xff] }
0x1009   : > { %9717 = vmatpush.msrb.mxu0 %v9704_v5 }
0x100a   : > { %11194 = vmatmul.msk.f32.vlgmr.msra.gmra.mxu2 %vm8764_vm7, %v9474_v31  ;;  %11195 = vmatmul.msk.f32.vlgmr.msra.gmra.mxu3 %vm8764_vm7, %v9506_v38  ;;  %v9699_v31 = vld [vmem:[%s18578_s22 + $0x10] sm:$0xff]  ;;  %v9698_v38 = vld [vmem:[%s18578_s22 + $0x8] sm:$0xff] }
0x100b   : > { %11196 = vmatmul.msk.f32.vlgmr.msra.gmra.mxu1 %vm8764_vm7, %v9538_v3  ;;  %9718 = vmatpush.msrb.mxu0 %v9703_v9  ;;  %v9697_v3 = vld [vmem:[%s18578_s22] sm:$0xff] }
0x100d   : > { %9719 = vmatpush.msrb.mxu0 %v9702_v4 }
0x100f   : > { %9720 = vmatpush.msrb.mxu0 %v9701_v18 }
0x1011   : > { %9721 = vmatpush.msrb.mxu0 %v9700_v20 }
0x1013   : > { %9722 = vmatpush.msrb.mxu0 %v9699_v31 }
0x1015   : > { %9723 = vmatpush.msrb.mxu0 %v9698_v38 }
0x1017   : > { %9724 = vmatpush.msrb.mxu0 %v9697_v3 }
0x1085   : > { %v9462_v7 = vpop.f32.mrf.mxu0 }
0x1086   : > { %v9465_v55 = vadd.f32 %v9462_v7, %v9433_v30 }
0x1088   : > { %v9558_v11 = vpop.f32.mrf.mxu1 }
0x108d   : > { %v9494_v52 = vpop.f32.mrf.mxu2  ;;  %v9526_v39 = vpop.f32.mrf.mxu3 }
0x108e   : > { %v9497_v63 = vadd.f32 %v9494_v52, %v9465_v55 }
0x1090   : > { %v9529_v49 = vadd.f32 %v9526_v39, %v9497_v63 }
0x1092   : > { %v9561_v1 = vadd.f32 %v9558_v11, %v9529_v49 }
0x1094   : > { %11235 = vtanh.f32 %v9561_v1  ;;  %v9638_v8 = vperm.slane %v9561_v1, 0 }
0x1096   : > { %9639 = vrot.lane.b32.xlu0 %v9638_v8, %s11315_s2 }
0x109a   : > { %v11236_v62 = vpop.eup %11235 }
0x109b   : > { %11197 = vmatmul.msk.f32.vlgmr.msra.gmra.mxu0 %vm8764_vm7, %v11236_v62 }
0x1108   : > { %v9640_v22 = vpop.permute.xlu0 %9639 }
0x1109   : > { %11199 = vmatmul.msk.f32.vlgmr.msrb.gmra.mxu3 %vm8764_vm7, %v9640_v22 }
0x1118   : > { %v9592_v27 = vpop.f32.mrf.mxu0 }
0x1119   : > { %v9593_v47 = vadd.f32 %v9592_v27, %v9571_v13 }
0x111b   : > { %11237 = vtanh.f32 %v9593_v47 }
0x1121   : > { %v11238_v41 = vpop.eup %11237 }
0x1122   : > { %11198 = vmatmul.msk.f32.vlgmr.msrb.gmra.mxu2 %vm8764_vm7, %v11238_v41 }
0x118c   : > { %v9660_v12 = vpop.f32.mrf.mxu3 }
0x118d   : > { %v9661_v57 = vadd.f32 %v9660_v12, %v9636_v29 }
0x118f   : > { %11239 = vtanh.f32 %v9661_v57 }
0x1195   : > { %v11240_v51 = vpop.eup %11239 }
0x1196   : > { %11200 = vmatmul.msk.f32.vlgmr.msrb.gmra.mxu1 %vm8764_vm7, %v11240_v51 }
0x11a5   : > { %v9625_v45 = vpop.f32.mrf.mxu2 }
0x11a6   : > { %v9626_v43 = vadd.f32 %v9625_v45, %v9604_v50 }
0x11a8   : > { %9731 = vst.msk [vmem:[%s18519_s1] sm:$0x1] %vm9730_vm8, %v9626_v43 }
0x1213   : > { %v9693_v34 = vpop.f32.mrf.mxu1 }
0x1214   : > { %v9694_v46 = vadd.f32 %v9693_v34, %v9672_v48 }
0x1216   : > { %11241 = vtanh.f32 %v9694_v46 }
0x121c   : > { %v11242_v32 = vpop.eup %11241 }
0x121d   : > { %11201 = vmatmul.msk.f32.vlgmr.msrb.gmra.mxu0 %vm8764_vm7, %v11242_v32 }
0x129a   : > { %v9726_v14 = vpop.f32.mrf.mxu0 }
0x129b   : > { %v9727_v19 = vadd.f32 %v9726_v14, %v9705_v40 }
0x129d   : > { %9733 = vrot.lane.b32.xlu0 %v9727_v19, %s11317_s4 }
0x130f   : > { %v9734_v35 = vpop.permute.xlu0 %9733 }
0x1310   : > { %9737 = vst.msk [vmem:[%s18519_s1] sm:$0x1] %vm9736_vm9, %v9734_v35 }
0x1311 PF: > { %s36_s27 = sadd.s32 1, %s11313_s27  }
0x1312   : > { %p33_p4 = scmp.ge.s32.totalorder %s36_s27, 4  }
0x1314   :  { %35 = sbr.rel (!%p33_p4) target bundleno = 10 (0xa), region = 178 }

</bundles_post_ra>
